<compile_context>
chip_gen: v7x
topology: tpu7x:2x2x1
jax: 0.10.0
libtpu: 0.0.40
codegen_flags: <defaults>
</compile_context>

<pallas_src>
import functools

import jax
import jax.numpy as jnp
from jax.experimental import pallas as pl
from jax.experimental.pallas import tpu as pltpu

_BN_EPS = 1e-5
_C = 256   # trunk channel width (fixed by the module)


# ----------------------------------------------------------------------------
# Fused forward kernel
# ----------------------------------------------------------------------------
def _fused_forward_kernel(
    # inputs
    cp_ref, x_ref, w_ref, scale_ref, bias_ref,
    pw_ref, ps_ref, pb_ref, pfc_w0_ref, pfc_w1_ref, pfc_b_ref,
    vw_ref, vs_ref, vb_ref, vfc1_ref, vfc1_b_ref, vfc2_w_ref, vfc2_b_ref,
    # outputs
    value_ref, policy_ref,
    # scratch
    a_ref, b_ref, pad_ref, col_ref,
    *, N, H, W, Cin, A, L):
  C = _C
  S = H * W
  M = N * S
  j = pl.program_id(0)

  # --- step 0: bring the (channel-padded) input into the resident activation.
  @pl.when(j == 0)
  def _init():
    pad_ref[...] = jnp.zeros_like(pad_ref)   # zero halo; border never rewritten
    a_ref[...] = jnp.zeros_like(a_ref)       # zero-padded input channels
    xv = x_ref[...].reshape(M, Cin) * cp_ref[0]      # x = input * crnt_player
    a_ref[:, 0:Cin] = xv

  # --- fill the halo-buffer interior from the right source:
  #     a_ref: stem + first conv of each residual block
  #     b_ref: second conv of each residual block
  @pl.when((j == 0) | (j % 2 == 1))
  def _pad_from_a():
    pad_ref[:, 1:H + 1, 1:W + 1, :] = a_ref[...].reshape(N, H, W, C)

  @pl.when((j > 0) & (j % 2 == 0))
  def _pad_from_b():
    pad_ref[:, 1:H + 1, 1:W + 1, :] = b_ref[...].reshape(N, H, W, C)

  # --- im2col: 9 shifted windows -> (M, 9*C) bf16 scratch (aligned stores).
  for t in range(9):
    dy, dx = divmod(t, 3)
    patch = pad_ref[:, dy:dy + H, dx:dx + W, :]            # (N,H,W,C) f32
    col_ref[:, t * C:(t + 1) * C] = patch.reshape(M, C).astype(jnp.bfloat16)

  # --- one deep-K MXU matmul (bf16 in, f32 accumulate) + folded BN in f32.
  y = jnp.dot(col_ref[...], w_ref[0], preferred_element_type=jnp.float32)
  y = y * scale_ref[0] + bias_ref[0]                       # (M, C) f32

  # --- writeback (+ residual) + ReLU
  @pl.when(j == 0)
  def _wb_stem():
    a_ref[...] = jnp.maximum(y, 0.0)

  @pl.when(j % 2 == 1)
  def _wb_first():
    b_ref[...] = jnp.maximum(y, 0.0)

  @pl.when((j > 0) & (j % 2 == 0))
  def _wb_second():
    a_ref[...] = jnp.maximum(y + a_ref[...], 0.0)          # residual add

  # --- heads, fused on the last layer; intermediates never leave VMEM.
  @pl.when(j == L - 1)
  def _heads():
    hb = a_ref[...].astype(jnp.bfloat16)                   # (M, C)

    # Value head: 1x1 conv -> BN -> relu -> NCHW flatten -> fc1 -> relu
    #             -> fc2 -> tanh
    v = jnp.dot(hb, vw_ref[...], preferred_element_type=jnp.float32)   # (M,1)
    v = jnp.maximum(v * vs_ref[...] + vb_ref[...], 0.0)
    # fc1 with the NCHW flatten folded into a batch-tiled weight:
    u = (v * vfc1_ref[...]).reshape(N, S, C).sum(axis=1) + vfc1_b_ref[...]
    u = jnp.maximum(u, 0.0)                                             # (N,C)
    val = jnp.sum(u * vfc2_w_ref[...], axis=-1, keepdims=True) + vfc2_b_ref[...]
    value_ref[...] = jnp.tanh(val)                                      # (N,1)

    # Policy head: 1x1 conv -> BN -> relu -> NCHW flatten -> fc -> softmax
    p = jnp.dot(hb, pw_ref[...], preferred_element_type=jnp.float32)    # (M,2)
    p = jnp.maximum(p * ps_ref[...] + pb_ref[...], 0.0)
    contrib = p[:, 0:1] * pfc_w0_ref[...] + p[:, 1:2] * pfc_w1_ref[...]  # (M,A)
    logits = contrib.reshape(N, S, A).sum(axis=1) + pfc_b_ref[...]       # (N,A)
    logits = logits - jnp.max(logits, axis=-1, keepdims=True)
    e = jnp.exp(logits)
    policy_ref[...] = e / jnp.sum(e, axis=-1, keepdims=True)


# ----------------------------------------------------------------------------
# Wrapper
# ----------------------------------------------------------------------------
def neural_network_forward(params, x_nhwc, crnt_player):
  N, H, W, Cin = x_nhwc.shape
  C = _C
  S = H * W
  M = N * S
  A = params["pfc_w"].shape[-1]
  L = params["trunk_w"].shape[0]

  # Fold the NCHW flatten into batch-tiled FC weights (tiny, trace-time).
  pfc_w0 = jnp.tile(params["pfc_w"][:S], (N, 1))     # (M, A)  policy channel 0
  pfc_w1 = jnp.tile(params["pfc_w"][S:], (N, 1))     # (M, A)  policy channel 1
  vfc1 = jnp.tile(params["vfc1_w"], (N, 1))          # (M, C)  value fc1
  cp = jnp.reshape(jnp.asarray(crnt_player, jnp.float32), (1,))

  kernel = functools.partial(_fused_forward_kernel,
                             N=N, H=H, W=W, Cin=Cin, A=A, L=L)

  in_specs = [
      pl.BlockSpec(memory_space=pltpu.MemorySpace.SMEM),          # crnt_player
      pl.BlockSpec((N, H, W, Cin), lambda j: (0, 0, 0, 0)),       # x
      pl.BlockSpec((1, 9 * C, C), lambda j: (j, 0, 0)),           # conv w (bf16)
      pl.BlockSpec((1, 1, C), lambda j: (j, 0, 0)),               # conv BN scale
      pl.BlockSpec((1, 1, C), lambda j: (j, 0, 0)),               # conv BN bias
      pl.BlockSpec((C, 2), lambda j: (0, 0)),                     # policy 1x1 w
      pl.BlockSpec((1, 2), lambda j: (0, 0)),                     # policy scale
      pl.BlockSpec((1, 2), lambda j: (0, 0)),                     # policy bias
      pl.BlockSpec((M, A), lambda j: (0, 0)),                     # policy fc w c0
      pl.BlockSpec((M, A), lambda j: (0, 0)),                     # policy fc w c1
      pl.BlockSpec((1, A), lambda j: (0, 0)),                     # policy fc b
      pl.BlockSpec((C, 1), lambda j: (0, 0)),                     # value 1x1 w
      pl.BlockSpec((1, 1), lambda j: (0, 0)),                     # value scale
      pl.BlockSpec((1, 1), lambda j: (0, 0)),                     # value bias
      pl.BlockSpec((M, C), lambda j: (0, 0)),                     # value fc1 w
      pl.BlockSpec((1, C), lambda j: (0, 0)),                     # value fc1 b
      pl.BlockSpec((1, C), lambda j: (0, 0)),                     # value fc2 w
      pl.BlockSpec((1, 1), lambda j: (0, 0)),                     # value fc2 b
  ]
  out_specs = (pl.BlockSpec((N, 1), lambda j: (0, 0)),
               pl.BlockSpec((N, A), lambda j: (0, 0)))
  scratch_shapes = [
      pltpu.VMEM((M, C), jnp.float32),                   # resident activation
      pltpu.VMEM((M, C), jnp.float32),                   # residual intermediate
      pltpu.VMEM((N, H + 2, W + 2, C), jnp.float32),     # zero-padded halo
      pltpu.VMEM((M, 9 * C), jnp.bfloat16),              # im2col matrix
  ]

  value, policy = pl.pallas_call(
      kernel,
      out_shape=(jax.ShapeDtypeStruct((N, 1), jnp.float32),
                 jax.ShapeDtypeStruct((N, A), jnp.float32)),
      grid=(L,),
      in_specs=in_specs,
      out_specs=out_specs,
      scratch_shapes=scratch_shapes,
      compiler_params=pltpu.CompilerParams(
          dimension_semantics=("arbitrary",)),
  )(cp, x_nhwc,
    params["trunk_w"], params["trunk_scale"], params["trunk_bias"],
    params["p_w"], params["p_scale"], params["p_bias"],
    pfc_w0, pfc_w1, params["pfc_b"],
    params["v_w"], params["v_scale"], params["v_bias"],
    vfc1, params["vfc1_b"], params["vfc2_w_row"], params["vfc2_b"])
  return value, policy


# ----------------------------------------------------------------------------
# Parameter construction (deterministic, synthetic; eval-mode BN folded)
# ----------------------------------------------------------------------------
def _conv_bn_params(key, kh, kw, cin, cout):
  k1, k2, k3, k4 = jax.random.split(key, 4)
  w = 0.05 * jax.random.normal(k1, (kh, kw, cin, cout), jnp.float32)
  b = 0.05 * jax.random.normal(k2, (cout,), jnp.float32)
  gamma = 1.0 + 0.05 * jax.random.normal(k3, (cout,), jnp.float32)
  beta = 0.05 * jax.random.normal(k4, (cout,), jnp.float32)
  mean = jnp.zeros((cout,), jnp.float32)   # fresh BN running stats
  var = jnp.ones((cout,), jnp.float32)
  scale = gamma / jnp.sqrt(var + _BN_EPS)
  bias = (b - mean) * scale + beta
  return w, scale, bias


def _fc_params(key, fin, fout):
  k1, k2 = jax.random.split(key, 2)
  w = 0.05 * jax.random.normal(k1, (fin, fout), jnp.float32)
  b = 0.05 * jax.random.normal(k2, (fout,), jnp.float32)
  return w, b


def init_network(key, in_channels, state_shape, nr_actions, nr_residual):
  H, W = state_shape
  S = H * W
  C = _C
  keys = iter(jax.random.split(key, 6 + 2 * nr_residual))

  # Trunk: stem conv (input channels zero-padded to 256 so every layer is
  # uniform) + 2*nr_residual 3x3 convs, stored as stacked im2col weights.
  tw, tscale, tbias = [], [], []
  w0, s0, b0 = _conv_bn_params(next(keys), 3, 3, in_channels, C)
  w0_full = jnp.zeros((3, 3, C, C), jnp.float32).at[:, :, :in_channels, :].set(w0)
  tw.append(w0_full.reshape(9 * C, C)); tscale.append(s0); tbias.append(b0)
  for _ in range(nr_residual):
    for _ in range(2):
      w, s, b = _conv_bn_params(next(keys), 3, 3, C, C)
      tw.append(w.reshape(9 * C, C)); tscale.append(s); tbias.append(b)

  params = {
      "trunk_w": jnp.stack(tw).astype(jnp.bfloat16),       # (L, 2304, 256)
      "trunk_scale": jnp.stack(tscale)[:, None, :],        # (L, 1, 256) f32
      "trunk_bias": jnp.stack(tbias)[:, None, :],          # (L, 1, 256) f32
  }

  # Policy head: 1x1 conv 256->2 (+BN), fc (2*H*W -> nr_actions)
  pw, ps, pb = _conv_bn_params(next(keys), 1, 1, C, 2)
  params["p_w"] = pw.reshape(C, 2).astype(jnp.bfloat16)
  params["p_scale"] = ps.reshape(1, 2)
  params["p_bias"] = pb.reshape(1, 2)
  pfw, pfb = _fc_params(next(keys), 2 * S, nr_actions)
  params["pfc_w"] = pfw                                    # (2*S, A)
  params["pfc_b"] = pfb.reshape(1, nr_actions)

  # Value head: 1x1 conv 256->1 (+BN), fc1 (H*W -> 256), fc2 (256 -> 1)
  vw, vs, vb = _conv_bn_params(next(keys), 1, 1, C, 1)
  params["v_w"] = vw.reshape(C, 1).astype(jnp.bfloat16)
  params["v_scale"] = vs.reshape(1, 1)
  params["v_bias"] = vb.reshape(1, 1)
  w1, b1 = _fc_params(next(keys), S, C)
  params["vfc1_w"] = w1                                    # (S, 256)
  params["vfc1_b"] = b1.reshape(1, C)
  w2, b2 = _fc_params(next(keys), C, 1)
  params["vfc2_w_row"] = w2.reshape(1, C)                  # stored transposed
  params["vfc2_b"] = b2.reshape(1, 1)
  return params


# ----------------------------------------------------------------------------
if __name__ == "__main__":
  BATCH = 2
  IN_CHANNELS = 8             # fixed by Convolutional_layer: Conv2d(8, 256, 3)
  STATE_SHAPE = (8, 8)
  NR_ACTIONS = 64
  NR_RESIDUAL_LAYERS = 2

  root = jax.random.PRNGKey(0)
  k_params, k_x = jax.random.split(root)
  params = init_network(k_params, IN_CHANNELS, STATE_SHAPE, NR_ACTIONS,
                        NR_RESIDUAL_LAYERS)

  # PyTorch input would be NCHW (2, 8, 8, 8); we build NHWC directly.
  x = jax.random.normal(
      k_x, (BATCH, STATE_SHAPE[0], STATE_SHAPE[1], IN_CHANNELS), jnp.float32)
  crnt_player = jnp.float32(-1.0)

  fwd = jax.jit(neural_network_forward)
  value, policy = fwd(params, x, crnt_player)
  value = jax.block_until_ready(value)
  policy = jax.block_until_ready(policy)

  assert value.shape == (BATCH, 1)
  assert policy.shape == (BATCH, NR_ACTIONS)
  assert bool(jnp.all(jnp.isfinite(value)))
  assert bool(jnp.all(jnp.abs(value) <= 1.0 + 1e-5))
  assert bool(jnp.allclose(jnp.sum(policy, axis=1), 1.0, atol=1e-5))
  print("KERNEL_OK")
</pallas_src>

<mosaic_0001>
module attributes {stable_mosaic.version = 11 : i64} {
  func.func @_fused_forward_kernel(%arg0: i32, %arg1: memref<1xf32, #tpu.memory_space<smem>>, %arg2: memref<2x8x8x8xf32, #tpu.memory_space<vmem>>, %arg3: memref<1x2304x256xbf16, #tpu.memory_space<vmem>>, %arg4: memref<1x1x256xf32, #tpu.memory_space<vmem>>, %arg5: memref<1x1x256xf32, #tpu.memory_space<vmem>>, %arg6: memref<256x2xbf16, #tpu.memory_space<vmem>>, %arg7: memref<1x2xf32, #tpu.memory_space<vmem>>, %arg8: memref<1x2xf32, #tpu.memory_space<vmem>>, %arg9: memref<128x64xf32, #tpu.memory_space<vmem>>, %arg10: memref<128x64xf32, #tpu.memory_space<vmem>>, %arg11: memref<1x64xf32, #tpu.memory_space<vmem>>, %arg12: memref<256x1xbf16, #tpu.memory_space<vmem>>, %arg13: memref<1x1xf32, #tpu.memory_space<vmem>>, %arg14: memref<1x1xf32, #tpu.memory_space<vmem>>, %arg15: memref<128x256xf32, #tpu.memory_space<vmem>>, %arg16: memref<1x256xf32, #tpu.memory_space<vmem>>, %arg17: memref<1x256xf32, #tpu.memory_space<vmem>>, %arg18: memref<1x1xf32, #tpu.memory_space<vmem>>, %arg19: memref<2x1xf32, #tpu.memory_space<vmem>>, %arg20: memref<2x64xf32, #tpu.memory_space<vmem>>, %arg21: memref<128x256xf32, #tpu.memory_space<vmem>>, %arg22: memref<128x256xf32, #tpu.memory_space<vmem>>, %arg23: memref<2x10x10x256xf32, #tpu.memory_space<vmem>>, %arg24: memref<128x2304xbf16, #tpu.memory_space<vmem>>) attributes {dimension_semantics = [#tpu.dimension_semantics<arbitrary>], iteration_bounds = array<i64: 5>, scalar_prefetch = 0 : i64, scratch_operands = 4 : i64, tpu.core_type = #tpu.core_type<tc>, window_params = [{transform_indices = @transform_0, window_bounds = array<i64: 1>}, {pipeline_mode = #tpu.pipeline_mode<synchronous>, transform_indices = @transform_1, window_bounds = array<i64: 2, 8, 8, 8>}, {transform_indices = @transform_2, window_bounds = array<i64: 1, 2304, 256>}, {transform_indices = @transform_3, window_bounds = array<i64: 1, 1, 256>}, {transform_indices = @transform_4, window_bounds = array<i64: 1, 1, 256>}, {pipeline_mode = #tpu.pipeline_mode<synchronous>, transform_indices = @transform_5, window_bounds = array<i64: 256, 2>}, {pipeline_mode = #tpu.pipeline_mode<synchronous>, transform_indices = @transform_6, window_bounds = array<i64: 1, 2>}, {pipeline_mode = #tpu.pipeline_mode<synchronous>, transform_indices = @transform_7, window_bounds = array<i64: 1, 2>}, {pipeline_mode = #tpu.pipeline_mode<synchronous>, transform_indices = @transform_8, window_bounds = array<i64: 128, 64>}, {pipeline_mode = #tpu.pipeline_mode<synchronous>, transform_indices = @transform_9, window_bounds = array<i64: 128, 64>}, {pipeline_mode = #tpu.pipeline_mode<synchronous>, transform_indices = @transform_10, window_bounds = array<i64: 1, 64>}, {pipeline_mode = #tpu.pipeline_mode<synchronous>, transform_indices = @transform_11, window_bounds = array<i64: 256, 1>}, {pipeline_mode = #tpu.pipeline_mode<synchronous>, transform_indices = @transform_12, window_bounds = array<i64: 1, 1>}, {pipeline_mode = #tpu.pipeline_mode<synchronous>, transform_indices = @transform_13, window_bounds = array<i64: 1, 1>}, {pipeline_mode = #tpu.pipeline_mode<synchronous>, transform_indices = @transform_14, window_bounds = array<i64: 128, 256>}, {pipeline_mode = #tpu.pipeline_mode<synchronous>, transform_indices = @transform_15, window_bounds = array<i64: 1, 256>}, {pipeline_mode = #tpu.pipeline_mode<synchronous>, transform_indices = @transform_16, window_bounds = array<i64: 1, 256>}, {pipeline_mode = #tpu.pipeline_mode<synchronous>, transform_indices = @transform_17, window_bounds = array<i64: 1, 1>}, {pipeline_mode = #tpu.pipeline_mode<synchronous>, transform_indices = @transform_18, window_bounds = array<i64: 2, 1>}, {pipeline_mode = #tpu.pipeline_mode<synchronous>, transform_indices = @transform_19, window_bounds = array<i64: 2, 64>}]} {
    %c0_i32 = arith.constant 0 : i32
    %0 = arith.cmpi eq, %arg0, %c0_i32 : i32
    %1 = arith.extui %0 : i1 to i32
    %c0_i32_0 = arith.constant 0 : i32
    %2 = arith.cmpi ne, %1, %c0_i32_0 : i32
    scf.if %2 {
      %cst_91 = arith.constant 0.000000e+00 : f32
      %115 = vector.broadcast %cst_91 : f32 to vector<2x10x10x256xf32>
      %c0_92 = arith.constant 0 : index
      %c0_93 = arith.constant 0 : index
      %c0_94 = arith.constant 0 : index
      %c0_95 = arith.constant 0 : index
      %116 = vector.load %arg23[%c0_92, %c0_93, %c0_94, %c0_95] : memref<2x10x10x256xf32, #tpu.memory_space<vmem>>, vector<2x10x10x256xf32>
      tpu.vector_store %arg23[%c0_92, %c0_93, %c0_94, %c0_95], %115 {strides = array<i32>} : memref<2x10x10x256xf32, #tpu.memory_space<vmem>>, vector<2x10x10x256xf32>,
      %cst_96 = arith.constant 0.000000e+00 : f32
      %117 = vector.broadcast %cst_96 : f32 to vector<128x256xf32>
      %c0_97 = arith.constant 0 : index
      %c0_98 = arith.constant 0 : index
      %118 = vector.load %arg21[%c0_97, %c0_98] : memref<128x256xf32, #tpu.memory_space<vmem>>, vector<128x256xf32>
      tpu.vector_store %arg21[%c0_97, %c0_98], %117 {strides = array<i32>} : memref<128x256xf32, #tpu.memory_space<vmem>>, vector<128x256xf32>,
      %c0_99 = arith.constant 0 : index
      %c0_100 = arith.constant 0 : index
      %c0_101 = arith.constant 0 : index
      %c0_102 = arith.constant 0 : index
      %119 = vector.load %arg2[%c0_99, %c0_100, %c0_101, %c0_102] : memref<2x8x8x8xf32, #tpu.memory_space<vmem>>, vector<2x8x8x8xf32>
      %120 = vector.shape_cast %119 : vector<2x8x8x8xf32> to vector<128x8xf32>
      %c0_103 = arith.constant 0 : index
      %121 = memref.load %arg1[%c0_103] : memref<1xf32, #tpu.memory_space<smem>>
      %122 = vector.broadcast %121 : f32 to vector<128x8xf32>
      %123 = arith.mulf %120, %122 : vector<128x8xf32>
      %c0_104 = arith.constant 0 : index
      %c0_105 = arith.constant 0 : index
      %124 = vector.load %arg21[%c0_104, %c0_105] : memref<128x256xf32, #tpu.memory_space<vmem>>, vector<128x8xf32>
      tpu.vector_store %arg21[%c0_104, %c0_105], %123 {strides = array<i32>} : memref<128x256xf32, #tpu.memory_space<vmem>>, vector<128x8xf32>,
    } else {
    }
    %c0_i32_1 = arith.constant 0 : i32
    %3 = arith.cmpi eq, %arg0, %c0_i32_1 : i32
    %c2_i32 = arith.constant 2 : i32
    %c0_i32_2 = arith.constant 0 : i32
    %4 = arith.cmpi eq, %c2_i32, %c0_i32_2 : i32
    %c1_i32 = arith.constant 1 : i32
    %5 = arith.select %4, %c1_i32, %c2_i32 : i32
    %6 = arith.remsi %arg0, %5 : i32
    %c0_i32_3 = arith.constant 0 : i32
    %7 = arith.cmpi ne, %6, %c0_i32_3 : i32
    %c0_i32_4 = arith.constant 0 : i32
    %8 = arith.cmpi slt, %6, %c0_i32_4 : i32
    %c0_i32_5 = arith.constant 0 : i32
    %9 = arith.cmpi slt, %5, %c0_i32_5 : i32
    %10 = arith.xori %8, %9 : i1
    %11 = arith.andi %10, %7 : i1
    %12 = arith.addi %6, %5 : i32
    %13 = arith.select %11, %12, %6 : i32
    %c1_i32_6 = arith.constant 1 : i32
    %14 = arith.cmpi eq, %13, %c1_i32_6 : i32
    %15 = arith.ori %3, %14 : i1
    %16 = arith.extui %15 : i1 to i32
    %c0_i32_7 = arith.constant 0 : i32
    %17 = arith.cmpi ne, %16, %c0_i32_7 : i32
    scf.if %17 {
      %c0_91 = arith.constant 0 : index
      %c0_92 = arith.constant 0 : index
      %115 = vector.load %arg21[%c0_91, %c0_92] : memref<128x256xf32, #tpu.memory_space<vmem>>, vector<128x256xf32>
      %116 = vector.shape_cast %115 : vector<128x256xf32> to vector<2x8x8x256xf32>
      %c0_93 = arith.constant 0 : index
      %c1_94 = arith.constant 1 : index
      %c1_95 = arith.constant 1 : index
      %c0_96 = arith.constant 0 : index
      %117 = vector.load %arg23[%c0_93, %c1_94, %c1_95, %c0_96] : memref<2x10x10x256xf32, #tpu.memory_space<vmem>>, vector<2x8x8x256xf32>
      tpu.vector_store %arg23[%c0_93, %c1_94, %c1_95, %c0_96], %116 {strides = array<i32>} : memref<2x10x10x256xf32, #tpu.memory_space<vmem>>, vector<2x8x8x256xf32>,
    } else {
    }
    %c0_i32_8 = arith.constant 0 : i32
    %18 = arith.cmpi sgt, %arg0, %c0_i32_8 : i32
    %c2_i32_9 = arith.constant 2 : i32
    %c0_i32_10 = arith.constant 0 : i32
    %19 = arith.cmpi eq, %c2_i32_9, %c0_i32_10 : i32
    %c1_i32_11 = arith.constant 1 : i32
    %20 = arith.select %19, %c1_i32_11, %c2_i32_9 : i32
    %21 = arith.remsi %arg0, %20 : i32
    %c0_i32_12 = arith.constant 0 : i32
    %22 = arith.cmpi ne, %21, %c0_i32_12 : i32
    %c0_i32_13 = arith.constant 0 : i32
    %23 = arith.cmpi slt, %21, %c0_i32_13 : i32
    %c0_i32_14 = arith.constant 0 : i32
    %24 = arith.cmpi slt, %20, %c0_i32_14 : i32
    %25 = arith.xori %23, %24 : i1
    %26 = arith.andi %25, %22 : i1
    %27 = arith.addi %21, %20 : i32
    %28 = arith.select %26, %27, %21 : i32
    %c0_i32_15 = arith.constant 0 : i32
    %29 = arith.cmpi eq, %28, %c0_i32_15 : i32
    %30 = arith.andi %18, %29 : i1
    %31 = arith.extui %30 : i1 to i32
    %c0_i32_16 = arith.constant 0 : i32
    %32 = arith.cmpi ne, %31, %c0_i32_16 : i32
    scf.if %32 {
      %c0_91 = arith.constant 0 : index
      %c0_92 = arith.constant 0 : index
      %115 = vector.load %arg22[%c0_91, %c0_92] : memref<128x256xf32, #tpu.memory_space<vmem>>, vector<128x256xf32>
      %116 = vector.shape_cast %115 : vector<128x256xf32> to vector<2x8x8x256xf32>
      %c0_93 = arith.constant 0 : index
      %c1_94 = arith.constant 1 : index
      %c1_95 = arith.constant 1 : index
      %c0_96 = arith.constant 0 : index
      %117 = vector.load %arg23[%c0_93, %c1_94, %c1_95, %c0_96] : memref<2x10x10x256xf32, #tpu.memory_space<vmem>>, vector<2x8x8x256xf32>
      tpu.vector_store %arg23[%c0_93, %c1_94, %c1_95, %c0_96], %116 {strides = array<i32>} : memref<2x10x10x256xf32, #tpu.memory_space<vmem>>, vector<2x8x8x256xf32>,
    } else {
    }
    %c0 = arith.constant 0 : index
    %c0_17 = arith.constant 0 : index
    %c0_18 = arith.constant 0 : index
    %c0_19 = arith.constant 0 : index
    %33 = vector.load %arg23[%c0, %c0_17, %c0_18, %c0_19] : memref<2x10x10x256xf32, #tpu.memory_space<vmem>>, vector<2x8x8x256xf32>
    %34 = vector.shape_cast %33 : vector<2x8x8x256xf32> to vector<128x256xf32>
    %35 = arith.truncf %34 : vector<128x256xf32> to vector<128x256xbf16>
    %c0_20 = arith.constant 0 : index
    %c0_21 = arith.constant 0 : index
    %36 = vector.load %arg24[%c0_20, %c0_21] : memref<128x2304xbf16, #tpu.memory_space<vmem>>, vector<128x256xbf16>
    tpu.vector_store %arg24[%c0_20, %c0_21], %35 {strides = array<i32>} : memref<128x2304xbf16, #tpu.memory_space<vmem>>, vector<128x256xbf16>,
    %c0_22 = arith.constant 0 : index
    %c0_23 = arith.constant 0 : index
    %c1 = arith.constant 1 : index
    %c0_24 = arith.constant 0 : index
    %37 = vector.load %arg23[%c0_22, %c0_23, %c1, %c0_24] : memref<2x10x10x256xf32, #tpu.memory_space<vmem>>, vector<2x8x8x256xf32>
    %38 = vector.shape_cast %37 : vector<2x8x8x256xf32> to vector<128x256xf32>
    %39 = arith.truncf %38 : vector<128x256xf32> to vector<128x256xbf16>
    %c0_25 = arith.constant 0 : index
    %c256 = arith.constant 256 : index
    %40 = vector.load %arg24[%c0_25, %c256] : memref<128x2304xbf16, #tpu.memory_space<vmem>>, vector<128x256xbf16>
    tpu.vector_store %arg24[%c0_25, %c256], %39 {strides = array<i32>} : memref<128x2304xbf16, #tpu.memory_space<vmem>>, vector<128x256xbf16>,
    %c0_26 = arith.constant 0 : index
    %c0_27 = arith.constant 0 : index
    %c2 = arith.constant 2 : index
    %c0_28 = arith.constant 0 : index
    %41 = vector.load %arg23[%c0_26, %c0_27, %c2, %c0_28] : memref<2x10x10x256xf32, #tpu.memory_space<vmem>>, vector<2x8x8x256xf32>
    %42 = vector.shape_cast %41 : vector<2x8x8x256xf32> to vector<128x256xf32>
    %43 = arith.truncf %42 : vector<128x256xf32> to vector<128x256xbf16>
    %c0_29 = arith.constant 0 : index
    %c512 = arith.constant 512 : index
    %44 = vector.load %arg24[%c0_29, %c512] : memref<128x2304xbf16, #tpu.memory_space<vmem>>, vector<128x256xbf16>
    tpu.vector_store %arg24[%c0_29, %c512], %43 {strides = array<i32>} : memref<128x2304xbf16, #tpu.memory_space<vmem>>, vector<128x256xbf16>,
    %c0_30 = arith.constant 0 : index
    %c1_31 = arith.constant 1 : index
    %c0_32 = arith.constant 0 : index
    %c0_33 = arith.constant 0 : index
    %45 = vector.load %arg23[%c0_30, %c1_31, %c0_32, %c0_33] : memref<2x10x10x256xf32, #tpu.memory_space<vmem>>, vector<2x8x8x256xf32>
    %46 = vector.shape_cast %45 : vector<2x8x8x256xf32> to vector<128x256xf32>
    %47 = arith.truncf %46 : vector<128x256xf32> to vector<128x256xbf16>
    %c0_34 = arith.constant 0 : index
    %c768 = arith.constant 768 : index
    %48 = vector.load %arg24[%c0_34, %c768] : memref<128x2304xbf16, #tpu.memory_space<vmem>>, vector<128x256xbf16>
    tpu.vector_store %arg24[%c0_34, %c768], %47 {strides = array<i32>} : memref<128x2304xbf16, #tpu.memory_space<vmem>>, vector<128x256xbf16>,
    %c0_35 = arith.constant 0 : index
    %c1_36 = arith.constant 1 : index
    %c1_37 = arith.constant 1 : index
    %c0_38 = arith.constant 0 : index
    %49 = vector.load %arg23[%c0_35, %c1_36, %c1_37, %c0_38] : memref<2x10x10x256xf32, #tpu.memory_space<vmem>>, vector<2x8x8x256xf32>
    %50 = vector.shape_cast %49 : vector<2x8x8x256xf32> to vector<128x256xf32>
    %51 = arith.truncf %50 : vector<128x256xf32> to vector<128x256xbf16>
    %c0_39 = arith.constant 0 : index
    %c1024 = arith.constant 1024 : index
    %52 = vector.load %arg24[%c0_39, %c1024] : memref<128x2304xbf16, #tpu.memory_space<vmem>>, vector<128x256xbf16>
    tpu.vector_store %arg24[%c0_39, %c1024], %51 {strides = array<i32>} : memref<128x2304xbf16, #tpu.memory_space<vmem>>, vector<128x256xbf16>,
    %c0_40 = arith.constant 0 : index
    %c1_41 = arith.constant 1 : index
    %c2_42 = arith.constant 2 : index
    %c0_43 = arith.constant 0 : index
    %53 = vector.load %arg23[%c0_40, %c1_41, %c2_42, %c0_43] : memref<2x10x10x256xf32, #tpu.memory_space<vmem>>, vector<2x8x8x256xf32>
    %54 = vector.shape_cast %53 : vector<2x8x8x256xf32> to vector<128x256xf32>
    %55 = arith.truncf %54 : vector<128x256xf32> to vector<128x256xbf16>
    %c0_44 = arith.constant 0 : index
    %c1280 = arith.constant 1280 : index
    %56 = vector.load %arg24[%c0_44, %c1280] : memref<128x2304xbf16, #tpu.memory_space<vmem>>, vector<128x256xbf16>
    tpu.vector_store %arg24[%c0_44, %c1280], %55 {strides = array<i32>} : memref<128x2304xbf16, #tpu.memory_space<vmem>>, vector<128x256xbf16>,
    %c0_45 = arith.constant 0 : index
    %c2_46 = arith.constant 2 : index
    %c0_47 = arith.constant 0 : index
    %c0_48 = arith.constant 0 : index
    %57 = vector.load %arg23[%c0_45, %c2_46, %c0_47, %c0_48] : memref<2x10x10x256xf32, #tpu.memory_space<vmem>>, vector<2x8x8x256xf32>
    %58 = vector.shape_cast %57 : vector<2x8x8x256xf32> to vector<128x256xf32>
    %59 = arith.truncf %58 : vector<128x256xf32> to vector<128x256xbf16>
    %c0_49 = arith.constant 0 : index
    %c1536 = arith.constant 1536 : index
    %60 = vector.load %arg24[%c0_49, %c1536] : memref<128x2304xbf16, #tpu.memory_space<vmem>>, vector<128x256xbf16>
    tpu.vector_store %arg24[%c0_49, %c1536], %59 {strides = array<i32>} : memref<128x2304xbf16, #tpu.memory_space<vmem>>, vector<128x256xbf16>,
    %c0_50 = arith.constant 0 : index
    %c2_51 = arith.constant 2 : index
    %c1_52 = arith.constant 1 : index
    %c0_53 = arith.constant 0 : index
    %61 = vector.load %arg23[%c0_50, %c2_51, %c1_52, %c0_53] : memref<2x10x10x256xf32, #tpu.memory_space<vmem>>, vector<2x8x8x256xf32>
    %62 = vector.shape_cast %61 : vector<2x8x8x256xf32> to vector<128x256xf32>
    %63 = arith.truncf %62 : vector<128x256xf32> to vector<128x256xbf16>
    %c0_54 = arith.constant 0 : index
    %c1792 = arith.constant 1792 : index
    %64 = vector.load %arg24[%c0_54, %c1792] : memref<128x2304xbf16, #tpu.memory_space<vmem>>, vector<128x256xbf16>
    tpu.vector_store %arg24[%c0_54, %c1792], %63 {strides = array<i32>} : memref<128x2304xbf16, #tpu.memory_space<vmem>>, vector<128x256xbf16>,
    %c0_55 = arith.constant 0 : index
    %c2_56 = arith.constant 2 : index
    %c2_57 = arith.constant 2 : index
    %c0_58 = arith.constant 0 : index
    %65 = vector.load %arg23[%c0_55, %c2_56, %c2_57, %c0_58] : memref<2x10x10x256xf32, #tpu.memory_space<vmem>>, vector<2x8x8x256xf32>
    %66 = vector.shape_cast %65 : vector<2x8x8x256xf32> to vector<128x256xf32>
    %67 = arith.truncf %66 : vector<128x256xf32> to vector<128x256xbf16>
    %c0_59 = arith.constant 0 : index
    %c2048 = arith.constant 2048 : index
    %68 = vector.load %arg24[%c0_59, %c2048] : memref<128x2304xbf16, #tpu.memory_space<vmem>>, vector<128x256xbf16>
    tpu.vector_store %arg24[%c0_59, %c2048], %67 {strides = array<i32>} : memref<128x2304xbf16, #tpu.memory_space<vmem>>, vector<128x256xbf16>,
    %c0_60 = arith.constant 0 : index
    %c0_61 = arith.constant 0 : index
    %69 = vector.load %arg24[%c0_60, %c0_61] : memref<128x2304xbf16, #tpu.memory_space<vmem>>, vector<128x2304xbf16>
    %c0_62 = arith.constant 0 : index
    %c0_63 = arith.constant 0 : index
    %c0_64 = arith.constant 0 : index
    %70 = vector.load %arg3[%c0_62, %c0_63, %c0_64] : memref<1x2304x256xbf16, #tpu.memory_space<vmem>>, vector<1x2304x256xbf16>
    %71 = vector.shape_cast %70 : vector<1x2304x256xbf16> to vector<2304x256xbf16>
    %cst = arith.constant dense<0.000000e+00> : vector<128x256xf32>
    %72 = tpu.matmul %69, %71, %cst {dimension_numbers = #tpu.dot_dimension_numbers<[1], [0], [0], [1], [0, 0, 1, 1], [], []>} : vector<128x2304xbf16>, vector<2304x256xbf16>, vector<128x256xf32> -> vector<128x256xf32>
    %c0_65 = arith.constant 0 : index
    %c0_66 = arith.constant 0 : index
    %c0_67 = arith.constant 0 : index
    %73 = vector.load %arg4[%c0_65, %c0_66, %c0_67] : memref<1x1x256xf32, #tpu.memory_space<vmem>>, vector<1x1x256xf32>
    %74 = vector.shape_cast %73 : vector<1x1x256xf32> to vector<1x256xf32>
    %75 = vector.broadcast %74 : vector<1x256xf32> to vector<128x256xf32>
    %76 = arith.mulf %72, %75 : vector<128x256xf32>
    %c0_68 = arith.constant 0 : index
    %c0_69 = arith.constant 0 : index
    %c0_70 = arith.constant 0 : index
    %77 = vector.load %arg5[%c0_68, %c0_69, %c0_70] : memref<1x1x256xf32, #tpu.memory_space<vmem>>, vector<1x1x256xf32>
    %78 = vector.shape_cast %77 : vector<1x1x256xf32> to vector<1x256xf32>
    %79 = vector.broadcast %78 : vector<1x256xf32> to vector<128x256xf32>
    %80 = arith.addf %76, %79 : vector<128x256xf32>
    %c0_i32_71 = arith.constant 0 : i32
    %81 = arith.cmpi eq, %arg0, %c0_i32_71 : i32
    %82 = arith.extui %81 : i1 to i32
    %c0_i32_72 = arith.constant 0 : i32
    %83 = arith.cmpi ne, %82, %c0_i32_72 : i32
    scf.if %83 {
      %cst_91 = arith.constant 0.000000e+00 : f32
      %115 = vector.broadcast %cst_91 : f32 to vector<128x256xf32>
      %116 = arith.maximumf %80, %115 : vector<128x256xf32>
      %c0_92 = arith.constant 0 : index
      %c0_93 = arith.constant 0 : index
      %117 = vector.load %arg21[%c0_92, %c0_93] : memref<128x256xf32, #tpu.memory_space<vmem>>, vector<128x256xf32>
      tpu.vector_store %arg21[%c0_92, %c0_93], %116 {strides = array<i32>} : memref<128x256xf32, #tpu.memory_space<vmem>>, vector<128x256xf32>,
    } else {
    }
    %c2_i32_73 = arith.constant 2 : i32
    %c0_i32_74 = arith.constant 0 : i32
    %84 = arith.cmpi eq, %c2_i32_73, %c0_i32_74 : i32
    %c1_i32_75 = arith.constant 1 : i32
    %85 = arith.select %84, %c1_i32_75, %c2_i32_73 : i32
    %86 = arith.remsi %arg0, %85 : i32
    %c0_i32_76 = arith.constant 0 : i32
    %87 = arith.cmpi ne, %86, %c0_i32_76 : i32
    %c0_i32_77 = arith.constant 0 : i32
    %88 = arith.cmpi slt, %86, %c0_i32_77 : i32
    %c0_i32_78 = arith.constant 0 : i32
    %89 = arith.cmpi slt, %85, %c0_i32_78 : i32
    %90 = arith.xori %88, %89 : i1
    %91 = arith.andi %90, %87 : i1
    %92 = arith.addi %86, %85 : i32
    %93 = arith.select %91, %92, %86 : i32
    %c1_i32_79 = arith.constant 1 : i32
    %94 = arith.cmpi eq, %93, %c1_i32_79 : i32
    %95 = arith.extui %94 : i1 to i32
    %c0_i32_80 = arith.constant 0 : i32
    %96 = arith.cmpi ne, %95, %c0_i32_80 : i32
    scf.if %96 {
      %cst_91 = arith.constant 0.000000e+00 : f32
      %115 = vector.broadcast %cst_91 : f32 to vector<128x256xf32>
      %116 = arith.maximumf %80, %115 : vector<128x256xf32>
      %c0_92 = arith.constant 0 : index
      %c0_93 = arith.constant 0 : index
      %117 = vector.load %arg22[%c0_92, %c0_93] : memref<128x256xf32, #tpu.memory_space<vmem>>, vector<128x256xf32>
      tpu.vector_store %arg22[%c0_92, %c0_93], %116 {strides = array<i32>} : memref<128x256xf32, #tpu.memory_space<vmem>>, vector<128x256xf32>,
    } else {
    }
    %c0_i32_81 = arith.constant 0 : i32
    %97 = arith.cmpi sgt, %arg0, %c0_i32_81 : i32
    %c2_i32_82 = arith.constant 2 : i32
    %c0_i32_83 = arith.constant 0 : i32
    %98 = arith.cmpi eq, %c2_i32_82, %c0_i32_83 : i32
    %c1_i32_84 = arith.constant 1 : i32
    %99 = arith.select %98, %c1_i32_84, %c2_i32_82 : i32
    %100 = arith.remsi %arg0, %99 : i32
    %c0_i32_85 = arith.constant 0 : i32
    %101 = arith.cmpi ne, %100, %c0_i32_85 : i32
    %c0_i32_86 = arith.constant 0 : i32
    %102 = arith.cmpi slt, %100, %c0_i32_86 : i32
    %c0_i32_87 = arith.constant 0 : i32
    %103 = arith.cmpi slt, %99, %c0_i32_87 : i32
    %104 = arith.xori %102, %103 : i1
    %105 = arith.andi %104, %101 : i1
    %106 = arith.addi %100, %99 : i32
    %107 = arith.select %105, %106, %100 : i32
    %c0_i32_88 = arith.constant 0 : i32
    %108 = arith.cmpi eq, %107, %c0_i32_88 : i32
    %109 = arith.andi %97, %108 : i1
    %110 = arith.extui %109 : i1 to i32
    %c0_i32_89 = arith.constant 0 : i32
    %111 = arith.cmpi ne, %110, %c0_i32_89 : i32
    scf.if %111 {
      %c0_91 = arith.constant 0 : index
      %c0_92 = arith.constant 0 : index
      %115 = vector.load %arg21[%c0_91, %c0_92] : memref<128x256xf32, #tpu.memory_space<vmem>>, vector<128x256xf32>
      %116 = arith.addf %80, %115 : vector<128x256xf32>
      %cst_93 = arith.constant 0.000000e+00 : f32
      %117 = vector.broadcast %cst_93 : f32 to vector<128x256xf32>
      %118 = arith.maximumf %116, %117 : vector<128x256xf32>
      %c0_94 = arith.constant 0 : index
      %c0_95 = arith.constant 0 : index
      %119 = vector.load %arg21[%c0_94, %c0_95] : memref<128x256xf32, #tpu.memory_space<vmem>>, vector<128x256xf32>
      tpu.vector_store %arg21[%c0_94, %c0_95], %118 {strides = array<i32>} : memref<128x256xf32, #tpu.memory_space<vmem>>, vector<128x256xf32>,
    } else {
    }
    %c4_i32 = arith.constant 4 : i32
    %112 = arith.cmpi eq, %arg0, %c4_i32 : i32
    %113 = arith.extui %112 : i1 to i32
    %c0_i32_90 = arith.constant 0 : i32
    %114 = arith.cmpi ne, %113, %c0_i32_90 : i32
    scf.if %114 {
      %c0_91 = arith.constant 0 : index
      %c0_92 = arith.constant 0 : index
      %115 = vector.load %arg21[%c0_91, %c0_92] : memref<128x256xf32, #tpu.memory_space<vmem>>, vector<128x256xf32>
      %116 = arith.truncf %115 : vector<128x256xf32> to vector<128x256xbf16>
      %c0_93 = arith.constant 0 : index
      %c0_94 = arith.constant 0 : index
      %117 = vector.load %arg12[%c0_93, %c0_94] : memref<256x1xbf16, #tpu.memory_space<vmem>>, vector<256x1xbf16>
      %cst_95 = arith.constant dense<0.000000e+00> : vector<128x1xf32>
      %118 = tpu.matmul %116, %117, %cst_95 {dimension_numbers = #tpu.dot_dimension_numbers<[1], [0], [0], [1], [0, 0, 1, 1], [], []>} : vector<128x256xbf16>, vector<256x1xbf16>, vector<128x1xf32> -> vector<128x1xf32>
      %c0_96 = arith.constant 0 : index
      %c0_97 = arith.constant 0 : index
      %119 = vector.load %arg13[%c0_96, %c0_97] : memref<1x1xf32, #tpu.memory_space<vmem>>, vector<1x1xf32>
      %120 = vector.broadcast %119 : vector<1x1xf32> to vector<128x1xf32>
      %121 = arith.mulf %118, %120 : vector<128x1xf32>
      %c0_98 = arith.constant 0 : index
      %c0_99 = arith.constant 0 : index
      %122 = vector.load %arg14[%c0_98, %c0_99] : memref<1x1xf32, #tpu.memory_space<vmem>>, vector<1x1xf32>
      %123 = vector.broadcast %122 : vector<1x1xf32> to vector<128x1xf32>
      %124 = arith.addf %121, %123 : vector<128x1xf32>
      %cst_100 = arith.constant 0.000000e+00 : f32
      %125 = vector.broadcast %cst_100 : f32 to vector<128x1xf32>
      %126 = arith.maximumf %124, %125 : vector<128x1xf32>
      %c0_101 = arith.constant 0 : index
      %c0_102 = arith.constant 0 : index
      %127 = vector.load %arg15[%c0_101, %c0_102] : memref<128x256xf32, #tpu.memory_space<vmem>>, vector<128x256xf32>
      %128 = vector.broadcast %126 : vector<128x1xf32> to vector<128x256xf32>
      %129 = arith.mulf %128, %127 : vector<128x256xf32>
      %130 = vector.shape_cast %129 : vector<128x256xf32> to vector<2x64x256xf32>
      %cst_103 = arith.constant dense<0.000000e+00> : vector<2x256xf32>
      %131 = vector.multi_reduction <add>, %130, %cst_103 [1] : vector<2x64x256xf32> to vector<2x256xf32>
      %c0_104 = arith.constant 0 : index
      %c0_105 = arith.constant 0 : index
      %132 = vector.load %arg16[%c0_104, %c0_105] : memref<1x256xf32, #tpu.memory_space<vmem>>, vector<1x256xf32>
      %133 = vector.broadcast %132 : vector<1x256xf32> to vector<2x256xf32>
      %134 = arith.addf %131, %133 : vector<2x256xf32>
      %cst_106 = arith.constant 0.000000e+00 : f32
      %135 = vector.broadcast %cst_106 : f32 to vector<2x256xf32>
      %136 = arith.maximumf %134, %135 : vector<2x256xf32>
      %c0_107 = arith.constant 0 : index
      %c0_108 = arith.constant 0 : index
      %137 = vector.load %arg17[%c0_107, %c0_108] : memref<1x256xf32, #tpu.memory_space<vmem>>, vector<1x256xf32>
      %138 = vector.broadcast %137 : vector<1x256xf32> to vector<2x256xf32>
      %139 = arith.mulf %136, %138 : vector<2x256xf32>
      %cst_109 = arith.constant dense<0.000000e+00> : vector<2xf32>
      %140 = vector.multi_reduction <add>, %139, %cst_109 [1] : vector<2x256xf32> to vector<2xf32>
      %141 = vector.shape_cast %140 : vector<2xf32> to vector<2x1xf32>
      %c0_110 = arith.constant 0 : index
      %c0_111 = arith.constant 0 : index
      %142 = vector.load %arg18[%c0_110, %c0_111] : memref<1x1xf32, #tpu.memory_space<vmem>>, vector<1x1xf32>
      %143 = vector.broadcast %142 : vector<1x1xf32> to vector<2x1xf32>
      %144 = arith.addf %141, %143 : vector<2x1xf32>
      %145 = math.tanh %144 : vector<2x1xf32>
      %c0_112 = arith.constant 0 : index
      %c0_113 = arith.constant 0 : index
      %146 = vector.load %arg19[%c0_112, %c0_113] : memref<2x1xf32, #tpu.memory_space<vmem>>, vector<2x1xf32>
      tpu.vector_store %arg19[%c0_112, %c0_113], %145 {strides = array<i32>} : memref<2x1xf32, #tpu.memory_space<vmem>>, vector<2x1xf32>,
      %c0_114 = arith.constant 0 : index
      %c0_115 = arith.constant 0 : index
      %147 = vector.load %arg6[%c0_114, %c0_115] : memref<256x2xbf16, #tpu.memory_space<vmem>>, vector<256x2xbf16>
      %cst_116 = arith.constant dense<0.000000e+00> : vector<128x2xf32>
      %148 = tpu.matmul %116, %147, %cst_116 {dimension_numbers = #tpu.dot_dimension_numbers<[1], [0], [0], [1], [0, 0, 1, 1], [], []>} : vector<128x256xbf16>, vector<256x2xbf16>, vector<128x2xf32> -> vector<128x2xf32>
      %c0_117 = arith.constant 0 : index
      %c0_118 = arith.constant 0 : index
      %149 = vector.load %arg7[%c0_117, %c0_118] : memref<1x2xf32, #tpu.memory_space<vmem>>, vector<1x2xf32>
      %150 = vector.broadcast %149 : vector<1x2xf32> to vector<128x2xf32>
      %151 = arith.mulf %148, %150 : vector<128x2xf32>
      %c0_119 = arith.constant 0 : index
      %c0_120 = arith.constant 0 : index
      %152 = vector.load %arg8[%c0_119, %c0_120] : memref<1x2xf32, #tpu.memory_space<vmem>>, vector<1x2xf32>
      %153 = vector.broadcast %152 : vector<1x2xf32> to vector<128x2xf32>
      %154 = arith.addf %151, %153 : vector<128x2xf32>
      %cst_121 = arith.constant 0.000000e+00 : f32
      %155 = vector.broadcast %cst_121 : f32 to vector<128x2xf32>
      %156 = arith.maximumf %154, %155 : vector<128x2xf32>
      %157 = vector.extract_strided_slice %156 {offsets = [0, 0], sizes = [128, 1], strides = [1, 1]} : vector<128x2xf32> to vector<128x1xf32>
      %c0_122 = arith.constant 0 : index
      %c0_123 = arith.constant 0 : index
      %158 = vector.load %arg9[%c0_122, %c0_123] : memref<128x64xf32, #tpu.memory_space<vmem>>, vector<128x64xf32>
      %159 = vector.broadcast %157 : vector<128x1xf32> to vector<128x64xf32>
      %160 = arith.mulf %159, %158 : vector<128x64xf32>
      %161 = vector.extract_strided_slice %156 {offsets = [0, 1], sizes = [128, 1], strides = [1, 1]} : vector<128x2xf32> to vector<128x1xf32>
      %c0_124 = arith.constant 0 : index
      %c0_125 = arith.constant 0 : index
      %162 = vector.load %arg10[%c0_124, %c0_125] : memref<128x64xf32, #tpu.memory_space<vmem>>, vector<128x64xf32>
      %163 = vector.broadcast %161 : vector<128x1xf32> to vector<128x64xf32>
      %164 = arith.mulf %163, %162 : vector<128x64xf32>
      %165 = arith.addf %160, %164 : vector<128x64xf32>
      %166 = vector.shape_cast %165 : vector<128x64xf32> to vector<2x64x64xf32>
      %cst_126 = arith.constant dense<0.000000e+00> : vector<2x64xf32>
      %167 = vector.multi_reduction <add>, %166, %cst_126 [1] : vector<2x64x64xf32> to vector<2x64xf32>
      %c0_127 = arith.constant 0 : index
      %c0_128 = arith.constant 0 : index
      %168 = vector.load %arg11[%c0_127, %c0_128] : memref<1x64xf32, #tpu.memory_space<vmem>>, vector<1x64xf32>
      %169 = vector.broadcast %168 : vector<1x64xf32> to vector<2x64xf32>
      %170 = arith.addf %167, %169 : vector<2x64xf32>
      %cst_129 = arith.constant dense<0xFF800000> : vector<2xf32>
      %171 = vector.multi_reduction <maximumf>, %170, %cst_129 [1] : vector<2x64xf32> to vector<2xf32>
      %172 = vector.shape_cast %171 : vector<2xf32> to vector<2x1xf32>
      %173 = vector.broadcast %172 : vector<2x1xf32> to vector<2x64xf32>
      %174 = arith.subf %170, %173 : vector<2x64xf32>
      %175 = math.exp %174 : vector<2x64xf32>
      %cst_130 = arith.constant dense<0.000000e+00> : vector<2xf32>
      %176 = vector.multi_reduction <add>, %175, %cst_130 [1] : vector<2x64xf32> to vector<2xf32>
      %177 = vector.shape_cast %176 : vector<2xf32> to vector<2x1xf32>
      %178 = vector.broadcast %177 : vector<2x1xf32> to vector<2x64xf32>
      %179 = arith.divf %175, %178 : vector<2x64xf32>
      %c0_131 = arith.constant 0 : index
      %c0_132 = arith.constant 0 : index
      %180 = vector.load %arg20[%c0_131, %c0_132] : memref<2x64xf32, #tpu.memory_space<vmem>>, vector<2x64xf32>
      tpu.vector_store %arg20[%c0_131, %c0_132], %179 {strides = array<i32>} : memref<2x64xf32, #tpu.memory_space<vmem>>, vector<2x64xf32>,
    } else {
    }
    return
  }
  func.func @transform_0(%arg0: i32) -> i32 {
    %c0_i32 = arith.constant 0 : i32
    %c0_i32_0 = arith.constant 0 : i32
    return %c0_i32 : i32
  }
  func.func @transform_1(%arg0: i32) -> (i32, i32, i32, i32) {
    %c0_i32 = arith.constant 0 : i32
    %c0_i32_0 = arith.constant 0 : i32
    %c0_i32_1 = arith.constant 0 : i32
    %c0_i32_2 = arith.constant 0 : i32
    %c0_i32_3 = arith.constant 0 : i32
    return %c0_i32, %c0_i32_0, %c0_i32_1, %c0_i32_2 : i32, i32, i32, i32
  }
  func.func @transform_2(%arg0: i32) -> (i32, i32, i32) {
    %c0_i32 = arith.constant 0 : i32
    %c0_i32_0 = arith.constant 0 : i32
    %c0_i32_1 = arith.constant 0 : i32
    return %arg0, %c0_i32, %c0_i32_0 : i32, i32, i32
  }
  func.func @transform_3(%arg0: i32) -> (i32, i32, i32) {
    %c0_i32 = arith.constant 0 : i32
    %c0_i32_0 = arith.constant 0 : i32
    %c0_i32_1 = arith.constant 0 : i32
    return %arg0, %c0_i32, %c0_i32_0 : i32, i32, i32
  }
  func.func @transform_4(%arg0: i32) -> (i32, i32, i32) {
    %c0_i32 = arith.constant 0 : i32
    %c0_i32_0 = arith.constant 0 : i32
    %c0_i32_1 = arith.constant 0 : i32
    return %arg0, %c0_i32, %c0_i32_0 : i32, i32, i32
  }
  func.func @transform_5(%arg0: i32) -> (i32, i32) {
    %c0_i32 = arith.constant 0 : i32
    %c0_i32_0 = arith.constant 0 : i32
    %c0_i32_1 = arith.constant 0 : i32
    return %c0_i32, %c0_i32_0 : i32, i32
  }
  func.func @transform_6(%arg0: i32) -> (i32, i32) {
    %c0_i32 = arith.constant 0 : i32
    %c0_i32_0 = arith.constant 0 : i32
    %c0_i32_1 = arith.constant 0 : i32
    return %c0_i32, %c0_i32_0 : i32, i32
  }
  func.func @transform_7(%arg0: i32) -> (i32, i32) {
    %c0_i32 = arith.constant 0 : i32
    %c0_i32_0 = arith.constant 0 : i32
    %c0_i32_1 = arith.constant 0 : i32
    return %c0_i32, %c0_i32_0 : i32, i32
  }
  func.func @transform_8(%arg0: i32) -> (i32, i32) {
    %c0_i32 = arith.constant 0 : i32
    %c0_i32_0 = arith.constant 0 : i32
    %c0_i32_1 = arith.constant 0 : i32
    return %c0_i32, %c0_i32_0 : i32, i32
  }
  func.func @transform_9(%arg0: i32) -> (i32, i32) {
    %c0_i32 = arith.constant 0 : i32
    %c0_i32_0 = arith.constant 0 : i32
    %c0_i32_1 = arith.constant 0 : i32
    return %c0_i32, %c0_i32_0 : i32, i32
  }
  func.func @transform_10(%arg0: i32) -> (i32, i32) {
    %c0_i32 = arith.constant 0 : i32
    %c0_i32_0 = arith.constant 0 : i32
    %c0_i32_1 = arith.constant 0 : i32
    return %c0_i32, %c0_i32_0 : i32, i32
  }
  func.func @transform_11(%arg0: i32) -> (i32, i32) {
    %c0_i32 = arith.constant 0 : i32
    %c0_i32_0 = arith.constant 0 : i32
    %c0_i32_1 = arith.constant 0 : i32
    return %c0_i32, %c0_i32_0 : i32, i32
  }
  func.func @transform_12(%arg0: i32) -> (i32, i32) {
    %c0_i32 = arith.constant 0 : i32
    %c0_i32_0 = arith.constant 0 : i32
    %c0_i32_1 = arith.constant 0 : i32
    return %c0_i32, %c0_i32_0 : i32, i32
  }
  func.func @transform_13(%arg0: i32) -> (i32, i32) {
    %c0_i32 = arith.constant 0 : i32
    %c0_i32_0 = arith.constant 0 : i32
    %c0_i32_1 = arith.constant 0 : i32
    return %c0_i32, %c0_i32_0 : i32, i32
  }
  func.func @transform_14(%arg0: i32) -> (i32, i32) {
    %c0_i32 = arith.constant 0 : i32
    %c0_i32_0 = arith.constant 0 : i32
    %c0_i32_1 = arith.constant 0 : i32
    return %c0_i32, %c0_i32_0 : i32, i32
  }
  func.func @transform_15(%arg0: i32) -> (i32, i32) {
    %c0_i32 = arith.constant 0 : i32
    %c0_i32_0 = arith.constant 0 : i32
    %c0_i32_1 = arith.constant 0 : i32
    return %c0_i32, %c0_i32_0 : i32, i32
  }
  func.func @transform_16(%arg0: i32) -> (i32, i32) {
    %c0_i32 = arith.constant 0 : i32
    %c0_i32_0 = arith.constant 0 : i32
    %c0_i32_1 = arith.constant 0 : i32
    return %c0_i32, %c0_i32_0 : i32, i32
  }
  func.func @transform_17(%arg0: i32) -> (i32, i32) {
    %c0_i32 = arith.constant 0 : i32
    %c0_i32_0 = arith.constant 0 : i32
    %c0_i32_1 = arith.constant 0 : i32
    return %c0_i32, %c0_i32_0 : i32, i32
  }
  func.func @transform_18(%arg0: i32) -> (i32, i32) {
    %c0_i32 = arith.constant 0 : i32
    %c0_i32_0 = arith.constant 0 : i32
    %c0_i32_1 = arith.constant 0 : i32
    return %c0_i32, %c0_i32_0 : i32, i32
  }
  func.func @transform_19(%arg0: i32) -> (i32, i32) {
    %c0_i32 = arith.constant 0 : i32
    %c0_i32_0 = arith.constant 0 : i32
    %c0_i32_1 = arith.constant 0 : i32
    return %c0_i32, %c0_i32_0 : i32, i32
  }
}

</mosaic_0001>

<bundles_post_ra>
// kernel: neural_network_forward.1
= control target key start
LH: loop header
LB: loop body
LE: loop exit
PB: predicated region body
PF: predicated region fallthrough
CT: control target
= control target key end

     0   :  { %s11780_s0 = inlined_call_operand.<no memory space> [shape: f32[1], index: 0, kind: input, shape index: {}]   ;;  %s11781_s1 = inlined_call_operand.hbm [shape: f32[2,8,8,8], index: 1, kind: input, shape index: {}]   ;;  %s11782_s2 = inlined_call_operand.hbm [shape: bf16[5,2304,256], index: 2, kind: input, shape index: {}]   ;;  %s11783_s3 = inlined_call_operand.hbm [shape: f32[5,1,256], index: 3, kind: input, shape index: {}]   ;;  %s11784_s4 = inlined_call_operand.hbm [shape: f32[5,1,256], index: 4, kind: input, shape index: {}]   ;;  %s11785_s5 = inlined_call_operand.vmem [shape: bf16[256,2], index: 5, kind: input, shape index: {}]   ;;  %s11786_s6 = inlined_call_operand.hbm [shape: f32[1,2], index: 6, kind: input, shape index: {}]   ;;  %s11787_s7 = inlined_call_operand.hbm [shape: f32[1,2], index: 7, kind: input, shape index: {}]   ;;  %s11788_s8 = inlined_call_operand.vmem [shape: f32[128,64], index: 8, kind: input, shape index: {}]   ;;  %s11789_s9 = inlined_call_operand.vmem [shape: f32[128,64], index: 9, kind: input, shape index: {}]   ;;  %s11790_s10 = inlined_call_operand.hbm [shape: f32[1,64], index: 10, kind: input, shape index: {}]   ;;  %s11791_s11 = inlined_call_operand.vmem [shape: bf16[256,1], index: 11, kind: input, shape index: {}]   ;;  %s11792_s12 = inlined_call_operand.<no memory space> [shape: f32[1,1], index: 12, kind: input, shape index: {}]   ;;  %s11793_s14 = inlined_call_operand.vmem [shape: f32[128,256], index: 14, kind: input, shape index: {}]   ;;  %s11794_s15 = inlined_call_operand.hbm [shape: f32[1,256], index: 15, kind: input, shape index: {}]   ;;  %s11795_s16 = inlined_call_operand.hbm [shape: f32[1,256], index: 16, kind: input, shape index: {}]   ;;  %s11796_s18 = inlined_call_operand.vmem [shape: f32[2,1], index: 18, kind: output, shape index: {0}]   ;;  %s11797_s19 = inlined_call_operand.hbm [shape: f32[2,64], index: 19, kind: output, shape index: {1}]   ;;  %s11798_s13 = inlined_call_operand.<no memory space> [shape: f32[1,1], index: 13, kind: input, shape index: {}]   ;;  %s11799_s17 = inlined_call_operand.<no memory space> [shape: f32[1,1], index: 17, kind: input, shape index: {}]  }
   0x1   :  { %11823 = sst [smem:[#allocation35_spill]] %s11780_s0  ;;  %v26_v0 = vstv %s11792_s12  ;;  %v28_v1 = vstv %s11798_s13  ;;  %v30_v2 = vstv %s11799_s17 }
   0x2   :  { %11824 = sst [smem:[#allocation36_spill]] %s11781_s1  ;;  %s11836_s20 = sld [smem:[#allocation35_spill]]  ;;  %27 = vst [vmem:[#allocation7] sm:$0x1] %v26_v0  ;;  %29 = vst [vmem:[#allocation8] sm:$0x1] %v28_v1 }
   0x3   :  { %11825 = sst [smem:[#allocation37_spill]] %s11782_s2  ;;  %31 = vst [vmem:[#allocation9] sm:$0x1] %v30_v2 }
   0x4   :  { %11826 = sst [smem:[#allocation38_spill]] %s11783_s3 }
   0x5   :  { %11827 = sst [smem:[#allocation39_spill]] %s11786_s6 }
   0x6   :  { %11828 = sst [smem:[#allocation40_spill]] %s11787_s7 }
   0x7   :  { %11829 = sst [smem:[#allocation41_spill]] %s11788_s8 }
   0x8   :  { %11830 = sst [smem:[#allocation42_spill]] %s11789_s9 }
   0x9   :  { %11831 = sst [smem:[#allocation43_spill]] %s11791_s11 }
   0xa   :  { %11832 = sst [smem:[#allocation44_spill]] %s11793_s14 }
   0xb   :  { %11833 = sst [smem:[#allocation45_spill]] %s11794_s15 }
   0xc   :  { %11834 = sst [smem:[#allocation46_spill]] %s11796_s18 }
   0xd   :  { %11835 = sst [smem:[#allocation47_spill]] %s11797_s19 }
   0xe   :  { %25 = sst [smem:[#allocation6]] %s11836_s20 }
   0xf   :  { %32 = vsyncpa [#allocation11], 0 }
  0x10   :  { %33 = vsyncpa [#allocation14], 0 }
  0x11   :  { %35 = vsyncpa [#allocation14 + $0x1], 0 }
  0x12   :  { %36 = vsyncpa [#allocation17], 0 }
  0x13   :  { %38 = vsyncpa [#allocation17 + $0x1], 0 }
  0x14   :  { %39 = vsyncpa [#allocation20], 0 }
  0x15   :  { %40 = vsyncpa [#allocation23], 0 }
  0x16   :  { %41 = vsyncpa [#allocation12], 0  ;;  %s9744_s12 = smov 0   ;;  %s9746_s25 = smov 0  }
  0x17   :  { %s9748_s13 = smov 0   ;;  %s9750_s3 = smov 0  }
  0x18 LB: > { %s9617_s17 = smov [#allocation18]   ;;  %s9765_s27 = sadd.s32 4294967295, %s9615_s3   ;;  %s9615_s3 = sphi %s9750_s3, %s11882_s3   ;;  %s9611_s13 = sphi %s9748_s13, %s11886_s13   ;;  %s9607_s25 = sphi %s9746_s25, %s11885_s25   ;;  %s9603_s12 = sphi %s9744_s12, %s11884_s12  }
  0x19   : > { %s519_s26 = sshll.u32 %s9617_s17, 4  ;;  %p7875_p0 = scmp.ge.s32.totalorder %s9615_s3, 1  ;;  %s520_s26 = int_to_ptr.vmem [resolvable:$true] %s519_s26 }
  0x1a   : > { %p11803_p1 = scmp.eq.s32.totalorder %s9765_s27, 0  ;;  %p487_p2 = scmp.lt.s32.totalorder %s9615_s3, 6 }
  0x1b   : > { %s9618_s29 = smov [#allocation19]   ;;  %s9619_s30 = smov [#allocation22]  }
  0x1c   : > { %p9771_p4 = pnand %p7875_p0, %p487_p2  ;;  %s530_s0 = sshll.u32 %s9618_s29, 4  ;;  %s9777_s0 = int_to_ptr.vmem [resolvable:$true] %s530_s0 }
  0x1d   : > { %s570_s20 = sshll.u32 %s9619_s30, 4  ;;  %s11839_s6 = sld [smem:[#allocation39_spill]]  ;;  %s9785_s20 = int_to_ptr.vmem [resolvable:$true] %s570_s20 }
  0x1e   : > { %s11837_s28 = scalar_select %p9771_p4, 1, 0 }
  0x1f   : > { %p8691_p5 = pneg %p9771_p4 }
  0x21   : > { %p9781_p6 = pnand %p8691_p5, %p11803_p1 }
  0x23   : > { %s11838_s21 = scalar_select %p9781_p6, 1, 0 }
  0x24   : > { %s9273_s2 = scalar_lea.hbm %s11839_s6, 16  ;;  %p9795_p8 = pneg %p9781_p6 }
  0x25   : > { %p9274_p7 = scmp.ne.s32.totalorder %s11839_s6, %s9273_s2  ;;  %p9280_p11 = scmp.lt.u32.totalorder %s9273_s2, %s11839_s6 }
  0x26   : > { %s11840_s17 = scalar_select %p9795_p8, 1, 0 }
  0x27   : > { %p9276_p9 = pnand %p9795_p8, %p9274_p7 }
  0x29   : > { %p9277_p10 = pneg %p9276_p9 }
  0x2b   : > { %p9282_p12 = pnand %p9280_p11, %p9277_p10 }
  0x2d   : > { %9285 = shalt.err (!%p9282_p12)
}
  0x2e   : > { %s9286_s1 = scalar_lea.vmem %s520_s26, 16  ;;  %s9293_s22 = scalar_lea.vmem %s520_s26, 32 }
  0x2f   : > { %p9287_p13 = scmp.ne.s32.totalorder %s520_s26, %s9286_s1  ;;  %p9294_p5 = scmp.lt.s32.totalorder %s520_s26, %s520_s26 }
  0x30   : > { %p9295_p3 = scmp.lt.s32.totalorder %s9293_s22, %s9286_s1 }
  0x31   : > { %p9289_p0 = pnand %p9287_p13, %p9795_p8 }
  0x32   : > { %p9296_p1 = por %p9295_p3, %p9294_p5 }
  0x33   : > { %p9290_p2 = pneg %p9289_p0 }
  0x35   : > { %p9297_p4 = pnand %p9296_p1, %p9290_p2 }
  0x37   : > { %9300 = shalt.err (!%p9297_p4)
}
  0x38   : > { %8697 = dma.hbm_to_vmem [thread:$0]  (!%p9781_p6), %s11839_s6, 16, %s520_s26, [#allocation17]  }
  0x39   : > { %s11841_s7 = sld [smem:[#allocation40_spill]] }
  0x3f   : > { %s9301_s30 = scalar_lea.hbm %s11841_s7, 16 }
  0x40   : > { %p9302_p7 = scmp.ne.s32.totalorder %s11841_s7, %s9301_s30  ;;  %p9308_p1 = scmp.lt.u32.totalorder %s9301_s30, %s11841_s7 }
  0x42   : > { %p9304_p9 = pnand %p9302_p7, %p9795_p8 }
  0x44   : > { %p9305_p3 = pneg %p9304_p9 }
  0x46   : > { %p9310_p4 = pnand %p9308_p1, %p9305_p3 }
  0x48   : > { %9313 = shalt.err (!%p9310_p4)
}
  0x49   : > { %s9314_s26 = scalar_lea.vmem %s9777_s0, 16  ;;  %s9321_s18 = scalar_lea.vmem %s9777_s0, 32 }
  0x4a   : > { %p9315_p10 = scmp.ne.s32.totalorder %s9777_s0, %s9314_s26  ;;  %p9322_p13 = scmp.lt.s32.totalorder %s9777_s0, %s9777_s0 }
  0x4b   : > { %p9323_p0 = scmp.lt.s32.totalorder %s9321_s18, %s9314_s26 }
  0x4c   : > { %p9317_p11 = pnand %p9315_p10, %p9795_p8 }
  0x4d   : > { %p9324_p2 = por %p9323_p0, %p9322_p13 }
  0x4e   : > { %p9318_p12 = pneg %p9317_p11 }
  0x50   : > { %p9325_p5 = pnand %p9324_p2, %p9318_p12 }
  0x52   : > { %9328 = shalt.err (!%p9325_p5)
}
  0x53   : > { %8700 = dma.hbm_to_vmem [thread:$0]  (!%p9781_p6), %s11841_s7, 16, %s9777_s0, [#allocation20]  }
  0x54   : > { %s11842_s15 = sld [smem:[#allocation45_spill]] }
  0x5a   : > { %s9329_s29 = scalar_lea.hbm %s11842_s15, 32 }
  0x5b   : > { %p9330_p7 = scmp.ne.s32.totalorder %s11842_s15, %s9329_s29  ;;  %p9336_p1 = scmp.lt.u32.totalorder %s9329_s29, %s11842_s15 }
  0x5d   : > { %p9332_p9 = pnand %p9330_p7, %p9795_p8 }
  0x5f   : > { %p9333_p3 = pneg %p9332_p9 }
  0x61   : > { %p9338_p4 = pnand %p9336_p1, %p9333_p3 }
  0x63   : > { %9341 = shalt.err (!%p9338_p4)
}
  0x64   : > { %s9342_s0 = scalar_lea.vmem %s9785_s20, 32  ;;  %p9350_p13 = scmp.lt.s32.totalorder %s9785_s20, %s9785_s20 }
  0x65   : > { %p9343_p10 = scmp.ne.s32.totalorder %s9785_s20, %s9342_s0  ;;  %p9351_p0 = scmp.lt.s32.totalorder %s9342_s0, %s9342_s0 }
  0x67   : > { %p9345_p11 = pnand %p9343_p10, %p9795_p8  ;;  %p9352_p2 = por %p9351_p0, %p9350_p13 }
  0x69   : > { %p9346_p12 = pneg %p9345_p11 }
  0x6b   : > { %p9353_p5 = pnand %p9352_p2, %p9346_p12 }
  0x6d   : > { %9356 = shalt.err (!%p9353_p5)
}
  0x6e   : > { %8706 = dma.hbm_to_vmem [thread:$0]  (!%p9781_p6), %s11842_s15, 32, %s9785_s20, [#allocation23]  }
  0x6f   : > { %s9859_s23 = sadd.s32 1, %s9615_s3   ;;  %s96_s2 = sadd.s32 1, %s9611_s13 }
  0x70   : > { %11843 = sst [smem:[#allocation33_spill]] %s9859_s23  ;;  %s93_s24 = ssub.s32 %s9615_s3, %s9859_s23 }
  0x71   : > { %p94_p7 = scmp.eq.s32.totalorder %s93_s24, 0  ;;  %p103_p9 = scmp.ne.s32.totalorder %s9611_s13, %s9607_s25 }
  0x72   : > { %p104_p3 = scmp.eq.s32.totalorder %s9615_s3, 0  ;;  %p109_p1 = scmp.ne.s32.totalorder %s9607_s25, %s9603_s12 }
  0x73   : > { %s9870_s29 = scalar_select %p94_p7, %s9611_s13, %s96_s2  }
  0x74   : > { %p105_p4 = por %p104_p3, %p103_p9  ;;  %p11845_p10 = scmp.eq.s32.totalorder %s9765_s27, 0 }
  0x75   : > { %11844 = sst [smem:[#allocation34_spill]] %s9870_s29  ;;  %p8726_p12 = scmp.lt.s32.totalorder %s9615_s3, 5 }
  0x76   : > { %p9874_p11 = por %p11845_p10, %p109_p1  ;;  %s11806_s1 = sand.u32 1, %s9611_s13  }
  0x77   : > { %s8654_s22 = smul.u32 2304, %s11806_s1  ;;  %p9883_p13 = pnand %p8726_p12, %p105_p4 }
  0x78   : > { %s11846_s30 = scalar_select %p9874_p11, 1, 0 }
  0x79   : > { %s11847_s26 = scalar_select %p9883_p13, 1, 0 }
  0x7a   : > { %s8655_s12 = smul.u32 36864, %s9615_s3  ;;  %s11848_s19 = sld [smem:[#allocation37_spill]] }
  0x7b   : > { %s599_s2 = scalar_lea.vmem [#allocation13], %s8654_s22  ;;  %s9620_s1 = smov [#allocation10]  }
  0x7c   : > { %s606_s20 = sshll.u32 %s599_s2, 4  ;;  %s9895_s6 = sshll.u32 %s9620_s1, 4  ;;  %s9893_s20 = int_to_ptr.vmem [resolvable:$true] %s606_s20  ;;  %s503_s6 = int_to_ptr.vmem [resolvable:$true] %s9895_s6 }
  0x7d   : > { %s11849_s7 = sand.u32 1, %s9615_s3   ;;  %p9905_p2 = pneg %p9883_p13 }
  0x7e   : > { %s9899_s15 = scalar_lea.sflag [#allocation14], %s11849_s7 }
  0x80   : > { %s9891_s24 = scalar_lea.hbm %s11848_s19, %s8655_s12  ;;  %s9362_s18 = scalar_lea.hbm %s11848_s19, 184320 }
  0x81   : > { %s9357_s29 = scalar_lea.hbm %s9891_s24, 36864  ;;  %p9363_p9 = scmp.lt.u32.totalorder %s9891_s24, %s11848_s19 }
  0x82   : > { %p9358_p0 = scmp.ne.s32.totalorder %s9891_s24, %s9357_s29  ;;  %p9364_p3 = scmp.lt.u32.totalorder %s9362_s18, %s9357_s29 }
  0x83   : > { %s11850_s12 = scalar_select %p9905_p2, 1, 0 }
  0x84   : > { %p9360_p5 = pnand %p9905_p2, %p9358_p0  ;;  %p9365_p1 = por %p9364_p3, %p9363_p9 }
  0x85   : > { %p9366_p4 = scmp.lt.u32.totalorder %s9357_s29, %s9891_s24 }
  0x86   : > { %p9361_p7 = pneg %p9360_p5 }
  0x87   : > { %p9367_p10 = por %p9366_p4, %p9365_p1 }
  0x89   : > { %p9368_p12 = pnand %p9367_p10, %p9361_p7 }
  0x8b   : > { %9371 = shalt.err (!%p9368_p12)
}
  0x8c   : > { %s9372_s7 = scalar_lea.vmem %s9893_s20, 36864  ;;  %s9621_s22 = smov [#allocation13]  }
  0x8d   : > { %p9373_p0 = scmp.ne.s32.totalorder %s9893_s20, %s9372_s7  ;;  %s9377_s0 = sshll.u32 %s9621_s22, 4  ;;  %s9378_s0 = int_to_ptr.vmem [resolvable:$false] %s9377_s0 }
  0x8e   : > { %s9379_s1 = scalar_lea.vmem %s9378_s0, 73728  ;;  %p9380_p6 = scmp.lt.s32.totalorder %s9893_s20, %s9378_s0 }
  0x8f   : > { %p9375_p5 = pnand %p9373_p0, %p9905_p2  ;;  %p9381_p8 = scmp.lt.s32.totalorder %s9379_s1, %s9372_s7 }
  0x91   : > { %p9376_p11 = pneg %p9375_p5  ;;  %p9382_p9 = por %p9381_p8, %p9380_p6 }
  0x93   : > { %p9383_p3 = pnand %p9382_p9, %p9376_p11 }
  0x95   : > { %9386 = shalt.err (!%p9383_p3)
}
  0x96   : > { %s9622_s29 = smov 128   ;;  %s9623_s18 = smov 8  }
  0x97   : > { %8713 = dma.hbm_to_vmem [thread:$0]  (!%p9883_p13), %s9891_s24, 36864, %s9893_s20, %s9899_s15, %s9622_s29, %s9622_s29, %s9623_s18  }
  0x98   : > { %s11851_s19 = sld [smem:[#allocation36_spill]]  ;;  %p11852_p8 = scmp.ne.s32.totalorder %s11840_s17, 0 }
  0x9e   : > { %s9387_s23 = scalar_lea.hbm %s11851_s19, 2048 }
  0x9f   : > { %p9388_p6 = scmp.ne.s32.totalorder %s11851_s19, %s9387_s23  ;;  %p9394_p1 = scmp.lt.u32.totalorder %s9387_s23, %s11851_s19 }
  0xa1   : > { %p9390_p11 = pnand %p9388_p6, %p11852_p8 }
  0xa3   : > { %p9391_p7 = pneg %p9390_p11 }
  0xa5   : > { %p9396_p4 = pnand %p9394_p1, %p9391_p7 }
  0xa7   : > { %9399 = shalt.err (!%p9396_p4)
}
  0xa8   : > { %s9400_s9 = scalar_lea.vmem %s503_s6, 2048  ;;  %p9408_p5 = scmp.lt.s32.totalorder %s503_s6, %s503_s6 }
  0xa9   : > { %p9401_p10 = scmp.ne.s32.totalorder %s503_s6, %s9400_s9  ;;  %p9409_p9 = scmp.lt.s32.totalorder %s9400_s9, %s9400_s9 }
  0xab   : > { %p9403_p12 = pnand %p9401_p10, %p11852_p8  ;;  %p9410_p3 = por %p9409_p9, %p9408_p5 }
  0xad   : > { %p9404_p0 = pneg %p9403_p12 }
  0xaf   : > { %p9411_p13 = pnand %p9410_p3, %p9404_p0 }
  0xb1   : > { %9414 = shalt.err (!%p9411_p13)
}
  0xb2   : > { %p11853_p6 = scmp.ne.s32.totalorder %s11838_s21, 0  ;;  %s9624_s14 = smov [#allocation21]  }
  0xb3   : > { %s547_s23 = sshll.u32 %s9624_s14, 4  ;;  %s9625_s2 = smov [#allocation24]   ;;  %s548_s23 = int_to_ptr.vmem [resolvable:$true] %s547_s23 }
  0xb4   : > { %8694 = dma.hbm_to_vmem [thread:$0]  (!%p11853_p6), %s11851_s19, 2048, %s503_s6, [#allocation11], %s9622_s29, %s9622_s29, %s9623_s18  }
  0xb5   : > { %s581_s22 = sshll.u32 %s9625_s2, 4  ;;  %s9415_s1 = scalar_lea.hbm %s11790_s10, 16  ;;  %s582_s22 = int_to_ptr.vmem [resolvable:$true] %s581_s22 }
  0xb6   : > { %p9416_p13 = scmp.ne.s32.totalorder %s11790_s10, %s9415_s1  ;;  %p9422_p1 = scmp.lt.u32.totalorder %s9415_s1, %s11790_s10 }
  0xb8   : > { %p9418_p11 = pnand %p9416_p13, %p11852_p8 }
  0xba   : > { %p9419_p7 = pneg %p9418_p11 }
  0xbc   : > { %p9424_p4 = pnand %p9422_p1, %p9419_p7 }
  0xbe   : > { %9427 = shalt.err (!%p9424_p4)
}
  0xbf   : > { %s9428_s6 = scalar_lea.vmem %s548_s23, 16  ;;  %s9435_s29 = scalar_lea.vmem %s548_s23, 32 }
  0xc0   : > { %p9429_p10 = scmp.ne.s32.totalorder %s548_s23, %s9428_s6  ;;  %p9436_p5 = scmp.lt.s32.totalorder %s548_s23, %s548_s23 }
  0xc1   : > { %p9437_p9 = scmp.lt.s32.totalorder %s9435_s29, %s9428_s6 }
  0xc2   : > { %p9431_p12 = pnand %p9429_p10, %p11852_p8 }
  0xc3   : > { %p9438_p3 = por %p9437_p9, %p9436_p5 }
  0xc4   : > { %p9432_p0 = pneg %p9431_p12 }
  0xc6   : > { %p9439_p2 = pnand %p9438_p3, %p9432_p0 }
  0xc8   : > { %9442 = shalt.err (!%p9439_p2)
}
  0xc9   : > { %8703 = dma.hbm_to_vmem [thread:$0]  (!%p11853_p6), %s11790_s10, 16, %s548_s23, [#allocation20]  }
  0xca   : > { %s11854_s11 = sand.u32 1, %s9611_s13   ;;  %s9443_s0 = scalar_lea.hbm %s11795_s16, 32 }
  0xcb   : > { %s9968_s24 = sshll.u32 %s11854_s11, 1  ;;  %p9444_p2 = scmp.ne.s32.totalorder %s11795_s16, %s9443_s0 }
  0xcc   : > { %p9450_p7 = scmp.lt.u32.totalorder %s9443_s0, %s11795_s16 }
  0xcd   : > { %p9446_p13 = pnand %p9444_p2, %p11852_p8 }
  0xcf   : > { %p9447_p11 = pneg %p9446_p13 }
  0xd1   : > { %p9452_p1 = pnand %p9450_p7, %p9447_p11 }
  0xd3   : > { %9455 = shalt.err (!%p9452_p1)
}
  0xd4   : > { %s9456_s23 = scalar_lea.vmem %s582_s22, 32  ;;  %p9464_p0 = scmp.lt.s32.totalorder %s582_s22, %s582_s22 }
  0xd5   : > { %p9457_p4 = scmp.ne.s32.totalorder %s582_s22, %s9456_s23  ;;  %p9465_p5 = scmp.lt.s32.totalorder %s9456_s23, %s9456_s23 }
  0xd7   : > { %p9459_p10 = pnand %p9457_p4, %p11852_p8  ;;  %p9466_p9 = por %p9465_p5, %p9464_p0 }
  0xd9   : > { %p9460_p12 = pneg %p9459_p10 }
  0xdb   : > { %p9467_p3 = pnand %p9466_p9, %p9460_p12 }
  0xdd   : > { %9470 = shalt.err (!%p9467_p3)
}
  0xde   : > { %8709 = dma.hbm_to_vmem [thread:$0]  (!%p11853_p6), %s11795_s16, 32, %s582_s22, [#allocation23]  }
  0xdf   : > { %s8236_s8 = sshll.u32 %s9615_s3, 5  ;;  %s11855_s11 = sld [smem:[#allocation38_spill]] }
  0xe0   : > { %s620_s21 = scalar_lea.vmem [#allocation15], %s9968_s24  ;;  %p11856_p2 = scmp.ne.s32.totalorder %s11850_s12, 0 }
  0xe1   : > { %s628_s2 = sshll.u32 %s620_s21, 4  ;;  %s629_s2 = int_to_ptr.vmem [resolvable:$true] %s628_s2 }
  0xe5   : > { %s9994_s14 = scalar_lea.hbm %s11855_s11, %s8236_s8  ;;  %s9476_s1 = scalar_lea.hbm %s11855_s11, 160 }
  0xe6   : > { %s9471_s0 = scalar_lea.hbm %s9994_s14, 32  ;;  %p9477_p6 = scmp.lt.u32.totalorder %s9994_s14, %s11855_s11 }
  0xe7   : > { %p9472_p8 = scmp.ne.s32.totalorder %s9994_s14, %s9471_s0  ;;  %p9478_p7 = scmp.lt.u32.totalorder %s9476_s1, %s9471_s0 }
  0xe8   : > { %p9480_p4 = scmp.lt.u32.totalorder %s9471_s0, %s9994_s14 }
  0xe9   : > { %p9474_p13 = pnand %p9472_p8, %p11856_p2  ;;  %p9479_p1 = por %p9478_p7, %p9477_p6 }
  0xeb   : > { %p9475_p11 = pneg %p9474_p13  ;;  %p9481_p10 = por %p9480_p4, %p9479_p1 }
  0xed   : > { %p9482_p12 = pnand %p9481_p10, %p9475_p11 }
  0xef   : > { %9485 = shalt.err (!%p9482_p12)
}
  0xf0   : > { %s9486_s23 = scalar_lea.vmem %s629_s2, 32  ;;  %s9626_s6 = smov [#allocation15]  }
  0xf1   : > { %p9487_p0 = scmp.ne.s32.totalorder %s629_s2, %s9486_s23  ;;  %s9491_s29 = sshll.u32 %s9626_s6, 4  ;;  %s9492_s29 = int_to_ptr.vmem [resolvable:$false] %s9491_s29 }
  0xf2   : > { %s9493_s17 = scalar_lea.vmem %s9492_s29, 64  ;;  %p9494_p3 = scmp.lt.s32.totalorder %s629_s2, %s9492_s29 }
  0xf3   : > { %p9489_p5 = pnand %p9487_p0, %p11856_p2  ;;  %p9495_p8 = scmp.lt.s32.totalorder %s9493_s17, %s9486_s23 }
  0xf5   : > { %p9490_p9 = pneg %p9489_p5  ;;  %p9496_p13 = por %p9495_p8, %p9494_p3 }
  0xf7   : > { %p9497_p6 = pnand %p9496_p13, %p9490_p9 }
  0xf9   : > { %9500 = shalt.err (!%p9497_p6)
}
  0xfa   : > { %p11857_p7 = scmp.ne.s32.totalorder %s11847_s26, 0  ;;  %s10020_s0 = scalar_lea.hbm %s11784_s4, %s8236_s8 }
  0xfb   : > { %s639_s22 = scalar_lea.vmem [#allocation16], %s9968_s24  ;;  %s11858_s1 = sand.u32 1, %s9615_s3  }
  0xfc   : > { %8716 = dma.hbm_to_vmem [thread:$0]  (!%p11857_p7), %s9994_s14, 32, %s629_s2, %s9899_s15  }
  0xfd   : > { %s647_s7 = sshll.u32 %s639_s22, 4  ;;  %s636_s9 = scalar_lea.sflag [#allocation17], %s11858_s1  ;;  %s648_s7 = int_to_ptr.vmem [resolvable:$true] %s647_s7 }
  0xfe   : > { %s9501_s20 = scalar_lea.hbm %s10020_s0, 32  ;;  %s9506_s2 = scalar_lea.hbm %s11784_s4, 160 }
  0xff   : > { %p9502_p11 = scmp.ne.s32.totalorder %s10020_s0, %s9501_s20  ;;  %p9507_p10 = scmp.lt.u32.totalorder %s10020_s0, %s11784_s4 }
 0x100   : > { %p9508_p12 = scmp.lt.u32.totalorder %s9506_s2, %s9501_s20  ;;  %p9510_p5 = scmp.lt.u32.totalorder %s9501_s20, %s10020_s0 }
 0x101   : > { %p9504_p1 = pnand %p9502_p11, %p11856_p2 }
 0x102   : > { %p9509_p0 = por %p9508_p12, %p9507_p10 }
 0x103   : > { %p9505_p4 = pneg %p9504_p1 }
 0x104   : > { %p9511_p9 = por %p9510_p5, %p9509_p0 }
 0x106   : > { %p9512_p3 = pnand %p9511_p9, %p9505_p4 }
 0x108   : > { %9515 = shalt.err (!%p9512_p3)
}
 0x109   : > { %s9516_s3 = scalar_lea.vmem %s648_s7, 32  ;;  %s9627_s24 = smov [#allocation16]  }
 0x10a   : > { %p9517_p8 = scmp.ne.s32.totalorder %s648_s7, %s9516_s3  ;;  %s9521_s6 = sshll.u32 %s9627_s24, 4  ;;  %s9522_s6 = int_to_ptr.vmem [resolvable:$false] %s9521_s6 }
 0x10b   : > { %s9523_s29 = scalar_lea.vmem %s9522_s6, 64  ;;  %p9524_p11 = scmp.lt.s32.totalorder %s648_s7, %s9522_s6 }
 0x10c   : > { %p9519_p13 = pnand %p9517_p8, %p11856_p2  ;;  %p9525_p1 = scmp.lt.s32.totalorder %s9523_s29, %s9516_s3 }
 0x10e   : > { %p9520_p6 = pneg %p9519_p13  ;;  %p9526_p7 = por %p9525_p1, %p9524_p11 }
 0x110   : > { %p9527_p10 = pnand %p9526_p7, %p9520_p6 }
 0x112   : > { %9530 = shalt.err (!%p9527_p10)
}
 0x113   : > { %p11859_p12 = scmp.ne.s32.totalorder %s11847_s26, 0  ;;  %p11860_p4 = scmp.ne.s32.totalorder %s11837_s28, 0 }
 0x114   : > { %p11861_p0 = scmp.eq.s32.totalorder (!%p11860_p4), %s9765_s27, 0 }
 0x115   : > { %8719 = dma.hbm_to_vmem [thread:$0]  (!%p11859_p12), %s10020_s0, 32, %s648_s7, %s636_s9  }
 0x116   : > { %656 = sbr.rel (%p11860_p4) target bundleno = 1925 (0x785), region = 92 }
 0x11d   : > { %9574 = dma.done.wait (%p11861_p0), [#allocation11], 2048   ;;  %p11862_p2 = pmov %p11861_p0 }
 0x11e   : > { %s662_s12 = sand.u32 1, %s9765_s27   ;;  %s664_s17 = sand.u32 1, %s9607_s25  }
 0x11f   : > { %9576 = vsyncadd (%p11862_p2), [#allocation11], 4294965248  ;;  %s8656_s18 = smul.u32 2304, %s664_s17  ;;  %s663_s21 = scalar_lea.sflag [#allocation14], %s662_s12 }
 0x120   : > { %p11863_p7 = scmp.ne.s32.totalorder %s11846_s30, 0 }
 0x121   : > { %s10050_s22 = scalar_lea.vmem [#allocation13], %s8656_s18 }
 0x122   : > { %9578 = dma.done.wait (%p11863_p7), %s663_s21, 36896  }
 0x123   : > { %9580 = vsyncadd (%p11863_p7), %s663_s21, 4294930400  ;;  %s10056_s28 = sshll.u32 %s664_s17, 1  ;;  %s681_s0 = scalar_lea.sflag [#allocation17], %s662_s12 }
 0x124   : > { %s675_s26 = scalar_lea.vmem [#allocation15], %s10056_s28  ;;  %s684_s7 = scalar_lea.vmem [#allocation16], %s10056_s28 }
 0x125   : > { %9582 = dma.done.wait (%p11863_p7), %s681_s0, 32  }
 0x126   : > { %9584 = vsyncadd (%p11863_p7), %s681_s0, 4294967264  ;;  %p11864_p5 = pmov %p11861_p0 }
 0x127   : > { %p11865_p9 = pmov %p11861_p0 }
 0x128   : > { %9586 = dma.done.wait (%p11864_p5), [#allocation17], 16  }
 0x129   : > { %9588 = vsyncadd (%p11865_p9), [#allocation17], 4294967280  ;;  %p11866_p3 = pmov %p11861_p0 }
 0x12a   : > { %p11867_p8 = pmov %p11861_p0 }
 0x12b   : > { %9590 = dma.done.wait (%p11866_p3), [#allocation20], 32  }
 0x12c   : > { %9592 = vsyncadd (%p11867_p8), [#allocation20], 4294967264  ;;  %p11868_p13 = pmov %p11861_p0 }
 0x12d   : > { %p11869_p6 = pmov %p11861_p0 }
 0x12e   : > { %9594 = dma.done.wait (%p11868_p13), [#allocation23], 64  }
 0x12f   : > { %9596 = vsyncadd (%p11869_p6), [#allocation23], 4294967232  ;;  %p11870_p11 = scmp.ne.s32.totalorder %s9765_s27, 0 }
 0x130   : > { %s10078_s30 = sld [smem:[#allocation6]] (!%p11870_p11)  ;;  %v9628_v3 = vmov (!%p11870_p11), 0.0   ;;  %v881_v4 = vld [vmem:[#allocation10] sm:$0xff] (!%p11870_p11)  ;;  %v882_v5 = vld [vmem:[#allocation10 + $0x8] sm:$0xff] (!%p11870_p11)  ;;  %v883_v6 = vld [vmem:[#allocation10 + $0x10] sm:$0xff] (!%p11870_p11)  ;;  %vm915_vm0 = vcmask (!%p11870_p11), 64512  }
 0x131   : > { %768 = sbr.rel (%p11870_p11) target bundleno = 369 (0x171), region = 132  ;;  %849 = vst [vmem:[#allocation2] sm:$0xff] (!%p11870_p11), %v9628_v3  ;;  %769 = vst [vmem:[#allocation4] sm:$0xff] (!%p11870_p11), %v9628_v3  ;;  %v884_v7 = vld [vmem:[#allocation10 + $0x18] sm:$0xff] (!%p11870_p11)  ;;  %v885_v8 = vld [vmem:[#allocation10 + $0x20] sm:$0xff] (!%p11870_p11) }
 0x132   : > { %770 = vst [vmem:[#allocation4 + $0x8] sm:$0xff] (!%p11870_p11), %v9628_v3  ;;  %771 = vst [vmem:[#allocation4 + $0x10] sm:$0x3] (!%p11870_p11), %v9628_v3  ;;  %v886_v9 = vld [vmem:[#allocation10 + $0x28] sm:$0xff] (!%p11870_p11)  ;;  %v887_v10 = vld [vmem:[#allocation10 + $0x30] sm:$0xff] (!%p11870_p11) }
 0x133   : > { %772 = vst [vmem:[#allocation4 + $0x18] sm:$0x3] (!%p11870_p11), %v9628_v3  ;;  %773 = vst [vmem:[#allocation4 + $0x20] sm:$0xff] (!%p11870_p11), %v9628_v3  ;;  %v888_v11 = vld [vmem:[#allocation10 + $0x38] sm:$0xff] (!%p11870_p11)  ;;  %v889_v12 = vld [vmem:[#allocation10 + $0x40] sm:$0xff] (!%p11870_p11) }
 0x134   : > { %774 = vst [vmem:[#allocation4 + $0x28] sm:$0xff] (!%p11870_p11), %v9628_v3  ;;  %775 = vst [vmem:[#allocation4 + $0x30] sm:$0x3] (!%p11870_p11), %v9628_v3  ;;  %v890_v13 = vld [vmem:[#allocation10 + $0x48] sm:$0xff] (!%p11870_p11)  ;;  %v891_v15 = vld [vmem:[#allocation10 + $0x50] sm:$0xff] (!%p11870_p11) }
 0x135   : > { %776 = vst [vmem:[#allocation4 + $0x38] sm:$0x3] (!%p11870_p11), %v9628_v3  ;;  %777 = vst [vmem:[#allocation4 + $0x40] sm:$0xff] (!%p11870_p11), %v9628_v3  ;;  %v892_v16 = vld [vmem:[#allocation10 + $0x58] sm:$0xff] (!%p11870_p11)  ;;  %v893_v17 = vld [vmem:[#allocation10 + $0x60] sm:$0xff] (!%p11870_p11) }
 0x136   : > { %778 = vst [vmem:[#allocation4 + $0x48] sm:$0xff] (!%p11870_p11), %v9628_v3  ;;  %779 = vst [vmem:[#allocation4 + $0x50] sm:$0x3] (!%p11870_p11), %v9628_v3  ;;  %v898_v14 = vstv (!%p11870_p11), %s10078_s30  ;;  %v894_v22 = vld [vmem:[#allocation10 + $0x68] sm:$0xff] (!%p11870_p11)  ;;  %v895_v23 = vld [vmem:[#allocation10 + $0x70] sm:$0xff] (!%p11870_p11) }
 0x137   : > { %780 = vst [vmem:[#allocation4 + $0x58] sm:$0x3] (!%p11870_p11), %v9628_v3  ;;  %781 = vst [vmem:[#allocation4 + $0x60] sm:$0xff] (!%p11870_p11), %v9628_v3  ;;  %v899_v18 = vmul.f32 (!%p11870_p11), %v898_v14, %v881_v4  ;;  %v900_v19 = vmul.f32 (!%p11870_p11), %v898_v14, %v882_v5  ;;  %v901_v20 = vmul.f32 (!%p11870_p11), %v898_v14, %v883_v6  ;;  %v896_v24 = vld [vmem:[#allocation10 + $0x78] sm:$0xff] (!%p11870_p11) }
 0x138   : > { %782 = vst [vmem:[#allocation4 + $0x68] sm:$0xff] %v9628_v3  ;;  %783 = vst [vmem:[#allocation4 + $0x70] sm:$0x3] %v9628_v3  ;;  %v902_v21 = vmul.f32 %v898_v14, %v884_v7  ;;  %v903_v25 = vmul.f32 %v898_v14, %v885_v8  ;;  %v904_v26 = vmul.f32 %v898_v14, %v886_v9 }
 0x139   : > { %784 = vst [vmem:[#allocation4 + $0x78] sm:$0x3] %v9628_v3  ;;  %785 = vst [vmem:[#allocation4 + $0x80] sm:$0xff] %v9628_v3  ;;  %v905_v27 = vmul.f32 %v898_v14, %v887_v10  ;;  %v906_v28 = vmul.f32 %v898_v14, %v888_v11  ;;  %v907_v29 = vmul.f32 %v898_v14, %v889_v12 }
 0x13a   : > { %786 = vst [vmem:[#allocation4 + $0x88] sm:$0xff] %v9628_v3  ;;  %787 = vst [vmem:[#allocation4 + $0x90] sm:$0x3] %v9628_v3  ;;  %v908_v30 = vmul.f32 %v898_v14, %v890_v13  ;;  %v909_v31 = vmul.f32 %v898_v14, %v891_v15  ;;  %v910_v32 = vmul.f32 %v898_v14, %v892_v16 }
 0x13b   : > { %788 = vst [vmem:[#allocation4 + $0x98] sm:$0x3] %v9628_v3  ;;  %789 = vst [vmem:[#allocation4 + $0xa0] sm:$0xff] %v9628_v3  ;;  %v911_v33 = vmul.f32 %v898_v14, %v893_v17  ;;  %v912_v34 = vmul.f32 %v898_v14, %v894_v22  ;;  %v913_v35 = vmul.f32 %v898_v14, %v895_v23 }
 0x13c   : > { %790 = vst [vmem:[#allocation4 + $0xa8] sm:$0xff] %v9628_v3  ;;  %791 = vst [vmem:[#allocation4 + $0xb0] sm:$0x3] %v9628_v3  ;;  %v914_v36 = vmul.f32 %v898_v14, %v896_v24 }
 0x13d   : > { %792 = vst [vmem:[#allocation4 + $0xb8] sm:$0x3] %v9628_v3  ;;  %793 = vst [vmem:[#allocation4 + $0xc0] sm:$0xff] %v9628_v3 }
 0x13e   : > { %794 = vst [vmem:[#allocation4 + $0xc8] sm:$0xff] %v9628_v3  ;;  %795 = vst [vmem:[#allocation4 + $0xd0] sm:$0x3] %v9628_v3 }
 0x13f   : > { %796 = vst [vmem:[#allocation4 + $0xd8] sm:$0x3] %v9628_v3  ;;  %797 = vst [vmem:[#allocation4 + $0xe0] sm:$0xff] %v9628_v3 }
 0x140   : > { %798 = vst [vmem:[#allocation4 + $0xe8] sm:$0xff] %v9628_v3  ;;  %799 = vst [vmem:[#allocation4 + $0xf0] sm:$0x3] %v9628_v3 }
 0x141   : > { %800 = vst [vmem:[#allocation4 + $0xf8] sm:$0x3] %v9628_v3  ;;  %801 = vst [vmem:[#allocation4 + $0x100] sm:$0xff] %v9628_v3 }
 0x142   : > { %802 = vst [vmem:[#allocation4 + $0x108] sm:$0xff] %v9628_v3  ;;  %803 = vst [vmem:[#allocation4 + $0x110] sm:$0x3] %v9628_v3 }
 0x143   : > { %804 = vst [vmem:[#allocation4 + $0x118] sm:$0x3] %v9628_v3  ;;  %805 = vst [vmem:[#allocation4 + $0x120] sm:$0xff] %v9628_v3 }
 0x144   : > { %806 = vst [vmem:[#allocation4 + $0x128] sm:$0xff] %v9628_v3  ;;  %807 = vst [vmem:[#allocation4 + $0x130] sm:$0x3] %v9628_v3 }
 0x145   : > { %808 = vst [vmem:[#allocation4 + $0x138] sm:$0x3] %v9628_v3  ;;  %809 = vst [vmem:[#allocation4 + $0x140] sm:$0xff] %v9628_v3 }
 0x146   : > { %810 = vst [vmem:[#allocation4 + $0x148] sm:$0xff] %v9628_v3  ;;  %811 = vst [vmem:[#allocation4 + $0x150] sm:$0x3] %v9628_v3 }
 0x147   : > { %812 = vst [vmem:[#allocation4 + $0x158] sm:$0x3] %v9628_v3  ;;  %813 = vst [vmem:[#allocation4 + $0x160] sm:$0xff] %v9628_v3 }
 0x148   : > { %814 = vst [vmem:[#allocation4 + $0x168] sm:$0xff] %v9628_v3  ;;  %815 = vst [vmem:[#allocation4 + $0x170] sm:$0x3] %v9628_v3 }
 0x149   : > { %816 = vst [vmem:[#allocation4 + $0x178] sm:$0x3] %v9628_v3  ;;  %817 = vst [vmem:[#allocation4 + $0x180] sm:$0xff] %v9628_v3 }
 0x14a   : > { %818 = vst [vmem:[#allocation4 + $0x188] sm:$0xff] %v9628_v3  ;;  %819 = vst [vmem:[#allocation4 + $0x190] sm:$0x3] %v9628_v3 }
 0x14b   : > { %820 = vst [vmem:[#allocation4 + $0x198] sm:$0x3] %v9628_v3  ;;  %821 = vst [vmem:[#allocation4 + $0x1a0] sm:$0xff] %v9628_v3 }
 0x14c   : > { %822 = vst [vmem:[#allocation4 + $0x1a8] sm:$0xff] %v9628_v3  ;;  %823 = vst [vmem:[#allocation4 + $0x1b0] sm:$0x3] %v9628_v3 }
 0x14d   : > { %824 = vst [vmem:[#allocation4 + $0x1b8] sm:$0x3] %v9628_v3  ;;  %825 = vst [vmem:[#allocation4 + $0x1c0] sm:$0xff] %v9628_v3 }
 0x14e   : > { %826 = vst [vmem:[#allocation4 + $0x1c8] sm:$0xff] %v9628_v3  ;;  %827 = vst [vmem:[#allocation4 + $0x1d0] sm:$0x3] %v9628_v3 }
 0x14f   : > { %828 = vst [vmem:[#allocation4 + $0x1d8] sm:$0x3] %v9628_v3  ;;  %829 = vst [vmem:[#allocation4 + $0x1e0] sm:$0xff] %v9628_v3 }
 0x150   : > { %830 = vst [vmem:[#allocation4 + $0x1e8] sm:$0xff] %v9628_v3  ;;  %831 = vst [vmem:[#allocation4 + $0x1f0] sm:$0x3] %v9628_v3 }
 0x151   : > { %832 = vst [vmem:[#allocation4 + $0x1f8] sm:$0x3] %v9628_v3  ;;  %833 = vst [vmem:[#allocation4 + $0x200] sm:$0xff] %v9628_v3 }
 0x152   : > { %834 = vst [vmem:[#allocation4 + $0x208] sm:$0xff] %v9628_v3  ;;  %835 = vst [vmem:[#allocation4 + $0x210] sm:$0x3] %v9628_v3 }
 0x153   : > { %836 = vst [vmem:[#allocation4 + $0x218] sm:$0x3] %v9628_v3  ;;  %837 = vst [vmem:[#allocation4 + $0x220] sm:$0xff] %v9628_v3 }
 0x154   : > { %838 = vst [vmem:[#allocation4 + $0x228] sm:$0xff] %v9628_v3  ;;  %839 = vst [vmem:[#allocation4 + $0x230] sm:$0x3] %v9628_v3 }
 0x155   : > { %840 = vst [vmem:[#allocation4 + $0x238] sm:$0x3] %v9628_v3  ;;  %841 = vst [vmem:[#allocation4 + $0x240] sm:$0xff] %v9628_v3 }
 0x156   : > { %842 = vst [vmem:[#allocation4 + $0x248] sm:$0xff] %v9628_v3  ;;  %843 = vst [vmem:[#allocation4 + $0x250] sm:$0x3] %v9628_v3 }
 0x157   : > { %844 = vst [vmem:[#allocation4 + $0x258] sm:$0x3] %v9628_v3  ;;  %845 = vst [vmem:[#allocation4 + $0x260] sm:$0xff] %v9628_v3 }
 0x158   : > { %846 = vst [vmem:[#allocation4 + $0x268] sm:$0xff] %v9628_v3  ;;  %847 = vst [vmem:[#allocation4 + $0x270] sm:$0x3] %v9628_v3 }
 0x159   : > { %848 = vst [vmem:[#allocation4 + $0x278] sm:$0x3] %v9628_v3  ;;  %850 = vst [vmem:[#allocation2 + $0x8] sm:$0xff] %v9628_v3 }
 0x15a   : > { %851 = vst [vmem:[#allocation2 + $0x10] sm:$0xff] %v9628_v3  ;;  %852 = vst [vmem:[#allocation2 + $0x18] sm:$0xff] %v9628_v3 }
 0x15b   : > { %853 = vst [vmem:[#allocation2 + $0x20] sm:$0xff] %v9628_v3  ;;  %854 = vst [vmem:[#allocation2 + $0x28] sm:$0xff] %v9628_v3 }
 0x15c   : > { %855 = vst [vmem:[#allocation2 + $0x30] sm:$0xff] %v9628_v3  ;;  %856 = vst [vmem:[#allocation2 + $0x38] sm:$0xff] %v9628_v3 }
 0x15d   : > { %857 = vst [vmem:[#allocation2 + $0x40] sm:$0xff] %v9628_v3  ;;  %858 = vst [vmem:[#allocation2 + $0x48] sm:$0xff] %v9628_v3 }
 0x15e   : > { %859 = vst [vmem:[#allocation2 + $0x50] sm:$0xff] %v9628_v3  ;;  %860 = vst [vmem:[#allocation2 + $0x58] sm:$0xff] %v9628_v3 }
 0x15f   : > { %861 = vst [vmem:[#allocation2 + $0x60] sm:$0xff] %v9628_v3  ;;  %862 = vst [vmem:[#allocation2 + $0x68] sm:$0xff] %v9628_v3 }
 0x160   : > { %863 = vst [vmem:[#allocation2 + $0x70] sm:$0xff] %v9628_v3  ;;  %864 = vst [vmem:[#allocation2 + $0x78] sm:$0xff] %v9628_v3 }
 0x161   : > { %865 = vst [vmem:[#allocation2 + $0x80] sm:$0xff] %v9628_v3  ;;  %866 = vst [vmem:[#allocation2 + $0x88] sm:$0xff] %v9628_v3 }
 0x162   : > { %867 = vst [vmem:[#allocation2 + $0x90] sm:$0xff] %v9628_v3  ;;  %868 = vst [vmem:[#allocation2 + $0x98] sm:$0xff] %v9628_v3 }
 0x163   : > { %869 = vst [vmem:[#allocation2 + $0xa0] sm:$0xff] %v9628_v3  ;;  %870 = vst [vmem:[#allocation2 + $0xa8] sm:$0xff] %v9628_v3 }
 0x164   : > { %871 = vst [vmem:[#allocation2 + $0xb0] sm:$0xff] %v9628_v3  ;;  %872 = vst [vmem:[#allocation2 + $0xb8] sm:$0xff] %v9628_v3 }
 0x165   : > { %873 = vst [vmem:[#allocation2 + $0xc0] sm:$0xff] %v9628_v3  ;;  %874 = vst [vmem:[#allocation2 + $0xc8] sm:$0xff] %v9628_v3 }
 0x166   : > { %875 = vst [vmem:[#allocation2 + $0xd0] sm:$0xff] %v9628_v3  ;;  %876 = vst [vmem:[#allocation2 + $0xd8] sm:$0xff] %v9628_v3 }
 0x167   : > { %877 = vst [vmem:[#allocation2 + $0xe0] sm:$0xff] %v9628_v3  ;;  %878 = vst [vmem:[#allocation2 + $0xe8] sm:$0xff] %v9628_v3 }
 0x168   : > { %879 = vst [vmem:[#allocation2 + $0xf0] sm:$0xff] %v9628_v3  ;;  %880 = vst [vmem:[#allocation2 + $0xf8] sm:$0xff] %v9628_v3 }
 0x169   : > { %916 = vst.msk [vmem:[#allocation2] sm:$0xff] %vm915_vm0, %v899_v18  ;;  %917 = vst.msk [vmem:[#allocation2 + $0x10] sm:$0xff] %vm915_vm0, %v900_v19 }
 0x16a   : > { %918 = vst.msk [vmem:[#allocation2 + $0x20] sm:$0xff] %vm915_vm0, %v901_v20  ;;  %919 = vst.msk [vmem:[#allocation2 + $0x30] sm:$0xff] %vm915_vm0, %v902_v21 }
 0x16b   : > { %920 = vst.msk [vmem:[#allocation2 + $0x40] sm:$0xff] %vm915_vm0, %v903_v25  ;;  %921 = vst.msk [vmem:[#allocation2 + $0x50] sm:$0xff] %vm915_vm0, %v904_v26 }
 0x16c   : > { %922 = vst.msk [vmem:[#allocation2 + $0x60] sm:$0xff] %vm915_vm0, %v905_v27  ;;  %923 = vst.msk [vmem:[#allocation2 + $0x70] sm:$0xff] %vm915_vm0, %v906_v28 }
 0x16d   : > { %924 = vst.msk [vmem:[#allocation2 + $0x80] sm:$0xff] %vm915_vm0, %v907_v29  ;;  %925 = vst.msk [vmem:[#allocation2 + $0x90] sm:$0xff] %vm915_vm0, %v908_v30 }
 0x16e   : > { %926 = vst.msk [vmem:[#allocation2 + $0xa0] sm:$0xff] %vm915_vm0, %v909_v31  ;;  %927 = vst.msk [vmem:[#allocation2 + $0xb0] sm:$0xff] %vm915_vm0, %v910_v32 }
 0x16f   : > { %928 = vst.msk [vmem:[#allocation2 + $0xc0] sm:$0xff] %vm915_vm0, %v911_v33  ;;  %929 = vst.msk [vmem:[#allocation2 + $0xd0] sm:$0xff] %vm915_vm0, %v912_v34 }
 0x170   : > { %930 = vst.msk [vmem:[#allocation2 + $0xe0] sm:$0xff] %vm915_vm0, %v913_v35  ;;  %931 = vst.msk [vmem:[#allocation2 + $0xf0] sm:$0xff] %vm915_vm0, %v914_v36 }
 0x171 PF: > { %p932_p1 = scmp.lt.s32.totalorder %s9765_s27, 0  ;;  %s933_s1 = ssub.s32 0, %s9765_s27 }
 0x172   : > { %s7900_s9 = smin.u32 %s9765_s27, %s933_s1  ;;  %p11871_p4 = scmp.eq.s32.totalorder %s9765_s27, 0 }
 0x173   : > { %s935_s20 = sand.u32 1, %s7900_s9  }
 0x174   : > { %s936_s15 = ssub.s32 0, %s935_s20 }
 0x175   : > { %s11888_s15 = smov (!%p932_p1, %s936_s15), %s935_s20 }
 0x176   : > { %p7902_p10 = scmp.lt.s32.totalorder %s11888_s15, 0  ;;  %s942_s14 = sadd.s32 2, %s11888_s15 }
 0x178   : > { %s11890_s14 = smov (!%p7902_p10, %s942_s14), %s11888_s15 }
 0x179   : > { %p944_p12 = scmp.eq.s32.totalorder %s11890_s14, 1 }
 0x17b   : > { %p945_p0 = por %p944_p12, %p11871_p4 }
 0x17c   : > { %v949_v37 = vld [vmem:[#allocation2] sm:$0xff] (%p945_p0)  ;;  %v950_v38 = vld [vmem:[#allocation2 + $0x8] sm:$0xff] (%p945_p0)  ;;  %v951_v39 = vld [vmem:[#allocation2 + $0x10] sm:$0xff] (%p945_p0) }
 0x17d   : > { %948 = sbr.rel (!%p945_p0) target bundleno = 415 (0x19f), region = 136  ;;  %v1013_v40 = vrot.slane (%p945_p0), %v949_v37, 7  ;;  %v1014_v41 = vrot.slane (%p945_p0), %v950_v38, 7  ;;  %v1015_v42 = vrot.slane (%p945_p0), %v951_v39, 7  ;;  %v952_v43 = vld [vmem:[#allocation2 + $0x18] sm:$0xff] (%p945_p0)  ;;  %v953_v44 = vld [vmem:[#allocation2 + $0x20] sm:$0xff] (%p945_p0) }
 0x17e   : > { %v954_v45 = vld [vmem:[#allocation2 + $0x28] sm:$0xff] (%p945_p0)  ;;  %v1016_v46 = vrot.slane (%p945_p0), %v952_v43, 7  ;;  %v1017_v47 = vrot.slane (%p945_p0), %v953_v44, 7  ;;  %v955_v49 = vld [vmem:[#allocation2 + $0x30] sm:$0xff] (%p945_p0)  ;;  %v956_v50 = vld [vmem:[#allocation2 + $0x38] sm:$0xff] (%p945_p0) }
 0x17f   : > { %v1018_v48 = vrot.slane (%p945_p0), %v954_v45, 7  ;;  %v957_v51 = vld [vmem:[#allocation2 + $0x40] sm:$0xff] (%p945_p0)  ;;  %1078 = vst [vmem:[#allocation4 + $0x20] sm:$0xfe] (%p945_p0), %v1013_v40  ;;  %1080 = vst [vmem:[#allocation4 + $0x30] sm:$0x1] (%p945_p0), %v1013_v40 }
 0x180   : > { %1079 = vst [vmem:[#allocation4 + $0x28] sm:$0xfe] (%p945_p0), %v1014_v41  ;;  %1081 = vst [vmem:[#allocation4 + $0x38] sm:$0x1] (%p945_p0), %v1014_v41  ;;  %v1019_v52 = vrot.slane (%p945_p0), %v955_v49, 7  ;;  %v1020_v53 = vrot.slane (%p945_p0), %v956_v50, 7 }
 0x181   : > { %1082 = vst [vmem:[#allocation4 + $0x40] sm:$0xfe] (%p945_p0), %v1015_v42  ;;  %1084 = vst [vmem:[#allocation4 + $0x50] sm:$0x1] (%p945_p0), %v1015_v42  ;;  %v1021_v54 = vrot.slane (%p945_p0), %v957_v51, 7  ;;  %v958_v55 = vld [vmem:[#allocation2 + $0x48] sm:$0xff] (%p945_p0) }
 0x182   : > { %v959_v56 = vld [vmem:[#allocation2 + $0x50] sm:$0xff] (%p945_p0)  ;;  %v960_v57 = vld [vmem:[#allocation2 + $0x58] sm:$0xff] (%p945_p0)  ;;  %1083 = vst [vmem:[#allocation4 + $0x48] sm:$0xfe] (%p945_p0), %v1016_v46  ;;  %1085 = vst [vmem:[#allocation4 + $0x58] sm:$0x1] (%p945_p0), %v1016_v46 }
 0x183   : > { %1086 = vst [vmem:[#allocation4 + $0x60] sm:$0xfe] (%p945_p0), %v1017_v47  ;;  %1088 = vst [vmem:[#allocation4 + $0x70] sm:$0x1] (%p945_p0), %v1017_v47  ;;  %v1022_v58 = vrot.slane (%p945_p0), %v958_v55, 7  ;;  %v1023_v59 = vrot.slane (%p945_p0), %v959_v56, 7 }
 0x184   : > { %1087 = vst [vmem:[#allocation4 + $0x68] sm:$0xfe] %v1018_v48  ;;  %1089 = vst [vmem:[#allocation4 + $0x78] sm:$0x1] %v1018_v48  ;;  %v1024_v60 = vrot.slane %v960_v57, 7  ;;  %v961_v61 = vld [vmem:[#allocation2 + $0x60] sm:$0xff] }
 0x185   : > { %v962_v62 = vld [vmem:[#allocation2 + $0x68] sm:$0xff]  ;;  %v963_v63 = vld [vmem:[#allocation2 + $0x70] sm:$0xff]  ;;  %1090 = vst [vmem:[#allocation4 + $0x80] sm:$0xfe] %v1019_v52  ;;  %1092 = vst [vmem:[#allocation4 + $0x90] sm:$0x1] %v1019_v52 }
 0x186   : > { %1091 = vst [vmem:[#allocation4 + $0x88] sm:$0xfe] %v1020_v53  ;;  %1093 = vst [vmem:[#allocation4 + $0x98] sm:$0x1] %v1020_v53  ;;  %v1025_v0 = vrot.slane %v961_v61, 7  ;;  %v1026_v1 = vrot.slane %v962_v62, 7 }
 0x187   : > { %1094 = vst [vmem:[#allocation4 + $0xa0] sm:$0xfe] %v1021_v54  ;;  %1096 = vst [vmem:[#allocation4 + $0xb0] sm:$0x1] %v1021_v54  ;;  %v1027_v2 = vrot.slane %v963_v63, 7  ;;  %v964_v3 = vld [vmem:[#allocation2 + $0x78] sm:$0xff] }
 0x188   : > { %v965_v4 = vld [vmem:[#allocation2 + $0x80] sm:$0xff]  ;;  %v966_v5 = vld [vmem:[#allocation2 + $0x88] sm:$0xff]  ;;  %1095 = vst [vmem:[#allocation4 + $0xa8] sm:$0xfe] %v1022_v58  ;;  %1097 = vst [vmem:[#allocation4 + $0xb8] sm:$0x1] %v1022_v58 }
 0x189   : > { %1098 = vst [vmem:[#allocation4 + $0xc0] sm:$0xfe] %v1023_v59  ;;  %1100 = vst [vmem:[#allocation4 + $0xd0] sm:$0x1] %v1023_v59  ;;  %v1028_v6 = vrot.slane %v964_v3, 7  ;;  %v1029_v7 = vrot.slane %v965_v4, 7 }
 0x18a   : > { %1099 = vst [vmem:[#allocation4 + $0xc8] sm:$0xfe] %v1024_v60  ;;  %1101 = vst [vmem:[#allocation4 + $0xd8] sm:$0x1] %v1024_v60  ;;  %v1030_v8 = vrot.slane %v966_v5, 7  ;;  %v967_v9 = vld [vmem:[#allocation2 + $0x90] sm:$0xff] }
 0x18b   : > { %v968_v10 = vld [vmem:[#allocation2 + $0x98] sm:$0xff]  ;;  %v969_v11 = vld [vmem:[#allocation2 + $0xa0] sm:$0xff]  ;;  %1102 = vst [vmem:[#allocation4 + $0xe0] sm:$0xfe] %v1025_v0  ;;  %1104 = vst [vmem:[#allocation4 + $0xf0] sm:$0x1] %v1025_v0 }
 0x18c   : > { %1103 = vst [vmem:[#allocation4 + $0xe8] sm:$0xfe] %v1026_v1  ;;  %1105 = vst [vmem:[#allocation4 + $0xf8] sm:$0x1] %v1026_v1  ;;  %v1031_v12 = vrot.slane %v967_v9, 7  ;;  %v1032_v13 = vrot.slane %v968_v10, 7 }
 0x18d   : > { %1106 = vst [vmem:[#allocation4 + $0x100] sm:$0xfe] %v1027_v2  ;;  %1108 = vst [vmem:[#allocation4 + $0x110] sm:$0x1] %v1027_v2  ;;  %v1033_v14 = vrot.slane %v969_v11, 7  ;;  %v970_v15 = vld [vmem:[#allocation2 + $0xa8] sm:$0xff] }
 0x18e   : > { %v971_v16 = vld [vmem:[#allocation2 + $0xb0] sm:$0xff]  ;;  %v972_v17 = vld [vmem:[#allocation2 + $0xb8] sm:$0xff]  ;;  %1107 = vst [vmem:[#allocation4 + $0x108] sm:$0xfe] %v1028_v6  ;;  %1109 = vst [vmem:[#allocation4 + $0x118] sm:$0x1] %v1028_v6 }
 0x18f   : > { %1110 = vst [vmem:[#allocation4 + $0x160] sm:$0xfe] %v1029_v7  ;;  %1112 = vst [vmem:[#allocation4 + $0x170] sm:$0x1] %v1029_v7  ;;  %v1034_v18 = vrot.slane %v970_v15, 7  ;;  %v1035_v19 = vrot.slane %v971_v16, 7 }
 0x190   : > { %1111 = vst [vmem:[#allocation4 + $0x168] sm:$0xfe] %v1030_v8  ;;  %1113 = vst [vmem:[#allocation4 + $0x178] sm:$0x1] %v1030_v8  ;;  %v1036_v20 = vrot.slane %v972_v17, 7  ;;  %v973_v21 = vld [vmem:[#allocation2 + $0xc0] sm:$0xff] }
 0x191   : > { %v974_v22 = vld [vmem:[#allocation2 + $0xc8] sm:$0xff]  ;;  %v975_v23 = vld [vmem:[#allocation2 + $0xd0] sm:$0xff]  ;;  %1114 = vst [vmem:[#allocation4 + $0x180] sm:$0xfe] %v1031_v12  ;;  %1116 = vst [vmem:[#allocation4 + $0x190] sm:$0x1] %v1031_v12 }
 0x192   : > { %1115 = vst [vmem:[#allocation4 + $0x188] sm:$0xfe] %v1032_v13  ;;  %1117 = vst [vmem:[#allocation4 + $0x198] sm:$0x1] %v1032_v13  ;;  %v1037_v24 = vrot.slane %v973_v21, 7  ;;  %v1038_v25 = vrot.slane %v974_v22, 7 }
 0x193   : > { %1118 = vst [vmem:[#allocation4 + $0x1a0] sm:$0xfe] %v1033_v14  ;;  %1120 = vst [vmem:[#allocation4 + $0x1b0] sm:$0x1] %v1033_v14  ;;  %v1039_v26 = vrot.slane %v975_v23, 7  ;;  %v976_v27 = vld [vmem:[#allocation2 + $0xd8] sm:$0xff] }
 0x194   : > { %v977_v28 = vld [vmem:[#allocation2 + $0xe0] sm:$0xff]  ;;  %v978_v29 = vld [vmem:[#allocation2 + $0xe8] sm:$0xff]  ;;  %1119 = vst [vmem:[#allocation4 + $0x1a8] sm:$0xfe] %v1034_v18  ;;  %1121 = vst [vmem:[#allocation4 + $0x1b8] sm:$0x1] %v1034_v18 }
 0x195   : > { %1122 = vst [vmem:[#allocation4 + $0x1c0] sm:$0xfe] %v1035_v19  ;;  %1124 = vst [vmem:[#allocation4 + $0x1d0] sm:$0x1] %v1035_v19  ;;  %v1040_v30 = vrot.slane %v976_v27, 7  ;;  %v1041_v31 = vrot.slane %v977_v28, 7 }
 0x196   : > { %1123 = vst [vmem:[#allocation4 + $0x1c8] sm:$0xfe] %v1036_v20  ;;  %1125 = vst [vmem:[#allocation4 + $0x1d8] sm:$0x1] %v1036_v20  ;;  %v1042_v32 = vrot.slane %v978_v29, 7  ;;  %v979_v33 = vld [vmem:[#allocation2 + $0xf0] sm:$0xff] }
 0x197   : > { %v980_v34 = vld [vmem:[#allocation2 + $0xf8] sm:$0xff]  ;;  %1126 = vst [vmem:[#allocation4 + $0x1e0] sm:$0xfe] %v1037_v24  ;;  %1128 = vst [vmem:[#allocation4 + $0x1f0] sm:$0x1] %v1037_v24  ;;  %v1043_v35 = vrot.slane %v979_v33, 7 }
 0x198   : > { %1127 = vst [vmem:[#allocation4 + $0x1e8] sm:$0xfe] %v1038_v25  ;;  %1129 = vst [vmem:[#allocation4 + $0x1f8] sm:$0x1] %v1038_v25  ;;  %v1044_v36 = vrot.slane %v980_v34, 7 }
 0x199   : > { %1130 = vst [vmem:[#allocation4 + $0x200] sm:$0xfe] %v1039_v26  ;;  %1132 = vst [vmem:[#allocation4 + $0x210] sm:$0x1] %v1039_v26 }
 0x19a   : > { %1131 = vst [vmem:[#allocation4 + $0x208] sm:$0xfe] %v1040_v30  ;;  %1133 = vst [vmem:[#allocation4 + $0x218] sm:$0x1] %v1040_v30 }
 0x19b   : > { %1134 = vst [vmem:[#allocation4 + $0x220] sm:$0xfe] %v1041_v31  ;;  %1136 = vst [vmem:[#allocation4 + $0x230] sm:$0x1] %v1041_v31 }
 0x19c   : > { %1135 = vst [vmem:[#allocation4 + $0x228] sm:$0xfe] %v1042_v32  ;;  %1137 = vst [vmem:[#allocation4 + $0x238] sm:$0x1] %v1042_v32 }
 0x19d   : > { %1138 = vst [vmem:[#allocation4 + $0x240] sm:$0xfe] %v1043_v35  ;;  %1140 = vst [vmem:[#allocation4 + $0x250] sm:$0x1] %v1043_v35 }
 0x19e   : > { %1139 = vst [vmem:[#allocation4 + $0x248] sm:$0xfe] %v1044_v36  ;;  %1141 = vst [vmem:[#allocation4 + $0x258] sm:$0x1] %v1044_v36 }
 0x19f PF: > { %p1142_p2 = scmp.gt.s32.totalorder %s9765_s27, 0  ;;  %p1143_p7 = scmp.eq.s32.totalorder %s11890_s14, 0 }
 0x1a1   : > { %p10219_p5 = pnand %p1143_p7, %p1142_p2 }
 0x1a2   : > { %v1148_v37 = vld [vmem:[#allocation3] sm:$0xff] (!%p10219_p5)  ;;  %v1149_v38 = vld [vmem:[#allocation3 + $0x8] sm:$0xff] (!%p10219_p5)  ;;  %v1150_v39 = vld [vmem:[#allocation3 + $0x10] sm:$0xff] (!%p10219_p5) }
 0x1a3   : > { %1147 = sbr.rel (%p10219_p5) target bundleno = 453 (0x1c5), region = 140  ;;  %v1212_v40 = vrot.slane (!%p10219_p5), %v1148_v37, 7  ;;  %v1213_v41 = vrot.slane (!%p10219_p5), %v1149_v38, 7  ;;  %v1214_v42 = vrot.slane (!%p10219_p5), %v1150_v39, 7  ;;  %v1151_v43 = vld [vmem:[#allocation3 + $0x18] sm:$0xff] (!%p10219_p5)  ;;  %v1152_v44 = vld [vmem:[#allocation3 + $0x20] sm:$0xff] (!%p10219_p5) }
 0x1a4   : > { %v1153_v45 = vld [vmem:[#allocation3 + $0x28] sm:$0xff] (!%p10219_p5)  ;;  %v1215_v46 = vrot.slane (!%p10219_p5), %v1151_v43, 7  ;;  %v1216_v47 = vrot.slane (!%p10219_p5), %v1152_v44, 7  ;;  %v1154_v49 = vld [vmem:[#allocation3 + $0x30] sm:$0xff] (!%p10219_p5)  ;;  %v1155_v50 = vld [vmem:[#allocation3 + $0x38] sm:$0xff] (!%p10219_p5) }
 0x1a5   : > { %v1217_v48 = vrot.slane (!%p10219_p5), %v1153_v45, 7  ;;  %v1156_v51 = vld [vmem:[#allocation3 + $0x40] sm:$0xff] (!%p10219_p5)  ;;  %1277 = vst [vmem:[#allocation4 + $0x20] sm:$0xfe] (!%p10219_p5), %v1212_v40  ;;  %1279 = vst [vmem:[#allocation4 + $0x30] sm:$0x1] (!%p10219_p5), %v1212_v40 }
 0x1a6   : > { %1278 = vst [vmem:[#allocation4 + $0x28] sm:$0xfe] (!%p10219_p5), %v1213_v41  ;;  %1280 = vst [vmem:[#allocation4 + $0x38] sm:$0x1] (!%p10219_p5), %v1213_v41  ;;  %v1218_v52 = vrot.slane (!%p10219_p5), %v1154_v49, 7  ;;  %v1219_v53 = vrot.slane (!%p10219_p5), %v1155_v50, 7 }
 0x1a7   : > { %1281 = vst [vmem:[#allocation4 + $0x40] sm:$0xfe] (!%p10219_p5), %v1214_v42  ;;  %1283 = vst [vmem:[#allocation4 + $0x50] sm:$0x1] (!%p10219_p5), %v1214_v42  ;;  %v1220_v54 = vrot.slane (!%p10219_p5), %v1156_v51, 7  ;;  %v1157_v55 = vld [vmem:[#allocation3 + $0x48] sm:$0xff] (!%p10219_p5) }
 0x1a8   : > { %v1158_v56 = vld [vmem:[#allocation3 + $0x50] sm:$0xff] (!%p10219_p5)  ;;  %v1159_v57 = vld [vmem:[#allocation3 + $0x58] sm:$0xff] (!%p10219_p5)  ;;  %1282 = vst [vmem:[#allocation4 + $0x48] sm:$0xfe] (!%p10219_p5), %v1215_v46  ;;  %1284 = vst [vmem:[#allocation4 + $0x58] sm:$0x1] (!%p10219_p5), %v1215_v46 }
 0x1a9   : > { %1285 = vst [vmem:[#allocation4 + $0x60] sm:$0xfe] (!%p10219_p5), %v1216_v47  ;;  %1287 = vst [vmem:[#allocation4 + $0x70] sm:$0x1] (!%p10219_p5), %v1216_v47  ;;  %v1221_v58 = vrot.slane (!%p10219_p5), %v1157_v55, 7  ;;  %v1222_v59 = vrot.slane (!%p10219_p5), %v1158_v56, 7 }
 0x1aa   : > { %1286 = vst [vmem:[#allocation4 + $0x68] sm:$0xfe] %v1217_v48  ;;  %1288 = vst [vmem:[#allocation4 + $0x78] sm:$0x1] %v1217_v48  ;;  %v1223_v60 = vrot.slane %v1159_v57, 7  ;;  %v1160_v61 = vld [vmem:[#allocation3 + $0x60] sm:$0xff] }
 0x1ab   : > { %v1161_v62 = vld [vmem:[#allocation3 + $0x68] sm:$0xff]  ;;  %v1162_v63 = vld [vmem:[#allocation3 + $0x70] sm:$0xff]  ;;  %1289 = vst [vmem:[#allocation4 + $0x80] sm:$0xfe] %v1218_v52  ;;  %1291 = vst [vmem:[#allocation4 + $0x90] sm:$0x1] %v1218_v52 }
 0x1ac   : > { %1290 = vst [vmem:[#allocation4 + $0x88] sm:$0xfe] %v1219_v53  ;;  %1292 = vst [vmem:[#allocation4 + $0x98] sm:$0x1] %v1219_v53  ;;  %v1224_v0 = vrot.slane %v1160_v61, 7  ;;  %v1225_v1 = vrot.slane %v1161_v62, 7 }
 0x1ad   : > { %1293 = vst [vmem:[#allocation4 + $0xa0] sm:$0xfe] %v1220_v54  ;;  %1295 = vst [vmem:[#allocation4 + $0xb0] sm:$0x1] %v1220_v54  ;;  %v1226_v2 = vrot.slane %v1162_v63, 7  ;;  %v1163_v3 = vld [vmem:[#allocation3 + $0x78] sm:$0xff] }
 0x1ae   : > { %v1164_v4 = vld [vmem:[#allocation3 + $0x80] sm:$0xff]  ;;  %v1165_v5 = vld [vmem:[#allocation3 + $0x88] sm:$0xff]  ;;  %1294 = vst [vmem:[#allocation4 + $0xa8] sm:$0xfe] %v1221_v58  ;;  %1296 = vst [vmem:[#allocation4 + $0xb8] sm:$0x1] %v1221_v58 }
 0x1af   : > { %1297 = vst [vmem:[#allocation4 + $0xc0] sm:$0xfe] %v1222_v59  ;;  %1299 = vst [vmem:[#allocation4 + $0xd0] sm:$0x1] %v1222_v59  ;;  %v1227_v6 = vrot.slane %v1163_v3, 7  ;;  %v1228_v7 = vrot.slane %v1164_v4, 7 }
 0x1b0   : > { %1298 = vst [vmem:[#allocation4 + $0xc8] sm:$0xfe] %v1223_v60  ;;  %1300 = vst [vmem:[#allocation4 + $0xd8] sm:$0x1] %v1223_v60  ;;  %v1229_v8 = vrot.slane %v1165_v5, 7  ;;  %v1166_v9 = vld [vmem:[#allocation3 + $0x90] sm:$0xff] }
 0x1b1   : > { %v1167_v10 = vld [vmem:[#allocation3 + $0x98] sm:$0xff]  ;;  %v1168_v11 = vld [vmem:[#allocation3 + $0xa0] sm:$0xff]  ;;  %1301 = vst [vmem:[#allocation4 + $0xe0] sm:$0xfe] %v1224_v0  ;;  %1303 = vst [vmem:[#allocation4 + $0xf0] sm:$0x1] %v1224_v0 }
 0x1b2   : > { %1302 = vst [vmem:[#allocation4 + $0xe8] sm:$0xfe] %v1225_v1  ;;  %1304 = vst [vmem:[#allocation4 + $0xf8] sm:$0x1] %v1225_v1  ;;  %v1230_v12 = vrot.slane %v1166_v9, 7  ;;  %v1231_v13 = vrot.slane %v1167_v10, 7 }
 0x1b3   : > { %1305 = vst [vmem:[#allocation4 + $0x100] sm:$0xfe] %v1226_v2  ;;  %1307 = vst [vmem:[#allocation4 + $0x110] sm:$0x1] %v1226_v2  ;;  %v1232_v14 = vrot.slane %v1168_v11, 7  ;;  %v1169_v15 = vld [vmem:[#allocation3 + $0xa8] sm:$0xff] }
 0x1b4   : > { %v1170_v16 = vld [vmem:[#allocation3 + $0xb0] sm:$0xff]  ;;  %v1171_v17 = vld [vmem:[#allocation3 + $0xb8] sm:$0xff]  ;;  %1306 = vst [vmem:[#allocation4 + $0x108] sm:$0xfe] %v1227_v6  ;;  %1308 = vst [vmem:[#allocation4 + $0x118] sm:$0x1] %v1227_v6 }
 0x1b5   : > { %1309 = vst [vmem:[#allocation4 + $0x160] sm:$0xfe] %v1228_v7  ;;  %1311 = vst [vmem:[#allocation4 + $0x170] sm:$0x1] %v1228_v7  ;;  %v1233_v18 = vrot.slane %v1169_v15, 7  ;;  %v1234_v19 = vrot.slane %v1170_v16, 7 }
 0x1b6   : > { %1310 = vst [vmem:[#allocation4 + $0x168] sm:$0xfe] %v1229_v8  ;;  %1312 = vst [vmem:[#allocation4 + $0x178] sm:$0x1] %v1229_v8  ;;  %v1235_v20 = vrot.slane %v1171_v17, 7  ;;  %v1172_v21 = vld [vmem:[#allocation3 + $0xc0] sm:$0xff] }
 0x1b7   : > { %v1173_v22 = vld [vmem:[#allocation3 + $0xc8] sm:$0xff]  ;;  %v1174_v23 = vld [vmem:[#allocation3 + $0xd0] sm:$0xff]  ;;  %1313 = vst [vmem:[#allocation4 + $0x180] sm:$0xfe] %v1230_v12  ;;  %1315 = vst [vmem:[#allocation4 + $0x190] sm:$0x1] %v1230_v12 }
 0x1b8   : > { %1314 = vst [vmem:[#allocation4 + $0x188] sm:$0xfe] %v1231_v13  ;;  %1316 = vst [vmem:[#allocation4 + $0x198] sm:$0x1] %v1231_v13  ;;  %v1236_v24 = vrot.slane %v1172_v21, 7  ;;  %v1237_v25 = vrot.slane %v1173_v22, 7 }
 0x1b9   : > { %1317 = vst [vmem:[#allocation4 + $0x1a0] sm:$0xfe] %v1232_v14  ;;  %1319 = vst [vmem:[#allocation4 + $0x1b0] sm:$0x1] %v1232_v14  ;;  %v1238_v26 = vrot.slane %v1174_v23, 7  ;;  %v1175_v27 = vld [vmem:[#allocation3 + $0xd8] sm:$0xff] }
 0x1ba   : > { %v1176_v28 = vld [vmem:[#allocation3 + $0xe0] sm:$0xff]  ;;  %v1177_v29 = vld [vmem:[#allocation3 + $0xe8] sm:$0xff]  ;;  %1318 = vst [vmem:[#allocation4 + $0x1a8] sm:$0xfe] %v1233_v18  ;;  %1320 = vst [vmem:[#allocation4 + $0x1b8] sm:$0x1] %v1233_v18 }
 0x1bb   : > { %1321 = vst [vmem:[#allocation4 + $0x1c0] sm:$0xfe] %v1234_v19  ;;  %1323 = vst [vmem:[#allocation4 + $0x1d0] sm:$0x1] %v1234_v19  ;;  %v1239_v30 = vrot.slane %v1175_v27, 7  ;;  %v1240_v31 = vrot.slane %v1176_v28, 7 }
 0x1bc   : > { %1322 = vst [vmem:[#allocation4 + $0x1c8] sm:$0xfe] %v1235_v20  ;;  %1324 = vst [vmem:[#allocation4 + $0x1d8] sm:$0x1] %v1235_v20  ;;  %v1241_v32 = vrot.slane %v1177_v29, 7  ;;  %v1178_v33 = vld [vmem:[#allocation3 + $0xf0] sm:$0xff] }
 0x1bd   : > { %v1179_v34 = vld [vmem:[#allocation3 + $0xf8] sm:$0xff]  ;;  %1325 = vst [vmem:[#allocation4 + $0x1e0] sm:$0xfe] %v1236_v24  ;;  %1327 = vst [vmem:[#allocation4 + $0x1f0] sm:$0x1] %v1236_v24  ;;  %v1242_v35 = vrot.slane %v1178_v33, 7 }
 0x1be   : > { %1326 = vst [vmem:[#allocation4 + $0x1e8] sm:$0xfe] %v1237_v25  ;;  %1328 = vst [vmem:[#allocation4 + $0x1f8] sm:$0x1] %v1237_v25  ;;  %v1243_v36 = vrot.slane %v1179_v34, 7 }
 0x1bf   : > { %1329 = vst [vmem:[#allocation4 + $0x200] sm:$0xfe] %v1238_v26  ;;  %1331 = vst [vmem:[#allocation4 + $0x210] sm:$0x1] %v1238_v26 }
 0x1c0   : > { %1330 = vst [vmem:[#allocation4 + $0x208] sm:$0xfe] %v1239_v30  ;;  %1332 = vst [vmem:[#allocation4 + $0x218] sm:$0x1] %v1239_v30 }
 0x1c1   : > { %1333 = vst [vmem:[#allocation4 + $0x220] sm:$0xfe] %v1240_v31  ;;  %1335 = vst [vmem:[#allocation4 + $0x230] sm:$0x1] %v1240_v31 }
 0x1c2   : > { %1334 = vst [vmem:[#allocation4 + $0x228] sm:$0xfe] %v1241_v32  ;;  %1336 = vst [vmem:[#allocation4 + $0x238] sm:$0x1] %v1241_v32 }
 0x1c3   : > { %1337 = vst [vmem:[#allocation4 + $0x240] sm:$0xfe] %v1242_v35  ;;  %1339 = vst [vmem:[#allocation4 + $0x250] sm:$0x1] %v1242_v35 }
 0x1c4   : > { %1338 = vst [vmem:[#allocation4 + $0x248] sm:$0xfe] %v1243_v36  ;;  %1340 = vst [vmem:[#allocation4 + $0x258] sm:$0x1] %v1243_v36 }
 0x1c5 PF: > { %v8779_v37 = vld [vmem:[%s10050_s22 + $0x4] ss:$8 sps:$4 sm:$0xff]   ;;  %v8783_v39 = vld [vmem:[%s10050_s22] ss:$8 sps:$4 sm:$0xff]   ;;  %v8785_v41 = vld [vmem:[%s10050_s22 + $0x14] ss:$8 sps:$4 sm:$0xff]  }
 0x1c6   : > { %v8781_v38 = vld [vmem:[%s10050_s22 + $0x404] ss:$8 sps:$4 sm:$0xff]   ;;  %5137 = vmatprep.subr.bf16.mxu1 %v8779_v37  ;;  %v8784_v40 = vld [vmem:[%s10050_s22 + $0x400] ss:$8 sps:$4 sm:$0xff]   ;;  %v8787_v42 = vld [vmem:[%s10050_s22 + $0x414] ss:$8 sps:$4 sm:$0xff]  }
 0x1c7   : > { %5589 = vmatprep.subr.bf16.mxu0 %v8781_v38  ;;  %5138 = vmatpush1.bf16.msra.mxu1 %v8783_v39  ;;  %v8789_v43 = vld [vmem:[%s10050_s22 + $0x10] ss:$8 sps:$4 sm:$0xff]   ;;  %v8791_v45 = vld [vmem:[%s10050_s22 + $0x24] ss:$8 sps:$4 sm:$0xff]   ;;  %v8795_v47 = vld [vmem:[%s10050_s22 + $0x20] ss:$8 sps:$4 sm:$0xff]  }
 0x1c8   : > { %5590 = vmatpush1.bf16.msra.mxu0 %v8784_v40  ;;  %5139 = vmatprep.subr.bf16.mxu1 %v8785_v41  ;;  %v8790_v44 = vld [vmem:[%s10050_s22 + $0x410] ss:$8 sps:$4 sm:$0xff]   ;;  %v8793_v46 = vld [vmem:[%s10050_s22 + $0x424] ss:$8 sps:$4 sm:$0xff]   ;;  %v8796_v48 = vld [vmem:[%s10050_s22 + $0x420] ss:$8 sps:$4 sm:$0xff]  }
 0x1c9   : > { %5591 = vmatprep.subr.bf16.mxu0 %v8787_v42  ;;  %v8797_v49 = vld [vmem:[%s10050_s22 + $0x34] ss:$8 sps:$4 sm:$0xff]   ;;  %v8801_v51 = vld [vmem:[%s10050_s22 + $0x30] ss:$8 sps:$4 sm:$0xff]   ;;  %v8803_v53 = vld [vmem:[%s10050_s22 + $0x44] ss:$8 sps:$4 sm:$0xff]  }
 0x1ca   : > { %v8799_v50 = vld [vmem:[%s10050_s22 + $0x434] ss:$8 sps:$4 sm:$0xff]   ;;  %v8802_v52 = vld [vmem:[%s10050_s22 + $0x430] ss:$8 sps:$4 sm:$0xff]   ;;  %v8805_v54 = vld [vmem:[%s10050_s22 + $0x444] ss:$8 sps:$4 sm:$0xff]  }
 0x1cb   : > { %5140 = vmatpush1.bf16.msra.mxu1 %v8789_v43  ;;  %v8807_v55 = vld [vmem:[%s10050_s22 + $0x40] ss:$8 sps:$4 sm:$0xff]   ;;  %v8809_v57 = vld [vmem:[%s10050_s22 + $0x54] ss:$8 sps:$4 sm:$0xff]   ;;  %v8813_v59 = vld [vmem:[%s10050_s22 + $0x50] ss:$8 sps:$4 sm:$0xff]  }
 0x1cc   : > { %5592 = vmatpush1.bf16.msra.mxu0 %v8790_v44  ;;  %5141 = vmatprep.subr.bf16.mxu1 %v8791_v45  ;;  %v8808_v56 = vld [vmem:[%s10050_s22 + $0x440] ss:$8 sps:$4 sm:$0xff]   ;;  %v8811_v58 = vld [vmem:[%s10050_s22 + $0x454] ss:$8 sps:$4 sm:$0xff]   ;;  %v8814_v60 = vld [vmem:[%s10050_s22 + $0x450] ss:$8 sps:$4 sm:$0xff]  }
 0x1cd   : > { %5593 = vmatprep.subr.bf16.mxu0 %v8793_v46  ;;  %v8815_v61 = vld [vmem:[%s10050_s22 + $0x64] ss:$8 sps:$4 sm:$0xff]   ;;  %v8819_v63 = vld [vmem:[%s10050_s22 + $0x60] ss:$8 sps:$4 sm:$0xff]   ;;  %v8821_v1 = vld [vmem:[%s10050_s22 + $0x74] ss:$8 sps:$4 sm:$0xff]  }
 0x1ce   : > { %v8817_v62 = vld [vmem:[%s10050_s22 + $0x464] ss:$8 sps:$4 sm:$0xff]   ;;  %v8820_v0 = vld [vmem:[%s10050_s22 + $0x460] ss:$8 sps:$4 sm:$0xff]   ;;  %v8823_v2 = vld [vmem:[%s10050_s22 + $0x474] ss:$8 sps:$4 sm:$0xff]  }
 0x1cf   : > { %5142 = vmatpush1.bf16.msra.mxu1 %v8795_v47  ;;  %v8825_v3 = vld [vmem:[%s10050_s22 + $0x70] ss:$8 sps:$4 sm:$0xff]   ;;  %v8827_v5 = vld [vmem:[%s10050_s22 + $0x84] ss:$8 sps:$4 sm:$0xff]   ;;  %v8831_v7 = vld [vmem:[%s10050_s22 + $0x80] ss:$8 sps:$4 sm:$0xff]  }
 0x1d0   : > { %5594 = vmatpush1.bf16.msra.mxu0 %v8796_v48  ;;  %5143 = vmatprep.subr.bf16.mxu1 %v8797_v49  ;;  %v8826_v4 = vld [vmem:[%s10050_s22 + $0x470] ss:$8 sps:$4 sm:$0xff]   ;;  %v8829_v6 = vld [vmem:[%s10050_s22 + $0x484] ss:$8 sps:$4 sm:$0xff]   ;;  %v8832_v8 = vld [vmem:[%s10050_s22 + $0x480] ss:$8 sps:$4 sm:$0xff]  }
 0x1d1   : > { %5595 = vmatprep.subr.bf16.mxu0 %v8799_v50  ;;  %v8833_v9 = vld [vmem:[%s10050_s22 + $0x94] ss:$8 sps:$4 sm:$0xff]   ;;  %v8837_v11 = vld [vmem:[%s10050_s22 + $0x90] ss:$8 sps:$4 sm:$0xff]   ;;  %v8839_v13 = vld [vmem:[%s10050_s22 + $0xa4] ss:$8 sps:$4 sm:$0xff]  }
 0x1d2   : > { %v8835_v10 = vld [vmem:[%s10050_s22 + $0x494] ss:$8 sps:$4 sm:$0xff]   ;;  %v8838_v12 = vld [vmem:[%s10050_s22 + $0x490] ss:$8 sps:$4 sm:$0xff]   ;;  %v8841_v14 = vld [vmem:[%s10050_s22 + $0x4a4] ss:$8 sps:$4 sm:$0xff]  }
 0x1d3   : > { %5144 = vmatpush1.bf16.msra.mxu1 %v8801_v51  ;;  %v8843_v15 = vld [vmem:[%s10050_s22 + $0xa0] ss:$8 sps:$4 sm:$0xff]   ;;  %v8845_v17 = vld [vmem:[%s10050_s22 + $0xb4] ss:$8 sps:$4 sm:$0xff]   ;;  %v8849_v19 = vld [vmem:[%s10050_s22 + $0xb0] ss:$8 sps:$4 sm:$0xff]  }
 0x1d4   : > { %5596 = vmatpush1.bf16.msra.mxu0 %v8802_v52  ;;  %5145 = vmatprep.subr.bf16.mxu1 %v8803_v53  ;;  %v8844_v16 = vld [vmem:[%s10050_s22 + $0x4a0] ss:$8 sps:$4 sm:$0xff]   ;;  %v8847_v18 = vld [vmem:[%s10050_s22 + $0x4b4] ss:$8 sps:$4 sm:$0xff]   ;;  %v8850_v20 = vld [vmem:[%s10050_s22 + $0x4b0] ss:$8 sps:$4 sm:$0xff]  }
 0x1d5   : > { %5597 = vmatprep.subr.bf16.mxu0 %v8805_v54  ;;  %v1342_v21 = vld [vmem:[#allocation4 + $0x8] sm:$0xff]  ;;  %vm1533_vm1 = vcmask 1046528   ;;  %v2051_v25 = vld [vmem:[#allocation4 + $0x38] sm:$0x1]  ;;  %v2048_v41 = vld [vmem:[#allocation4 + $0x20] sm:$0xfe] }
 0x1d6   : > { %v8851_v22 = vld [vmem:[%s10050_s22 + $0xc4] ss:$8 sps:$4 sm:$0xff]   ;;  %v2055_v28 = vld [vmem:[#allocation4 + $0x58] sm:$0x1]  ;;  %v2180_v30 = vrot.slane %v2051_v25, 1  ;;  %v2176_v49 = vrot.slane %v2048_v41, 1 }
 0x1d7   : > { %5146 = vmatpush1.bf16.msra.mxu1 %v8807_v55  ;;  %v1344_v23 = vld [vmem:[#allocation4 + $0x28] sm:$0xff]  ;;  %v2186_v33 = vrot.slane %v2055_v28, 1  ;;  %v8857_v38 = vld [vmem:[%s10050_s22 + $0xd4] ss:$8 sps:$4 sm:$0xff]   ;;  %v2050_v42 = vld [vmem:[#allocation4 + $0x30] sm:$0x1] }
 0x1d8   : > { %5598 = vmatpush1.bf16.msra.mxu0 %v8808_v56  ;;  %5147 = vmatprep.subr.bf16.mxu1 %v8809_v57  ;;  %v2049_v24 = vld [vmem:[#allocation4 + $0x28] sm:$0xfe]  ;;  %v1374_v26 = vpack.c.bf16 %v1344_v23, %v1342_v21  ;;  %v8859_v40 = vld [vmem:[%s10050_s22 + $0x4d4] ss:$8 sps:$4 sm:$0xff]   ;;  %v8861_v44 = vld [vmem:[%s10050_s22 + $0xd0] ss:$8 sps:$4 sm:$0xff]  }
 0x1d9   : > { %5599 = vmatprep.subr.bf16.mxu0 %v8811_v58  ;;  %v2053_v27 = vld [vmem:[#allocation4 + $0x48] sm:$0xfe]  ;;  %v2179_v29 = vrot.slane %v2049_v24, 1  ;;  %v2052_v43 = vld [vmem:[#allocation4 + $0x40] sm:$0xfe]  ;;  %v2177_v51 = vrot.slane %v2050_v42, 1 }
 0x1da   : > { %v8853_v31 = vld [vmem:[%s10050_s22 + $0x4c4] ss:$8 sps:$4 sm:$0xff]   ;;  %v2185_v32 = vrot.slane %v2053_v27, 1  ;;  %5169 = vmatprep.mubr.bf16.mxu1 %v1374_v26  ;;  %v8855_v35 = vld [vmem:[%s10050_s22 + $0xc0] ss:$8 sps:$4 sm:$0xff]   ;;  %v2182_v52 = vrot.slane %v2052_v43, 1 }
 0x1db   : > { %5148 = vmatpush1.bf16.msra.mxu1 %v8813_v59  ;;  %v2181_v34 = vsel %vm1533_vm1, %v2179_v29, %v2180_v30  ;;  %v8856_v37 = vld [vmem:[%s10050_s22 + $0x4c0] ss:$8 sps:$4 sm:$0xff]   ;;  %v8862_v45 = vld [vmem:[%s10050_s22 + $0x4d0] ss:$8 sps:$4 sm:$0xff]   ;;  %v2054_v46 = vld [vmem:[#allocation4 + $0x50] sm:$0x1] }
 0x1dc   : > { %5600 = vmatpush1.bf16.msra.mxu0 %v8814_v60  ;;  %5149 = vmatprep.subr.bf16.mxu1 %v8815_v61  ;;  %v2187_v36 = vsel %vm1533_vm1, %v2185_v32, %v2186_v33  ;;  %v8863_v47 = vld [vmem:[%s10050_s22 + $0xe4] ss:$8 sps:$4 sm:$0xff]   ;;  %v8867_v50 = vld [vmem:[%s10050_s22 + $0xe0] ss:$8 sps:$4 sm:$0xff]   ;;  %v2059_v54 = vld [vmem:[#allocation4 + $0x78] sm:$0x1] }
 0x1dd   : > { %5601 = vmatprep.subr.bf16.mxu0 %v8817_v62  ;;  %v2305_v39 = vpack.c.bf16 %v2187_v36, %v2181_v34  ;;  %v8865_v48 = vld [vmem:[%s10050_s22 + $0x4e4] ss:$8 sps:$4 sm:$0xff]   ;;  %v2183_v55 = vrot.slane %v2054_v46, 1  ;;  %v2063_v57 = vld [vmem:[#allocation4 + $0x98] sm:$0x1]  ;;  %vm1822_vm2 = vcmask 1045504  }
 0x1de   : > { %v2057_v53 = vld [vmem:[#allocation4 + $0x68] sm:$0xfe]  ;;  %v8869_v59 = vld [vmem:[%s10050_s22 + $0xf4] ss:$8 sps:$4 sm:$0xff]   ;;  %v8884_v32 = vld [vmem:[%s10050_s22 + $0x510] ss:$8 sps:$4 sm:$0xff]  }
 0x1df   : > { %5150 = vmatpush1.bf16.msra.mxu1 %v8819_v63  ;;  %5621 = vmatprep.mubr.bf16.mxu0 %v2305_v39  ;;  %v2061_v56 = vld [vmem:[#allocation4 + $0x88] sm:$0xfe]  ;;  %v8871_v60 = vld [vmem:[%s10050_s22 + $0x4f4] ss:$8 sps:$4 sm:$0xff]   ;;  %v2191_v63 = vrot.slane %v2057_v53, 1  ;;  %p11873_p9 = scmp.ne.s32.totalorder %s9765_s27, 0 }
 0x1e0   : > { %5602 = vmatpush1.bf16.msra.mxu0 %v8820_v0  ;;  %5151 = vmatprep.subr.bf16.mxu1 %v8821_v1  ;;  %v8868_v58 = vld [vmem:[%s10050_s22 + $0x4e0] ss:$8 sps:$4 sm:$0xff]   ;;  %v8873_v0 = vld [vmem:[%s10050_s22 + $0xf0] ss:$8 sps:$4 sm:$0xff]   ;;  %v2067_v26 = vld [vmem:[#allocation4 + $0xb8] sm:$0x1] }
 0x1e1   : > { %5603 = vmatprep.subr.bf16.mxu0 %v8823_v2  ;;  %v1341_v61 = vld [vmem:[#allocation4] sm:$0xff]  ;;  %v8874_v1 = vld [vmem:[%s10050_s22 + $0x4f0] ss:$8 sps:$4 sm:$0xff]   ;;  %v2192_v2 = vrot.slane %v2059_v54, 1  ;;  %v2065_v25 = vld [vmem:[#allocation4 + $0xa8] sm:$0xfe] }
 0x1e2   : > { %v1343_v62 = vld [vmem:[#allocation4 + $0x20] sm:$0xff]  ;;  %v2069_v27 = vld [vmem:[#allocation4 + $0xc8] sm:$0xfe]  ;;  %v2071_v28 = vld [vmem:[#allocation4 + $0xd8] sm:$0x1]  ;;  %v2203_v39 = vrot.slane %v2065_v25, 1 }
 0x1e3   : > { %5152 = vmatpush1.bf16.msra.mxu1 %v8825_v3  ;;  %v2197_v3 = vrot.slane %v2061_v56, 1  ;;  %v8883_v29 = vld [vmem:[%s10050_s22 + $0x114] ss:$8 sps:$4 sm:$0xff]   ;;  %v2209_v41 = vrot.slane %v2069_v27, 1  ;;  %v2210_v42 = vrot.slane %v2071_v28, 1  ;;  %v1352_v54 = vld [vmem:[#allocation4 + $0xa8] sm:$0xff] }
 0x1e4   : > { %5604 = vmatpush1.bf16.msra.mxu0 %v8826_v4  ;;  %5153 = vmatprep.subr.bf16.mxu1 %v8827_v5  ;;  %v2198_v4 = vrot.slane %v2063_v57, 1  ;;  %v2056_v5 = vld [vmem:[#allocation4 + $0x60] sm:$0xfe]  ;;  %v2066_v46 = vld [vmem:[#allocation4 + $0xb0] sm:$0x1]  ;;  %v1356_v27 = vld [vmem:[#allocation4 + $0xe8] sm:$0xff] }
 0x1e5   : > { %5605 = vmatprep.subr.bf16.mxu0 %v8829_v6  ;;  %v8877_v6 = vld [vmem:[%s10050_s22 + $0x104] ss:$8 sps:$4 sm:$0xff]   ;;  %v2188_v21 = vrot.slane %v2056_v5, 1  ;;  %v8886_v30 = vld [vmem:[%s10050_s22 + $0x514] ss:$8 sps:$4 sm:$0xff]   ;;  %v2211_v56 = vsel %vm1533_vm1, %v2209_v41, %v2210_v42 }
 0x1e6   : > { %v1347_v36 = vld [vmem:[#allocation4 + $0x60] sm:$0xff]  ;;  %v2081_v42 = vld [vmem:[#allocation4 + $0x168] sm:$0xfe] }
 0x1e7   : > { %5154 = vmatpush1.bf16.msra.mxu1 %v8831_v7  ;;  %v2178_v7 = vsel %vm1533_vm1, %v2176_v49, %v2177_v51  ;;  %v8887_v49 = vld [vmem:[%s10050_s22 + $0x120] ss:$8 sps:$4 sm:$0xff]   ;;  %v8895_v57 = vld [vmem:[%s10050_s22 + $0x134] ss:$8 sps:$4 sm:$0xff]   ;;  %v8913_v41 = vld [vmem:[%s10050_s22 + $0x164] ss:$8 sps:$4 sm:$0xff]  }
 0x1e8   : > { %5606 = vmatpush1.bf16.msra.mxu0 %v8832_v8  ;;  %5155 = vmatprep.subr.bf16.mxu1 %v8833_v9  ;;  %v2184_v8 = vsel %vm1533_vm1, %v2182_v52, %v2183_v55  ;;  %v2058_v9 = vld [vmem:[#allocation4 + $0x70] sm:$0x1]  ;;  %v1350_v51 = vld [vmem:[#allocation4 + $0x88] sm:$0xff]  ;;  %v1349_v5 = vld [vmem:[#allocation4 + $0x80] sm:$0xff] }
 0x1e9   : > { %5607 = vmatprep.subr.bf16.mxu0 %v8835_v10  ;;  %v2060_v10 = vld [vmem:[#allocation4 + $0x80] sm:$0xfe] }
 0x1ea   : > { %v2194_v23 = vrot.slane %v2060_v10, 1  ;;  %v8907_v25 = vld [vmem:[%s10050_s22 + $0x154] ss:$8 sps:$4 sm:$0xff]  }
 0x1eb   : > { %5156 = vmatpush1.bf16.msra.mxu1 %v8837_v11  ;;  %v2062_v11 = vld [vmem:[#allocation4 + $0x90] sm:$0x1] }
 0x1ec   : > { %5608 = vmatpush1.bf16.msra.mxu0 %v8838_v12  ;;  %5157 = vmatprep.subr.bf16.mxu1 %v8839_v13  ;;  %v8880_v12 = vld [vmem:[%s10050_s22 + $0x504] ss:$8 sps:$4 sm:$0xff]   ;;  %v1373_v13 = vpack.c.bf16 %v1343_v62, %v1341_v61  ;;  %v2195_v24 = vrot.slane %v2062_v11, 1  ;;  %v8898_v62 = vld [vmem:[%s10050_s22 + $0x534] ss:$8 sps:$4 sm:$0xff]  }
 0x1ed   : > { %5609 = vmatprep.subr.bf16.mxu0 %v8841_v14  ;;  %v8875_v14 = vld [vmem:[%s10050_s22 + $0x100] ss:$8 sps:$4 sm:$0xff]  }
 0x1ef   : > { %5158 = vmatpush1.bf16.msra.mxu1 %v8843_v15  ;;  %v2304_v15 = vpack.c.bf16 %v2184_v8, %v2178_v7  ;;  %v2079_v7 = vld [vmem:[#allocation4 + $0x118] sm:$0x1]  ;;  %v1351_v8 = vld [vmem:[#allocation4 + $0xa0] sm:$0xff] }
 0x1f0   : > { %5610 = vmatpush1.bf16.msra.mxu0 %v8844_v16  ;;  %5159 = vmatprep.subr.bf16.mxu1 %v8845_v17  ;;  %v8878_v16 = vld [vmem:[%s10050_s22 + $0x500] ss:$8 sps:$4 sm:$0xff]  }
 0x1f1   : > { %5611 = vmatprep.subr.bf16.mxu0 %v8847_v18  ;;  %v1346_v17 = vld [vmem:[#allocation4 + $0x48] sm:$0xff] }
 0x1f2   : > { %v1348_v18 = vld [vmem:[#allocation4 + $0x68] sm:$0xff] }
 0x1f3   : > { %5160 = vmatpush1.bf16.msra.mxu1 %v8849_v19  ;;  %v2193_v19 = vsel %vm1533_vm1, %v2191_v63, %v2192_v2  ;;  %v1376_v33 = vpack.c.bf16 %v1348_v18, %v1346_v17  ;;  %v2073_v63 = vld [vmem:[#allocation4 + $0xe8] sm:$0xfe]  ;;  %v8896_v2 = vld [vmem:[%s10050_s22 + $0x530] ss:$8 sps:$4 sm:$0xff]   ;;  %v2072_v17 = vld [vmem:[#allocation4 + $0xe0] sm:$0xfe] }
 0x1f4   : > { %5612 = vmatpush1.bf16.msra.mxu0 %v8850_v20  ;;  %5161 = vmatprep.subr.bf16.mxu1 %v8851_v22  ;;  %v2199_v20 = vsel %vm1533_vm1, %v2197_v3, %v2198_v4  ;;  %v2189_v22 = vrot.slane %v2058_v9, 1  ;;  %v1378_v3 = vpack.c.bf16 %v1352_v54, %v1350_v51  ;;  %v2215_v9 = vrot.slane %v2073_v63, 1  ;;  %v2074_v18 = vld [vmem:[#allocation4 + $0xf0] sm:$0x1]  ;;  %v8914_v54 = vld [vmem:[%s10050_s22 + $0x560] ss:$8 sps:$4 sm:$0xff]  }
 0x1f5   : > { %5613 = vmatprep.subr.bf16.mxu0 %v8853_v31  ;;  %v8881_v31 = vld [vmem:[%s10050_s22 + $0x110] ss:$8 sps:$4 sm:$0xff]   ;;  %v2307_v34 = vpack.c.bf16 %v2199_v20, %v2193_v19  ;;  %v2076_v19 = vld [vmem:[#allocation4 + $0x100] sm:$0xfe] }
 0x1f6   : > { %v2190_v43 = vsel %vm1533_vm1, %v2188_v21, %v2189_v22  ;;  %v8899_v20 = vld [vmem:[%s10050_s22 + $0x140] ss:$8 sps:$4 sm:$0xff]   ;;  %v2078_v22 = vld [vmem:[#allocation4 + $0x110] sm:$0x1] }
 0x1f7   : > { %5162 = vmatpush1.bf16.msra.mxu1 %v8855_v35  ;;  %v1345_v35 = vld [vmem:[#allocation4 + $0x40] sm:$0xff] }
 0x1f8   : > { %5614 = vmatpush1.bf16.msra.mxu0 %v8856_v37  ;;  %5163 = vmatprep.subr.bf16.mxu1 %v8857_v38  ;;  %v8889_v37 = vld [vmem:[%s10050_s22 + $0x124] ss:$8 sps:$4 sm:$0xff]   ;;  %v1375_v52 = vpack.c.bf16 %v1347_v36, %v1345_v35  ;;  %v8902_v21 = vld [vmem:[%s10050_s22 + $0x540] ss:$8 sps:$4 sm:$0xff]   ;;  %v8905_v35 = vld [vmem:[%s10050_s22 + $0x150] ss:$8 sps:$4 sm:$0xff]  }
 0x1f9   : > { %5615 = vmatprep.subr.bf16.mxu0 %v8859_v40  ;;  %v8892_v38 = vld [vmem:[%s10050_s22 + $0x524] ss:$8 sps:$4 sm:$0xff]   ;;  %v2204_v40 = vrot.slane %v2067_v26, 1  ;;  %v8908_v36 = vld [vmem:[%s10050_s22 + $0x550] ss:$8 sps:$4 sm:$0xff]  }
 0x1fa   : > { %v1354_v26 = vld [vmem:[#allocation4 + $0xc8] sm:$0xff]  ;;  %v2084_v63 = vld [vmem:[#allocation4 + $0x180] sm:$0xfe] }
 0x1fb   : > { %5164 = vmatpush1.bf16.msra.mxu1 %v8861_v44  ;;  %v2196_v44 = vsel %vm1533_vm1, %v2194_v23, %v2195_v24  ;;  %v2205_v55 = vsel %vm1533_vm1, %v2203_v39, %v2204_v40  ;;  %v1377_v23 = vpack.c.bf16 %v1351_v8, %v1349_v5  ;;  %v1353_v39 = vld [vmem:[#allocation4 + $0xc0] sm:$0xff]  ;;  %v8920_v8 = vld [vmem:[%s10050_s22 + $0x570] ss:$8 sps:$4 sm:$0xff]  }
 0x1fc   : > { %5616 = vmatpush1.bf16.msra.mxu0 %v8862_v45  ;;  %5165 = vmatprep.subr.bf16.mxu1 %v8863_v47  ;;  %v2064_v45 = vld [vmem:[#allocation4 + $0xa0] sm:$0xfe]  ;;  %v2306_v53 = vpack.c.bf16 %v2196_v44, %v2190_v43  ;;  %v2309_v4 = vpack.c.bf16 %v2211_v56, %v2205_v55  ;;  %v2083_v43 = vld [vmem:[#allocation4 + $0x178] sm:$0x1]  ;;  %v1358_v55 = vld [vmem:[#allocation4 + $0x148] sm:$0xff] }
 0x1fd   : > { %5617 = vmatprep.subr.bf16.mxu0 %v8865_v48  ;;  %v2068_v47 = vld [vmem:[#allocation4 + $0xc0] sm:$0xfe]  ;;  %v2070_v48 = vld [vmem:[#allocation4 + $0xd0] sm:$0x1]  ;;  %v1360_v56 = vld [vmem:[#allocation4 + $0x168] sm:$0xff] }
 0x1fe   : > { %v2207_v61 = vrot.slane %v2070_v48, 1  ;;  %v1355_v40 = vld [vmem:[#allocation4 + $0xe0] sm:$0xff]  ;;  %v2227_v48 = vrot.slane %v2081_v42, 1  ;;  %v2094_v42 = vld [vmem:[#allocation4 + $0x1d0] sm:$0x1] }
 0x1ff   : > { %5166 = vmatpush1.bf16.msra.mxu1 %v8867_v50  ;;  %v8890_v50 = vld [vmem:[%s10050_s22 + $0x520] ss:$8 sps:$4 sm:$0xff]   ;;  %v8922_v5 = vld [vmem:[%s10050_s22 + $0x574] ss:$8 sps:$4 sm:$0xff]  }
 0x200   : > { %5618 = vmatpush1.bf16.msra.mxu0 %v8868_v58  ;;  %5167 = vmatprep.subr.bf16.mxu1 %v8869_v59  ;;  %v2200_v58 = vrot.slane %v2064_v45, 1  ;;  %v2201_v59 = vrot.slane %v2066_v46, 1  ;;  %v2085_v46 = vld [vmem:[#allocation4 + $0x188] sm:$0xfe] }
 0x201   : > { %5619 = vmatprep.subr.bf16.mxu0 %v8871_v60  ;;  %v2206_v60 = vrot.slane %v2068_v47, 1  ;;  %v2087_v47 = vld [vmem:[#allocation4 + $0x198] sm:$0x1]  ;;  %v2233_v51 = vrot.slane %v2085_v46, 1  ;;  %v1361_v46 = vld [vmem:[#allocation4 + $0x180] sm:$0xff] }
 0x203   : > { %5168 = vmatpush1.bf16.msra.mxu1 %v8873_v0  ;;  %v2075_v0 = vld [vmem:[#allocation4 + $0xf8] sm:$0x1] }
 0x204   : > { %5620 = vmatpush1.bf16.msra.mxu0 %v8874_v1  ;;  %5250 = vmatprep.subr.bf16.mxu1 %v8877_v6  ;;  %v8893_v1 = vld [vmem:[%s10050_s22 + $0x130] ss:$8 sps:$4 sm:$0xff]   ;;  %v2077_v6 = vld [vmem:[#allocation4 + $0x108] sm:$0xfe]  ;;  %v2216_v10 = vrot.slane %v2075_v0, 1 }
 0x205   : > { %5702 = vmatprep.subr.bf16.mxu0 %v8880_v12  ;;  %v2221_v11 = vrot.slane %v2077_v6, 1  ;;  %v2222_v12 = vrot.slane %v2079_v7, 1  ;;  %v2086_v0 = vld [vmem:[#allocation4 + $0x190] sm:$0x1]  ;;  %v8917_v7 = vld [vmem:[%s10050_s22 + $0x170] ss:$8 sps:$4 sm:$0xff]  }
 0x206   : > { %5170 = vmatmul.mubr.bf16.vlgmr.msra.gmra.mrb[0].mxu1 %v1373_v13  ;;  %v8901_v13 = vld [vmem:[%s10050_s22 + $0x144] ss:$8 sps:$4 sm:$0xff]   ;;  %v2217_v28 = vsel %vm1533_vm1, %v2215_v9, %v2216_v10  ;;  %v2231_v6 = vrot.slane %v2086_v0, 1  ;;  %v1382_v9 = vpack.c.bf16 %v1360_v56, %v1358_v55 }
 0x207   : > { %5622 = vmatmul.mubr.bf16.vlgmr.msra.gmra.mrb[0].mxu0 %v2304_v15  ;;  %5251 = vmatpush1.bf16.msra.mxu1 %v8875_v14  ;;  %v2202_v14 = vsel %vm1533_vm1, %v2200_v58, %v2201_v59  ;;  %v2208_v15 = vsel %vm1533_vm1, %v2206_v60, %v2207_v61  ;;  %v2080_v61 = vld [vmem:[#allocation4 + $0x160] sm:$0xfe]  ;;  %v1366_v55 = vld [vmem:[#allocation4 + $0x1c8] sm:$0xff] }
 0x208   : > { %5703 = vmatpush1.bf16.msra.mxu0 %v8878_v16  ;;  %5252 = vmatprep.subr.bf16.mxu1 %v8883_v29  ;;  %v8904_v16 = vld [vmem:[%s10050_s22 + $0x544] ss:$8 sps:$4 sm:$0xff]   ;;  %v2308_v24 = vpack.c.bf16 %v2208_v15, %v2202_v14  ;;  %v2223_v29 = vsel %vm1533_vm1, %v2221_v11, %v2222_v12 }
 0x209   : > { %5704 = vmatprep.subr.bf16.mxu0 %v8886_v30  ;;  %5179 = vmatprep.mubr.bf16.mxu1 %v1376_v33  ;;  %v2212_v30 = vrot.slane %v2072_v17, 1  ;;  %v2219_v33 = vrot.slane %v2078_v22, 1  ;;  %v1357_v11 = vld [vmem:[#allocation4 + $0x140] sm:$0xff]  ;;  %v1362_v17 = vld [vmem:[#allocation4 + $0x188] sm:$0xff] }
 0x20a   : > { %5631 = vmatprep.mubr.bf16.mxu0 %v2307_v34  ;;  %v8910_v34 = vld [vmem:[%s10050_s22 + $0x554] ss:$8 sps:$4 sm:$0xff]   ;;  %v2093_v22 = vld [vmem:[#allocation4 + $0x1c8] sm:$0xfe] }
 0x20b   : > { %5253 = vmatpush1.bf16.msra.mxu1 %v8881_v31  ;;  %v2213_v31 = vrot.slane %v2074_v18, 1  ;;  %v1359_v12 = vld [vmem:[#allocation4 + $0x160] sm:$0xff]  ;;  %v1364_v18 = vld [vmem:[#allocation4 + $0x1a8] sm:$0xff] }
 0x20c   : > { %5705 = vmatpush1.bf16.msra.mxu0 %v8884_v32  ;;  %5254 = vmatprep.subr.bf16.mxu1 %v8889_v37  ;;  %v2218_v32 = vrot.slane %v2076_v19, 1  ;;  %v1380_v37 = vpack.c.bf16 %v1356_v27, %v1354_v26  ;;  %v2089_v19 = vld [vmem:[#allocation4 + $0x1a8] sm:$0xfe]  ;;  %v1381_v26 = vpack.c.bf16 %v1359_v12, %v1357_v11  ;;  %v2096_v12 = vld [vmem:[#allocation4 + $0x1e0] sm:$0xfe] }
 0x20d   : > { %5706 = vmatprep.subr.bf16.mxu0 %v8892_v38  ;;  %v2311_v38 = vpack.c.bf16 %v2223_v29, %v2217_v28  ;;  %v2214_v44 = vsel %vm1533_vm1, %v2212_v30, %v2213_v31  ;;  %v8926_v28 = vld [vmem:[%s10050_s22 + $0x580] ss:$8 sps:$4 sm:$0xff]   ;;  %v2245_v29 = vrot.slane %v2093_v22, 1  ;;  %v8931_v31 = vld [vmem:[%s10050_s22 + $0x194] ss:$8 sps:$4 sm:$0xff]  }
 0x20e   : > { %5180 = vmatmul.mubr.bf16.gmra.mrb[4].mxu1 %v1375_v52  ;;  %v2220_v45 = vsel %vm1533_vm1, %v2218_v32, %v2219_v33  ;;  %v2234_v52 = vrot.slane %v2087_v47, 1  ;;  %v8934_v32 = vld [vmem:[%s10050_s22 + $0x594] ss:$8 sps:$4 sm:$0xff]   ;;  %v8952_v22 = vld [vmem:[%s10050_s22 + $0x5c4] ss:$8 sps:$4 sm:$0xff]  }
 0x20f   : > { %5632 = vmatmul.mubr.bf16.gmra.mrb[4].mxu0 %v2306_v53  ;;  %5255 = vmatpush1.bf16.msra.mxu1 %v8887_v49  ;;  %v2228_v49 = vrot.slane %v2083_v43, 1  ;;  %v8911_v53 = vld [vmem:[%s10050_s22 + $0x160] ss:$8 sps:$4 sm:$0xff]   ;;  %v2310_v58 = vpack.c.bf16 %v2220_v45, %v2214_v44 }
 0x210   : > { %5707 = vmatpush1.bf16.msra.mxu0 %v8890_v50  ;;  %5256 = vmatprep.subr.bf16.mxu1 %v8895_v57  ;;  %v8916_v50 = vld [vmem:[%s10050_s22 + $0x564] ss:$8 sps:$4 sm:$0xff]   ;;  %v1379_v57 = vpack.c.bf16 %v1355_v40, %v1353_v39  ;;  %v2235_v60 = vsel %vm1533_vm1, %v2233_v51, %v2234_v52  ;;  %v8929_v39 = vld [vmem:[%s10050_s22 + $0x190] ss:$8 sps:$4 sm:$0xff]  }
 0x211   : > { %5708 = vmatprep.subr.bf16.mxu0 %v8898_v62  ;;  %5189 = vmatprep.mubr.bf16.mxu1 %v1378_v3  ;;  %v2229_v59 = vsel %vm1533_vm1, %v2227_v48, %v2228_v49  ;;  %v2082_v62 = vld [vmem:[#allocation4 + $0x170] sm:$0x1]  ;;  %v2230_v3 = vrot.slane %v2084_v63, 1  ;;  %v8932_v40 = vld [vmem:[%s10050_s22 + $0x590] ss:$8 sps:$4 sm:$0xff]   ;;  %v1363_v47 = vld [vmem:[#allocation4 + $0x1a0] sm:$0xff] }
 0x212   : > { %5641 = vmatprep.mubr.bf16.mxu0 %v2309_v4  ;;  %v8919_v4 = vld [vmem:[%s10050_s22 + $0x174] ss:$8 sps:$4 sm:$0xff]   ;;  %v2313_v10 = vpack.c.bf16 %v2235_v60, %v2229_v59  ;;  %v2243_v48 = vrot.slane %v2094_v42, 1  ;;  %v8937_v49 = vld [vmem:[%s10050_s22 + $0x1a4] ss:$8 sps:$4 sm:$0xff]   ;;  %v1383_v56 = vpack.c.bf16 %v1363_v47, %v1361_v46 }
 0x213   : > { %5257 = vmatpush1.bf16.msra.mxu1 %v8893_v1  ;;  %v2224_v1 = vrot.slane %v2080_v61, 1  ;;  %v2232_v15 = vsel %vm1533_vm1, %v2230_v3, %v2231_v6  ;;  %v8940_v52 = vld [vmem:[%s10050_s22 + $0x5a4] ss:$8 sps:$4 sm:$0xff]   ;;  %v2099_v61 = vld [vmem:[#allocation4 + $0x1f8] sm:$0x1] }
 0x214   : > { %5709 = vmatpush1.bf16.msra.mxu0 %v8896_v2  ;;  %5258 = vmatprep.subr.bf16.mxu1 %v8901_v13  ;;  %v2225_v2 = vrot.slane %v2082_v62, 1  ;;  %v8925_v13 = vld [vmem:[%s10050_s22 + $0x184] ss:$8 sps:$4 sm:$0xff]   ;;  %v2103_v63 = vld [vmem:[#allocation4 + $0x218] sm:$0x1] }
 0x215   : > { %5710 = vmatprep.subr.bf16.mxu0 %v8904_v16  ;;  %v8928_v16 = vld [vmem:[%s10050_s22 + $0x584] ss:$8 sps:$4 sm:$0xff]   ;;  %v8944_v6 = vld [vmem:[%s10050_s22 + $0x5b0] ss:$8 sps:$4 sm:$0xff]  }
 0x216   : > { %5190 = vmatmul.mubr.bf16.gmra.mrb[8].mxu1 %v1377_v23  ;;  %v2226_v14 = vsel %vm1533_vm1, %v2224_v1, %v2225_v2  ;;  %v2095_v23 = vld [vmem:[#allocation4 + $0x1d8] sm:$0x1]  ;;  %v1368_v59 = vld [vmem:[#allocation4 + $0x1e8] sm:$0xff]  ;;  %v2252_v1 = vrot.slane %v2099_v61, 1  ;;  %v1371_v46 = vld [vmem:[#allocation4 + $0x220] sm:$0xff] }
 0x217   : > { %5642 = vmatmul.mubr.bf16.gmra.mrb[8].mxu0 %v2308_v24  ;;  %5259 = vmatpush1.bf16.msra.mxu1 %v8899_v20  ;;  %v2091_v20 = vld [vmem:[#allocation4 + $0x1b8] sm:$0x1]  ;;  %v2239_v24 = vrot.slane %v2089_v19, 1  ;;  %v2312_v27 = vpack.c.bf16 %v2232_v15, %v2226_v14  ;;  %v2246_v30 = vrot.slane %v2095_v23, 1  ;;  %v2097_v60 = vld [vmem:[#allocation4 + $0x1e8] sm:$0xfe] }
 0x218   : > { %5711 = vmatpush1.bf16.msra.mxu0 %v8902_v21  ;;  %5260 = vmatprep.subr.bf16.mxu1 %v8907_v25  ;;  %v8923_v21 = vld [vmem:[%s10050_s22 + $0x180] ss:$8 sps:$4 sm:$0xff]   ;;  %v2240_v25 = vrot.slane %v2091_v20, 1  ;;  %v2251_v0 = vrot.slane %v2097_v60, 1  ;;  %v8946_v2 = vld [vmem:[%s10050_s22 + $0x5b4] ss:$8 sps:$4 sm:$0xff]  }
 0x219   : > { %5712 = vmatprep.subr.bf16.mxu0 %v8910_v34  ;;  %5199 = vmatprep.mubr.bf16.mxu1 %v1380_v37  ;;  %v1384_v34 = vpack.c.bf16 %v1364_v18, %v1362_v17  ;;  %v2090_v37 = vld [vmem:[#allocation4 + $0x1b0] sm:$0x1]  ;;  %v2101_v62 = vld [vmem:[#allocation4 + $0x208] sm:$0xfe]  ;;  %v2100_v14 = vld [vmem:[#allocation4 + $0x200] sm:$0xfe] }
 0x21a   : > { %5651 = vmatprep.mubr.bf16.mxu0 %v2311_v38  ;;  %v2241_v33 = vsel %vm1533_vm1, %v2239_v24, %v2240_v25  ;;  %v2092_v38 = vld [vmem:[#allocation4 + $0x1c0] sm:$0xfe]  ;;  %v2237_v44 = vrot.slane %v2090_v37, 1  ;;  %v2257_v3 = vrot.slane %v2101_v62, 1  ;;  %v2248_v17 = vrot.slane %v2096_v12, 1 }
 0x21b   : > { %5261 = vmatpush1.bf16.msra.mxu1 %v8905_v35  ;;  %v2247_v35 = vsel %vm1533_vm1, %v2245_v29, %v2246_v30  ;;  %v2242_v45 = vrot.slane %v2092_v38, 1  ;;  %v2254_v19 = vrot.slane %v2100_v14, 1  ;;  %v8949_v20 = vld [vmem:[%s10050_s22 + $0x1c4] ss:$8 sps:$4 sm:$0xff]   ;;  %v8947_v23 = vld [vmem:[%s10050_s22 + $0x1c0] ss:$8 sps:$4 sm:$0xff]  }
 0x21c   : > { %5713 = vmatpush1.bf16.msra.mxu0 %v8908_v36  ;;  %5262 = vmatprep.subr.bf16.mxu1 %v8913_v41  ;;  %v2088_v36 = vld [vmem:[#allocation4 + $0x1a0] sm:$0xfe]  ;;  %v2315_v41 = vpack.c.bf16 %v2247_v35, %v2241_v33  ;;  %v2105_v33 = vld [vmem:[#allocation4 + $0x228] sm:$0xfe]  ;;  %v8953_v35 = vld [vmem:[%s10050_s22 + $0x1d0] ss:$8 sps:$4 sm:$0xff]  }
 0x21d   : > { %5714 = vmatprep.subr.bf16.mxu0 %v8916_v50  ;;  %v2236_v43 = vrot.slane %v2088_v36, 1  ;;  %v2244_v51 = vsel %vm1533_vm1, %v2242_v45, %v2243_v48  ;;  %v8955_v29 = vld [vmem:[%s10050_s22 + $0x1d4] ss:$8 sps:$4 sm:$0xff]   ;;  %v2109_v37 = vld [vmem:[#allocation4 + $0x248] sm:$0xfe] }
 0x21e   : > { %5200 = vmatmul.mubr.bf16.gmra.mrb[12].mxu1 %v1379_v57  ;;  %v8958_v30 = vld [vmem:[%s10050_s22 + $0x5d4] ss:$8 sps:$4 sm:$0xff]   ;;  %v2269_v42 = vrot.slane %v2109_v37, 1  ;;  %v8961_v47 = vld [vmem:[%s10050_s22 + $0x1e4] ss:$8 sps:$4 sm:$0xff]  }
 0x21f   : > { %5652 = vmatmul.mubr.bf16.gmra.mrb[12].mxu0 %v2310_v58  ;;  %5263 = vmatpush1.bf16.msra.mxu1 %v8911_v53  ;;  %v2238_v50 = vsel %vm1533_vm1, %v2236_v43, %v2237_v44  ;;  %v8935_v53 = vld [vmem:[%s10050_s22 + $0x1a0] ss:$8 sps:$4 sm:$0xff]   ;;  %v8943_v58 = vld [vmem:[%s10050_s22 + $0x1b4] ss:$8 sps:$4 sm:$0xff]   ;;  %v8964_v60 = vld [vmem:[%s10050_s22 + $0x5e4] ss:$8 sps:$4 sm:$0xff]  }
 0x220   : > { %5715 = vmatpush1.bf16.msra.mxu0 %v8914_v54  ;;  %5264 = vmatprep.subr.bf16.mxu1 %v8919_v4  ;;  %v8938_v54 = vld [vmem:[%s10050_s22 + $0x5a0] ss:$8 sps:$4 sm:$0xff]   ;;  %v2314_v57 = vpack.c.bf16 %v2244_v51, %v2238_v50  ;;  %v2258_v4 = vrot.slane %v2103_v63, 1  ;;  %v2111_v38 = vld [vmem:[#allocation4 + $0x258] sm:$0x1] }
 0x221   : > { %5716 = vmatprep.subr.bf16.mxu0 %v8922_v5  ;;  %5209 = vmatprep.mubr.bf16.mxu1 %v1382_v9  ;;  %v8941_v5 = vld [vmem:[%s10050_s22 + $0x1b0] ss:$8 sps:$4 sm:$0xff]   ;;  %v1365_v9 = vld [vmem:[#allocation4 + $0x1c0] sm:$0xff]  ;;  %v2270_v43 = vrot.slane %v2111_v38, 1  ;;  %v2106_v50 = vld [vmem:[#allocation4 + $0x230] sm:$0x1] }
 0x222   : > { %5661 = vmatprep.mubr.bf16.mxu0 %v2313_v10  ;;  %v1367_v10 = vld [vmem:[#allocation4 + $0x1e0] sm:$0xff]  ;;  %v2259_v11 = vsel %vm1533_vm1, %v2257_v3, %v2258_v4  ;;  %v1406_v4 = vld [vmem:[#allocation4 + $0x8] sm:$0xfe]  ;;  %v2339_v14 = vld [vmem:[#allocation4 + $0x38] sm:$0x3] }
 0x223   : > { %5265 = vmatpush1.bf16.msra.mxu1 %v8917_v7  ;;  %v1386_v7 = vpack.c.bf16 %v1368_v59, %v1366_v55  ;;  %v1385_v25 = vpack.c.bf16 %v1367_v10, %v1365_v9  ;;  %v1369_v44 = vld [vmem:[#allocation4 + $0x200] sm:$0xff]  ;;  %v2271_v48 = vsel %vm1533_vm1, %v2269_v42, %v2270_v43  ;;  %v2261_v55 = vrot.slane %v2106_v50, 1  ;;  %v2342_v42 = vld [vmem:[#allocation4 + $0x50] sm:$0x3] }
 0x224   : > { %5717 = vmatpush1.bf16.msra.mxu0 %v8920_v8  ;;  %5266 = vmatprep.subr.bf16.mxu1 %v8925_v13  ;;  %v2253_v8 = vsel %vm1533_vm1, %v2251_v0, %v2252_v1  ;;  %v2098_v13 = vld [vmem:[#allocation4 + $0x1f0] sm:$0x1]  ;;  %v2108_v51 = vld [vmem:[#allocation4 + $0x240] sm:$0xfe]  ;;  %v1537_v9 = vrot.slane %v1406_v4, 1 }
 0x225   : > { %5718 = vmatprep.subr.bf16.mxu0 %v8928_v16  ;;  %v2317_v15 = vpack.c.bf16 %v2259_v11, %v2253_v8  ;;  %v2102_v16 = vld [vmem:[#allocation4 + $0x210] sm:$0x1]  ;;  %v2249_v18 = vrot.slane %v2098_v13, 1  ;;  %v8962_v62 = vld [vmem:[%s10050_s22 + $0x5e0] ss:$8 sps:$4 sm:$0xff]  }
 0x226   : > { %5210 = vmatmul.mubr.bf16.gmra.mrb[16].mxu1 %v1381_v26  ;;  %v8967_v0 = vld [vmem:[%s10050_s22 + $0x1f4] ss:$8 sps:$4 sm:$0xff]   ;;  %v2337_v13 = vld [vmem:[#allocation4 + $0x28] sm:$0xfc] }
 0x227   : > { %5662 = vmatmul.mubr.bf16.gmra.mrb[16].mxu0 %v2312_v27  ;;  %5267 = vmatpush1.bf16.msra.mxu1 %v8923_v21  ;;  %v2255_v21 = vrot.slane %v2102_v16, 1  ;;  %v2250_v24 = vsel %vm1533_vm1, %v2248_v17, %v2249_v18  ;;  %v8950_v27 = vld [vmem:[%s10050_s22 + $0x5c0] ss:$8 sps:$4 sm:$0xff]   ;;  %v8970_v3 = vld [vmem:[%s10050_s22 + $0x5f4] ss:$8 sps:$4 sm:$0xff]  }
 0x228   : > { %5719 = vmatpush1.bf16.msra.mxu0 %v8926_v28  ;;  %5268 = vmatprep.subr.bf16.mxu1 %v8931_v31  ;;  %v1370_v31 = vld [vmem:[#allocation4 + $0x208] sm:$0xff]  ;;  %v1412_v8 = vld [vmem:[#allocation4 + $0x38] sm:$0x1]  ;;  %v2336_v38 = vld [vmem:[#allocation4 + $0x20] sm:$0xfc] }
 0x229   : > { %5720 = vmatprep.subr.bf16.mxu0 %v8934_v32  ;;  %5219 = vmatprep.mubr.bf16.mxu1 %v1384_v34  ;;  %v2256_v26 = vsel %vm1533_vm1, %v2254_v19, %v2255_v21  ;;  %v1372_v32 = vld [vmem:[#allocation4 + $0x228] sm:$0xff]  ;;  %v2107_v34 = vld [vmem:[#allocation4 + $0x238] sm:$0x1]  ;;  %v1544_v12 = vrot.slane %v1412_v8, 1  ;;  %v2467_v19 = vrot.slane %v2337_v13, 2  ;;  %v2464_v43 = vrot.slane %v2336_v38, 2 }
 0x22a   : > { %5671 = vmatprep.mubr.bf16.mxu0 %v2315_v41  ;;  %v2316_v28 = vpack.c.bf16 %v2256_v26, %v2250_v24  ;;  %v1388_v36 = vpack.c.bf16 %v1372_v32, %v1370_v31  ;;  %v8956_v41 = vld [vmem:[%s10050_s22 + $0x5d0] ss:$8 sps:$4 sm:$0xff]   ;;  %v2343_v16 = vld [vmem:[#allocation4 + $0x58] sm:$0x3]  ;;  %v1405_v21 = vld [vmem:[#allocation4] sm:$0xfe] }
 0x22b   : > { %5269 = vmatpush1.bf16.msra.mxu1 %v8929_v39  ;;  %v2263_v39 = vrot.slane %v2105_v33, 1  ;;  %v1409_v26 = vld [vmem:[#allocation4 + $0x20] sm:$0xfe]  ;;  %v2349_v4 = vld [vmem:[#allocation4 + $0x88] sm:$0xfc] }
 0x22c   : > { %5721 = vmatpush1.bf16.msra.mxu0 %v8932_v40  ;;  %5270 = vmatprep.subr.bf16.mxu1 %v8937_v49  ;;  %v2264_v40 = vrot.slane %v2107_v34, 1  ;;  %v2104_v49 = vld [vmem:[#allocation4 + $0x220] sm:$0xfe]  ;;  %v1540_v31 = vrot.slane %v1409_v26, 1 }
 0x22d   : > { %5722 = vmatprep.subr.bf16.mxu0 %v8940_v52  ;;  %v8971_v34 = vld [vmem:[%s10050_s22 + $0x200] ss:$8 sps:$4 sm:$0xff]  }
 0x22e   : > { %5220 = vmatmul.mubr.bf16.gmra.mrb[20].mxu1 %v1383_v56  ;;  %v2265_v45 = vsel %vm1533_vm1, %v2263_v39, %v2264_v40  ;;  %v2266_v56 = vrot.slane %v2108_v51, 1  ;;  %v2338_v39 = vld [vmem:[#allocation4 + $0x30] sm:$0x3]  ;;  %v2340_v40 = vld [vmem:[#allocation4 + $0x40] sm:$0xfc] }
 0x22f   : > { %5672 = vmatmul.mubr.bf16.gmra.mrb[20].mxu0 %v2314_v57  ;;  %5271 = vmatpush1.bf16.msra.mxu1 %v8935_v53  ;;  %v2319_v52 = vpack.c.bf16 %v2271_v48, %v2265_v45  ;;  %v2110_v53 = vld [vmem:[#allocation4 + $0x250] sm:$0x1]  ;;  %v1387_v57 = vpack.c.bf16 %v1371_v46, %v1369_v44  ;;  %v2465_v44 = vrot.slane %v2338_v39, 2  ;;  %v2470_v45 = vrot.slane %v2340_v40, 2  ;;  %v8974_v50 = vld [vmem:[%s10050_s22 + $0x600] ss:$8 sps:$4 sm:$0xff]  }
 0x230   : > { %5723 = vmatpush1.bf16.msra.mxu0 %v8938_v54  ;;  %5272 = vmatprep.subr.bf16.mxu1 %v8943_v58  ;;  %v2260_v54 = vrot.slane %v2104_v49, 1  ;;  %v8959_v58 = vld [vmem:[%s10050_s22 + $0x1e0] ss:$8 sps:$4 sm:$0xff]   ;;  %v2267_v59 = vrot.slane %v2110_v53, 1  ;;  %v8976_v48 = vld [vmem:[%s10050_s22 + $0x604] ss:$8 sps:$4 sm:$0xff]  }
 0x231   : > { %5724 = vmatprep.subr.bf16.mxu0 %v8946_v2  ;;  %5229 = vmatprep.mubr.bf16.mxu1 %v1386_v7  ;;  %v8965_v2 = vld [vmem:[%s10050_s22 + $0x1f0] ss:$8 sps:$4 sm:$0xff]   ;;  %v1410_v7 = vld [vmem:[#allocation4 + $0x28] sm:$0xfe]  ;;  %v2466_v49 = vsel %vm1822_vm2, %v2464_v43, %v2465_v44  ;;  %v8979_v51 = vld [vmem:[%s10050_s22 + $0x214] ss:$8 sps:$4 sm:$0xff]  }
 0x232   : > { %5681 = vmatprep.mubr.bf16.mxu0 %v2317_v15  ;;  %v2262_v61 = vsel %vm1533_vm1, %v2260_v54, %v2261_v55  ;;  %v2268_v63 = vsel %vm1533_vm1, %v2266_v56, %v2267_v59  ;;  %v1543_v11 = vrot.slane %v1410_v7, 1  ;;  %v2341_v15 = vld [vmem:[#allocation4 + $0x48] sm:$0xfc]  ;;  %v8977_v53 = vld [vmem:[%s10050_s22 + $0x210] ss:$8 sps:$4 sm:$0xff]  }
 0x233   : > { %5273 = vmatpush1.bf16.msra.mxu1 %v8941_v5  ;;  %v2318_v1 = vpack.c.bf16 %v2268_v63, %v2262_v61  ;;  %v8968_v5 = vld [vmem:[%s10050_s22 + $0x5f0] ss:$8 sps:$4 sm:$0xff]   ;;  %v2473_v24 = vrot.slane %v2341_v15, 2  ;;  %v8982_v54 = vld [vmem:[%s10050_s22 + $0x614] ss:$8 sps:$4 sm:$0xff]  }
 0x234   : > { %5725 = vmatpush1.bf16.msra.mxu0 %v8944_v6  ;;  %5274 = vmatprep.subr.bf16.mxu1 %v8949_v20  ;;  %v1408_v6 = vld [vmem:[#allocation4 + $0x18] sm:$0x1]  ;;  %v1545_v18 = vsel %vm1533_vm1, %v1543_v11, %v1544_v12  ;;  %v2468_v20 = vrot.slane %v2339_v14, 2  ;;  %v1414_v56 = vld [vmem:[#allocation4 + $0x48] sm:$0xfe] }
 0x235   : > { %5726 = vmatprep.subr.bf16.mxu0 %v8952_v22  ;;  %v1538_v10 = vrot.slane %v1408_v6, 1  ;;  %v1407_v22 = vld [vmem:[#allocation4 + $0x10] sm:$0x1]  ;;  %v8980_v59 = vld [vmem:[%s10050_s22 + $0x610] ss:$8 sps:$4 sm:$0xff]   ;;  %v1549_v61 = vrot.slane %v1414_v56, 1 }
 0x236   : > { %5230 = vmatmul.mubr.bf16.gmra.mrb[24].mxu1 %v1385_v25  ;;  %v2474_v25 = vrot.slane %v2343_v16, 2  ;;  %v1413_v11 = vld [vmem:[#allocation4 + $0x40] sm:$0xfe]  ;;  %v1415_v12 = vld [vmem:[#allocation4 + $0x50] sm:$0x1] }
 0x237   : > { %5682 = vmatmul.mubr.bf16.gmra.mrb[24].mxu0 %v2316_v28  ;;  %5275 = vmatpush1.bf16.msra.mxu1 %v8947_v23  ;;  %v1539_v17 = vsel %vm1533_vm1, %v1537_v9, %v1538_v10  ;;  %v2469_v28 = vsel %vm1822_vm2, %v2467_v19, %v2468_v20  ;;  %v2485_v9 = vrot.slane %v2349_v4, 2  ;;  %v1417_v15 = vld [vmem:[#allocation4 + $0x60] sm:$0xfe]  ;;  %v1419_v16 = vld [vmem:[#allocation4 + $0x70] sm:$0x1] }
 0x238   : > { %5727 = vmatpush1.bf16.msra.mxu0 %v8950_v27  ;;  %5276 = vmatprep.subr.bf16.mxu1 %v8955_v29  ;;  %v1663_v23 = vpack.c.bf16 %v1545_v18, %v1539_v17  ;;  %v1411_v27 = vld [vmem:[#allocation4 + $0x30] sm:$0x1]  ;;  %v1534_v29 = vrot.slane %v1405_v21, 1  ;;  %v2475_v32 = vsel %vm1822_vm2, %v2473_v24, %v2474_v25  ;;  %v1546_v17 = vrot.slane %v1413_v11, 1  ;;  %v2344_v26 = vld [vmem:[#allocation4 + $0x60] sm:$0xfc] }
 0x239   : > { %5728 = vmatprep.subr.bf16.mxu0 %v8958_v30  ;;  %5239 = vmatprep.mubr.bf16.mxu1 %v1388_v36  ;;  %v1535_v30 = vrot.slane %v1407_v22, 1  ;;  %v1541_v33 = vrot.slane %v1411_v27, 1  ;;  %v2593_v36 = vpack.c.bf16 %v2475_v32, %v2469_v28  ;;  %v1547_v18 = vrot.slane %v1415_v12, 1  ;;  %v8983_v22 = vld [vmem:[%s10050_s22 + $0x220] ss:$8 sps:$4 sm:$0xff]  }
 0x23a   : > { %5691 = vmatprep.mubr.bf16.mxu0 %v2319_v52  ;;  %v1552_v20 = vrot.slane %v1417_v15, 1  ;;  %v1553_v21 = vrot.slane %v1419_v16, 1  ;;  %v2346_v27 = vld [vmem:[#allocation4 + $0x70] sm:$0x3]  ;;  %v2348_v28 = vld [vmem:[#allocation4 + $0x80] sm:$0xfc] }
 0x23b   : > { %5277 = vmatpush1.bf16.msra.mxu1 %v8953_v35  ;;  %v8973_v35 = vld [vmem:[%s10050_s22 + $0x204] ss:$8 sps:$4 sm:$0xff]   ;;  %v1536_v37 = vsel %vm1533_vm1, %v1534_v29, %v1535_v30  ;;  %v1548_v25 = vsel %vm1533_vm1, %v1546_v17, %v1547_v18  ;;  %v2477_v32 = vrot.slane %v2346_v27, 2  ;;  %v8989_v39 = vld [vmem:[%s10050_s22 + $0x230] ss:$8 sps:$4 sm:$0xff]  }
 0x23c   : > { %5729 = vmatpush1.bf16.msra.mxu0 %v8956_v41  ;;  %5278 = vmatprep.subr.bf16.mxu1 %v8961_v47  ;;  %v1542_v41 = vsel %vm1533_vm1, %v1540_v31, %v1541_v33  ;;  %v2471_v47 = vrot.slane %v2342_v42, 2  ;;  %v1554_v29 = vsel %vm1533_vm1, %v1552_v20, %v1553_v21  ;;  %v2350_v30 = vld [vmem:[#allocation4 + $0x90] sm:$0x3]  ;;  %v2476_v31 = vrot.slane %v2344_v26, 2  ;;  %v8992_v43 = vld [vmem:[%s10050_s22 + $0x630] ss:$8 sps:$4 sm:$0xff]  }
 0x23d   : > { %5730 = vmatprep.subr.bf16.mxu0 %v8964_v60  ;;  %v1662_v46 = vpack.c.bf16 %v1542_v41, %v1536_v37  ;;  %v1420_v60 = vld [vmem:[#allocation4 + $0x78] sm:$0x1]  ;;  %v2482_v33 = vrot.slane %v2348_v28, 2  ;;  %v8988_v37 = vld [vmem:[%s10050_s22 + $0x624] ss:$8 sps:$4 sm:$0xff]  }
 0x23e   : > { %5240 = vmatmul.mubr.bf16.gmra.mrb[28].mxu1 %v1387_v57  ;;  %v2472_v52 = vsel %vm1822_vm2, %v2470_v45, %v2471_v47  ;;  %v1416_v57 = vld [vmem:[#allocation4 + $0x58] sm:$0x1]  ;;  %v2478_v38 = vsel %vm1822_vm2, %v2476_v31, %v2477_v32  ;;  %v1422_v45 = vld [vmem:[#allocation4 + $0x88] sm:$0xfe]  ;;  %v2354_v15 = vld [vmem:[#allocation4 + $0xb0] sm:$0x3] }
 0x23f   : > { %5692 = vmatmul.mubr.bf16.gmra.mrb[28].mxu0 %v2318_v1  ;;  %5279 = vmatpush1.bf16.msra.mxu1 %v8959_v58  ;;  %v2592_v55 = vpack.c.bf16 %v2472_v52, %v2466_v49  ;;  %v1418_v58 = vld [vmem:[#allocation4 + $0x68] sm:$0xfe]  ;;  %v8991_v41 = vld [vmem:[%s10050_s22 + $0x234] ss:$8 sps:$4 sm:$0xff]   ;;  %v1561_v49 = vrot.slane %v1422_v45, 1  ;;  %v2489_v20 = vrot.slane %v2354_v15, 2 }
 0x240   : > { %5731 = vmatpush1.bf16.msra.mxu0 %v8962_v62  ;;  %5280 = vmatprep.subr.bf16.mxu1 %v8967_v0  ;;  %v1550_v62 = vrot.slane %v1416_v57, 1  ;;  %v1555_v63 = vrot.slane %v1418_v58, 1  ;;  %v1556_v0 = vrot.slane %v1420_v60, 1  ;;  %v2345_v1 = vld [vmem:[#allocation4 + $0x68] sm:$0xfc] }
 0x241   : > { %5732 = vmatprep.subr.bf16.mxu0 %v8970_v3  ;;  %5282 = vmatprep.mubr.bf16.mxu1 %v1663_v23  ;;  %v2479_v6 = vrot.slane %v2345_v1, 2  ;;  %v8985_v23 = vld [vmem:[%s10050_s22 + $0x224] ss:$8 sps:$4 sm:$0xff]   ;;  %v8994_v44 = vld [vmem:[%s10050_s22 + $0x634] ss:$8 sps:$4 sm:$0xff]  }
 0x242   : > { %5734 = vmatprep.mubr.bf16.mxu0 %v2593_v36  ;;  %v1551_v3 = vsel %vm1533_vm1, %v1549_v61, %v1550_v62  ;;  %v1557_v8 = vsel %vm1533_vm1, %v1555_v63, %v1556_v0  ;;  %v8986_v36 = vld [vmem:[%s10050_s22 + $0x620] ss:$8 sps:$4 sm:$0xff]   ;;  %v2359_v56 = vld [vmem:[#allocation4 + $0xd8] sm:$0x3]  ;;  %v1423_v62 = vld [vmem:[#allocation4 + $0x90] sm:$0x1] }
 0x243   : > { %5281 = vmatpush1.bf16.msra.mxu1 %v8965_v2  ;;  %v2347_v2 = vld [vmem:[#allocation4 + $0x78] sm:$0x3]  ;;  %v1665_v13 = vpack.c.bf16 %v1557_v8, %v1551_v3  ;;  %v1426_v47 = vld [vmem:[#allocation4 + $0xa8] sm:$0xfe]  ;;  %v1421_v61 = vld [vmem:[#allocation4 + $0x80] sm:$0xfe] }
 0x244   : > { %5733 = vmatpush1.bf16.msra.mxu0 %v8968_v5  ;;  %5363 = vmatprep.subr.bf16.mxu1 %v8973_v35  ;;  %v2351_v5 = vld [vmem:[#allocation4 + $0x98] sm:$0x3]  ;;  %v2480_v7 = vrot.slane %v2347_v2, 2  ;;  %v2483_v35 = vrot.slane %v2350_v30, 2  ;;  %v2498_v1 = vrot.slane %v2359_v56, 2 }
 0x245   : > { %5815 = vmatprep.subr.bf16.mxu0 %v8976_v48  ;;  %v2486_v10 = vrot.slane %v2351_v5, 2  ;;  %v1428_v48 = vld [vmem:[#allocation4 + $0xb8] sm:$0x1]  ;;  %v1425_v2 = vld [vmem:[#allocation4 + $0xa0] sm:$0xfe]  ;;  %v1558_v5 = vrot.slane %v1421_v61, 1 }
 0x246   : > { %5283 = vmatmul.mubr.bf16.vlgmr.msra.gmra.mrb[0].mxu1 %v1662_v46  ;;  %v2481_v14 = vsel %vm1822_vm2, %v2479_v6, %v2480_v7  ;;  %v2484_v40 = vsel %vm1822_vm2, %v2482_v33, %v2483_v35  ;;  %v1424_v46 = vld [vmem:[#allocation4 + $0x98] sm:$0x1]  ;;  %v1568_v52 = vrot.slane %v1428_v48, 1  ;;  %v1427_v3 = vld [vmem:[#allocation4 + $0xb0] sm:$0x1]  ;;  %v1559_v6 = vrot.slane %v1423_v62, 1 }
 0x247   : > { %5364 = vmatpush1.bf16.msra.mxu1 %v8971_v34  ;;  %5735 = vmatmul.mubr.bf16.vlgmr.msra.gmra.mrb[0].mxu0 %v2592_v55  ;;  %v2487_v19 = vsel %vm1822_vm2, %v2485_v9, %v2486_v10  ;;  %v1664_v34 = vpack.c.bf16 %v1554_v29, %v1548_v25  ;;  %v2594_v42 = vpack.c.bf16 %v2484_v40, %v2478_v38  ;;  %v2357_v55 = vld [vmem:[#allocation4 + $0xc8] sm:$0xfc]  ;;  %v1564_v7 = vrot.slane %v1425_v2, 1  ;;  %v2356_v16 = vld [vmem:[#allocation4 + $0xc0] sm:$0xfc] }
 0x248   : > { %5365 = vmatprep.subr.bf16.mxu1 %v8979_v51  ;;  %5816 = vmatpush1.bf16.msra.mxu0 %v8974_v50  ;;  %v2595_v24 = vpack.c.bf16 %v2487_v19, %v2481_v14  ;;  %v1562_v50 = vrot.slane %v1424_v46, 1  ;;  %v1567_v51 = vrot.slane %v1426_v47, 1  ;;  %v2497_v0 = vrot.slane %v2357_v55, 2  ;;  %v8995_v10 = vld [vmem:[%s10050_s22 + $0x240] ss:$8 sps:$4 sm:$0xff]  }
 0x249   : > { %5817 = vmatprep.subr.bf16.mxu0 %v8982_v54  ;;  %5292 = vmatprep.mubr.bf16.mxu1 %v1665_v13  ;;  %v2355_v54 = vld [vmem:[#allocation4 + $0xb8] sm:$0x3]  ;;  %v1565_v9 = vrot.slane %v1427_v3, 1  ;;  %v8997_v11 = vld [vmem:[%s10050_s22 + $0x244] ss:$8 sps:$4 sm:$0xff]   ;;  %v1560_v13 = vsel %vm1533_vm1, %v1558_v5, %v1559_v6  ;;  %v2494_v21 = vrot.slane %v2356_v16, 2 }
 0x24a   : > { %5744 = vmatprep.mubr.bf16.mxu0 %v2595_v24  ;;  %v1563_v57 = vsel %vm1533_vm1, %v1561_v49, %v1562_v50  ;;  %v1569_v58 = vsel %vm1533_vm1, %v1567_v51, %v1568_v52  ;;  %v2492_v60 = vrot.slane %v2355_v54, 2  ;;  %v2499_v8 = vsel %vm1822_vm2, %v2497_v0, %v2498_v1  ;;  %v2352_v14 = vld [vmem:[#allocation4 + $0xa0] sm:$0xfc]  ;;  %v2358_v18 = vld [vmem:[#allocation4 + $0xd0] sm:$0x3] }
 0x24b   : > { %5366 = vmatpush1.bf16.msra.mxu1 %v8977_v53  ;;  %v2353_v53 = vld [vmem:[#allocation4 + $0xa8] sm:$0xfc]  ;;  %v1667_v63 = vpack.c.bf16 %v1569_v58, %v1563_v57  ;;  %v1566_v17 = vsel %vm1533_vm1, %v1564_v7, %v1565_v9  ;;  %v2488_v19 = vrot.slane %v2352_v14, 2  ;;  %v9001_v27 = vld [vmem:[%s10050_s22 + $0x250] ss:$8 sps:$4 sm:$0xff]  }
 0x24c   : > { %5818 = vmatpush1.bf16.msra.mxu0 %v8980_v59  ;;  %5367 = vmatprep.subr.bf16.mxu1 %v8985_v23  ;;  %v2491_v59 = vrot.slane %v2353_v53, 2  ;;  %v2495_v23 = vrot.slane %v2358_v18, 2  ;;  %v8998_v24 = vld [vmem:[%s10050_s22 + $0x640] ss:$8 sps:$4 sm:$0xff]   ;;  %v9000_v25 = vld [vmem:[%s10050_s22 + $0x644] ss:$8 sps:$4 sm:$0xff]  }
 0x24d   : > { %5819 = vmatprep.subr.bf16.mxu0 %v8988_v37  ;;  %v2490_v26 = vsel %vm1822_vm2, %v2488_v19, %v2489_v20  ;;  %v9003_v28 = vld [vmem:[%s10050_s22 + $0x254] ss:$8 sps:$4 sm:$0xff]   ;;  %v9004_v30 = vld [vmem:[%s10050_s22 + $0x650] ss:$8 sps:$4 sm:$0xff]   ;;  %v1430_v33 = vld [vmem:[#allocation4 + $0xc8] sm:$0xfe] }
 0x24e   : > { %5293 = vmatmul.mubr.bf16.gmra.mrb[4].mxu1 %v1664_v34  ;;  %v2493_v4 = vsel %vm1822_vm2, %v2491_v59, %v2492_v60  ;;  %v2496_v29 = vsel %vm1822_vm2, %v2494_v21, %v2495_v23  ;;  %v9006_v31 = vld [vmem:[%s10050_s22 + $0x654] ss:$8 sps:$4 sm:$0xff]   ;;  %v1434_v35 = vld [vmem:[#allocation4 + $0xe8] sm:$0xfe]  ;;  %v1573_v37 = vrot.slane %v1430_v33, 1 }
 0x24f   : > { %5368 = vmatpush1.bf16.msra.mxu1 %v8983_v22  ;;  %5745 = vmatmul.mubr.bf16.gmra.mrb[4].mxu0 %v2594_v42  ;;  %v2597_v12 = vpack.c.bf16 %v2499_v8, %v2493_v4  ;;  %v1666_v22 = vpack.c.bf16 %v1566_v17, %v1560_v13  ;;  %v2596_v32 = vpack.c.bf16 %v2496_v29, %v2490_v26  ;;  %v1432_v34 = vld [vmem:[#allocation4 + $0xd8] sm:$0x1]  ;;  %v1429_v51 = vld [vmem:[#allocation4 + $0xc0] sm:$0xfe]  ;;  %v1431_v52 = vld [vmem:[#allocation4 + $0xd0] sm:$0x1] }
 0x250   : > { %5820 = vmatpush1.bf16.msra.mxu0 %v8986_v36  ;;  %5369 = vmatprep.subr.bf16.mxu1 %v8991_v41  ;;  %v1436_v36 = vld [vmem:[#allocation4 + $0xf8] sm:$0x1]  ;;  %v1574_v38 = vrot.slane %v1432_v34, 1  ;;  %v2361_v41 = vld [vmem:[#allocation4 + $0xe8] sm:$0xfc]  ;;  %v1570_v57 = vrot.slane %v1429_v51, 1 }
 0x251   : > { %5821 = vmatprep.subr.bf16.mxu0 %v8994_v44  ;;  %5302 = vmatprep.mubr.bf16.mxu1 %v1667_v63  ;;  %v1580_v40 = vrot.slane %v1436_v36, 1  ;;  %v2363_v42 = vld [vmem:[#allocation4 + $0xf8] sm:$0x3]  ;;  %v2365_v44 = vld [vmem:[#allocation4 + $0x108] sm:$0xfc]  ;;  %v2503_v46 = vrot.slane %v2361_v41, 2 }
 0x252   : > { %5754 = vmatprep.mubr.bf16.mxu0 %v2597_v12  ;;  %v2367_v45 = vld [vmem:[#allocation4 + $0x118] sm:$0x3]  ;;  %v2504_v47 = vrot.slane %v2363_v42, 2  ;;  %v2509_v49 = vrot.slane %v2365_v44, 2  ;;  %v1433_v55 = vld [vmem:[#allocation4 + $0xe0] sm:$0xfe] }
 0x253   : > { %5370 = vmatpush1.bf16.msra.mxu1 %v8989_v39  ;;  %v1579_v39 = vrot.slane %v1434_v35, 1  ;;  %v2510_v50 = vrot.slane %v2367_v45, 2  ;;  %v1435_v56 = vld [vmem:[#allocation4 + $0xf0] sm:$0x1]  ;;  %v1571_v58 = vrot.slane %v1431_v52, 1  ;;  %v1576_v60 = vrot.slane %v1433_v55, 1 }
 0x254   : > { %5822 = vmatpush1.bf16.msra.mxu0 %v8992_v43  ;;  %5371 = vmatprep.subr.bf16.mxu1 %v8997_v11  ;;  %v1575_v43 = vsel %vm1533_vm1, %v1573_v37, %v1574_v38  ;;  %v2505_v54 = vsel %vm1822_vm2, %v2503_v46, %v2504_v47  ;;  %v1577_v61 = vrot.slane %v1435_v56, 1  ;;  %v9007_v62 = vld [vmem:[%s10050_s22 + $0x260] ss:$8 sps:$4 sm:$0xff]   ;;  %v9009_v63 = vld [vmem:[%s10050_s22 + $0x264] ss:$8 sps:$4 sm:$0xff]  }
 0x255   : > { %5823 = vmatprep.subr.bf16.mxu0 %v9000_v25  ;;  %v1581_v48 = vsel %vm1533_vm1, %v1579_v39, %v1580_v40  ;;  %v2511_v59 = vsel %vm1822_vm2, %v2509_v49, %v2510_v50  ;;  %v1572_v1 = vsel %vm1533_vm1, %v1570_v57, %v1571_v58  ;;  %v2360_v2 = vld [vmem:[#allocation4 + $0xe0] sm:$0xfc]  ;;  %v2362_v3 = vld [vmem:[#allocation4 + $0xf0] sm:$0x3]  ;;  %v9013_v15 = vld [vmem:[%s10050_s22 + $0x270] ss:$8 sps:$4 sm:$0xff]  }
 0x256   : > { %5303 = vmatmul.mubr.bf16.gmra.mrb[8].mxu1 %v1666_v22  ;;  %v1669_v53 = vpack.c.bf16 %v1581_v48, %v1575_v43  ;;  %v2599_v0 = vpack.c.bf16 %v2511_v59, %v2505_v54  ;;  %v2364_v4 = vld [vmem:[#allocation4 + $0x100] sm:$0xfc]  ;;  %v1578_v5 = vsel %vm1533_vm1, %v1576_v60, %v1577_v61  ;;  %v2366_v6 = vld [vmem:[#allocation4 + $0x110] sm:$0x3]  ;;  %v2500_v7 = vrot.slane %v2360_v2, 2 }
 0x257   : > { %5372 = vmatpush1.bf16.msra.mxu1 %v8995_v10  ;;  %5755 = vmatmul.mubr.bf16.gmra.mrb[8].mxu0 %v2596_v32  ;;  %v2501_v8 = vrot.slane %v2362_v3, 2  ;;  %v2506_v9 = vrot.slane %v2364_v4, 2  ;;  %v1668_v10 = vpack.c.bf16 %v1578_v5, %v1572_v1  ;;  %v2507_v11 = vrot.slane %v2366_v6, 2  ;;  %v9010_v12 = vld [vmem:[%s10050_s22 + $0x660] ss:$8 sps:$4 sm:$0xff]  }
 0x258   : > { %5824 = vmatpush1.bf16.msra.mxu0 %v8998_v24  ;;  %5373 = vmatprep.subr.bf16.mxu1 %v9003_v28  ;;  %v9012_v13 = vld [vmem:[%s10050_s22 + $0x664] ss:$8 sps:$4 sm:$0xff]   ;;  %v9015_v17 = vld [vmem:[%s10050_s22 + $0x274] ss:$8 sps:$4 sm:$0xff]   ;;  %v9016_v19 = vld [vmem:[%s10050_s22 + $0x670] ss:$8 sps:$4 sm:$0xff]  }
 0x259   : > { %5825 = vmatprep.subr.bf16.mxu0 %v9006_v31  ;;  %5312 = vmatprep.mubr.bf16.mxu1 %v1669_v53  ;;  %v2502_v14 = vsel %vm1822_vm2, %v2500_v7, %v2501_v8  ;;  %v2508_v16 = vsel %vm1822_vm2, %v2506_v9, %v2507_v11  ;;  %v9018_v20 = vld [vmem:[%s10050_s22 + $0x674] ss:$8 sps:$4 sm:$0xff]   ;;  %v1438_v21 = vld [vmem:[#allocation4 + $0x148] sm:$0xfe]  ;;  %v1439_v38 = vld [vmem:[#allocation4 + $0x150] sm:$0x1] }
 0x25a   : > { %5764 = vmatprep.mubr.bf16.mxu0 %v2599_v0  ;;  %v2598_v18 = vpack.c.bf16 %v2508_v16, %v2502_v14  ;;  %v1440_v22 = vld [vmem:[#allocation4 + $0x158] sm:$0x1]  ;;  %v1442_v23 = vld [vmem:[#allocation4 + $0x168] sm:$0xfe]  ;;  %v1585_v25 = vrot.slane %v1438_v21, 1  ;;  %v1583_v46 = vrot.slane %v1439_v38, 1 }
 0x25b   : > { %5374 = vmatpush1.bf16.msra.mxu1 %v9001_v27  ;;  %v1444_v24 = vld [vmem:[#allocation4 + $0x178] sm:$0x1]  ;;  %v1586_v26 = vrot.slane %v1440_v22, 1  ;;  %v1591_v27 = vrot.slane %v1442_v23, 1  ;;  %v2369_v29 = vld [vmem:[#allocation4 + $0x168] sm:$0xfc] }
 0x25c   : > { %5826 = vmatpush1.bf16.msra.mxu0 %v9004_v30  ;;  %5375 = vmatprep.subr.bf16.mxu1 %v9009_v63  ;;  %v1592_v28 = vrot.slane %v1444_v24, 1  ;;  %v2371_v30 = vld [vmem:[#allocation4 + $0x178] sm:$0x3]  ;;  %v2373_v31 = vld [vmem:[#allocation4 + $0x188] sm:$0xfc]  ;;  %v2515_v35 = vrot.slane %v2369_v29, 2 }
 0x25d   : > { %5827 = vmatprep.subr.bf16.mxu0 %v9012_v13  ;;  %v2375_v32 = vld [vmem:[#allocation4 + $0x198] sm:$0x3]  ;;  %v1587_v33 = vsel %vm1533_vm1, %v1585_v25, %v1586_v26  ;;  %v2516_v36 = vrot.slane %v2371_v30, 2  ;;  %v1437_v37 = vld [vmem:[#allocation4 + $0x140] sm:$0xfe]  ;;  %v2521_v40 = vrot.slane %v2373_v31, 2 }
 0x25e   : > { %5313 = vmatmul.mubr.bf16.gmra.mrb[12].mxu1 %v1668_v10  ;;  %v1593_v34 = vsel %vm1533_vm1, %v1591_v27, %v1592_v28  ;;  %v2522_v41 = vrot.slane %v2375_v32, 2  ;;  %v1441_v42 = vld [vmem:[#allocation4 + $0x160] sm:$0xfe]  ;;  %v1443_v43 = vld [vmem:[#allocation4 + $0x170] sm:$0x1]  ;;  %v1582_v45 = vrot.slane %v1437_v37, 1 }
 0x25f   : > { %5376 = vmatpush1.bf16.msra.mxu1 %v9007_v62  ;;  %5765 = vmatmul.mubr.bf16.gmra.mrb[12].mxu0 %v2598_v18  ;;  %v1671_v39 = vpack.c.bf16 %v1593_v34, %v1587_v33  ;;  %v2517_v44 = vsel %vm1822_vm2, %v2515_v35, %v2516_v36  ;;  %v1588_v47 = vrot.slane %v1441_v42, 1  ;;  %v1589_v49 = vrot.slane %v1443_v43, 1  ;;  %v9019_v50 = vld [vmem:[%s10050_s22 + $0x280] ss:$8 sps:$4 sm:$0xff]   ;;  %v9021_v51 = vld [vmem:[%s10050_s22 + $0x284] ss:$8 sps:$4 sm:$0xff]  }
 0x260   : > { %5828 = vmatpush1.bf16.msra.mxu0 %v9010_v12  ;;  %5377 = vmatprep.subr.bf16.mxu1 %v9015_v17  ;;  %v2523_v48 = vsel %vm1822_vm2, %v2521_v40, %v2522_v41  ;;  %v1584_v53 = vsel %vm1533_vm1, %v1582_v45, %v1583_v46  ;;  %v2368_v54 = vld [vmem:[#allocation4 + $0x160] sm:$0xfc]  ;;  %v2370_v55 = vld [vmem:[#allocation4 + $0x170] sm:$0x3]  ;;  %v9025_v3 = vld [vmem:[%s10050_s22 + $0x290] ss:$8 sps:$4 sm:$0xff]  }
 0x261   : > { %5829 = vmatprep.subr.bf16.mxu0 %v9018_v20  ;;  %5322 = vmatprep.mubr.bf16.mxu1 %v1671_v39  ;;  %v2601_v52 = vpack.c.bf16 %v2523_v48, %v2517_v44  ;;  %v2372_v56 = vld [vmem:[#allocation4 + $0x180] sm:$0xfc]  ;;  %v1590_v57 = vsel %vm1533_vm1, %v1588_v47, %v1589_v49  ;;  %v2374_v58 = vld [vmem:[#allocation4 + $0x190] sm:$0x3]  ;;  %v2512_v59 = vrot.slane %v2368_v54, 2  ;;  %v2513_v60 = vrot.slane %v2370_v55, 2 }
 0x262   : > { %v2518_v61 = vrot.slane %v2372_v56, 2  ;;  %v1670_v62 = vpack.c.bf16 %v1590_v57, %v1584_v53  ;;  %v2519_v63 = vrot.slane %v2374_v58, 2  ;;  %v9022_v0 = vld [vmem:[%s10050_s22 + $0x680] ss:$8 sps:$4 sm:$0xff]   ;;  %v9024_v1 = vld [vmem:[%s10050_s22 + $0x684] ss:$8 sps:$4 sm:$0xff]  }
 0x263   : > { %5378 = vmatpush1.bf16.msra.mxu1 %v9013_v15  ;;  %5774 = vmatprep.mubr.bf16.mxu0 %v2601_v52  ;;  %v2514_v2 = vsel %vm1822_vm2, %v2512_v59, %v2513_v60  ;;  %v9027_v4 = vld [vmem:[%s10050_s22 + $0x294] ss:$8 sps:$4 sm:$0xff]   ;;  %v9028_v6 = vld [vmem:[%s10050_s22 + $0x690] ss:$8 sps:$4 sm:$0xff]   ;;  %v1446_v9 = vld [vmem:[#allocation4 + $0x188] sm:$0xfe] }
 0x264   : > { %5830 = vmatpush1.bf16.msra.mxu0 %v9016_v19  ;;  %5379 = vmatprep.subr.bf16.mxu1 %v9021_v51  ;;  %v2520_v5 = vsel %vm1822_vm2, %v2518_v61, %v2519_v63  ;;  %v9030_v7 = vld [vmem:[%s10050_s22 + $0x694] ss:$8 sps:$4 sm:$0xff]   ;;  %v1450_v11 = vld [vmem:[#allocation4 + $0x1a8] sm:$0xfe]  ;;  %v1597_v13 = vrot.slane %v1446_v9, 1 }
 0x265   : > { %5831 = vmatprep.subr.bf16.mxu0 %v9024_v1  ;;  %v2600_v8 = vpack.c.bf16 %v2520_v5, %v2514_v2  ;;  %v1448_v10 = vld [vmem:[#allocation4 + $0x198] sm:$0x1]  ;;  %v1603_v15 = vrot.slane %v1450_v11, 1  ;;  %v2377_v17 = vld [vmem:[#allocation4 + $0x1a8] sm:$0xfc] }
 0x266   : > { %5323 = vmatmul.mubr.bf16.gmra.mrb[16].mxu1 %v1670_v62  ;;  %v1452_v12 = vld [vmem:[#allocation4 + $0x1b8] sm:$0x1]  ;;  %v1598_v14 = vrot.slane %v1448_v10, 1  ;;  %v2381_v20 = vld [vmem:[#allocation4 + $0x1c8] sm:$0xfc]  ;;  %v2527_v22 = vrot.slane %v2377_v17, 2 }
 0x267   : > { %5380 = vmatpush1.bf16.msra.mxu1 %v9019_v50  ;;  %5775 = vmatmul.mubr.bf16.gmra.mrb[16].mxu0 %v2600_v8  ;;  %v1604_v16 = vrot.slane %v1452_v12, 1  ;;  %v2379_v18 = vld [vmem:[#allocation4 + $0x1b8] sm:$0x3]  ;;  %v2533_v25 = vrot.slane %v2381_v20, 2  ;;  %v1445_v27 = vld [vmem:[#allocation4 + $0x180] sm:$0xfe] }
 0x268   : > { %5832 = vmatpush1.bf16.msra.mxu0 %v9022_v0  ;;  %5381 = vmatprep.subr.bf16.mxu1 %v9027_v4  ;;  %v1599_v19 = vsel %vm1533_vm1, %v1597_v13, %v1598_v14  ;;  %v2383_v21 = vld [vmem:[#allocation4 + $0x1d8] sm:$0x3]  ;;  %v2528_v23 = vrot.slane %v2379_v18, 2  ;;  %v1447_v28 = vld [vmem:[#allocation4 + $0x190] sm:$0x1]  ;;  %v1594_v33 = vrot.slane %v1445_v27, 1 }
 0x269   : > { %5833 = vmatprep.subr.bf16.mxu0 %v9030_v7  ;;  %v1605_v24 = vsel %vm1533_vm1, %v1603_v15, %v1604_v16  ;;  %v2534_v26 = vrot.slane %v2383_v21, 2  ;;  %v1449_v31 = vld [vmem:[#allocation4 + $0x1a0] sm:$0xfe]  ;;  %v1451_v32 = vld [vmem:[#allocation4 + $0x1b0] sm:$0x1]  ;;  %v1595_v34 = vrot.slane %v1447_v28, 1 }
 0x26a   : > { %v1673_v29 = vpack.c.bf16 %v1605_v24, %v1599_v19  ;;  %v2529_v30 = vsel %vm1822_vm2, %v2527_v22, %v2528_v23  ;;  %v1600_v36 = vrot.slane %v1449_v31, 1  ;;  %v1601_v37 = vrot.slane %v1451_v32, 1  ;;  %v9031_v38 = vld [vmem:[%s10050_s22 + $0x2a0] ss:$8 sps:$4 sm:$0xff]   ;;  %v9033_v39 = vld [vmem:[%s10050_s22 + $0x2a4] ss:$8 sps:$4 sm:$0xff]  }
 0x26b   : > { %5382 = vmatpush1.bf16.msra.mxu1 %v9025_v3  ;;  %v2535_v35 = vsel %vm1822_vm2, %v2533_v25, %v2534_v26  ;;  %v1596_v41 = vsel %vm1533_vm1, %v1594_v33, %v1595_v34  ;;  %v2376_v42 = vld [vmem:[#allocation4 + $0x1a0] sm:$0xfc]  ;;  %v2378_v43 = vld [vmem:[#allocation4 + $0x1b0] sm:$0x3]  ;;  %v9037_v55 = vld [vmem:[%s10050_s22 + $0x2b0] ss:$8 sps:$4 sm:$0xff]  }
 0x26c   : > { %5834 = vmatpush1.bf16.msra.mxu0 %v9028_v6  ;;  %5332 = vmatprep.mubr.bf16.mxu1 %v1673_v29  ;;  %v2603_v40 = vpack.c.bf16 %v2535_v35, %v2529_v30  ;;  %v2380_v44 = vld [vmem:[#allocation4 + $0x1c0] sm:$0xfc]  ;;  %v1602_v45 = vsel %vm1533_vm1, %v1600_v36, %v1601_v37  ;;  %v2382_v46 = vld [vmem:[#allocation4 + $0x1d0] sm:$0x3]  ;;  %v2524_v47 = vrot.slane %v2376_v42, 2  ;;  %v2525_v48 = vrot.slane %v2378_v43, 2 }
 0x26d   : > { %5383 = vmatprep.subr.bf16.mxu1 %v9033_v39  ;;  %v2530_v49 = vrot.slane %v2380_v44, 2  ;;  %v1672_v50 = vpack.c.bf16 %v1602_v45, %v1596_v41  ;;  %v2531_v51 = vrot.slane %v2382_v46, 2  ;;  %v9034_v52 = vld [vmem:[%s10050_s22 + $0x6a0] ss:$8 sps:$4 sm:$0xff]   ;;  %v9036_v53 = vld [vmem:[%s10050_s22 + $0x6a4] ss:$8 sps:$4 sm:$0xff]  }
 0x26e   : > { %5784 = vmatprep.mubr.bf16.mxu0 %v2603_v40  ;;  %v2526_v54 = vsel %vm1822_vm2, %v2524_v47, %v2525_v48  ;;  %5835 = vmatprep.subr.bf16.mxu0 %v9036_v53  ;;  %v9039_v57 = vld [vmem:[%s10050_s22 + $0x2b4] ss:$8 sps:$4 sm:$0xff]   ;;  %v9040_v59 = vld [vmem:[%s10050_s22 + $0x6b0] ss:$8 sps:$4 sm:$0xff]   ;;  %v1454_v61 = vld [vmem:[#allocation4 + $0x1c8] sm:$0xfe] }
 0x26f   : > { %5384 = vmatpush1.bf16.msra.mxu1 %v9031_v38  ;;  %v2532_v56 = vsel %vm1822_vm2, %v2530_v49, %v2531_v51  ;;  %v9042_v60 = vld [vmem:[%s10050_s22 + $0x6b4] ss:$8 sps:$4 sm:$0xff]   ;;  %v1458_v63 = vld [vmem:[#allocation4 + $0x1e8] sm:$0xfe]  ;;  %v1609_v1 = vrot.slane %v1454_v61, 1 }
 0x270   : > { %5333 = vmatmul.mubr.bf16.gmra.mrb[20].mxu1 %v1672_v50  ;;  %v2602_v58 = vpack.c.bf16 %v2532_v56, %v2526_v54  ;;  %5836 = vmatpush1.bf16.msra.mxu0 %v9034_v52  ;;  %v1456_v62 = vld [vmem:[#allocation4 + $0x1d8] sm:$0x1]  ;;  %v1615_v3 = vrot.slane %v1458_v63, 1  ;;  %v2385_v5 = vld [vmem:[#allocation4 + $0x1e8] sm:$0xfc] }
 0x271   : > { %5385 = vmatprep.subr.bf16.mxu1 %v9039_v57  ;;  %v1460_v0 = vld [vmem:[#allocation4 + $0x1f8] sm:$0x1]  ;;  %5837 = vmatprep.subr.bf16.mxu0 %v9042_v60  ;;  %v1610_v2 = vrot.slane %v1456_v62, 1  ;;  %v2389_v7 = vld [vmem:[#allocation4 + $0x208] sm:$0xfc]  ;;  %v2539_v11 = vrot.slane %v2385_v5, 2 }
 0x272   : > { %5785 = vmatmul.mubr.bf16.gmra.mrb[20].mxu0 %v2602_v58  ;;  %v1616_v4 = vrot.slane %v1460_v0, 1  ;;  %v2387_v6 = vld [vmem:[#allocation4 + $0x1f8] sm:$0x3]  ;;  %v1453_v13 = vld [vmem:[#allocation4 + $0x1c0] sm:$0xfe]  ;;  %v2545_v16 = vrot.slane %v2389_v7, 2 }
 0x273   : > { %5386 = vmatpush1.bf16.msra.mxu1 %v9037_v55  ;;  %v2391_v8 = vld [vmem:[#allocation4 + $0x218] sm:$0x3]  ;;  %v1611_v9 = vsel %vm1533_vm1, %v1609_v1, %v1610_v2  ;;  %v2540_v12 = vrot.slane %v2387_v6, 2  ;;  %v1455_v14 = vld [vmem:[#allocation4 + $0x1d0] sm:$0x1]  ;;  %v1606_v21 = vrot.slane %v1453_v13, 1 }
 0x274   : > { %5838 = vmatpush1.bf16.msra.mxu0 %v9040_v59  ;;  %v1617_v10 = vsel %vm1533_vm1, %v1615_v3, %v1616_v4  ;;  %v2546_v17 = vrot.slane %v2391_v8, 2  ;;  %v1457_v18 = vld [vmem:[#allocation4 + $0x1e0] sm:$0xfe]  ;;  %v1459_v19 = vld [vmem:[#allocation4 + $0x1f0] sm:$0x1]  ;;  %v1607_v22 = vrot.slane %v1455_v14, 1 }
 0x275   : > { %v1675_v15 = vpack.c.bf16 %v1617_v10, %v1611_v9  ;;  %v2541_v20 = vsel %vm1822_vm2, %v2539_v11, %v2540_v12  ;;  %v1612_v23 = vrot.slane %v1457_v18, 1  ;;  %v1613_v25 = vrot.slane %v1459_v19, 1  ;;  %v9043_v26 = vld [vmem:[%s10050_s22 + $0x2c0] ss:$8 sps:$4 sm:$0xff]   ;;  %v9045_v27 = vld [vmem:[%s10050_s22 + $0x2c4] ss:$8 sps:$4 sm:$0xff]  }
 0x276   : > { %v2547_v24 = vsel %vm1822_vm2, %v2545_v16, %v2546_v17  ;;  %v1608_v29 = vsel %vm1533_vm1, %v1606_v21, %v1607_v22  ;;  %v2384_v30 = vld [vmem:[#allocation4 + $0x1e0] sm:$0xfc]  ;;  %v2386_v31 = vld [vmem:[#allocation4 + $0x1f0] sm:$0x3]  ;;  %5387 = vmatprep.subr.bf16.mxu1 %v9045_v27  ;;  %v9049_v43 = vld [vmem:[%s10050_s22 + $0x2d0] ss:$8 sps:$4 sm:$0xff]  }
 0x277   : > { %5342 = vmatprep.mubr.bf16.mxu1 %v1675_v15  ;;  %v2605_v28 = vpack.c.bf16 %v2547_v24, %v2541_v20  ;;  %v2388_v32 = vld [vmem:[#allocation4 + $0x200] sm:$0xfc]  ;;  %v1614_v33 = vsel %vm1533_vm1, %v1612_v23, %v1613_v25  ;;  %v2390_v34 = vld [vmem:[#allocation4 + $0x210] sm:$0x3]  ;;  %v2536_v35 = vrot.slane %v2384_v30, 2  ;;  %v2537_v36 = vrot.slane %v2386_v31, 2  ;;  %5388 = vmatpush1.bf16.msra.mxu1 %v9043_v26 }
 0x278   : > { %v2542_v37 = vrot.slane %v2388_v32, 2  ;;  %v1674_v38 = vpack.c.bf16 %v1614_v33, %v1608_v29  ;;  %v2543_v39 = vrot.slane %v2390_v34, 2  ;;  %v9046_v40 = vld [vmem:[%s10050_s22 + $0x6c0] ss:$8 sps:$4 sm:$0xff]   ;;  %v9048_v41 = vld [vmem:[%s10050_s22 + $0x6c4] ss:$8 sps:$4 sm:$0xff]  }
 0x279   : > { %5794 = vmatprep.mubr.bf16.mxu0 %v2605_v28  ;;  %v2538_v42 = vsel %vm1822_vm2, %v2536_v35, %v2537_v36  ;;  %v9051_v44 = vld [vmem:[%s10050_s22 + $0x2d4] ss:$8 sps:$4 sm:$0xff]   ;;  %5839 = vmatprep.subr.bf16.mxu0 %v9048_v41  ;;  %v9052_v46 = vld [vmem:[%s10050_s22 + $0x6d0] ss:$8 sps:$4 sm:$0xff]   ;;  %v1462_v49 = vld [vmem:[#allocation4 + $0x208] sm:$0xfe] }
 0x27a   : > { %5343 = vmatmul.mubr.bf16.gmra.mrb[24].mxu1 %v1674_v38  ;;  %v2544_v45 = vsel %vm1822_vm2, %v2542_v37, %v2543_v39  ;;  %v9054_v47 = vld [vmem:[%s10050_s22 + $0x6d4] ss:$8 sps:$4 sm:$0xff]   ;;  %5840 = vmatpush1.bf16.msra.mxu0 %v9046_v40  ;;  %v1466_v51 = vld [vmem:[#allocation4 + $0x228] sm:$0xfe]  ;;  %v1621_v53 = vrot.slane %v1462_v49, 1 }
 0x27b   : > { %v2604_v48 = vpack.c.bf16 %v2544_v45, %v2538_v42  ;;  %5389 = vmatprep.subr.bf16.mxu1 %v9051_v44  ;;  %v1464_v50 = vld [vmem:[#allocation4 + $0x218] sm:$0x1]  ;;  %5841 = vmatprep.subr.bf16.mxu0 %v9054_v47  ;;  %v1627_v55 = vrot.slane %v1466_v51, 1  ;;  %v2393_v57 = vld [vmem:[#allocation4 + $0x228] sm:$0xfc] }
 0x27c   : > { %5390 = vmatpush1.bf16.msra.mxu1 %v9049_v43  ;;  %v1468_v52 = vld [vmem:[#allocation4 + $0x238] sm:$0x1]  ;;  %v1622_v54 = vrot.slane %v1464_v50, 1  ;;  %v2397_v60 = vld [vmem:[#allocation4 + $0x248] sm:$0xfc]  ;;  %v2551_v62 = vrot.slane %v2393_v57, 2 }
 0x27d   : > { %5795 = vmatmul.mubr.bf16.gmra.mrb[24].mxu0 %v2604_v48  ;;  %v1628_v56 = vrot.slane %v1468_v52, 1  ;;  %v2395_v58 = vld [vmem:[#allocation4 + $0x238] sm:$0x3]  ;;  %v2557_v1 = vrot.slane %v2397_v60, 2  ;;  %v1461_v3 = vld [vmem:[#allocation4 + $0x200] sm:$0xfe] }
 0x27e   : > { %v1623_v59 = vsel %vm1533_vm1, %v1621_v53, %v1622_v54  ;;  %v2399_v61 = vld [vmem:[#allocation4 + $0x258] sm:$0x3]  ;;  %v2552_v63 = vrot.slane %v2395_v58, 2  ;;  %5842 = vmatpush1.bf16.msra.mxu0 %v9052_v46  ;;  %v1463_v4 = vld [vmem:[#allocation4 + $0x210] sm:$0x1]  ;;  %v1618_v9 = vrot.slane %v1461_v3, 1 }
 0x27f   : > { %v1629_v0 = vsel %vm1533_vm1, %v1627_v55, %v1628_v56  ;;  %v2558_v2 = vrot.slane %v2399_v61, 2  ;;  %v1465_v7 = vld [vmem:[#allocation4 + $0x220] sm:$0xfe]  ;;  %v1467_v8 = vld [vmem:[#allocation4 + $0x230] sm:$0x1]  ;;  %v1619_v10 = vrot.slane %v1463_v4, 1 }
 0x280   : > { %v1677_v5 = vpack.c.bf16 %v1629_v0, %v1623_v59  ;;  %v2553_v6 = vsel %vm1822_vm2, %v2551_v62, %v2552_v63  ;;  %v1624_v12 = vrot.slane %v1465_v7, 1  ;;  %v1625_v13 = vrot.slane %v1467_v8, 1  ;;  %v9055_v14 = vld [vmem:[%s10050_s22 + $0x2e0] ss:$8 sps:$4 sm:$0xff]   ;;  %v9057_v15 = vld [vmem:[%s10050_s22 + $0x2e4] ss:$8 sps:$4 sm:$0xff]  }
 0x281   : > { %v2559_v11 = vsel %vm1822_vm2, %v2557_v1, %v2558_v2  ;;  %v1620_v17 = vsel %vm1533_vm1, %v1618_v9, %v1619_v10  ;;  %v2392_v18 = vld [vmem:[#allocation4 + $0x220] sm:$0xfc]  ;;  %v2394_v19 = vld [vmem:[#allocation4 + $0x230] sm:$0x3]  ;;  %5391 = vmatprep.subr.bf16.mxu1 %v9057_v15  ;;  %v9061_v31 = vld [vmem:[%s10050_s22 + $0x2f0] ss:$8 sps:$4 sm:$0xff]  }
 0x282   : > { %5352 = vmatprep.mubr.bf16.mxu1 %v1677_v5  ;;  %v2607_v16 = vpack.c.bf16 %v2559_v11, %v2553_v6  ;;  %v2396_v20 = vld [vmem:[#allocation4 + $0x240] sm:$0xfc]  ;;  %v1626_v21 = vsel %vm1533_vm1, %v1624_v12, %v1625_v13  ;;  %v2398_v22 = vld [vmem:[#allocation4 + $0x250] sm:$0x3]  ;;  %v2548_v23 = vrot.slane %v2392_v18, 2  ;;  %v2549_v24 = vrot.slane %v2394_v19, 2  ;;  %5392 = vmatpush1.bf16.msra.mxu1 %v9055_v14 }
 0x283   : > { %v2554_v25 = vrot.slane %v2396_v20, 2  ;;  %v1676_v26 = vpack.c.bf16 %v1626_v21, %v1620_v17  ;;  %v2555_v27 = vrot.slane %v2398_v22, 2  ;;  %v9058_v28 = vld [vmem:[%s10050_s22 + $0x6e0] ss:$8 sps:$4 sm:$0xff]   ;;  %v9060_v29 = vld [vmem:[%s10050_s22 + $0x6e4] ss:$8 sps:$4 sm:$0xff]  }
 0x284   : > { %5804 = vmatprep.mubr.bf16.mxu0 %v2607_v16  ;;  %v2550_v30 = vsel %vm1822_vm2, %v2548_v23, %v2549_v24  ;;  %5843 = vmatprep.subr.bf16.mxu0 %v9060_v29  ;;  %v9063_v33 = vld [vmem:[%s10050_s22 + $0x2f4] ss:$8 sps:$4 sm:$0xff]   ;;  %v9064_v35 = vld [vmem:[%s10050_s22 + $0x6f0] ss:$8 sps:$4 sm:$0xff]   ;;  %v1695_v37 = vld [vmem:[#allocation4 + $0x8] sm:$0xfc] }
 0x285   : > { %5353 = vmatmul.mubr.bf16.gmra.mrb[28].mxu1 %v1676_v26  ;;  %v2556_v32 = vsel %vm1822_vm2, %v2554_v25, %v2555_v27  ;;  %5844 = vmatpush1.bf16.msra.mxu0 %v9058_v28  ;;  %v9066_v36 = vld [vmem:[%s10050_s22 + $0x6f4] ss:$8 sps:$4 sm:$0xff]   ;;  %v1699_v39 = vld [vmem:[#allocation4 + $0x28] sm:$0xfc]  ;;  %v1826_v41 = vrot.slane %v1695_v37, 2 }
 0x286   : > { %v2606_v34 = vpack.c.bf16 %v2556_v32, %v2550_v30  ;;  %5393 = vmatprep.subr.bf16.mxu1 %v9063_v33  ;;  %v1697_v38 = vld [vmem:[#allocation4 + $0x18] sm:$0x3]  ;;  %5845 = vmatprep.subr.bf16.mxu0 %v9066_v36  ;;  %v1832_v43 = vrot.slane %v1699_v39, 2  ;;  %v10513_v45 = vld [vmem:[#allocation4 + $0x48] sm:$0xff]  ;;  %v1694_v48 = vld [vmem:[#allocation4] sm:$0xfc] }
 0x287   : > { %v1701_v40 = vld [vmem:[#allocation4 + $0x38] sm:$0x3]  ;;  %v1827_v42 = vrot.slane %v1697_v38, 2  ;;  %v10515_v46 = vld [vmem:[#allocation4 + $0x68] sm:$0xff]  ;;  %5394 = vmatpush1.bf16.msra.mxu1 %v9061_v31  ;;  %v1696_v49 = vld [vmem:[#allocation4 + $0x10] sm:$0x3] }
 0x288   : > { %5805 = vmatmul.mubr.bf16.gmra.mrb[28].mxu0 %v2606_v34  ;;  %v1833_v44 = vrot.slane %v1701_v40, 2  ;;  %v2658_v47 = vpack.c.bf16 %v10515_v46, %v10513_v45  ;;  %v1698_v50 = vld [vmem:[#allocation4 + $0x20] sm:$0xfc]  ;;  %v1700_v53 = vld [vmem:[#allocation4 + $0x30] sm:$0x3]  ;;  %v1823_v54 = vrot.slane %v1694_v48, 2 }
 0x289   : > { %5846 = vmatpush1.bf16.msra.mxu0 %v9064_v35  ;;  %v1828_v51 = vsel %vm1822_vm2, %v1826_v41, %v1827_v42  ;;  %v1824_v55 = vrot.slane %v1696_v49, 2  ;;  %v1829_v57 = vrot.slane %v1698_v50, 2  ;;  %v1830_v58 = vrot.slane %v1700_v53, 2  ;;  %v9067_v59 = vld [vmem:[%s10050_s22 + $0x300] ss:$8 sps:$4 sm:$0xff]  }
 0x28a   : > { %v1834_v52 = vsel %vm1822_vm2, %v1832_v43, %v1833_v44  ;;  %5847 = vmatprep.mubr.bf16.mxu0 %v2658_v47  ;;  %v9069_v60 = vld [vmem:[%s10050_s22 + $0x304] ss:$8 sps:$4 sm:$0xff]   ;;  %v9070_v2 = vld [vmem:[%s10050_s22 + $0x700] ss:$8 sps:$4 sm:$0xff]   ;;  %v9073_v5 = vld [vmem:[%s10050_s22 + $0x310] ss:$8 sps:$4 sm:$0xff]  }
 0x28b   : > { %v1952_v56 = vpack.c.bf16 %v1834_v52, %v1828_v51  ;;  %v1825_v61 = vsel %vm1822_vm2, %v1823_v54, %v1824_v55  ;;  %v10524_v62 = vld [vmem:[#allocation4 + $0x40] sm:$0xff]  ;;  %v1831_v0 = vsel %vm1822_vm2, %v1829_v57, %v1830_v58  ;;  %5476 = vmatprep.subr.bf16.mxu1 %v9069_v60  ;;  %v9076_v7 = vld [vmem:[%s10050_s22 + $0x710] ss:$8 sps:$4 sm:$0xff]   ;;  %v1703_v9 = vld [vmem:[#allocation4 + $0x48] sm:$0xfc] }
 0x28c   : > { %v10526_v63 = vld [vmem:[#allocation4 + $0x60] sm:$0xff]  ;;  %v1951_v4 = vpack.c.bf16 %v1831_v0, %v1825_v61  ;;  %v1705_v10 = vld [vmem:[#allocation4 + $0x58] sm:$0x3]  ;;  %v1707_v11 = vld [vmem:[#allocation4 + $0x68] sm:$0xfc]  ;;  %v1838_v13 = vrot.slane %v1703_v9, 2 }
 0x28d   : > { %5395 = vmatprep.mubr.bf16.mxu1 %v1952_v56  ;;  %v2657_v1 = vpack.c.bf16 %v10526_v63, %v10524_v62  ;;  %v9072_v3 = vld [vmem:[%s10050_s22 + $0x704] ss:$8 sps:$4 sm:$0xff]   ;;  %v9075_v6 = vld [vmem:[%s10050_s22 + $0x314] ss:$8 sps:$4 sm:$0xff]   ;;  %v1839_v14 = vrot.slane %v1705_v10, 2  ;;  %v1844_v15 = vrot.slane %v1707_v11, 2 }
 0x28e   : > { %5928 = vmatprep.subr.bf16.mxu0 %v9072_v3  ;;  %5396 = vmatmul.mubr.bf16.vlgmr.msra.gmra.mrb[0].mxu1 %v1951_v4  ;;  %v9078_v8 = vld [vmem:[%s10050_s22 + $0x714] ss:$8 sps:$4 sm:$0xff]   ;;  %v10537_v17 = vld [vmem:[#allocation4 + $0x88] sm:$0xff]  ;;  %v1704_v21 = vld [vmem:[#allocation4 + $0x50] sm:$0x3] }
 0x28f   : > { %5477 = vmatpush1.bf16.msra.mxu1 %v9067_v59  ;;  %v1709_v12 = vld [vmem:[#allocation4 + $0x78] sm:$0x3]  ;;  %v10539_v18 = vld [vmem:[#allocation4 + $0xa8] sm:$0xff]  ;;  %v1702_v20 = vld [vmem:[#allocation4 + $0x40] sm:$0xfc]  ;;  %v2019_v23 = vpack.c.bf16 %v10537_v17, %v10515_v46  ;;  %v1840_v24 = vsel %vm1822_vm2, %v1838_v13, %v1839_v14  ;;  %v1836_v28 = vrot.slane %v1704_v21, 2 }
 0x290   : > { %5848 = vmatmul.mubr.bf16.vlgmr.msra.gmra.mrb[0].mxu0 %v2657_v1  ;;  %5478 = vmatprep.subr.bf16.mxu1 %v9075_v6  ;;  %v1845_v16 = vrot.slane %v1709_v12, 2  ;;  %v2660_v19 = vpack.c.bf16 %v10539_v18, %v10537_v17  ;;  %v1706_v22 = vld [vmem:[#allocation4 + $0x60] sm:$0xfc]  ;;  %v1708_v26 = vld [vmem:[#allocation4 + $0x70] sm:$0x3]  ;;  %v1835_v27 = vrot.slane %v1702_v20, 2 }
 0x291   : > { %5929 = vmatpush1.bf16.msra.mxu0 %v9070_v2  ;;  %v1841_v30 = vrot.slane %v1706_v22, 2  ;;  %v1842_v31 = vrot.slane %v1708_v26, 2  ;;  %v9079_v32 = vld [vmem:[%s10050_s22 + $0x320] ss:$8 sps:$4 sm:$0xff]   ;;  %v9081_v33 = vld [vmem:[%s10050_s22 + $0x324] ss:$8 sps:$4 sm:$0xff]  }
 0x292   : > { %5930 = vmatprep.subr.bf16.mxu0 %v9078_v8  ;;  %v1846_v25 = vsel %vm1822_vm2, %v1844_v15, %v1845_v16  ;;  %5857 = vmatprep.mubr.bf16.mxu0 %v2660_v19  ;;  %v1837_v34 = vsel %vm1822_vm2, %v1835_v27, %v1836_v28  ;;  %v10550_v35 = vld [vmem:[#allocation4 + $0x80] sm:$0xff]  ;;  %v9085_v43 = vld [vmem:[%s10050_s22 + $0x330] ss:$8 sps:$4 sm:$0xff]   ;;  %v1711_v49 = vld [vmem:[#allocation4 + $0x88] sm:$0xfc] }
 0x293   : > { %5479 = vmatpush1.bf16.msra.mxu1 %v9073_v5  ;;  %v1954_v29 = vpack.c.bf16 %v1846_v25, %v1840_v24  ;;  %v10552_v36 = vld [vmem:[#allocation4 + $0xa0] sm:$0xff]  ;;  %v1843_v37 = vsel %vm1822_vm2, %v1841_v30, %v1842_v31  ;;  %v2018_v41 = vpack.c.bf16 %v10550_v35, %v10526_v63  ;;  %v9088_v47 = vld [vmem:[%s10050_s22 + $0x730] ss:$8 sps:$4 sm:$0xff]   ;;  %v1713_v50 = vld [vmem:[#allocation4 + $0x98] sm:$0x3]  ;;  %v1850_v53 = vrot.slane %v1711_v49, 2 }
 0x294   : > { %5480 = vmatprep.subr.bf16.mxu1 %v9081_v33  ;;  %v2659_v38 = vpack.c.bf16 %v10552_v36, %v10550_v35  ;;  %v9082_v39 = vld [vmem:[%s10050_s22 + $0x720] ss:$8 sps:$4 sm:$0xff]   ;;  %v9084_v40 = vld [vmem:[%s10050_s22 + $0x724] ss:$8 sps:$4 sm:$0xff]   ;;  %v1953_v42 = vpack.c.bf16 %v1843_v37, %v1837_v34  ;;  %v9087_v44 = vld [vmem:[%s10050_s22 + $0x334] ss:$8 sps:$4 sm:$0xff]  }
 0x295   : > { %5931 = vmatpush1.bf16.msra.mxu0 %v9076_v7  ;;  %5405 = vmatprep.mubr.bf16.mxu1 %v1954_v29  ;;  %v9090_v48 = vld [vmem:[%s10050_s22 + $0x734] ss:$8 sps:$4 sm:$0xff]   ;;  %v1715_v51 = vld [vmem:[#allocation4 + $0xa8] sm:$0xfc]  ;;  %v1851_v54 = vrot.slane %v1713_v50, 2 }
 0x296   : > { %5932 = vmatprep.subr.bf16.mxu0 %v9084_v40  ;;  %5406 = vmatmul.mubr.bf16.gmra.mrb[4].mxu1 %v1953_v42  ;;  %v1717_v52 = vld [vmem:[#allocation4 + $0xb8] sm:$0x3]  ;;  %v1856_v55 = vrot.slane %v1715_v51, 2  ;;  %v10565_v57 = vld [vmem:[#allocation4 + $0xc8] sm:$0xff]  ;;  %v1710_v60 = vld [vmem:[#allocation4 + $0x80] sm:$0xfc] }
 0x297   : > { %5481 = vmatpush1.bf16.msra.mxu1 %v9079_v32  ;;  %v1857_v56 = vrot.slane %v1717_v52, 2  ;;  %v10567_v58 = vld [vmem:[#allocation4 + $0xe8] sm:$0xff]  ;;  %v1712_v61 = vld [vmem:[#allocation4 + $0x90] sm:$0x3]  ;;  %v1714_v0 = vld [vmem:[#allocation4 + $0xa0] sm:$0xfc]  ;;  %v2021_v1 = vpack.c.bf16 %v10565_v57, %v10539_v18  ;;  %v1852_v2 = vsel %vm1822_vm2, %v1850_v53, %v1851_v54 }
 0x298   : > { %5858 = vmatmul.mubr.bf16.gmra.mrb[4].mxu0 %v2659_v38  ;;  %5482 = vmatprep.subr.bf16.mxu1 %v9087_v44  ;;  %v2662_v59 = vpack.c.bf16 %v10567_v58, %v10565_v57  ;;  %v1716_v4 = vld [vmem:[#allocation4 + $0xb0] sm:$0x3]  ;;  %v1847_v5 = vrot.slane %v1710_v60, 2  ;;  %v1848_v6 = vrot.slane %v1712_v61, 2  ;;  %v1853_v8 = vrot.slane %v1714_v0, 2  ;;  %v10578_v13 = vld [vmem:[#allocation4 + $0xc0] sm:$0xff] }
 0x299   : > { %5933 = vmatpush1.bf16.msra.mxu0 %v9082_v39  ;;  %v1858_v3 = vsel %vm1822_vm2, %v1856_v55, %v1857_v56  ;;  %v1854_v9 = vrot.slane %v1716_v4, 2  ;;  %v9091_v10 = vld [vmem:[%s10050_s22 + $0x340] ss:$8 sps:$4 sm:$0xff]   ;;  %v9093_v11 = vld [vmem:[%s10050_s22 + $0x344] ss:$8 sps:$4 sm:$0xff]   ;;  %v2020_v21 = vpack.c.bf16 %v10578_v13, %v10552_v36 }
 0x29a   : > { %5934 = vmatprep.subr.bf16.mxu0 %v9090_v48  ;;  %v1956_v7 = vpack.c.bf16 %v1858_v3, %v1852_v2  ;;  %5867 = vmatprep.mubr.bf16.mxu0 %v2662_v59  ;;  %v1849_v12 = vsel %vm1822_vm2, %v1847_v5, %v1848_v6  ;;  %v10580_v14 = vld [vmem:[#allocation4 + $0xe0] sm:$0xff]  ;;  %v9097_v24 = vld [vmem:[%s10050_s22 + $0x350] ss:$8 sps:$4 sm:$0xff]   ;;  %v1719_v28 = vld [vmem:[#allocation4 + $0xc8] sm:$0xfc] }
 0x29b   : > { %5483 = vmatpush1.bf16.msra.mxu1 %v9085_v43  ;;  %v1855_v15 = vsel %vm1822_vm2, %v1853_v8, %v1854_v9  ;;  %v2661_v16 = vpack.c.bf16 %v10580_v14, %v10578_v13  ;;  %v9094_v19 = vld [vmem:[%s10050_s22 + $0x740] ss:$8 sps:$4 sm:$0xff]   ;;  %v9096_v20 = vld [vmem:[%s10050_s22 + $0x744] ss:$8 sps:$4 sm:$0xff]   ;;  %v9099_v25 = vld [vmem:[%s10050_s22 + $0x354] ss:$8 sps:$4 sm:$0xff]  }
 0x29c   : > { %5415 = vmatprep.mubr.bf16.mxu1 %v1956_v7  ;;  %5484 = vmatprep.subr.bf16.mxu1 %v9093_v11  ;;  %v1955_v22 = vpack.c.bf16 %v1855_v15, %v1849_v12  ;;  %v9100_v26 = vld [vmem:[%s10050_s22 + $0x750] ss:$8 sps:$4 sm:$0xff]   ;;  %v9102_v27 = vld [vmem:[%s10050_s22 + $0x754] ss:$8 sps:$4 sm:$0xff]   ;;  %v1723_v30 = vld [vmem:[#allocation4 + $0xe8] sm:$0xfc] }
 0x29d   : > { %5935 = vmatpush1.bf16.msra.mxu0 %v9088_v47  ;;  %v1721_v29 = vld [vmem:[#allocation4 + $0xd8] sm:$0x3]  ;;  %v1862_v32 = vrot.slane %v1719_v28, 2  ;;  %v1868_v34 = vrot.slane %v1723_v30, 2  ;;  %v10593_v38 = vld [vmem:[#allocation4 + $0x108] sm:$0xff]  ;;  %v10603_v61 = vld [vmem:[#allocation4 + $0x100] sm:$0xff] }
 0x29e   : > { %5936 = vmatprep.subr.bf16.mxu0 %v9096_v20  ;;  %5416 = vmatmul.mubr.bf16.gmra.mrb[8].mxu1 %v1955_v22  ;;  %v1725_v31 = vld [vmem:[#allocation4 + $0xf8] sm:$0x3]  ;;  %v1863_v33 = vrot.slane %v1721_v29, 2  ;;  %v2640_v39 = vld [vmem:[#allocation4 + $0x128] sm:$0xff]  ;;  %v1718_v42 = vld [vmem:[#allocation4 + $0xc0] sm:$0xfc]  ;;  %v2023_v47 = vpack.c.bf16 %v10593_v38, %v10567_v58  ;;  %v2022_v6 = vpack.c.bf16 %v10603_v61, %v10580_v14 }
 0x29f   : > { %5485 = vmatpush1.bf16.msra.mxu1 %v9091_v10  ;;  %v1869_v37 = vrot.slane %v1725_v31, 2  ;;  %v2664_v40 = vpack.c.bf16 %v2640_v39, %v10593_v38  ;;  %v1720_v43 = vld [vmem:[#allocation4 + $0xd0] sm:$0x3]  ;;  %v1722_v44 = vld [vmem:[#allocation4 + $0xe0] sm:$0xfc]  ;;  %v1859_v51 = vrot.slane %v1718_v42, 2 }
 0x2a0   : > { %5868 = vmatmul.mubr.bf16.gmra.mrb[8].mxu0 %v2661_v16  ;;  %5486 = vmatprep.subr.bf16.mxu1 %v9099_v25  ;;  %v1864_v48 = vsel %vm1822_vm2, %v1862_v32, %v1863_v33  ;;  %v1724_v50 = vld [vmem:[#allocation4 + $0xf0] sm:$0x3]  ;;  %v1860_v52 = vrot.slane %v1720_v43, 2  ;;  %v1865_v54 = vrot.slane %v1722_v44, 2  ;;  %v9103_v56 = vld [vmem:[%s10050_s22 + $0x360] ss:$8 sps:$4 sm:$0xff]  }
 0x2a1   : > { %5937 = vmatpush1.bf16.msra.mxu0 %v9094_v19  ;;  %v1870_v49 = vsel %vm1822_vm2, %v1868_v34, %v1869_v37  ;;  %5877 = vmatprep.mubr.bf16.mxu0 %v2664_v40  ;;  %v1866_v55 = vrot.slane %v1724_v50, 2  ;;  %v9105_v59 = vld [vmem:[%s10050_s22 + $0x364] ss:$8 sps:$4 sm:$0xff]   ;;  %v9106_v4 = vld [vmem:[%s10050_s22 + $0x760] ss:$8 sps:$4 sm:$0xff]  }
 0x2a2   : > { %5938 = vmatprep.subr.bf16.mxu0 %v9102_v27  ;;  %v1958_v53 = vpack.c.bf16 %v1870_v49, %v1864_v48  ;;  %v1861_v60 = vsel %vm1822_vm2, %v1859_v51, %v1860_v52  ;;  %v2639_v0 = vld [vmem:[#allocation4 + $0x120] sm:$0xff]  ;;  %v9109_v8 = vld [vmem:[%s10050_s22 + $0x370] ss:$8 sps:$4 sm:$0xff]   ;;  %v1727_v12 = vld [vmem:[#allocation4 + $0x148] sm:$0xfc] }
 0x2a3   : > { %5487 = vmatpush1.bf16.msra.mxu1 %v9097_v24  ;;  %v1867_v2 = vsel %vm1822_vm2, %v1865_v54, %v1866_v55  ;;  %v2663_v3 = vpack.c.bf16 %v2639_v0, %v10603_v61  ;;  %v9108_v5 = vld [vmem:[%s10050_s22 + $0x764] ss:$8 sps:$4 sm:$0xff]   ;;  %v9111_v9 = vld [vmem:[%s10050_s22 + $0x374] ss:$8 sps:$4 sm:$0xff]   ;;  %v9112_v10 = vld [vmem:[%s10050_s22 + $0x770] ss:$8 sps:$4 sm:$0xff]  }
 0x2a4   : > { %5425 = vmatprep.mubr.bf16.mxu1 %v1958_v53  ;;  %5488 = vmatprep.subr.bf16.mxu1 %v9105_v59  ;;  %v1957_v7 = vpack.c.bf16 %v1867_v2, %v1861_v60  ;;  %v9114_v11 = vld [vmem:[%s10050_s22 + $0x774] ss:$8 sps:$4 sm:$0xff]   ;;  %v1731_v16 = vld [vmem:[#allocation4 + $0x168] sm:$0xfc]  ;;  %v1874_v20 = vrot.slane %v1727_v12, 2 }
 0x2a5   : > { %5939 = vmatpush1.bf16.msra.mxu0 %v9100_v26  ;;  %v1729_v15 = vld [vmem:[#allocation4 + $0x158] sm:$0x3]  ;;  %v1880_v24 = vrot.slane %v1731_v16, 2  ;;  %v10615_v26 = vld [vmem:[#allocation4 + $0x188] sm:$0xff]  ;;  %v1726_v29 = vld [vmem:[#allocation4 + $0x140] sm:$0xfc] }
 0x2a6   : > { %5940 = vmatprep.subr.bf16.mxu0 %v9108_v5  ;;  %5426 = vmatmul.mubr.bf16.gmra.mrb[12].mxu1 %v1957_v7  ;;  %v1733_v19 = vld [vmem:[#allocation4 + $0x178] sm:$0x3]  ;;  %v1875_v22 = vrot.slane %v1729_v15, 2  ;;  %v10617_v27 = vld [vmem:[#allocation4 + $0x1a8] sm:$0xff]  ;;  %v1728_v30 = vld [vmem:[#allocation4 + $0x150] sm:$0x3] }
 0x2a7   : > { %5489 = vmatpush1.bf16.msra.mxu1 %v9103_v56  ;;  %v1881_v25 = vrot.slane %v1733_v19, 2  ;;  %v2666_v28 = vpack.c.bf16 %v10617_v27, %v10615_v26  ;;  %v1730_v31 = vld [vmem:[#allocation4 + $0x160] sm:$0xfc]  ;;  %v1732_v34 = vld [vmem:[#allocation4 + $0x170] sm:$0x3]  ;;  %v1871_v37 = vrot.slane %v1726_v29, 2 }
 0x2a8   : > { %5878 = vmatmul.mubr.bf16.gmra.mrb[12].mxu0 %v2663_v3  ;;  %5490 = vmatprep.subr.bf16.mxu1 %v9111_v9  ;;  %v1876_v32 = vsel %vm1822_vm2, %v1874_v20, %v1875_v22  ;;  %v1872_v39 = vrot.slane %v1728_v30, 2  ;;  %v1877_v42 = vrot.slane %v1730_v31, 2  ;;  %v1878_v43 = vrot.slane %v1732_v34, 2  ;;  %v9115_v44 = vld [vmem:[%s10050_s22 + $0x380] ss:$8 sps:$4 sm:$0xff]  }
 0x2a9   : > { %5941 = vmatpush1.bf16.msra.mxu0 %v9106_v4  ;;  %v1882_v33 = vsel %vm1822_vm2, %v1880_v24, %v1881_v25  ;;  %5887 = vmatprep.mubr.bf16.mxu0 %v2666_v28  ;;  %v9117_v48 = vld [vmem:[%s10050_s22 + $0x384] ss:$8 sps:$4 sm:$0xff]   ;;  %v9118_v54 = vld [vmem:[%s10050_s22 + $0x780] ss:$8 sps:$4 sm:$0xff]   ;;  %v9121_v59 = vld [vmem:[%s10050_s22 + $0x390] ss:$8 sps:$4 sm:$0xff]  }
 0x2aa   : > { %5942 = vmatprep.subr.bf16.mxu0 %v9114_v11  ;;  %v1960_v40 = vpack.c.bf16 %v1882_v33, %v1876_v32  ;;  %v1873_v49 = vsel %vm1822_vm2, %v1871_v37, %v1872_v39  ;;  %v10626_v50 = vld [vmem:[#allocation4 + $0x180] sm:$0xff]  ;;  %v1879_v52 = vsel %vm1822_vm2, %v1877_v42, %v1878_v43  ;;  %v9124_v0 = vld [vmem:[%s10050_s22 + $0x790] ss:$8 sps:$4 sm:$0xff]   ;;  %v1735_v3 = vld [vmem:[#allocation4 + $0x188] sm:$0xfc] }
 0x2ab   : > { %5491 = vmatpush1.bf16.msra.mxu1 %v9109_v8  ;;  %v10628_v51 = vld [vmem:[#allocation4 + $0x1a0] sm:$0xff]  ;;  %v1959_v56 = vpack.c.bf16 %v1879_v52, %v1873_v49  ;;  %v1737_v4 = vld [vmem:[#allocation4 + $0x198] sm:$0x3]  ;;  %v1739_v5 = vld [vmem:[#allocation4 + $0x1a8] sm:$0xfc]  ;;  %v1886_v8 = vrot.slane %v1735_v3, 2 }
 0x2ac   : > { %5435 = vmatprep.mubr.bf16.mxu1 %v1960_v40  ;;  %5492 = vmatprep.subr.bf16.mxu1 %v9117_v48  ;;  %v2665_v53 = vpack.c.bf16 %v10628_v51, %v10626_v50  ;;  %v9120_v55 = vld [vmem:[%s10050_s22 + $0x784] ss:$8 sps:$4 sm:$0xff]   ;;  %v9123_v60 = vld [vmem:[%s10050_s22 + $0x394] ss:$8 sps:$4 sm:$0xff]   ;;  %v1887_v9 = vrot.slane %v1737_v4, 2 }
 0x2ad   : > { %5943 = vmatpush1.bf16.msra.mxu0 %v9112_v10  ;;  %v9126_v2 = vld [vmem:[%s10050_s22 + $0x794] ss:$8 sps:$4 sm:$0xff]   ;;  %v1892_v10 = vrot.slane %v1739_v5, 2  ;;  %v10639_v12 = vld [vmem:[#allocation4 + $0x1c8] sm:$0xff]  ;;  %v1736_v20 = vld [vmem:[#allocation4 + $0x190] sm:$0x3] }
 0x2ae   : > { %5944 = vmatprep.subr.bf16.mxu0 %v9120_v55  ;;  %5436 = vmatmul.mubr.bf16.gmra.mrb[16].mxu1 %v1959_v56  ;;  %v1741_v7 = vld [vmem:[#allocation4 + $0x1b8] sm:$0x3]  ;;  %v10641_v15 = vld [vmem:[#allocation4 + $0x1e8] sm:$0xff]  ;;  %v1734_v19 = vld [vmem:[#allocation4 + $0x180] sm:$0xfc]  ;;  %v2027_v24 = vpack.c.bf16 %v10639_v12, %v10617_v27  ;;  %v1888_v25 = vsel %vm1822_vm2, %v1886_v8, %v1887_v9  ;;  %v1884_v31 = vrot.slane %v1736_v20, 2 }
 0x2af   : > { %5493 = vmatpush1.bf16.msra.mxu1 %v9115_v44  ;;  %v1893_v11 = vrot.slane %v1741_v7, 2  ;;  %v2668_v16 = vpack.c.bf16 %v10641_v15, %v10639_v12  ;;  %v1738_v22 = vld [vmem:[#allocation4 + $0x1a0] sm:$0xfc]  ;;  %v1740_v29 = vld [vmem:[#allocation4 + $0x1b0] sm:$0x3]  ;;  %v1883_v30 = vrot.slane %v1734_v19, 2 }
 0x2b0   : > { %5888 = vmatmul.mubr.bf16.gmra.mrb[16].mxu0 %v2665_v53  ;;  %5494 = vmatprep.subr.bf16.mxu1 %v9123_v60  ;;  %v1889_v33 = vrot.slane %v1738_v22, 2  ;;  %v1890_v34 = vrot.slane %v1740_v29, 2  ;;  %v9127_v37 = vld [vmem:[%s10050_s22 + $0x3a0] ss:$8 sps:$4 sm:$0xff]   ;;  %v9129_v39 = vld [vmem:[%s10050_s22 + $0x3a4] ss:$8 sps:$4 sm:$0xff]  }
 0x2b1   : > { %5945 = vmatpush1.bf16.msra.mxu0 %v9118_v54  ;;  %v1894_v28 = vsel %vm1822_vm2, %v1892_v10, %v1893_v11  ;;  %5897 = vmatprep.mubr.bf16.mxu0 %v2668_v16  ;;  %v1885_v40 = vsel %vm1822_vm2, %v1883_v30, %v1884_v31  ;;  %v10652_v42 = vld [vmem:[#allocation4 + $0x1c0] sm:$0xff]  ;;  %v9133_v55 = vld [vmem:[%s10050_s22 + $0x3b0] ss:$8 sps:$4 sm:$0xff]   ;;  %v1747_v3 = vld [vmem:[#allocation4 + $0x1e8] sm:$0xfc] }
 0x2b2   : > { %5946 = vmatprep.subr.bf16.mxu0 %v9126_v2  ;;  %v1962_v32 = vpack.c.bf16 %v1894_v28, %v1888_v25  ;;  %v10654_v43 = vld [vmem:[#allocation4 + $0x1e0] sm:$0xff]  ;;  %v1891_v44 = vsel %vm1822_vm2, %v1889_v33, %v1890_v34  ;;  %v2026_v53 = vpack.c.bf16 %v10652_v42, %v10628_v51  ;;  %v1745_v2 = vld [vmem:[#allocation4 + $0x1d8] sm:$0x3]  ;;  %v1904_v8 = vrot.slane %v1747_v3, 2  ;;  %v10667_v10 = vld [vmem:[#allocation4 + $0x208] sm:$0xff] }
 0x2b3   : > { %5495 = vmatpush1.bf16.msra.mxu1 %v9121_v59  ;;  %v2667_v48 = vpack.c.bf16 %v10654_v43, %v10652_v42  ;;  %v9130_v49 = vld [vmem:[%s10050_s22 + $0x7a0] ss:$8 sps:$4 sm:$0xff]   ;;  %v9132_v52 = vld [vmem:[%s10050_s22 + $0x7a4] ss:$8 sps:$4 sm:$0xff]   ;;  %v1961_v54 = vpack.c.bf16 %v1891_v44, %v1885_v40  ;;  %v9135_v56 = vld [vmem:[%s10050_s22 + $0x3b4] ss:$8 sps:$4 sm:$0xff]   ;;  %v2029_v25 = vpack.c.bf16 %v10667_v10, %v10641_v15 }
 0x2b4   : > { %5445 = vmatprep.mubr.bf16.mxu1 %v1962_v32  ;;  %5496 = vmatprep.subr.bf16.mxu1 %v9129_v39  ;;  %v9136_v59 = vld [vmem:[%s10050_s22 + $0x7b0] ss:$8 sps:$4 sm:$0xff]   ;;  %v9138_v60 = vld [vmem:[%s10050_s22 + $0x7b4] ss:$8 sps:$4 sm:$0xff]   ;;  %v1899_v7 = vrot.slane %v1745_v2, 2  ;;  %v10669_v11 = vld [vmem:[#allocation4 + $0x228] sm:$0xff] }
 0x2b5   : > { %5947 = vmatpush1.bf16.msra.mxu0 %v9124_v0  ;;  %v1743_v0 = vld [vmem:[#allocation4 + $0x1c8] sm:$0xfc]  ;;  %v1749_v4 = vld [vmem:[#allocation4 + $0x1f8] sm:$0x3]  ;;  %v2670_v16 = vpack.c.bf16 %v10669_v11, %v10667_v10  ;;  %v1742_v19 = vld [vmem:[#allocation4 + $0x1c0] sm:$0xfc] }
 0x2b6   : > { %5948 = vmatprep.subr.bf16.mxu0 %v9132_v52  ;;  %5446 = vmatmul.mubr.bf16.gmra.mrb[20].mxu1 %v1961_v54  ;;  %v1898_v5 = vrot.slane %v1743_v0, 2  ;;  %v1905_v9 = vrot.slane %v1749_v4, 2  ;;  %v1744_v20 = vld [vmem:[#allocation4 + $0x1d0] sm:$0x3]  ;;  %v1746_v22 = vld [vmem:[#allocation4 + $0x1e0] sm:$0xfc] }
 0x2b7   : > { %5497 = vmatpush1.bf16.msra.mxu1 %v9127_v37  ;;  %v1748_v30 = vld [vmem:[#allocation4 + $0x1f0] sm:$0x3]  ;;  %v1895_v31 = vrot.slane %v1742_v19, 2  ;;  %v1896_v32 = vrot.slane %v1744_v20, 2  ;;  %v1901_v34 = vrot.slane %v1746_v22, 2 }
 0x2b8   : > { %5898 = vmatmul.mubr.bf16.gmra.mrb[20].mxu0 %v2667_v48  ;;  %5498 = vmatprep.subr.bf16.mxu1 %v9135_v56  ;;  %v1900_v28 = vsel %vm1822_vm2, %v1898_v5, %v1899_v7  ;;  %v1906_v29 = vsel %vm1822_vm2, %v1904_v8, %v1905_v9  ;;  %v1902_v37 = vrot.slane %v1748_v30, 2  ;;  %v9139_v39 = vld [vmem:[%s10050_s22 + $0x3c0] ss:$8 sps:$4 sm:$0xff]   ;;  %v9141_v40 = vld [vmem:[%s10050_s22 + $0x3c4] ss:$8 sps:$4 sm:$0xff]  }
 0x2b9   : > { %5949 = vmatpush1.bf16.msra.mxu0 %v9130_v49  ;;  %v1964_v33 = vpack.c.bf16 %v1906_v29, %v1900_v28  ;;  %5907 = vmatprep.mubr.bf16.mxu0 %v2670_v16  ;;  %v1897_v44 = vsel %vm1822_vm2, %v1895_v31, %v1896_v32  ;;  %v10680_v48 = vld [vmem:[#allocation4 + $0x200] sm:$0xff]  ;;  %v9145_v0 = vld [vmem:[%s10050_s22 + $0x3d0] ss:$8 sps:$4 sm:$0xff]   ;;  %v1751_v5 = vld [vmem:[#allocation4 + $0x208] sm:$0xfc] }
 0x2ba   : > { %5950 = vmatprep.subr.bf16.mxu0 %v9138_v60  ;;  %v10682_v49 = vld [vmem:[#allocation4 + $0x220] sm:$0xff]  ;;  %v1903_v52 = vsel %vm1822_vm2, %v1901_v34, %v1902_v37  ;;  %v9148_v3 = vld [vmem:[%s10050_s22 + $0x7d0] ss:$8 sps:$4 sm:$0xff]   ;;  %v1753_v7 = vld [vmem:[#allocation4 + $0x218] sm:$0x3]  ;;  %v1910_v16 = vrot.slane %v1751_v5, 2 }
 0x2bb   : > { %5499 = vmatpush1.bf16.msra.mxu1 %v9133_v55  ;;  %5455 = vmatprep.mubr.bf16.mxu1 %v1964_v33  ;;  %v2669_v54 = vpack.c.bf16 %v10682_v49, %v10680_v48  ;;  %v9142_v55 = vld [vmem:[%s10050_s22 + $0x7c0] ss:$8 sps:$4 sm:$0xff]   ;;  %v9144_v56 = vld [vmem:[%s10050_s22 + $0x7c4] ss:$8 sps:$4 sm:$0xff]   ;;  %v1963_v60 = vpack.c.bf16 %v1903_v52, %v1897_v44  ;;  %v9147_v2 = vld [vmem:[%s10050_s22 + $0x3d4] ss:$8 sps:$4 sm:$0xff]  }
 0x2bc   : > { %5500 = vmatprep.subr.bf16.mxu1 %v9141_v40  ;;  %v9150_v4 = vld [vmem:[%s10050_s22 + $0x7d4] ss:$8 sps:$4 sm:$0xff]   ;;  %v1755_v8 = vld [vmem:[#allocation4 + $0x228] sm:$0xfc]  ;;  %v1911_v19 = vrot.slane %v1753_v7, 2 }
 0x2bd   : > { %5951 = vmatpush1.bf16.msra.mxu0 %v9136_v59  ;;  %v2028_v59 = vpack.c.bf16 %v10680_v48, %v10654_v43  ;;  %v1757_v9 = vld [vmem:[#allocation4 + $0x238] sm:$0x3]  ;;  %v1916_v20 = vrot.slane %v1755_v8, 2  ;;  %v10695_v28 = vld [vmem:[#allocation4 + $0x248] sm:$0xff]  ;;  %v1750_v31 = vld [vmem:[#allocation4 + $0x200] sm:$0xfc] }
 0x2be   : > { %5952 = vmatprep.subr.bf16.mxu0 %v9144_v56  ;;  %5456 = vmatmul.mubr.bf16.gmra.mrb[24].mxu1 %v1963_v60  ;;  %v1917_v22 = vrot.slane %v1757_v9, 2  ;;  %v2656_v29 = vld [vmem:[#allocation4 + $0x268] sm:$0xff]  ;;  %v1752_v32 = vld [vmem:[#allocation4 + $0x210] sm:$0x3]  ;;  %v1754_v33 = vld [vmem:[#allocation4 + $0x220] sm:$0xfc]  ;;  %v1912_v34 = vsel %vm1822_vm2, %v1910_v16, %v1911_v19 }
 0x2bf   : > { %5501 = vmatpush1.bf16.msra.mxu1 %v9139_v39  ;;  %v2672_v30 = vpack.c.bf16 %v2656_v29, %v10695_v28  ;;  %v1756_v39 = vld [vmem:[#allocation4 + $0x230] sm:$0x3]  ;;  %v1907_v40 = vrot.slane %v1750_v31, 2  ;;  %v1908_v44 = vrot.slane %v1752_v32, 2  ;;  %v9151_v56 = vld [vmem:[%s10050_s22 + $0x3e0] ss:$8 sps:$4 sm:$0xff]  }
 0x2c0   : > { %5908 = vmatmul.mubr.bf16.gmra.mrb[24].mxu0 %v2669_v54  ;;  %5502 = vmatprep.subr.bf16.mxu1 %v9147_v2  ;;  %v1918_v37 = vsel %vm1822_vm2, %v1916_v20, %v1917_v22  ;;  %v1913_v54 = vrot.slane %v1754_v33, 2  ;;  %v9153_v60 = vld [vmem:[%s10050_s22 + $0x3e4] ss:$8 sps:$4 sm:$0xff]   ;;  %v9154_v7 = vld [vmem:[%s10050_s22 + $0x7e0] ss:$8 sps:$4 sm:$0xff]  }
 0x2c1   : > { %5953 = vmatpush1.bf16.msra.mxu0 %v9142_v55  ;;  %v1966_v52 = vpack.c.bf16 %v1918_v37, %v1912_v34  ;;  %5917 = vmatprep.mubr.bf16.mxu0 %v2672_v30  ;;  %v1914_v55 = vrot.slane %v1756_v39, 2  ;;  %v1909_v2 = vsel %vm1822_vm2, %v1907_v40, %v1908_v44  ;;  %v9156_v8 = vld [vmem:[%s10050_s22 + $0x7e4] ss:$8 sps:$4 sm:$0xff]   ;;  %v9157_v19 = vld [vmem:[%s10050_s22 + $0x3f0] ss:$8 sps:$4 sm:$0xff]  }
 0x2c2   : > { %5954 = vmatprep.subr.bf16.mxu0 %v9150_v4  ;;  %v2655_v4 = vld [vmem:[#allocation4 + $0x260] sm:$0xff]  ;;  %v9160_v22 = vld [vmem:[%s10050_s22 + $0x7f0] ss:$8 sps:$4 sm:$0xff]   ;;  %v1985_v30 = vld [vmem:[#allocation4 + $0x28] sm:$0xff] }
 0x2c3   : > { %5503 = vmatpush1.bf16.msra.mxu1 %v9145_v0  ;;  %5465 = vmatprep.mubr.bf16.mxu1 %v1966_v52  ;;  %v1915_v5 = vsel %vm1822_vm2, %v1913_v54, %v1914_v55  ;;  %v9159_v20 = vld [vmem:[%s10050_s22 + $0x3f4] ss:$8 sps:$4 sm:$0xff]   ;;  %v2017_v31 = vpack.c.bf16 %v10513_v45, %v1985_v30  ;;  %v2690_v32 = vld [vmem:[#allocation4 + $0x48] sm:$0xfe]  ;;  %v9172_v63 = vld [vmem:[%s10050_s22 + $0x830] ss:$8 sps:$4 sm:$0xff]  }
 0x2c4   : > { %5504 = vmatprep.subr.bf16.mxu1 %v9153_v60  ;;  %v1965_v16 = vpack.c.bf16 %v1915_v5, %v1909_v2  ;;  %v9162_v29 = vld [vmem:[%s10050_s22 + $0x7f4] ss:$8 sps:$4 sm:$0xff]   ;;  %v2694_v34 = vld [vmem:[#allocation4 + $0x68] sm:$0xfe]  ;;  %v2820_v39 = vrot.slane %v2690_v32, 1 }
 0x2c5   : > { %5955 = vmatpush1.bf16.msra.mxu0 %v9148_v3  ;;  %v10703_v3 = vld [vmem:[#allocation4 + $0x240] sm:$0xff]  ;;  %v2692_v33 = vld [vmem:[#allocation4 + $0x58] sm:$0x1]  ;;  %v2826_v44 = vrot.slane %v2694_v34, 1  ;;  %v2691_v60 = vld [vmem:[#allocation4 + $0x50] sm:$0x1] }
 0x2c6   : > { %v2671_v0 = vpack.c.bf16 %v2655_v4, %v10703_v3  ;;  %v2030_v9 = vpack.c.bf16 %v10703_v3, %v10682_v49  ;;  %5956 = vmatprep.subr.bf16.mxu0 %v9156_v8  ;;  %5466 = vmatmul.mubr.bf16.gmra.mrb[28].mxu1 %v1965_v16  ;;  %v2696_v37 = vld [vmem:[#allocation4 + $0x78] sm:$0x1]  ;;  %v2821_v40 = vrot.slane %v2692_v33, 1  ;;  %v1984_v52 = vld [vmem:[#allocation4 + $0x20] sm:$0xff]  ;;  %v2695_v4 = vld [vmem:[#allocation4 + $0x70] sm:$0x1] }
 0x2c7   : > { %5505 = vmatpush1.bf16.msra.mxu1 %v9151_v56  ;;  %5508 = vmatprep.mubr.bf16.mxu1 %v2017_v31  ;;  %v2827_v54 = vrot.slane %v2696_v37, 1  ;;  %v2689_v55 = vld [vmem:[#allocation4 + $0x40] sm:$0xfe]  ;;  %v2016_v56 = vpack.c.bf16 %v10524_v62, %v1984_v52  ;;  %v2824_v16 = vrot.slane %v2695_v4, 1  ;;  %v2698_v33 = vld [vmem:[#allocation4 + $0x88] sm:$0xfe] }
 0x2c8   : > { %5918 = vmatmul.mubr.bf16.gmra.mrb[28].mxu0 %v2671_v0  ;;  %5506 = vmatprep.subr.bf16.mxu1 %v9159_v20  ;;  %v2822_v45 = vsel %vm1533_vm1, %v2820_v39, %v2821_v40  ;;  %v2693_v2 = vld [vmem:[#allocation4 + $0x60] sm:$0xfe]  ;;  %v2817_v5 = vrot.slane %v2689_v55, 1  ;;  %v2818_v0 = vrot.slane %v2691_v60, 1  ;;  %v2700_v62 = vld [vmem:[#allocation4 + $0x98] sm:$0x1] }
 0x2c9   : > { %5957 = vmatpush1.bf16.msra.mxu0 %v9154_v7  ;;  %v2828_v7 = vsel %vm1533_vm1, %v2826_v44, %v2827_v54  ;;  %v2823_v8 = vrot.slane %v2693_v2, 1  ;;  %v9163_v30 = vld [vmem:[%s10050_s22 + $0x800] ss:$8 sps:$4 sm:$0xff]   ;;  %v9168_v32 = vld [vmem:[%s10050_s22 + $0x814] ss:$8 sps:$4 sm:$0xff]   ;;  %v2832_v40 = vrot.slane %v2698_v33, 1 }
 0x2ca   : > { %5958 = vmatprep.subr.bf16.mxu0 %v9162_v29  ;;  %v2946_v20 = vpack.c.bf16 %v2828_v7, %v2822_v45  ;;  %v2819_v29 = vsel %vm1533_vm1, %v2817_v5, %v2818_v0  ;;  %v9166_v37 = vld [vmem:[%s10050_s22 + $0x810] ss:$8 sps:$4 sm:$0xff]   ;;  %v2702_v39 = vld [vmem:[#allocation4 + $0xa8] sm:$0xfe]  ;;  %v2833_v44 = vrot.slane %v2700_v62, 1 }
 0x2cb   : > { %5507 = vmatpush1.bf16.msra.mxu1 %v9157_v19  ;;  %v2825_v31 = vsel %vm1533_vm1, %v2823_v8, %v2824_v16  ;;  %v2704_v19 = vld [vmem:[#allocation4 + $0xb8] sm:$0x1]  ;;  %v2838_v52 = vrot.slane %v2702_v39, 1  ;;  %v2697_v55 = vld [vmem:[#allocation4 + $0x80] sm:$0xfe] }
 0x2cc   : > { %5960 = vmatprep.mubr.bf16.mxu0 %v2946_v20  ;;  %v2945_v34 = vpack.c.bf16 %v2825_v31, %v2819_v29  ;;  %v2839_v54 = vrot.slane %v2704_v19, 1  ;;  %v2699_v60 = vld [vmem:[#allocation4 + $0x90] sm:$0x1]  ;;  %v2834_v45 = vsel %vm1533_vm1, %v2832_v40, %v2833_v44  ;;  %v2701_v2 = vld [vmem:[#allocation4 + $0xa0] sm:$0xfe]  ;;  %v2829_v4 = vrot.slane %v2697_v55, 1 }
 0x2cd   : > { %5959 = vmatpush1.bf16.msra.mxu0 %v9160_v22  ;;  %v9165_v22 = vld [vmem:[%s10050_s22 + $0x804] ss:$8 sps:$4 sm:$0xff]   ;;  %v2830_v5 = vrot.slane %v2699_v60, 1  ;;  %v2835_v7 = vrot.slane %v2701_v2, 1  ;;  %v9169_v31 = vld [vmem:[%s10050_s22 + $0x820] ss:$8 sps:$4 sm:$0xff]  }
 0x2ce   : > { %5509 = vmatmul.mubr.bf16.vlgmr.msra.gmra.mrb[0].mxu1 %v2016_v56  ;;  %6041 = vmatprep.subr.bf16.mxu0 %v9165_v22  ;;  %v2703_v56 = vld [vmem:[#allocation4 + $0xb0] sm:$0x1]  ;;  %v2840_v0 = vsel %vm1533_vm1, %v2838_v52, %v2839_v54  ;;  %v9174_v33 = vld [vmem:[%s10050_s22 + $0x834] ss:$8 sps:$4 sm:$0xff]   ;;  %v2706_v62 = vld [vmem:[#allocation4 + $0xc8] sm:$0xfe] }
 0x2cf   : > { %8366 = vmatprep.subr.bf16.mxu1 %v9165_v22  ;;  %v2836_v8 = vrot.slane %v2703_v56, 1  ;;  %5518 = vmatprep.mubr.bf16.mxu1 %v2019_v23  ;;  %v2948_v16 = vpack.c.bf16 %v2840_v0, %v2834_v45  ;;  %v2831_v20 = vsel %vm1533_vm1, %v2829_v4, %v2830_v5  ;;  %v9171_v29 = vld [vmem:[%s10050_s22 + $0x824] ss:$8 sps:$4 sm:$0xff]   ;;  %v2712_v19 = vld [vmem:[#allocation4 + $0xf8] sm:$0x1] }
 0x2d0   : > { %5961 = vmatmul.mubr.bf16.vlgmr.msra.gmra.mrb[0].mxu0 %v2945_v34  ;;  %8382 = vmatpush1.bf16.msra.mxu1 %v9163_v30  ;;  %v2708_v34 = vld [vmem:[#allocation4 + $0xd8] sm:$0x1]  ;;  %v2710_v39 = vld [vmem:[#allocation4 + $0xe8] sm:$0xfe]  ;;  %v2851_v23 = vrot.slane %v2712_v19, 1 }
 0x2d1   : > { %6042 = vmatpush1.bf16.msra.mxu0 %v9163_v30  ;;  %8367 = vmatprep.subr.bf16.mxu1 %v9168_v32  ;;  %v2837_v22 = vsel %vm1533_vm1, %v2835_v7, %v2836_v8  ;;  %v2845_v46 = vrot.slane %v2708_v34, 1  ;;  %v2850_v17 = vrot.slane %v2710_v39, 1  ;;  %v2705_v40 = vld [vmem:[#allocation4 + $0xc0] sm:$0xfe]  ;;  %v2707_v44 = vld [vmem:[#allocation4 + $0xd0] sm:$0x1] }
 0x2d2   : > { %6043 = vmatprep.subr.bf16.mxu0 %v9168_v32  ;;  %5970 = vmatprep.mubr.bf16.mxu0 %v2948_v16  ;;  %v2947_v30 = vpack.c.bf16 %v2837_v22, %v2831_v20  ;;  %v2844_v32 = vrot.slane %v2706_v62, 1  ;;  %v2709_v52 = vld [vmem:[#allocation4 + $0xe0] sm:$0xfe]  ;;  %v2711_v54 = vld [vmem:[#allocation4 + $0xf0] sm:$0x1]  ;;  %v2841_v60 = vrot.slane %v2705_v40, 1 }
 0x2d3   : > { %v2852_v55 = vsel %vm1533_vm1, %v2850_v17, %v2851_v23  ;;  %v2842_v45 = vrot.slane %v2707_v44, 1  ;;  %v2848_v2 = vrot.slane %v2711_v54, 1  ;;  %v9177_v18 = vld [vmem:[%s10050_s22 + $0x844] ss:$8 sps:$4 sm:$0xff]   ;;  %v9175_v4 = vld [vmem:[%s10050_s22 + $0x840] ss:$8 sps:$4 sm:$0xff]  }
 0x2d4   : > { %8383 = vmatpush1.bf16.msra.mxu1 %v9166_v37  ;;  %v2714_v57 = vld [vmem:[#allocation4 + $0x108] sm:$0xfe]  ;;  %v2716_v5 = vld [vmem:[#allocation4 + $0x118] sm:$0x1]  ;;  %v2713_v22 = vld [vmem:[#allocation4 + $0x100] sm:$0xfe] }
 0x2d5   : > { %6044 = vmatpush1.bf16.msra.mxu0 %v9166_v37  ;;  %8368 = vmatprep.subr.bf16.mxu1 %v9171_v29  ;;  %v2846_v37 = vsel %vm1533_vm1, %v2844_v32, %v2845_v46  ;;  %v2843_v56 = vsel %vm1533_vm1, %v2841_v60, %v2842_v45  ;;  %v2718_v0 = vld [vmem:[#allocation4 + $0x128] sm:$0xfe]  ;;  %v2720_v7 = vld [vmem:[#allocation4 + $0x138] sm:$0x1]  ;;  %v2856_v16 = vrot.slane %v2714_v57, 1  ;;  %v2857_v20 = vrot.slane %v2716_v5, 1 }
 0x2d6   : > { %5519 = vmatmul.mubr.bf16.gmra.mrb[4].mxu1 %v2018_v41  ;;  %6045 = vmatprep.subr.bf16.mxu0 %v9171_v29  ;;  %v2950_v35 = vpack.c.bf16 %v2852_v55, %v2846_v37  ;;  %v2847_v41 = vrot.slane %v2709_v52, 1  ;;  %v9180_v8 = vld [vmem:[%s10050_s22 + $0x854] ss:$8 sps:$4 sm:$0xff]   ;;  %v2862_v29 = vrot.slane %v2718_v0, 1  ;;  %v2863_v62 = vrot.slane %v2720_v7, 1  ;;  %v2001_v54 = vld [vmem:[#allocation4 + $0x168] sm:$0xff] }
 0x2d7   : > { %5528 = vmatprep.mubr.bf16.mxu1 %v2021_v1  ;;  %v2717_v34 = vld [vmem:[#allocation4 + $0x120] sm:$0xfe]  ;;  %v2858_v39 = vsel %vm1533_vm1, %v2856_v16, %v2857_v20  ;;  %v2719_v19 = vld [vmem:[#allocation4 + $0x130] sm:$0x1]  ;;  %v9178_v40 = vld [vmem:[%s10050_s22 + $0x850] ss:$8 sps:$4 sm:$0xff]  }
 0x2d8   : > { %5971 = vmatmul.mubr.bf16.gmra.mrb[4].mxu0 %v2947_v30  ;;  %8384 = vmatpush1.bf16.msra.mxu1 %v9169_v31  ;;  %v2849_v1 = vsel %vm1533_vm1, %v2847_v41, %v2848_v2  ;;  %v2715_v30 = vld [vmem:[#allocation4 + $0x110] sm:$0x1]  ;;  %v2859_v46 = vrot.slane %v2717_v34, 1  ;;  %v2864_v17 = vsel %vm1533_vm1, %v2862_v29, %v2863_v62  ;;  %v2860_v23 = vrot.slane %v2719_v19, 1  ;;  %v2722_v13 = vld [vmem:[#allocation4 + $0x188] sm:$0xfe] }
 0x2d9   : > { %6046 = vmatpush1.bf16.msra.mxu0 %v9169_v31  ;;  %8369 = vmatprep.subr.bf16.mxu1 %v9174_v33  ;;  %v2949_v31 = vpack.c.bf16 %v2849_v1, %v2843_v56  ;;  %v2854_v32 = vrot.slane %v2715_v30, 1  ;;  %v2952_v44 = vpack.c.bf16 %v2864_v17, %v2858_v39  ;;  %v9183_v52 = vld [vmem:[%s10050_s22 + $0x864] ss:$8 sps:$4 sm:$0xff]   ;;  %v2728_v60 = vld [vmem:[#allocation4 + $0x1b8] sm:$0x1]  ;;  %v2868_v45 = vrot.slane %v2722_v13, 1 }
 0x2da   : > { %6047 = vmatprep.subr.bf16.mxu0 %v9174_v33  ;;  %5980 = vmatprep.mubr.bf16.mxu0 %v2950_v35  ;;  %v2853_v33 = vrot.slane %v2713_v22, 1  ;;  %v2861_v36 = vsel %vm1533_vm1, %v2859_v46, %v2860_v23  ;;  %v2726_v55 = vld [vmem:[#allocation4 + $0x1a8] sm:$0xfe]  ;;  %v2721_v35 = vld [vmem:[#allocation4 + $0x180] sm:$0xfe]  ;;  %v2025_v56 = vpack.c.bf16 %v10615_v26, %v2001_v54 }
 0x2db   : > { %v2874_v58 = vrot.slane %v2726_v55, 1  ;;  %v9181_v38 = vld [vmem:[%s10050_s22 + $0x860] ss:$8 sps:$4 sm:$0xff]   ;;  %v2723_v41 = vld [vmem:[#allocation4 + $0x190] sm:$0x1] }
 0x2dc   : > { %8385 = vmatpush1.bf16.msra.mxu1 %v9172_v63  ;;  %v2855_v37 = vsel %vm1533_vm1, %v2853_v33, %v2854_v32  ;;  %v2725_v57 = vld [vmem:[#allocation4 + $0x1a0] sm:$0xfe]  ;;  %v2727_v1 = vld [vmem:[#allocation4 + $0x1b0] sm:$0x1]  ;;  %v2866_v0 = vrot.slane %v2723_v41, 1 }
 0x2dd   : > { %6048 = vmatpush1.bf16.msra.mxu0 %v9172_v63  ;;  %8370 = vmatprep.subr.bf16.mxu1 %v9177_v18  ;;  %v2951_v2 = vpack.c.bf16 %v2861_v36, %v2855_v37  ;;  %v2871_v7 = vrot.slane %v2725_v57, 1  ;;  %v9186_v16 = vld [vmem:[%s10050_s22 + $0x874] ss:$8 sps:$4 sm:$0xff]   ;;  %v9184_v26 = vld [vmem:[%s10050_s22 + $0x870] ss:$8 sps:$4 sm:$0xff]  }
 0x2de   : > { %5529 = vmatmul.mubr.bf16.gmra.mrb[8].mxu1 %v2020_v21  ;;  %6049 = vmatprep.subr.bf16.mxu0 %v9177_v18  ;;  %v2724_v21 = vld [vmem:[#allocation4 + $0x198] sm:$0x1]  ;;  %v2000_v29 = vld [vmem:[#allocation4 + $0x160] sm:$0xff]  ;;  %v2730_v22 = vld [vmem:[#allocation4 + $0x1c8] sm:$0xfe] }
 0x2df   : > { %5538 = vmatprep.mubr.bf16.mxu1 %v2023_v47  ;;  %v2869_v63 = vrot.slane %v2724_v21, 1  ;;  %v2875_v47 = vrot.slane %v2728_v60, 1  ;;  %v2734_v62 = vld [vmem:[#allocation4 + $0x1e8] sm:$0xfe]  ;;  %v2736_v30 = vld [vmem:[#allocation4 + $0x1f8] sm:$0x1] }
 0x2e0   : > { %5981 = vmatmul.mubr.bf16.gmra.mrb[8].mxu0 %v2949_v31  ;;  %8386 = vmatpush1.bf16.msra.mxu1 %v9175_v4  ;;  %v2732_v31 = vld [vmem:[#allocation4 + $0x1d8] sm:$0x1]  ;;  %v2880_v34 = vrot.slane %v2730_v22, 1  ;;  %v9189_v61 = vld [vmem:[%s10050_s22 + $0x884] ss:$8 sps:$4 sm:$0xff]   ;;  %v2887_v19 = vrot.slane %v2736_v30, 1 }
 0x2e1   : > { %6050 = vmatpush1.bf16.msra.mxu0 %v9175_v4  ;;  %8371 = vmatprep.subr.bf16.mxu1 %v9180_v8  ;;  %v2870_v18 = vsel %vm1533_vm1, %v2868_v45, %v2869_v63  ;;  %v2865_v4 = vrot.slane %v2721_v35, 1  ;;  %v2876_v5 = vsel %vm1533_vm1, %v2874_v58, %v2875_v47  ;;  %v2881_v33 = vrot.slane %v2732_v31, 1  ;;  %v2729_v32 = vld [vmem:[#allocation4 + $0x1c0] sm:$0xfe]  ;;  %v2731_v46 = vld [vmem:[#allocation4 + $0x1d0] sm:$0x1] }
 0x2e2   : > { %6051 = vmatprep.subr.bf16.mxu0 %v9180_v8  ;;  %5990 = vmatprep.mubr.bf16.mxu0 %v2952_v44  ;;  %v2872_v8 = vrot.slane %v2727_v1, 1  ;;  %v2954_v20 = vpack.c.bf16 %v2876_v5, %v2870_v18  ;;  %v2733_v17 = vld [vmem:[#allocation4 + $0x1e0] sm:$0xfe]  ;;  %v2735_v23 = vld [vmem:[#allocation4 + $0x1f0] sm:$0x1]  ;;  %v2877_v13 = vrot.slane %v2729_v32, 1 }
 0x2e3   : > { %v2867_v39 = vsel %vm1533_vm1, %v2865_v4, %v2866_v0  ;;  %v9187_v44 = vld [vmem:[%s10050_s22 + $0x880] ss:$8 sps:$4 sm:$0xff]   ;;  %v9192_v54 = vld [vmem:[%s10050_s22 + $0x894] ss:$8 sps:$4 sm:$0xff]   ;;  %v2882_v37 = vsel %vm1533_vm1, %v2880_v34, %v2881_v33  ;;  %v2878_v21 = vrot.slane %v2731_v46, 1  ;;  %v2883_v55 = vrot.slane %v2733_v17, 1 }
 0x2e4   : > { %8387 = vmatpush1.bf16.msra.mxu1 %v9178_v40  ;;  %v2873_v14 = vsel %vm1533_vm1, %v2871_v7, %v2872_v8  ;;  %v2884_v60 = vrot.slane %v2735_v23, 1  ;;  %v2738_v45 = vld [vmem:[#allocation4 + $0x208] sm:$0xfe]  ;;  %v2740_v63 = vld [vmem:[#allocation4 + $0x218] sm:$0x1] }
 0x2e5   : > { %6052 = vmatpush1.bf16.msra.mxu0 %v9178_v40  ;;  %8372 = vmatprep.subr.bf16.mxu1 %v9183_v52  ;;  %v2024_v40 = vpack.c.bf16 %v10626_v50, %v2000_v29  ;;  %v2742_v58 = vld [vmem:[#allocation4 + $0x228] sm:$0xfe]  ;;  %v2744_v50 = vld [vmem:[#allocation4 + $0x238] sm:$0x1]  ;;  %v2892_v35 = vrot.slane %v2738_v45, 1  ;;  %v2893_v41 = vrot.slane %v2740_v63, 1  ;;  %v2879_v5 = vsel %vm1533_vm1, %v2877_v13, %v2878_v21 }
 0x2e6   : > { %5539 = vmatmul.mubr.bf16.gmra.mrb[12].mxu1 %v2022_v6  ;;  %6053 = vmatprep.subr.bf16.mxu0 %v9183_v52  ;;  %v2886_v6 = vrot.slane %v2734_v62, 1  ;;  %v2953_v52 = vpack.c.bf16 %v2873_v14, %v2867_v39  ;;  %v2899_v18 = vrot.slane %v2744_v50, 1  ;;  %v2737_v57 = vld [vmem:[#allocation4 + $0x200] sm:$0xfe]  ;;  %v2739_v1 = vld [vmem:[#allocation4 + $0x210] sm:$0x1]  ;;  %v2885_v0 = vsel %vm1533_vm1, %v2883_v55, %v2884_v60 }
 0x2e7   : > { %5548 = vmatprep.mubr.bf16.mxu1 %v2025_v56  ;;  %v2898_v56 = vrot.slane %v2742_v58, 1  ;;  %v2741_v4 = vld [vmem:[#allocation4 + $0x220] sm:$0xfe]  ;;  %v2743_v7 = vld [vmem:[#allocation4 + $0x230] sm:$0x1]  ;;  %v2889_v12 = vrot.slane %v2737_v57, 1  ;;  %v2894_v8 = vsel %vm1533_vm1, %v2892_v35, %v2893_v41  ;;  %v2955_v31 = vpack.c.bf16 %v2885_v0, %v2879_v5 }
 0x2e8   : > { %5991 = vmatmul.mubr.bf16.gmra.mrb[12].mxu0 %v2951_v2  ;;  %8388 = vmatpush1.bf16.msra.mxu1 %v9181_v38  ;;  %v2888_v36 = vsel %vm1533_vm1, %v2886_v6, %v2887_v19  ;;  %v9195_v2 = vld [vmem:[%s10050_s22 + $0x8a4] ss:$8 sps:$4 sm:$0xff]   ;;  %v9193_v27 = vld [vmem:[%s10050_s22 + $0x8a0] ss:$8 sps:$4 sm:$0xff]   ;;  %v2748_v22 = vld [vmem:[#allocation4 + $0x258] sm:$0x1] }
 0x2e9   : > { %6054 = vmatpush1.bf16.msra.mxu0 %v9181_v38  ;;  %8373 = vmatprep.subr.bf16.mxu1 %v9186_v16  ;;  %v9190_v38 = vld [vmem:[%s10050_s22 + $0x890] ss:$8 sps:$4 sm:$0xff]   ;;  %v2956_v47 = vpack.c.bf16 %v2888_v36, %v2882_v37  ;;  %v2746_v29 = vld [vmem:[#allocation4 + $0x248] sm:$0xfe]  ;;  %v2896_v62 = vrot.slane %v2743_v7, 1  ;;  %v2905_v46 = vrot.slane %v2748_v22, 1  ;;  %v2031_v36 = vpack.c.bf16 %v10695_v28, %v10669_v11 }
 0x2ea   : > { %6055 = vmatprep.subr.bf16.mxu0 %v9186_v16  ;;  %6000 = vmatprep.mubr.bf16.mxu0 %v2954_v20  ;;  %v2900_v16 = vsel %vm1533_vm1, %v2898_v56, %v2899_v18  ;;  %v2895_v20 = vrot.slane %v2741_v4, 1  ;;  %v2750_v30 = vld [vmem:[#allocation4 + $0x268] sm:$0xfe]  ;;  %v2752_v34 = vld [vmem:[#allocation4 + $0x278] sm:$0x1]  ;;  %v2904_v32 = vrot.slane %v2746_v29, 1 }
 0x2eb   : > { %v10789_v33 = vld [vmem:[#allocation4 + $0x240] sm:$0xfe]  ;;  %v10791_v39 = vld [vmem:[#allocation4 + $0x250] sm:$0x1]  ;;  %v2958_v6 = vpack.c.bf16 %v2900_v16, %v2894_v8  ;;  %v2910_v17 = vrot.slane %v2750_v30, 1  ;;  %v2911_v23 = vrot.slane %v2752_v34, 1 }
 0x2ec   : > { %8389 = vmatpush1.bf16.msra.mxu1 %v9184_v26  ;;  %v10793_v14 = vld [vmem:[#allocation4 + $0x260] sm:$0xfe]  ;;  %v10799_v19 = vld [vmem:[#allocation4 + $0x270] sm:$0x1]  ;;  %v2901_v51 = vrot.slane %v10789_v33, 1  ;;  %v2902_v42 = vrot.slane %v10791_v39, 1  ;;  %v2897_v10 = vsel %vm1533_vm1, %v2895_v20, %v2896_v62  ;;  %v2906_v63 = vsel %vm1533_vm1, %v2904_v32, %v2905_v46 }
 0x2ed   : > { %6056 = vmatpush1.bf16.msra.mxu0 %v9184_v26  ;;  %8374 = vmatprep.subr.bf16.mxu1 %v9189_v61  ;;  %v2890_v26 = vrot.slane %v2739_v1, 1  ;;  %v9199_v37 = vld [vmem:[%s10050_s22 + $0x8c0] ss:$8 sps:$4 sm:$0xff]   ;;  %v10820_v13 = vld [vmem:[#allocation4 + $0x78] sm:$0x3]  ;;  %v2912_v58 = vsel %vm1533_vm1, %v2910_v17, %v2911_v23 }
 0x2ee   : > { %5549 = vmatmul.mubr.bf16.gmra.mrb[16].mxu1 %v2024_v40  ;;  %6057 = vmatprep.subr.bf16.mxu0 %v9189_v61  ;;  %v9196_v61 = vld [vmem:[%s10050_s22 + $0x8b0] ss:$8 sps:$4 sm:$0xff]   ;;  %v9201_v40 = vld [vmem:[%s10050_s22 + $0x8c4] ss:$8 sps:$4 sm:$0xff]   ;;  %v9204_v45 = vld [vmem:[%s10050_s22 + $0x8d4] ss:$8 sps:$4 sm:$0xff]   ;;  %v2960_v0 = vpack.c.bf16 %v2912_v58, %v2906_v63  ;;  %v2903_v30 = vsel %vm1533_vm1, %v2901_v51, %v2902_v42 }
 0x2ef   : > { %5558 = vmatprep.mubr.bf16.mxu1 %v2027_v24  ;;  %v9198_v24 = vld [vmem:[%s10050_s22 + $0x8b4] ss:$8 sps:$4 sm:$0xff]   ;;  %v2891_v15 = vsel %vm1533_vm1, %v2889_v12, %v2890_v26  ;;  %v3010_v60 = vld [vmem:[#allocation4 + $0x188] sm:$0xfc]  ;;  %v3115_v18 = vrot.slane %v10820_v13, 2 }
 0x2f0   : > { %6001 = vmatmul.mubr.bf16.gmra.mrb[16].mxu0 %v2953_v52  ;;  %8390 = vmatpush1.bf16.msra.mxu1 %v9187_v44  ;;  %v10813_v52 = vld [vmem:[#allocation4 + $0x58] sm:$0x3]  ;;  %v3156_v35 = vrot.slane %v3010_v60, 2  ;;  %v2957_v11 = vpack.c.bf16 %v2897_v10, %v2891_v15  ;;  %v10828_v56 = vld [vmem:[#allocation4 + $0x40] sm:$0xfc] }
 0x2f1   : > { %6058 = vmatpush1.bf16.msra.mxu0 %v9187_v44  ;;  %8375 = vmatprep.subr.bf16.mxu1 %v9192_v54  ;;  %v2908_v44 = vrot.slane %v10799_v19, 1  ;;  %v3109_v55 = vrot.slane %v10813_v52, 2  ;;  %v3016_v28 = vld [vmem:[#allocation4 + $0x1b8] sm:$0x3]  ;;  %v10831_v1 = vld [vmem:[#allocation4 + $0x50] sm:$0x3] }
 0x2f2   : > { %6059 = vmatprep.subr.bf16.mxu0 %v9192_v54  ;;  %6010 = vmatprep.mubr.bf16.mxu0 %v2956_v47  ;;  %v10815_v54 = vld [vmem:[#allocation4 + $0x68] sm:$0xfc]  ;;  %v3163_v57 = vrot.slane %v3016_v28, 2  ;;  %v10833_v4 = vld [vmem:[#allocation4 + $0x60] sm:$0xfc]  ;;  %v3106_v12 = vrot.slane %v10831_v1, 2 }
 0x2f3   : > { %v3114_v50 = vrot.slane %v10815_v54, 2  ;;  %v3014_v47 = vld [vmem:[#allocation4 + $0x1a8] sm:$0xfc]  ;;  %v9202_v5 = vld [vmem:[%s10050_s22 + $0x8d0] ss:$8 sps:$4 sm:$0xff]   ;;  %v3111_v16 = vrot.slane %v10833_v4, 2 }
 0x2f4   : > { %8391 = vmatpush1.bf16.msra.mxu1 %v9190_v38  ;;  %v10839_v7 = vld [vmem:[#allocation4 + $0x70] sm:$0x3]  ;;  %v10850_v43 = vld [vmem:[#allocation4 + $0x1a0] sm:$0xfc]  ;;  %v10856_v62 = vld [vmem:[#allocation4 + $0x88] sm:$0xfc] }
 0x2f5   : > { %6060 = vmatpush1.bf16.msra.mxu0 %v9190_v38  ;;  %8376 = vmatprep.subr.bf16.mxu1 %v9195_v2  ;;  %v3012_v38 = vld [vmem:[#allocation4 + $0x198] sm:$0x3]  ;;  %v9207_v8 = vld [vmem:[%s10050_s22 + $0x8e4] ss:$8 sps:$4 sm:$0xff]   ;;  %v3112_v26 = vrot.slane %v10839_v7, 2  ;;  %v3159_v39 = vrot.slane %v10850_v43, 2  ;;  %v3116_v51 = vsel %vm1822_vm2, %v3114_v50, %v3115_v18 }
 0x2f6   : > { %5559 = vmatmul.mubr.bf16.gmra.mrb[20].mxu1 %v2026_v53  ;;  %6061 = vmatprep.subr.bf16.mxu0 %v9195_v2  ;;  %v10807_v53 = vld [vmem:[#allocation4 + $0x48] sm:$0xfc]  ;;  %v3157_v41 = vrot.slane %v3012_v38, 2  ;;  %v3162_v2 = vrot.slane %v3014_v47, 2  ;;  %v10848_v20 = vld [vmem:[#allocation4 + $0x190] sm:$0x3] }
 0x2f7   : > { %5568 = vmatprep.mubr.bf16.mxu1 %v2029_v25  ;;  %v2907_v25 = vrot.slane %v10793_v14, 1  ;;  %v3108_v21 = vrot.slane %v10807_v53, 2  ;;  %v3015_v29 = vld [vmem:[#allocation4 + $0x1b0] sm:$0x3]  ;;  %v9205_v19 = vld [vmem:[%s10050_s22 + $0x8e0] ss:$8 sps:$4 sm:$0xff]  }
 0x2f8   : > { %6011 = vmatmul.mubr.bf16.gmra.mrb[20].mxu0 %v2955_v31  ;;  %8392 = vmatpush1.bf16.msra.mxu1 %v9193_v27  ;;  %v3158_v48 = vsel %vm1822_vm2, %v3156_v35, %v3157_v41  ;;  %v3154_v31 = vrot.slane %v10848_v20, 2  ;;  %v3160_v14 = vrot.slane %v3015_v29, 2  ;;  %v2992_v46 = vld [vmem:[#allocation4 + $0xb8] sm:$0x3]  ;;  %v3120_v17 = vrot.slane %v10856_v62, 2 }
 0x2f9   : > { %6062 = vmatpush1.bf16.msra.mxu0 %v9193_v27  ;;  %8377 = vmatprep.subr.bf16.mxu1 %v9198_v24  ;;  %v3105_v27 = vrot.slane %v10828_v56, 2  ;;  %v2909_v34 = vsel %vm1533_vm1, %v2907_v25, %v2908_v44  ;;  %v3110_v32 = vsel %vm1822_vm2, %v3108_v21, %v3109_v55  ;;  %v3018_v23 = vld [vmem:[#allocation4 + $0x1c8] sm:$0xfc]  ;;  %v3127_v15 = vrot.slane %v2992_v46, 2  ;;  %v3020_v10 = vld [vmem:[#allocation4 + $0x1d8] sm:$0x3] }
 0x2fa   : > { %6063 = vmatprep.subr.bf16.mxu0 %v9198_v24  ;;  %6020 = vmatprep.mubr.bf16.mxu0 %v2958_v6  ;;  %v10843_v24 = vld [vmem:[#allocation4 + $0x180] sm:$0xfc]  ;;  %v10865_v6 = vld [vmem:[#allocation4 + $0xa8] sm:$0xfc]  ;;  %v2959_v44 = vpack.c.bf16 %v2909_v34, %v2903_v30  ;;  %v3024_v52 = vld [vmem:[#allocation4 + $0x1f8] sm:$0x3]  ;;  %v3234_v63 = vpack.c.bf16 %v3116_v51, %v3110_v32  ;;  %v3161_v3 = vsel %vm1822_vm2, %v3159_v39, %v3160_v14 }
 0x2fb   : > { %v3153_v22 = vrot.slane %v10843_v24, 2  ;;  %v3126_v53 = vrot.slane %v10865_v6, 2  ;;  %v3022_v25 = vld [vmem:[#allocation4 + $0x1e8] sm:$0xfc]  ;;  %v3168_v54 = vrot.slane %v3018_v23, 2  ;;  %v3175_v21 = vrot.slane %v3024_v52, 2 }
 0x2fc   : > { %8393 = vmatpush1.bf16.msra.mxu1 %v9196_v61  ;;  %v3174_v13 = vrot.slane %v3022_v25, 2  ;;  %v2987_v55 = vld [vmem:[#allocation4 + $0x90] sm:$0x3]  ;;  %v10876_v60 = vld [vmem:[#allocation4 + $0xa0] sm:$0xfc]  ;;  %v3107_v35 = vsel %vm1822_vm2, %v3105_v27, %v3106_v12 }
 0x2fd   : > { %6064 = vmatpush1.bf16.msra.mxu0 %v9196_v61  ;;  %8378 = vmatprep.subr.bf16.mxu1 %v9201_v40  ;;  %v10863_v61 = vld [vmem:[#allocation4 + $0x98] sm:$0x3]  ;;  %v2991_v58 = vld [vmem:[#allocation4 + $0xb0] sm:$0x3]  ;;  %v3118_v38 = vrot.slane %v2987_v55, 2  ;;  %v3123_v28 = vrot.slane %v10876_v60, 2  ;;  %v3155_v49 = vsel %vm1822_vm2, %v3153_v22, %v3154_v31 }
 0x2fe   : > { %5569 = vmatmul.mubr.bf16.gmra.mrb[24].mxu1 %v2028_v59  ;;  %6065 = vmatprep.subr.bf16.mxu0 %v9201_v40  ;;  %v3164_v59 = vsel %vm1822_vm2, %v3162_v2, %v3163_v57  ;;  %v3121_v33 = vrot.slane %v10863_v61, 2  ;;  %v9210_v40 = vld [vmem:[%s10050_s22 + $0x8f4] ss:$8 sps:$4 sm:$0xff]   ;;  %v3124_v41 = vrot.slane %v2991_v58, 2  ;;  %v3019_v2 = vld [vmem:[#allocation4 + $0x1d0] sm:$0x3] }
 0x2ff   : > { %5578 = vmatprep.mubr.bf16.mxu1 %v2031_v36  ;;  %v3242_v42 = vpack.c.bf16 %v3164_v59, %v3158_v48  ;;  %v10874_v36 = vld [vmem:[#allocation4 + $0x80] sm:$0xfc]  ;;  %v3166_v57 = vrot.slane %v3019_v2, 2  ;;  %v2994_v1 = vld [vmem:[#allocation4 + $0xc8] sm:$0xfc]  ;;  %v3241_v48 = vpack.c.bf16 %v3161_v3, %v3155_v49 }
 0x300   : > { %6021 = vmatmul.mubr.bf16.gmra.mrb[24].mxu0 %v2957_v11  ;;  %8394 = vmatpush1.bf16.msra.mxu1 %v9199_v37  ;;  %v3117_v50 = vrot.slane %v10874_v36, 2  ;;  %v3017_v47 = vld [vmem:[#allocation4 + $0x1c0] sm:$0xfc]  ;;  %v3113_v11 = vsel %vm1822_vm2, %v3111_v16, %v3112_v26  ;;  %v2996_v27 = vld [vmem:[#allocation4 + $0xd8] sm:$0x3]  ;;  %v3122_v24 = vsel %vm1822_vm2, %v3120_v17, %v3121_v33  ;;  %v3132_v26 = vrot.slane %v2994_v1, 2 }
 0x301   : > { %6066 = vmatpush1.bf16.msra.mxu0 %v9199_v37  ;;  %8379 = vmatprep.subr.bf16.mxu1 %v9204_v45  ;;  %v3169_v37 = vrot.slane %v3020_v10, 2  ;;  %v3021_v56 = vld [vmem:[#allocation4 + $0x1e0] sm:$0xfc]  ;;  %v3165_v18 = vrot.slane %v3017_v47, 2  ;;  %v2998_v12 = vld [vmem:[#allocation4 + $0xe8] sm:$0xfc]  ;;  %v3233_v62 = vpack.c.bf16 %v3113_v11, %v3107_v35  ;;  %v3125_v51 = vsel %vm1822_vm2, %v3123_v28, %v3124_v41 }
 0x302   : > { %6067 = vmatprep.subr.bf16.mxu0 %v9204_v45  ;;  %6030 = vmatprep.mubr.bf16.mxu0 %v2960_v0  ;;  %v9208_v45 = vld [vmem:[%s10050_s22 + $0x8f0] ss:$8 sps:$4 sm:$0xff]   ;;  %v3171_v0 = vrot.slane %v3021_v56, 2  ;;  %v3000_v16 = vld [vmem:[#allocation4 + $0xf8] sm:$0x3]  ;;  %v3133_v20 = vrot.slane %v2996_v27, 2  ;;  %v3119_v33 = vsel %vm1822_vm2, %v3117_v50, %v3118_v38 }
 0x303   : > { %v3170_v4 = vsel %vm1822_vm2, %v3168_v54, %v3169_v37  ;;  %v3026_v43 = vld [vmem:[#allocation4 + $0x208] sm:$0xfc]  ;;  %v3138_v59 = vrot.slane %v2998_v12, 2  ;;  %v3139_v29 = vrot.slane %v3000_v16, 2  ;;  %v3028_v22 = vld [vmem:[#allocation4 + $0x218] sm:$0x3]  ;;  %v3235_v38 = vpack.c.bf16 %v3125_v51, %v3119_v33 }
 0x304   : > { %8395 = vmatpush1.bf16.msra.mxu1 %v9202_v5  ;;  %v3030_v31 = vld [vmem:[#allocation4 + $0x228] sm:$0xfc]  ;;  %v3032_v34 = vld [vmem:[#allocation4 + $0x238] sm:$0x3]  ;;  %v3180_v39 = vrot.slane %v3026_v43, 2  ;;  %v3181_v14 = vrot.slane %v3028_v22, 2  ;;  %v3134_v10 = vsel %vm1822_vm2, %v3132_v26, %v3133_v20 }
 0x305   : > { %6068 = vmatpush1.bf16.msra.mxu0 %v9202_v5  ;;  %8380 = vmatprep.subr.bf16.mxu1 %v9207_v8  ;;  %v3176_v5 = vsel %vm1822_vm2, %v3174_v13, %v3175_v21  ;;  %v2993_v61 = vld [vmem:[#allocation4 + $0xc0] sm:$0xfc]  ;;  %v3187_v32 = vrot.slane %v3032_v34, 2  ;;  %v2995_v46 = vld [vmem:[#allocation4 + $0xd0] sm:$0x3]  ;;  %v3140_v25 = vsel %vm1822_vm2, %v3138_v59, %v3139_v29 }
 0x306   : > { %5579 = vmatmul.mubr.bf16.gmra.mrb[28].mxu1 %v2030_v9  ;;  %6069 = vmatprep.subr.bf16.mxu0 %v9207_v8  ;;  %v3023_v9 = vld [vmem:[#allocation4 + $0x1f0] sm:$0x3]  ;;  %v3128_v8 = vsel %vm1822_vm2, %v3126_v53, %v3127_v15  ;;  %v3244_v30 = vpack.c.bf16 %v3176_v5, %v3170_v4  ;;  %v2997_v17 = vld [vmem:[#allocation4 + $0xe0] sm:$0xfc]  ;;  %v3129_v15 = vrot.slane %v2993_v61, 2  ;;  %v3182_v36 = vsel %vm1822_vm2, %v3180_v39, %v3181_v14 }
 0x307   : > { %6113 = vmatprep.mubr.bf16.mxu1 %v3242_v42  ;;  %v3172_v7 = vrot.slane %v3023_v9, 2  ;;  %v3236_v6 = vpack.c.bf16 %v3128_v8, %v3122_v24  ;;  %v2999_v23 = vld [vmem:[#allocation4 + $0xf0] sm:$0x3]  ;;  %v3167_v42 = vsel %vm1822_vm2, %v3165_v18, %v3166_v57  ;;  %v3135_v52 = vrot.slane %v2997_v17, 2  ;;  %v3029_v37 = vld [vmem:[#allocation4 + $0x220] sm:$0xfc] }
 0x308   : > { %6031 = vmatmul.mubr.bf16.gmra.mrb[28].mxu0 %v2959_v44  ;;  %8396 = vmatpush1.bf16.msra.mxu1 %v9205_v19  ;;  %v3130_v44 = vrot.slane %v2995_v46, 2  ;;  %v3027_v54 = vld [vmem:[#allocation4 + $0x210] sm:$0x3]  ;;  %v3136_v21 = vrot.slane %v2999_v23, 2  ;;  %v3006_v58 = vld [vmem:[#allocation4 + $0x128] sm:$0xfc]  ;;  %v3238_v35 = vpack.c.bf16 %v3140_v25, %v3134_v10 }
 0x309   : > { %6070 = vmatpush1.bf16.msra.mxu0 %v9205_v19  ;;  %8381 = vmatprep.subr.bf16.mxu1 %v9210_v40  ;;  %v3186_v19 = vrot.slane %v3030_v31, 2  ;;  %v3173_v53 = vsel %vm1822_vm2, %v3171_v0, %v3172_v7  ;;  %v3031_v55 = vld [vmem:[#allocation4 + $0x230] sm:$0x3]  ;;  %v3034_v50 = vld [vmem:[#allocation4 + $0x248] sm:$0xfc]  ;;  %v3178_v56 = vrot.slane %v3027_v54, 2 }
 0x30a   : > { %6071 = vmatprep.subr.bf16.mxu0 %v9210_v40  ;;  %6073 = vmatprep.mubr.bf16.mxu0 %v3234_v63  ;;  %v3025_v40 = vld [vmem:[#allocation4 + $0x200] sm:$0xfc]  ;;  %v3004_v63 = vld [vmem:[#allocation4 + $0x118] sm:$0x3]  ;;  %v3243_v47 = vpack.c.bf16 %v3173_v53, %v3167_v42  ;;  %v3038_v41 = vld [vmem:[#allocation4 + $0x268] sm:$0xfc]  ;;  %v3131_v12 = vsel %vm1822_vm2, %v3129_v15, %v3130_v44  ;;  %v3137_v24 = vsel %vm1822_vm2, %v3135_v52, %v3136_v21 }
 0x30b   : > { %v3188_v13 = vsel %vm1822_vm2, %v3186_v19, %v3187_v32  ;;  %v3177_v60 = vrot.slane %v3025_v40, 2  ;;  %v3008_v11 = vld [vmem:[#allocation4 + $0x138] sm:$0x3]  ;;  %v3183_v49 = vrot.slane %v3029_v37, 2  ;;  %v3184_v3 = vrot.slane %v3031_v55, 2 }
 0x30c   : > { %8397 = vmatpush1.bf16.msra.mxu1 %v9208_v45  ;;  %v3036_v28 = vld [vmem:[#allocation4 + $0x258] sm:$0x3]  ;;  %v3246_v2 = vpack.c.bf16 %v3188_v13, %v3182_v36  ;;  %v3192_v18 = vrot.slane %v3034_v50, 2  ;;  %v3198_v1 = vrot.slane %v3038_v41, 2  ;;  %v3145_v0 = vrot.slane %v3004_v63, 2 }
 0x30d   : > { %6072 = vmatpush1.bf16.msra.mxu0 %v9208_v45  ;;  %v3002_v45 = vld [vmem:[#allocation4 + $0x108] sm:$0xfc]  ;;  %v3040_v9 = vld [vmem:[#allocation4 + $0x278] sm:$0x3]  ;;  %v3193_v57 = vrot.slane %v3036_v28, 2  ;;  %v3150_v7 = vrot.slane %v3006_v58, 2  ;;  %v3179_v8 = vsel %vm1822_vm2, %v3177_v60, %v3178_v56  ;;  %v3185_v16 = vsel %vm1822_vm2, %v3183_v49, %v3184_v3 }
 0x30e   : > { %v3199_v4 = vrot.slane %v3040_v9, 2  ;;  %v3144_v5 = vrot.slane %v3002_v45, 2  ;;  %v3151_v27 = vrot.slane %v3008_v11, 2  ;;  %v3001_v26 = vld [vmem:[#allocation4 + $0x100] sm:$0xfc]  ;;  %v3237_v14 = vpack.c.bf16 %v3137_v24, %v3131_v12 }
 0x30f   : > { %6114 = vmatmul.mubr.bf16.vlgmr.msra.gmra.mrb[32].mxu1 %v3241_v48  ;;  %v3033_v20 = vld [vmem:[#allocation4 + $0x240] sm:$0xfc]  ;;  %v3194_v43 = vsel %vm1822_vm2, %v3192_v18, %v3193_v57  ;;  %v3035_v59 = vld [vmem:[#allocation4 + $0x250] sm:$0x3]  ;;  %v3245_v61 = vpack.c.bf16 %v3185_v16, %v3179_v8 }
 0x310   : > { %6074 = vmatmul.mubr.bf16.vlgmr.msra.gmra.mrb[0].mxu0 %v3233_v62  ;;  %6123 = vmatprep.mubr.bf16.mxu1 %v3244_v30  ;;  %v3200_v48 = vsel %vm1822_vm2, %v3198_v1, %v3199_v4  ;;  %v3037_v29 = vld [vmem:[#allocation4 + $0x260] sm:$0xfc]  ;;  %v3039_v22 = vld [vmem:[#allocation4 + $0x270] sm:$0x3]  ;;  %v3146_v31 = vsel %vm1822_vm2, %v3144_v5, %v3145_v0  ;;  %v3152_v62 = vsel %vm1822_vm2, %v3150_v7, %v3151_v27  ;;  %v3189_v19 = vrot.slane %v3033_v20, 2 }
 0x311   : > { %6083 = vmatprep.mubr.bf16.mxu0 %v3236_v6  ;;  %v3003_v30 = vld [vmem:[#allocation4 + $0x110] sm:$0x3]  ;;  %v3005_v34 = vld [vmem:[#allocation4 + $0x120] sm:$0xfc]  ;;  %v3141_v6 = vrot.slane %v3001_v26, 2  ;;  %v3248_v32 = vpack.c.bf16 %v3200_v48, %v3194_v43  ;;  %v3190_v46 = vrot.slane %v3035_v59, 2  ;;  %v3240_v23 = vpack.c.bf16 %v3152_v62, %v3146_v31 }
 0x312   : > { %v3007_v39 = vld [vmem:[#allocation4 + $0x130] sm:$0x3]  ;;  %v3195_v17 = vrot.slane %v3037_v29, 2  ;;  %v3196_v33 = vrot.slane %v3039_v22, 2  ;;  %v3142_v40 = vrot.slane %v3003_v30, 2  ;;  %v3147_v51 = vrot.slane %v3005_v34, 2 }
 0x313   : > { %v3148_v42 = vrot.slane %v3007_v39, 2  ;;  %v3191_v53 = vsel %vm1822_vm2, %v3189_v19, %v3190_v46  ;;  %v6156_v19 = vlaneseq }
 0x314   : > { %v3197_v15 = vsel %vm1822_vm2, %v3195_v17, %v3196_v33  ;;  %v3143_v10 = vsel %vm1822_vm2, %v3141_v6, %v3142_v40 }
 0x315   : > { %v3149_v25 = vsel %vm1822_vm2, %v3147_v51, %v3148_v42  ;;  %v3247_v44 = vpack.c.bf16 %v3197_v15, %v3191_v53 }
 0x316   : > { %v3239_v52 = vpack.c.bf16 %v3149_v25, %v3143_v10 }
 0x317   : > { %6124 = vmatmul.mubr.bf16.gmra.mrb[36].mxu1 %v3243_v47 }
 0x318   : > { %6084 = vmatmul.mubr.bf16.gmra.mrb[4].mxu0 %v3235_v38  ;;  %6133 = vmatprep.mubr.bf16.mxu1 %v3246_v2 }
 0x319   : > { %6093 = vmatprep.mubr.bf16.mxu0 %v3238_v35 }
 0x31f   : > { %6134 = vmatmul.mubr.bf16.gmra.mrb[40].mxu1 %v3245_v61 }
 0x320   : > { %6094 = vmatmul.mubr.bf16.gmra.mrb[8].mxu0 %v3237_v14  ;;  %6143 = vmatprep.mubr.bf16.mxu1 %v3248_v32 }
 0x321   : > { %6103 = vmatprep.mubr.bf16.mxu0 %v3240_v23  ;;  %v6157_v23 = vshrl.u32 %v6156_v19, 7 }
 0x327   : > { %6144 = vmatmul.mubr.bf16.gmra.mrb[44].mxu1 %v3247_v44 }
 0x328   : > { %6104 = vmatmul.mubr.bf16.gmra.mrb[12].mxu0 %v3239_v52  ;;  %v10966_v52 = vsub.s32 0, %v6157_v23 }
 0x3a1   : > { %v10912_v54 = vpop.f32.mrb[0].mxu1 }
 0x3a2   : > { %v10914_v37 = vpop.f32.mrb[1].mxu1 }
 0x3a3   : > { %v10916_v36 = vpop.f32.mrb[2].mxu1 }
 0x3a4   : > { %v10918_v13 = vpop.f32.mrb[3].mxu1 }
 0x3a9   : > { %v10920_v21 = vpop.f32.mrb[4].mxu1 }
 0x3aa   : > { %v10922_v55 = vpop.f32.mrb[5].mxu1 }
 0x3ab   : > { %v10924_v60 = vpop.f32.mrb[6].mxu1 }
 0x3ac   : > { %v10926_v45 = vpop.f32.mrb[7].mxu1 }
 0x3b1   : > { %v10928_v63 = vpop.f32.mrb[8].mxu1 }
 0x3b2   : > { %v10930_v58 = vpop.f32.mrb[9].mxu1 }
 0x3b3   : > { %v10932_v50 = vpop.f32.mrb[10].mxu1 }
 0x3b4   : > { %v10934_v38 = vpop.f32.mrb[11].mxu1 }
 0x3b9   : > { %v10936_v47 = vpop.f32.mrb[12].mxu1 }
 0x3ba   : > { %v10938_v35 = vpop.f32.mrb[13].mxu1 }
 0x3bb   : > { %v10940_v11 = vpop.f32.mrb[14].mxu1 }
 0x3bc   : > { %v10942_v28 = vpop.f32.mrb[15].mxu1 }
 0x3c1   : > { %v5550_v41 = vpop.f32.mrb[16].mxu1 }
 0x3c2   : > { %v5552_v2 = vpop.f32.mrb[17].mxu1 }
 0x3c3   : > { %v6002_v56 = vpop.f32.mrb[16].mxu0  ;;  %v5554_v49 = vpop.f32.mrb[18].mxu1 }
 0x3c4   : > { %v8414_v3 = vadd.f32 %v6002_v56, %v5550_v41  ;;  %v6004_v9 = vpop.f32.mrb[17].mxu0  ;;  %v5556_v18 = vpop.f32.mrb[19].mxu1  ;;  %v6154_v56 = vld [vmem:[%s675_s26] sm:$0x3] }
 0x3c5   : > { %v8416_v57 = vadd.f32 %v6004_v9, %v5552_v2  ;;  %v6006_v1 = vpop.f32.mrb[18].mxu0 }
 0x3c6   : > { %v8418_v4 = vadd.f32 %v6006_v1, %v5554_v49  ;;  %v6008_v5 = vpop.f32.mrb[19].mxu0  ;;  %v10972_v49 = vsub.s32 1, %v6157_v23  ;;  %v10979_v1 = vrot.slane %v6154_v56, %v10966_v52 }
 0x3c7   : > { %v10944_v0 = vadd.f32 %v6008_v5, %v5556_v18  ;;  %v6198_v18 = vld [vmem:[%s684_s7] sm:$0x3] }
 0x3c9   : > { %v5560_v7 = vpop.f32.mrb[20].mxu1 }
 0x3ca   : > { %v5562_v27 = vpop.f32.mrb[21].mxu1 }
 0x3cb   : > { %v6012_v12 = vpop.f32.mrb[20].mxu0  ;;  %v5564_v24 = vpop.f32.mrb[22].mxu1 }
 0x3cc   : > { %v10946_v8 = vadd.f32 %v6012_v12, %v5560_v7  ;;  %v6014_v16 = vpop.f32.mrb[21].mxu0  ;;  %v5566_v26 = vpop.f32.mrb[23].mxu1  ;;  %v10982_v7 = vrot.slane %v6154_v56, %v10972_v49  ;;  %v10985_v12 = vrot.slane %v6198_v18, %v10966_v52 }
 0x3cd   : > { %v10948_v20 = vadd.f32 %v6014_v16, %v5562_v27  ;;  %v6016_v43 = vpop.f32.mrb[22].mxu0 }
 0x3ce   : > { %v10950_v48 = vadd.f32 %v6016_v43, %v5564_v24  ;;  %v6018_v59 = vpop.f32.mrb[23].mxu0 }
 0x3cf   : > { %v10952_v29 = vadd.f32 %v6018_v59, %v5566_v26  ;;  %v10989_v59 = vrot.slane %v6198_v18, %v10972_v49 }
 0x3d1   : > { %v5570_v22 = vpop.f32.mrb[24].mxu1 }
 0x3d2   : > { %v5572_v31 = vpop.f32.mrb[25].mxu1 }
 0x3d3   : > { %v6022_v62 = vpop.f32.mrb[24].mxu0  ;;  %v5574_v30 = vpop.f32.mrb[26].mxu1 }
 0x3d4   : > { %v10954_v34 = vadd.f32 %v6022_v62, %v5570_v22  ;;  %v6024_v39 = vpop.f32.mrb[25].mxu0  ;;  %v5576_v14 = vpop.f32.mrb[27].mxu1 }
 0x3d5   : > { %v10956_v61 = vadd.f32 %v6024_v39, %v5572_v31  ;;  %v6026_v6 = vpop.f32.mrb[26].mxu0 }
 0x3d6   : > { %v10958_v32 = vadd.f32 %v6026_v6, %v5574_v30  ;;  %v6028_v46 = vpop.f32.mrb[27].mxu0 }
 0x3d7   : > { %v10960_v17 = vadd.f32 %v6028_v46, %v5576_v14 }
 0x3d9   : > { %v5580_v33 = vpop.f32.mrb[28].mxu1 }
 0x3da   : > { %v5582_v40 = vpop.f32.mrb[29].mxu1 }
 0x3db   : > { %v6032_v51 = vpop.f32.mrb[28].mxu0  ;;  %v5584_v42 = vpop.f32.mrb[30].mxu1 }
 0x3dc   : > { %v10962_v53 = vadd.f32 %v6032_v51, %v5580_v33  ;;  %v6034_v15 = vpop.f32.mrb[29].mxu0  ;;  %v5586_v10 = vpop.f32.mrb[31].mxu1 }
 0x3dd   : > { %v10964_v25 = vadd.f32 %v6034_v15, %v5582_v40  ;;  %v6036_v44 = vpop.f32.mrb[30].mxu0 }
 0x3de   : > { %v10968_v41 = vadd.f32 %v6036_v44, %v5584_v42  ;;  %v6038_v2 = vpop.f32.mrb[31].mxu0 }
 0x3df   : > { %v10974_v9 = vadd.f32 %v6038_v2, %v5586_v10 }
 0x3e2   : > { %v6115_v5 = vpop.f32.mrb[32].mxu1 }
 0x3e3   : > { %v6075_v27 = vpop.f32.mrb[0].mxu0  ;;  %v8415_v24 = vadd.f32 %v8414_v3, %v6115_v5  ;;  %v6117_v16 = vpop.f32.mrb[33].mxu1 }
 0x3e4   : > { %v8398_v26 = vadd.f32 %v6075_v27, %v10912_v54  ;;  %v6077_v43 = vpop.f32.mrb[1].mxu0  ;;  %v8417_v22 = vadd.f32 %v8416_v57, %v6117_v16  ;;  %v6119_v31 = vpop.f32.mrb[34].mxu1 }
 0x3e5   : > { %v6182_v62 = vmul.f32 %v8415_v24, %v10979_v1  ;;  %v8399_v30 = vadd.f32 %v6077_v43, %v10914_v37  ;;  %v6079_v39 = vpop.f32.mrb[2].mxu0  ;;  %v8419_v14 = vadd.f32 %v8418_v4, %v6119_v31  ;;  %v6121_v6 = vpop.f32.mrb[35].mxu1 }
 0x3e6   : > { %v6166_v19 = vmul.f32 %v8398_v26, %v10979_v1  ;;  %v6183_v3 = vmul.f32 %v8417_v22, %v10982_v7  ;;  %v8400_v46 = vadd.f32 %v6079_v39, %v10916_v36  ;;  %v6081_v54 = vpop.f32.mrb[3].mxu0  ;;  %v8421_v33 = vadd.f32 %v10944_v0, %v6121_v6 }
 0x3e7   : > { %v10998_v23 = vadd.f32 %v10985_v12, %v6182_v62  ;;  %v6167_v57 = vmul.f32 %v8399_v30, %v10982_v7  ;;  %v6184_v40 = vmul.f32 %v8419_v14, %v10979_v1  ;;  %v8401_v37 = vadd.f32 %v6081_v54, %v10918_v13 }
 0x3e8   : > { %v11004_v4 = vadd.f32 %v10985_v12, %v6166_v19  ;;  %v11007_v51 = vadd.f32 %v10989_v59, %v6183_v3  ;;  %v6168_v36 = vmul.f32 %v8400_v46, %v10979_v1  ;;  %v6185_v42 = vmul.f32 %v8421_v33, %v10982_v7 }
 0x3e9   : > { %v11012_v0 = vadd.f32 %v10989_v59, %v6167_v57  ;;  %v11015_v15 = vadd.f32 %v10985_v12, %v6184_v40  ;;  %v6169_v10 = vmul.f32 %v8401_v37, %v10982_v7 }
 0x3ea   : > { %v11019_v13 = vadd.f32 %v10985_v12, %v6168_v36  ;;  %v11022_v44 = vadd.f32 %v10989_v59, %v6185_v42  ;;  %v6125_v2 = vpop.f32.mrb[36].mxu1 }
 0x3eb   : > { %v11025_v56 = vadd.f32 %v10989_v59, %v6169_v10  ;;  %v6085_v18 = vpop.f32.mrb[4].mxu0  ;;  %v8423_v5 = vadd.f32 %v10946_v8, %v6125_v2  ;;  %v6127_v27 = vpop.f32.mrb[37].mxu1 }
 0x3ec   : > { %v8402_v24 = vadd.f32 %v6085_v18, %v10920_v21  ;;  %v6087_v16 = vpop.f32.mrb[5].mxu0  ;;  %v8425_v26 = vadd.f32 %v10948_v20, %v6127_v27  ;;  %v6129_v43 = vpop.f32.mrb[38].mxu1 }
 0x3ed   : > { %v6186_v22 = vmul.f32 %v8423_v5, %v10979_v1  ;;  %v8403_v31 = vadd.f32 %v6087_v16, %v10922_v55  ;;  %v6089_v62 = vpop.f32.mrb[6].mxu0  ;;  %v8427_v30 = vadd.f32 %v10950_v48, %v6129_v43  ;;  %v6131_v39 = vpop.f32.mrb[39].mxu1 }
 0x3ee   : > { %v6170_v14 = vmul.f32 %v8402_v24, %v10979_v1  ;;  %v6187_v6 = vmul.f32 %v8425_v26, %v10982_v7  ;;  %v8404_v8 = vadd.f32 %v6089_v62, %v10924_v60  ;;  %v6091_v19 = vpop.f32.mrb[7].mxu0  ;;  %v8429_v21 = vadd.f32 %v10952_v29, %v6131_v39 }
 0x3ef   : > { %v11038_v20 = vadd.f32 %v10985_v12, %v6186_v22  ;;  %v6171_v3 = vmul.f32 %v8403_v31, %v10982_v7  ;;  %v6188_v55 = vmul.f32 %v8427_v30, %v10979_v1  ;;  %v8405_v46 = vadd.f32 %v6091_v19, %v10926_v45 }
 0x3f0   : > { %v11044_v48 = vadd.f32 %v10985_v12, %v6170_v14  ;;  %v11047_v54 = vadd.f32 %v10989_v59, %v6187_v6  ;;  %v6172_v60 = vmul.f32 %v8404_v8, %v10979_v1  ;;  %v6189_v33 = vmul.f32 %v8429_v21, %v10982_v7 }
 0x3f1   : > { %v11052_v29 = vadd.f32 %v10989_v59, %v6171_v3  ;;  %v11055_v57 = vadd.f32 %v10985_v12, %v6188_v55  ;;  %v6173_v40 = vmul.f32 %v8405_v46, %v10982_v7 }
 0x3f2   : > { %v11059_v45 = vadd.f32 %v10985_v12, %v6172_v60  ;;  %v11062_v37 = vadd.f32 %v10989_v59, %v6189_v33  ;;  %v6135_v36 = vpop.f32.mrb[40].mxu1 }
 0x3f3   : > { %v11065_v42 = vadd.f32 %v10989_v59, %v6173_v40  ;;  %v6095_v10 = vpop.f32.mrb[8].mxu0  ;;  %v8431_v2 = vadd.f32 %v10954_v34, %v6135_v36  ;;  %v6137_v18 = vpop.f32.mrb[41].mxu1 }
 0x3f4   : > { %v8406_v5 = vadd.f32 %v6095_v10, %v10928_v63  ;;  %v6097_v27 = vpop.f32.mrb[9].mxu0  ;;  %v8433_v24 = vadd.f32 %v10956_v61, %v6137_v18  ;;  %v6139_v16 = vpop.f32.mrb[42].mxu1 }
 0x3f5   : > { %v6190_v26 = vmul.f32 %v8431_v2, %v10979_v1  ;;  %v8407_v43 = vadd.f32 %v6097_v27, %v10930_v58  ;;  %v6099_v22 = vpop.f32.mrb[10].mxu0  ;;  %v8435_v31 = vadd.f32 %v10958_v32, %v6139_v16  ;;  %v6141_v62 = vpop.f32.mrb[43].mxu1 }
 0x3f6   : > { %v6174_v30 = vmul.f32 %v8406_v5, %v10979_v1  ;;  %v6191_v39 = vmul.f32 %v8433_v24, %v10982_v7  ;;  %v8408_v34 = vadd.f32 %v6099_v22, %v10932_v50  ;;  %v6101_v14 = vpop.f32.mrb[11].mxu0  ;;  %v8437_v63 = vadd.f32 %v10960_v17, %v6141_v62 }
 0x3f7   : > { %v11078_v61 = vadd.f32 %v10985_v12, %v6190_v26  ;;  %v6175_v6 = vmul.f32 %v8407_v43, %v10982_v7  ;;  %v6192_v58 = vmul.f32 %v8435_v31, %v10979_v1  ;;  %v8409_v8 = vadd.f32 %v6101_v14, %v10934_v38 }
 0x3f8   : > { %v11084_v32 = vadd.f32 %v10985_v12, %v6174_v30  ;;  %v11087_v19 = vadd.f32 %v10989_v59, %v6191_v39  ;;  %v6176_v50 = vmul.f32 %v8408_v34, %v10979_v1  ;;  %v6193_v21 = vmul.f32 %v8437_v63, %v10982_v7 }
 0x3f9   : > { %v11092_v17 = vadd.f32 %v10989_v59, %v6175_v6  ;;  %v11095_v3 = vadd.f32 %v10985_v12, %v6192_v58  ;;  %v6177_v55 = vmul.f32 %v8409_v8, %v10982_v7 }
 0x3fa   : > { %v11099_v38 = vadd.f32 %v10985_v12, %v6176_v50  ;;  %v11102_v46 = vadd.f32 %v10989_v59, %v6193_v21  ;;  %v6145_v60 = vpop.f32.mrb[44].mxu1  ;;  %v6246_v21 = vmax.f32 (!%p11873_p9), %v11012_v0, 0.0 }
 0x3fb   : > { %v11105_v33 = vadd.f32 %v10989_v59, %v6177_v55  ;;  %v6105_v40 = vpop.f32.mrb[12].mxu0  ;;  %v8439_v36 = vadd.f32 %v10962_v53, %v6145_v60  ;;  %v6147_v10 = vpop.f32.mrb[45].mxu1  ;;  %v6247_v55 = vmax.f32 (!%p11873_p9), %v11019_v13, 0.0  ;;  %v6250_v60 = vmax.f32 (!%p11873_p9), %v11052_v29, 0.0 }
 0x3fc   : > { %v8410_v2 = vadd.f32 %v6105_v40, %v10936_v47  ;;  %v6107_v18 = vpop.f32.mrb[13].mxu0  ;;  %v8441_v5 = vadd.f32 %v10964_v25, %v6147_v10  ;;  %v6149_v27 = vpop.f32.mrb[46].mxu1  ;;  %v6251_v40 = vmax.f32 (!%p11873_p9), %v11059_v45, 0.0  ;;  %6278 = vst [vmem:[#allocation2 + $0x8] sm:$0xff] (!%p11873_p9), %v6246_v21  ;;  %v6254_v10 = vmax.f32 (!%p11873_p9), %v11092_v17, 0.0 }
 0x3fd   : > { %v6194_v24 = vmul.f32 %v8439_v36, %v10979_v1  ;;  %v8411_v16 = vadd.f32 %v6107_v18, %v10938_v35  ;;  %v6109_v26 = vpop.f32.mrb[14].mxu0  ;;  %v8443_v43 = vadd.f32 %v10968_v41, %v6149_v27  ;;  %v6151_v22 = vpop.f32.mrb[47].mxu1  ;;  %6244 = sbr.rel (%p11873_p9) target bundleno = 1041 (0x411), region = 144  ;;  %6279 = vst [vmem:[#allocation2 + $0x10] sm:$0xff] (!%p11873_p9), %v6247_v55  ;;  %v6253_v36 = vmax.f32 (!%p11873_p9), %v11084_v32, 0.0  ;;  %6282 = vst [vmem:[#allocation2 + $0x28] sm:$0xff] (!%p11873_p9), %v6250_v60 }
 0x3fe   : > { %v6178_v31 = vmul.f32 %v8410_v2, %v10979_v1  ;;  %v6195_v62 = vmul.f32 %v8441_v5, %v10982_v7  ;;  %v8412_v53 = vadd.f32 %v6109_v26, %v10940_v11  ;;  %v6111_v30 = vpop.f32.mrb[15].mxu0  ;;  %v8445_v47 = vadd.f32 %v10974_v9, %v6151_v22  ;;  %6283 = vst [vmem:[#allocation2 + $0x30] sm:$0xff] (!%p11873_p9), %v6251_v40 }
 0x3ff   : > { %v11118_v25 = vadd.f32 %v10985_v12, %v6194_v24  ;;  %v6179_v39 = vmul.f32 %v8411_v16, %v10982_v7  ;;  %v6196_v35 = vmul.f32 %v8443_v43, %v10979_v1  ;;  %v8413_v34 = vadd.f32 %v6111_v30, %v10942_v28  ;;  %6285 = vst [vmem:[#allocation2 + $0x40] sm:$0xff] (!%p11873_p9), %v6253_v36 }
 0x400   : > { %v11124_v41 = vadd.f32 %v10985_v12, %v6178_v31  ;;  %v11127_v14 = vadd.f32 %v10989_v59, %v6195_v62  ;;  %v6180_v11 = vmul.f32 %v8412_v53, %v10979_v1  ;;  %v6197_v63 = vmul.f32 %v8445_v47, %v10982_v7  ;;  %6286 = vst [vmem:[#allocation2 + $0x48] sm:$0xff] (!%p11873_p9), %v6254_v10 }
 0x401   : > { %v11132_v9 = vadd.f32 %v10989_v59, %v6179_v39  ;;  %v11135_v6 = vadd.f32 %v10985_v12, %v6196_v35  ;;  %v6181_v58 = vmul.f32 %v8413_v34, %v10982_v7  ;;  %v6245_v1 = vmax.f32 (!%p11873_p9), %v11004_v4, 0.0 }
 0x402   : > { %v11139_v28 = vadd.f32 %v10985_v12, %v6180_v11  ;;  %v11142_v8 = vadd.f32 %v10989_v59, %v6197_v63  ;;  %v6248_v7 = vmax.f32 (!%p11873_p9), %v11025_v56, 0.0  ;;  %v6249_v12 = vmax.f32 (!%p11873_p9), %v11044_v48, 0.0 }
 0x403   : > { %v11145_v50 = vadd.f32 %v10989_v59, %v6181_v58  ;;  %v6252_v59 = vmax.f32 (!%p11873_p9), %v11065_v42, 0.0  ;;  %6277 = vst [vmem:[#allocation2] sm:$0xff] (!%p11873_p9), %v6245_v1  ;;  %v6255_v2 = vmax.f32 (!%p11873_p9), %v11099_v38, 0.0  ;;  %v6256_v18 = vmax.f32 (!%p11873_p9), %v11105_v33, 0.0 }
 0x404   : > { %6280 = vst [vmem:[#allocation2 + $0x18] sm:$0xff] %v6248_v7  ;;  %6281 = vst [vmem:[#allocation2 + $0x20] sm:$0xff] %v6249_v12  ;;  %v6257_v5 = vmax.f32 %v11124_v41, 0.0  ;;  %v6258_v27 = vmax.f32 %v11132_v9, 0.0  ;;  %v6259_v24 = vmax.f32 %v11139_v28, 0.0  ;;  %v6261_v26 = vmax.f32 %v10998_v23, 0.0 }
 0x405   : > { %6284 = vst [vmem:[#allocation2 + $0x38] sm:$0xff] %v6252_v59  ;;  %v6260_v16 = vmax.f32 %v11145_v50, 0.0  ;;  %6287 = vst [vmem:[#allocation2 + $0x50] sm:$0xff] %v6255_v2  ;;  %v6262_v43 = vmax.f32 %v11007_v51, 0.0  ;;  %v6263_v22 = vmax.f32 %v11015_v15, 0.0  ;;  %v6264_v31 = vmax.f32 %v11022_v44, 0.0 }
 0x406   : > { %6288 = vst [vmem:[#allocation2 + $0x58] sm:$0xff] %v6256_v18  ;;  %6289 = vst [vmem:[#allocation2 + $0x60] sm:$0xff] %v6257_v5  ;;  %v6265_v62 = vmax.f32 %v11038_v20, 0.0  ;;  %v6266_v53 = vmax.f32 %v11047_v54, 0.0  ;;  %v6267_v30 = vmax.f32 %v11055_v57, 0.0  ;;  %v6268_v47 = vmax.f32 %v11062_v37, 0.0 }
 0x407   : > { %6290 = vst [vmem:[#allocation2 + $0x68] sm:$0xff] %v6258_v27  ;;  %6291 = vst [vmem:[#allocation2 + $0x70] sm:$0xff] %v6259_v24  ;;  %v6269_v39 = vmax.f32 %v11078_v61, 0.0  ;;  %v6270_v35 = vmax.f32 %v11087_v19, 0.0  ;;  %v6271_v34 = vmax.f32 %v11095_v3, 0.0  ;;  %v6272_v11 = vmax.f32 %v11102_v46, 0.0 }
 0x408   : > { %6292 = vst [vmem:[#allocation2 + $0x78] sm:$0xff] %v6260_v16  ;;  %6293 = vst [vmem:[#allocation2 + $0x80] sm:$0xff] %v6261_v26  ;;  %v6273_v63 = vmax.f32 %v11118_v25, 0.0  ;;  %v6274_v58 = vmax.f32 %v11127_v14, 0.0  ;;  %v6275_v1 = vmax.f32 %v11135_v6, 0.0  ;;  %v6276_v21 = vmax.f32 %v11142_v8, 0.0 }
 0x409   : > { %6294 = vst [vmem:[#allocation2 + $0x88] sm:$0xff] %v6262_v43  ;;  %6295 = vst [vmem:[#allocation2 + $0x90] sm:$0xff] %v6263_v22 }
 0x40a   : > { %6296 = vst [vmem:[#allocation2 + $0x98] sm:$0xff] %v6264_v31  ;;  %6297 = vst [vmem:[#allocation2 + $0xa0] sm:$0xff] %v6265_v62 }
 0x40b   : > { %6298 = vst [vmem:[#allocation2 + $0xa8] sm:$0xff] %v6266_v53  ;;  %6299 = vst [vmem:[#allocation2 + $0xb0] sm:$0xff] %v6267_v30 }
 0x40c   : > { %6300 = vst [vmem:[#allocation2 + $0xb8] sm:$0xff] %v6268_v47  ;;  %6301 = vst [vmem:[#allocation2 + $0xc0] sm:$0xff] %v6269_v39 }
 0x40d   : > { %6302 = vst [vmem:[#allocation2 + $0xc8] sm:$0xff] %v6270_v35  ;;  %6303 = vst [vmem:[#allocation2 + $0xd0] sm:$0xff] %v6271_v34 }
 0x40e   : > { %6304 = vst [vmem:[#allocation2 + $0xd8] sm:$0xff] %v6272_v11  ;;  %6305 = vst [vmem:[#allocation2 + $0xe0] sm:$0xff] %v6273_v63 }
 0x40f   : > { %6306 = vst [vmem:[#allocation2 + $0xe8] sm:$0xff] %v6274_v58  ;;  %6307 = vst [vmem:[#allocation2 + $0xf0] sm:$0xff] %v6275_v1 }
 0x410   : > { %6308 = vst [vmem:[#allocation2 + $0xf8] sm:$0xff] %v6276_v21 }
 0x411 PF: > { %p8192_p3 = scmp.ne.s32.totalorder %s11890_s14, 1 }
 0x412   : > { %v6312_v55 = vmax.f32 (!%p8192_p3), %v11004_v4, 0.0  ;;  %v6313_v7 = vmax.f32 (!%p8192_p3), %v11012_v0, 0.0  ;;  %v6314_v12 = vmax.f32 (!%p8192_p3), %v11019_v13, 0.0  ;;  %v6315_v60 = vmax.f32 (!%p8192_p3), %v11025_v56, 0.0 }
 0x413   : > { %6311 = sbr.rel (%p8192_p3) target bundleno = 1060 (0x424), region = 148  ;;  %v6316_v40 = vmax.f32 (!%p8192_p3), %v11044_v48, 0.0  ;;  %v6317_v59 = vmax.f32 (!%p8192_p3), %v11052_v29, 0.0  ;;  %v6318_v36 = vmax.f32 (!%p8192_p3), %v11059_v45, 0.0  ;;  %v6319_v10 = vmax.f32 (!%p8192_p3), %v11065_v42, 0.0 }
 0x414   : > { %6344 = vst [vmem:[#allocation3] sm:$0xff] (!%p8192_p3), %v6312_v55  ;;  %6345 = vst [vmem:[#allocation3 + $0x8] sm:$0xff] (!%p8192_p3), %v6313_v7  ;;  %v6320_v2 = vmax.f32 (!%p8192_p3), %v11084_v32, 0.0  ;;  %v6321_v18 = vmax.f32 (!%p8192_p3), %v11092_v17, 0.0  ;;  %v6322_v5 = vmax.f32 (!%p8192_p3), %v11099_v38, 0.0  ;;  %v6323_v27 = vmax.f32 (!%p8192_p3), %v11105_v33, 0.0 }
 0x415   : > { %6346 = vst [vmem:[#allocation3 + $0x10] sm:$0xff] (!%p8192_p3), %v6314_v12  ;;  %6347 = vst [vmem:[#allocation3 + $0x18] sm:$0xff] (!%p8192_p3), %v6315_v60  ;;  %v6324_v24 = vmax.f32 (!%p8192_p3), %v11124_v41, 0.0  ;;  %v6325_v16 = vmax.f32 (!%p8192_p3), %v11132_v9, 0.0  ;;  %v6326_v26 = vmax.f32 (!%p8192_p3), %v11139_v28, 0.0  ;;  %v6327_v43 = vmax.f32 (!%p8192_p3), %v11145_v50, 0.0 }
 0x416   : > { %6348 = vst [vmem:[#allocation3 + $0x20] sm:$0xff] (!%p8192_p3), %v6316_v40  ;;  %6349 = vst [vmem:[#allocation3 + $0x28] sm:$0xff] (!%p8192_p3), %v6317_v59  ;;  %v6328_v22 = vmax.f32 (!%p8192_p3), %v10998_v23, 0.0  ;;  %v6329_v31 = vmax.f32 (!%p8192_p3), %v11007_v51, 0.0  ;;  %v6330_v62 = vmax.f32 (!%p8192_p3), %v11015_v15, 0.0  ;;  %v6331_v53 = vmax.f32 (!%p8192_p3), %v11022_v44, 0.0 }
 0x417   : > { %6350 = vst [vmem:[#allocation3 + $0x30] sm:$0xff] (!%p8192_p3), %v6318_v36  ;;  %6351 = vst [vmem:[#allocation3 + $0x38] sm:$0xff] (!%p8192_p3), %v6319_v10  ;;  %v6332_v30 = vmax.f32 (!%p8192_p3), %v11038_v20, 0.0  ;;  %v6333_v47 = vmax.f32 (!%p8192_p3), %v11047_v54, 0.0  ;;  %v6334_v39 = vmax.f32 (!%p8192_p3), %v11055_v57, 0.0  ;;  %v6335_v35 = vmax.f32 (!%p8192_p3), %v11062_v37, 0.0 }
 0x418   : > { %6352 = vst [vmem:[#allocation3 + $0x40] sm:$0xff] (!%p8192_p3), %v6320_v2  ;;  %6353 = vst [vmem:[#allocation3 + $0x48] sm:$0xff] (!%p8192_p3), %v6321_v18  ;;  %v6336_v34 = vmax.f32 (!%p8192_p3), %v11078_v61, 0.0  ;;  %v6337_v11 = vmax.f32 (!%p8192_p3), %v11087_v19, 0.0  ;;  %v6338_v63 = vmax.f32 (!%p8192_p3), %v11095_v3, 0.0  ;;  %v6339_v58 = vmax.f32 (!%p8192_p3), %v11102_v46, 0.0 }
 0x419   : > { %6354 = vst [vmem:[#allocation3 + $0x50] sm:$0xff] (!%p8192_p3), %v6322_v5  ;;  %6355 = vst [vmem:[#allocation3 + $0x58] sm:$0xff] (!%p8192_p3), %v6323_v27  ;;  %v6340_v1 = vmax.f32 (!%p8192_p3), %v11118_v25, 0.0  ;;  %v6341_v21 = vmax.f32 (!%p8192_p3), %v11127_v14, 0.0  ;;  %v6342_v55 = vmax.f32 (!%p8192_p3), %v11135_v6, 0.0  ;;  %v6343_v7 = vmax.f32 (!%p8192_p3), %v11142_v8, 0.0 }
 0x41a   : > { %6356 = vst [vmem:[#allocation3 + $0x60] sm:$0xff] %v6324_v24  ;;  %6357 = vst [vmem:[#allocation3 + $0x68] sm:$0xff] %v6325_v16 }
 0x41b   : > { %6358 = vst [vmem:[#allocation3 + $0x70] sm:$0xff] %v6326_v26  ;;  %6359 = vst [vmem:[#allocation3 + $0x78] sm:$0xff] %v6327_v43 }
 0x41c   : > { %6360 = vst [vmem:[#allocation3 + $0x80] sm:$0xff] %v6328_v22  ;;  %6361 = vst [vmem:[#allocation3 + $0x88] sm:$0xff] %v6329_v31 }
 0x41d   : > { %6362 = vst [vmem:[#allocation3 + $0x90] sm:$0xff] %v6330_v62  ;;  %6363 = vst [vmem:[#allocation3 + $0x98] sm:$0xff] %v6331_v53 }
 0x41e   : > { %6364 = vst [vmem:[#allocation3 + $0xa0] sm:$0xff] %v6332_v30  ;;  %6365 = vst [vmem:[#allocation3 + $0xa8] sm:$0xff] %v6333_v47 }
 0x41f   : > { %6366 = vst [vmem:[#allocation3 + $0xb0] sm:$0xff] %v6334_v39  ;;  %6367 = vst [vmem:[#allocation3 + $0xb8] sm:$0xff] %v6335_v35 }
 0x420   : > { %6368 = vst [vmem:[#allocation3 + $0xc0] sm:$0xff] %v6336_v34  ;;  %6369 = vst [vmem:[#allocation3 + $0xc8] sm:$0xff] %v6337_v11 }
 0x421   : > { %6370 = vst [vmem:[#allocation3 + $0xd0] sm:$0xff] %v6338_v63  ;;  %6371 = vst [vmem:[#allocation3 + $0xd8] sm:$0xff] %v6339_v58 }
 0x422   : > { %6372 = vst [vmem:[#allocation3 + $0xe0] sm:$0xff] %v6340_v1  ;;  %6373 = vst [vmem:[#allocation3 + $0xe8] sm:$0xff] %v6341_v21 }
 0x423   : > { %6374 = vst [vmem:[#allocation3 + $0xf0] sm:$0xff] %v6342_v55  ;;  %6375 = vst [vmem:[#allocation3 + $0xf8] sm:$0xff] %v6343_v7 }
 0x424 PF: > { %6377 = sbr.rel (%p10219_p5) target bundleno = 1082 (0x43a), region = 152  ;;  %v6378_v12 = vld [vmem:[#allocation2] sm:$0xff] (!%p10219_p5)  ;;  %v6379_v60 = vld [vmem:[#allocation2 + $0x8] sm:$0xff] (!%p10219_p5)  ;;  %v6380_v40 = vld [vmem:[#allocation2 + $0x10] sm:$0xff] (!%p10219_p5) }
 0x425   : > { %v6410_v59 = vadd.f32 (!%p10219_p5), %v6378_v12, %v11004_v4  ;;  %v6411_v36 = vadd.f32 (!%p10219_p5), %v6379_v60, %v11012_v0  ;;  %v6412_v10 = vadd.f32 (!%p10219_p5), %v6380_v40, %v11019_v13  ;;  %v6381_v2 = vld [vmem:[#allocation2 + $0x18] sm:$0xff] (!%p10219_p5)  ;;  %v6382_v18 = vld [vmem:[#allocation2 + $0x20] sm:$0xff] (!%p10219_p5)  ;;  %v6383_v5 = vld [vmem:[#allocation2 + $0x28] sm:$0xff] (!%p10219_p5) }
 0x426   : > { %v6413_v27 = vadd.f32 (!%p10219_p5), %v6381_v2, %v11025_v56  ;;  %v6414_v24 = vadd.f32 (!%p10219_p5), %v6382_v18, %v11044_v48  ;;  %v6415_v16 = vadd.f32 (!%p10219_p5), %v6383_v5, %v11052_v29  ;;  %v6384_v26 = vld [vmem:[#allocation2 + $0x30] sm:$0xff] (!%p10219_p5)  ;;  %v6385_v43 = vld [vmem:[#allocation2 + $0x38] sm:$0xff] (!%p10219_p5)  ;;  %v6386_v22 = vld [vmem:[#allocation2 + $0x40] sm:$0xff] (!%p10219_p5) }
 0x427   : > { %v6442_v31 = vmax.f32 (!%p10219_p5), %v6410_v59, 0.0  ;;  %v6443_v62 = vmax.f32 (!%p10219_p5), %v6411_v36, 0.0  ;;  %v6444_v53 = vmax.f32 (!%p10219_p5), %v6412_v10, 0.0  ;;  %v6416_v4 = vadd.f32 (!%p10219_p5), %v6384_v26, %v11059_v45  ;;  %v6387_v0 = vld [vmem:[#allocation2 + $0x48] sm:$0xff] (!%p10219_p5)  ;;  %v6388_v30 = vld [vmem:[#allocation2 + $0x50] sm:$0xff] (!%p10219_p5)  ;;  %v6389_v13 = vld [vmem:[#allocation2 + $0x58] sm:$0xff] (!%p10219_p5) }
 0x428   : > { %v6445_v47 = vmax.f32 (!%p10219_p5), %v6413_v27, 0.0  ;;  %v6446_v39 = vmax.f32 (!%p10219_p5), %v6414_v24, 0.0  ;;  %v6447_v35 = vmax.f32 (!%p10219_p5), %v6415_v16, 0.0  ;;  %v6417_v56 = vadd.f32 (!%p10219_p5), %v6385_v43, %v11065_v42  ;;  %v6390_v34 = vld [vmem:[#allocation2 + $0x60] sm:$0xff] (!%p10219_p5)  ;;  %v6391_v48 = vld [vmem:[#allocation2 + $0x68] sm:$0xff] (!%p10219_p5)  ;;  %v6392_v11 = vld [vmem:[#allocation2 + $0x70] sm:$0xff] (!%p10219_p5) }
 0x429   : > { %6474 = vst [vmem:[#allocation2] sm:$0xff] (!%p10219_p5), %v6442_v31  ;;  %6475 = vst [vmem:[#allocation2 + $0x8] sm:$0xff] (!%p10219_p5), %v6443_v62  ;;  %v6448_v29 = vmax.f32 (!%p10219_p5), %v6416_v4, 0.0  ;;  %v6418_v63 = vadd.f32 (!%p10219_p5), %v6386_v22, %v11084_v32  ;;  %v6419_v58 = vadd.f32 (!%p10219_p5), %v6387_v0, %v11092_v17  ;;  %v6420_v45 = vadd.f32 (!%p10219_p5), %v6388_v30, %v11099_v38  ;;  %v6393_v1 = vld [vmem:[#allocation2 + $0x78] sm:$0xff] (!%p10219_p5)  ;;  %v6394_v12 = vld [vmem:[#allocation2 + $0x80] sm:$0xff] (!%p10219_p5) }
 0x42a   : > { %6476 = vst [vmem:[#allocation2 + $0x10] sm:$0xff] (!%p10219_p5), %v6444_v53  ;;  %6477 = vst [vmem:[#allocation2 + $0x18] sm:$0xff] (!%p10219_p5), %v6445_v47  ;;  %v6449_v21 = vmax.f32 (!%p10219_p5), %v6417_v56, 0.0  ;;  %v6421_v42 = vadd.f32 (!%p10219_p5), %v6389_v13, %v11105_v33  ;;  %v6422_v55 = vadd.f32 (!%p10219_p5), %v6390_v34, %v11124_v41  ;;  %v6423_v7 = vadd.f32 (!%p10219_p5), %v6391_v48, %v11132_v9  ;;  %v6395_v60 = vld [vmem:[#allocation2 + $0x88] sm:$0xff] (!%p10219_p5)  ;;  %v6396_v40 = vld [vmem:[#allocation2 + $0x90] sm:$0xff] (!%p10219_p5) }
 0x42b   : > { %6478 = vst [vmem:[#allocation2 + $0x20] sm:$0xff] %v6446_v39  ;;  %6479 = vst [vmem:[#allocation2 + $0x28] sm:$0xff] %v6447_v35  ;;  %v6450_v32 = vmax.f32 %v6418_v63, 0.0  ;;  %v6451_v59 = vmax.f32 %v6419_v58, 0.0  ;;  %v6452_v17 = vmax.f32 %v6420_v45, 0.0  ;;  %v6424_v38 = vadd.f32 %v6392_v11, %v11139_v28  ;;  %v6397_v36 = vld [vmem:[#allocation2 + $0x98] sm:$0xff] }
 0x42c   : > { %6480 = vst [vmem:[#allocation2 + $0x30] sm:$0xff] %v6448_v29  ;;  %v6398_v10 = vld [vmem:[#allocation2 + $0xa0] sm:$0xff]  ;;  %v6399_v2 = vld [vmem:[#allocation2 + $0xa8] sm:$0xff]  ;;  %6481 = vst [vmem:[#allocation2 + $0x38] sm:$0xff] %v6449_v21  ;;  %v6453_v18 = vmax.f32 %v6421_v42, 0.0  ;;  %v6454_v5 = vmax.f32 %v6422_v55, 0.0  ;;  %v6425_v41 = vadd.f32 %v6393_v1, %v11145_v50  ;;  %v6426_v24 = vadd.f32 %v6394_v12, %v10998_v23 }
 0x42d   : > { %v6455_v33 = vmax.f32 %v6423_v7, 0.0  ;;  %v6400_v27 = vld [vmem:[#allocation2 + $0xb0] sm:$0xff]  ;;  %6482 = vst [vmem:[#allocation2 + $0x40] sm:$0xff] %v6450_v32  ;;  %6483 = vst [vmem:[#allocation2 + $0x48] sm:$0xff] %v6451_v59  ;;  %v6456_v9 = vmax.f32 %v6424_v38, 0.0  ;;  %v6427_v16 = vadd.f32 %v6395_v60, %v11007_v51  ;;  %v6428_v28 = vadd.f32 %v6396_v40, %v11015_v15  ;;  %v6401_v26 = vld [vmem:[#allocation2 + $0xb8] sm:$0xff] }
 0x42e   : > { %6484 = vst [vmem:[#allocation2 + $0x50] sm:$0xff] %v6452_v17  ;;  %6485 = vst [vmem:[#allocation2 + $0x58] sm:$0xff] %v6453_v18  ;;  %v6457_v43 = vmax.f32 %v6425_v41, 0.0  ;;  %v6429_v22 = vadd.f32 %v6397_v36, %v11022_v44  ;;  %v6430_v50 = vadd.f32 %v6398_v10, %v11038_v20  ;;  %v6431_v31 = vadd.f32 %v6399_v2, %v11047_v54  ;;  %v6402_v62 = vld [vmem:[#allocation2 + $0xc0] sm:$0xff]  ;;  %v6403_v53 = vld [vmem:[#allocation2 + $0xc8] sm:$0xff] }
 0x42f   : > { %6486 = vst [vmem:[#allocation2 + $0x60] sm:$0xff] %v6454_v5  ;;  %6487 = vst [vmem:[#allocation2 + $0x68] sm:$0xff] %v6455_v33  ;;  %v6404_v4 = vld [vmem:[#allocation2 + $0xd0] sm:$0xff]  ;;  %v6458_v23 = vmax.f32 %v6426_v24, 0.0  ;;  %v6459_v0 = vmax.f32 %v6427_v16, 0.0  ;;  %v6460_v51 = vmax.f32 %v6428_v28, 0.0  ;;  %v6432_v15 = vadd.f32 %v6400_v27, %v11055_v57 }
 0x430   : > { %6488 = vst [vmem:[#allocation2 + $0x70] sm:$0xff] %v6456_v9  ;;  %v6405_v30 = vld [vmem:[#allocation2 + $0xd8] sm:$0xff]  ;;  %v6406_v13 = vld [vmem:[#allocation2 + $0xe0] sm:$0xff]  ;;  %v6407_v47 = vld [vmem:[#allocation2 + $0xe8] sm:$0xff]  ;;  %v6461_v39 = vmax.f32 %v6429_v22, 0.0  ;;  %v6462_v35 = vmax.f32 %v6430_v50, 0.0  ;;  %v6433_v20 = vadd.f32 %v6401_v26, %v11062_v37  ;;  %v6434_v34 = vadd.f32 %v6402_v62, %v11078_v61 }
 0x431   : > { %6489 = vst [vmem:[#allocation2 + $0x78] sm:$0xff] %v6457_v43  ;;  %v6463_v44 = vmax.f32 %v6431_v31, 0.0  ;;  %v6408_v56 = vld [vmem:[#allocation2 + $0xf0] sm:$0xff]  ;;  %6490 = vst [vmem:[#allocation2 + $0x80] sm:$0xff] %v6458_v23  ;;  %v6464_v54 = vmax.f32 %v6432_v15, 0.0  ;;  %v6435_v48 = vadd.f32 %v6403_v53, %v11087_v19  ;;  %v6436_v57 = vadd.f32 %v6404_v4, %v11095_v3  ;;  %v6409_v11 = vld [vmem:[#allocation2 + $0xf8] sm:$0xff] }
 0x432   : > { %6491 = vst [vmem:[#allocation2 + $0x88] sm:$0xff] %v6459_v0  ;;  %6492 = vst [vmem:[#allocation2 + $0x90] sm:$0xff] %v6460_v51  ;;  %v6465_v29 = vmax.f32 %v6433_v20, 0.0  ;;  %v6437_v63 = vadd.f32 %v6405_v30, %v11102_v46  ;;  %v6438_v37 = vadd.f32 %v6406_v13, %v11118_v25  ;;  %v6439_v58 = vadd.f32 %v6407_v47, %v11127_v14 }
 0x433   : > { %6493 = vst [vmem:[#allocation2 + $0x98] sm:$0xff] %v6461_v39  ;;  %6494 = vst [vmem:[#allocation2 + $0xa0] sm:$0xff] %v6462_v35  ;;  %v6466_v45 = vmax.f32 %v6434_v34, 0.0  ;;  %v6467_v1 = vmax.f32 %v6435_v48, 0.0  ;;  %v6468_v21 = vmax.f32 %v6436_v57, 0.0  ;;  %v6440_v61 = vadd.f32 %v6408_v56, %v11135_v6 }
 0x434   : > { %6495 = vst [vmem:[#allocation2 + $0xa8] sm:$0xff] %v6463_v44  ;;  %6496 = vst [vmem:[#allocation2 + $0xb0] sm:$0xff] %v6464_v54  ;;  %v6469_v19 = vmax.f32 %v6437_v63, 0.0  ;;  %v6470_v3 = vmax.f32 %v6438_v37, 0.0  ;;  %v6471_v42 = vmax.f32 %v6439_v58, 0.0  ;;  %v6441_v55 = vadd.f32 %v6409_v11, %v11142_v8 }
 0x435   : > { %6497 = vst [vmem:[#allocation2 + $0xb8] sm:$0xff] %v6465_v29  ;;  %6498 = vst [vmem:[#allocation2 + $0xc0] sm:$0xff] %v6466_v45  ;;  %v6472_v46 = vmax.f32 %v6440_v61, 0.0 }
 0x436   : > { %6499 = vst [vmem:[#allocation2 + $0xc8] sm:$0xff] %v6467_v1  ;;  %6500 = vst [vmem:[#allocation2 + $0xd0] sm:$0xff] %v6468_v21  ;;  %v6473_v25 = vmax.f32 %v6441_v55, 0.0 }
 0x437   : > { %6501 = vst [vmem:[#allocation2 + $0xd8] sm:$0xff] %v6469_v19  ;;  %6502 = vst [vmem:[#allocation2 + $0xe0] sm:$0xff] %v6470_v3 }
 0x438   : > { %6503 = vst [vmem:[#allocation2 + $0xe8] sm:$0xff] %v6471_v42  ;;  %6504 = vst [vmem:[#allocation2 + $0xf0] sm:$0xff] %v6472_v46 }
 0x439   : > { %6505 = vst [vmem:[#allocation2 + $0xf8] sm:$0xff] %v6473_v25 }
 0x43a PF: > { %p8193_p8 = scmp.ne.s32.totalorder %s9765_s27, 4 }
 0x43b   : > { %v9231_v14 = vld [vmem:[%s11785_s5 + $0x40] sm:$0xff] (!%p8193_p8)   ;;  %v9233_v8 = vld [vmem:[%s11785_s5 + $0x48] sm:$0xff] (!%p8193_p8)   ;;  %v9235_v12 = vld [vmem:[%s11785_s5 + $0x50] sm:$0xff] (!%p8193_p8)   ;;  %s11874_s12 = sld [smem:[#allocation43_spill]] (!%p8193_p8)  ;;  %s11876_s24 = sld [smem:[#allocation41_spill]] (!%p8193_p8)  ;;  %vm7616_vm3 = vcmask (!%p8193_p8), 523264  }
 0x43c   : > { %6509 = sbr.rel (%p8193_p8) target bundleno = 1894 (0x766), region = 156  ;;  %v9232_v6 = vld [vmem:[%s11785_s5] sm:$0xff] (!%p8193_p8)   ;;  %8302 = vmatprep.subr.bf16.mxu1 (!%p8193_p8), %v9231_v14  ;;  %v9234_v7 = vld [vmem:[%s11785_s5 + $0x8] sm:$0xff] (!%p8193_p8)   ;;  %v9236_v60 = vld [vmem:[%s11785_s5 + $0x10] sm:$0xff] (!%p8193_p8)   ;;  %s11879_s7 = sld [smem:[#allocation44_spill]] (!%p8193_p8)  ;;  %vm7082_vm4 = vcmask (!%p8193_p8), 1041409  }
 0x43d   : > { %8303 = vmatpush3.bf16.msra.mxu1 (!%p8193_p8), %v9232_v6  ;;  %v9237_v40 = vld [vmem:[%s11785_s5 + $0x58] sm:$0xff] (!%p8193_p8)   ;;  %v9239_v59 = vld [vmem:[%s11785_s5 + $0x60] sm:$0xff] (!%p8193_p8)   ;;  %v9241_v38 = vld [vmem:[%s11785_s5 + $0x68] sm:$0xff] (!%p8193_p8)   ;;  %vm7673_vm5 = vcmask (!%p8193_p8), 517120   ;;  %vm7088_vm6 = vcmask (!%p8193_p8), 1041408   ;;  %vm7103_vm7 = vcmask (!%p8193_p8), 1024  }
 0x43e   : > { %8304 = vmatprep.subr.bf16.mxu1 (!%p8193_p8), %v9233_v8  ;;  %v9238_v32 = vld [vmem:[%s11785_s5 + $0x18] sm:$0xff] (!%p8193_p8)   ;;  %v9240_v17 = vld [vmem:[%s11785_s5 + $0x20] sm:$0xff] (!%p8193_p8)   ;;  %v9242_v2 = vld [vmem:[%s11785_s5 + $0x28] sm:$0xff] (!%p8193_p8)   ;;  %s11880_s6 = sld [smem:[#allocation46_spill]] (!%p8193_p8) }
 0x43f   : > { %v6511_v36 = vld [vmem:[#allocation2 + $0x8] sm:$0xff] (!%p8193_p8)  ;;  %v9243_v5 = vld [vmem:[%s11785_s5 + $0x70] sm:$0xff] (!%p8193_p8)   ;;  %v9245_v28 = vld [vmem:[%s11785_s5 + $0x78] sm:$0xff] (!%p8193_p8)  }
 0x440   : > { %v6513_v10 = vld [vmem:[#allocation2 + $0x18] sm:$0xff] (!%p8193_p8)  ;;  %v9244_v24 = vld [vmem:[%s11785_s5 + $0x30] sm:$0xff] (!%p8193_p8)   ;;  %v6510_v50 = vld [vmem:[#allocation2] sm:$0xff] (!%p8193_p8) }
 0x441   : > { %8305 = vmatpush3.bf16.msra.mxu1 (!%p8193_p8), %v9234_v7  ;;  %v6543_v18 = vpack.c.bf16 (!%p8193_p8), %v6513_v10, %v6511_v36  ;;  %s11875_s17 = smov (!%p8193_p8), %s11874_s12  ;;  %v9247_v33 = vld [vmem:[%s11874_s12 + $0x40] sm:$0xff] (!%p8193_p8)   ;;  %v9246_v43 = vld [vmem:[%s11785_s5 + $0x38] sm:$0xff] (!%p8193_p8)   ;;  %v6512_v31 = vld [vmem:[#allocation2 + $0x10] sm:$0xff] (!%p8193_p8)  ;;  %s11877_s12 = sld [smem:[#allocation42_spill]] (!%p8193_p8) }
 0x442   : > { %8306 = vmatprep.subr.bf16.mxu1 (!%p8193_p8), %v9235_v12  ;;  %v9248_v41 = vld [vmem:[%s11875_s17] sm:$0xff] (!%p8193_p8)   ;;  %8238 = vmatprep.subr.bf16.mxu0 (!%p8193_p8), %v9247_v33  ;;  %v9249_v27 = vld [vmem:[%s11875_s17 + $0x48] sm:$0xff] (!%p8193_p8)   ;;  %v9251_v16 = vld [vmem:[%s11875_s17 + $0x50] sm:$0xff] (!%p8193_p8)   ;;  %v6542_v23 = vpack.c.bf16 (!%p8193_p8), %v6512_v31, %v6510_v50 }
 0x443   : > { %7265 = vmatprep.mubr.bf16.mxu1 %v6543_v18  ;;  %8239 = vmatpush3.bf16.msra.mxu0 %v9248_v41  ;;  %v9250_v9 = vld [vmem:[%s11875_s17 + $0x8] sm:$0xff]   ;;  %v9252_v26 = vld [vmem:[%s11875_s17 + $0x10] sm:$0xff]   ;;  %v9253_v22 = vld [vmem:[%s11875_s17 + $0x58] sm:$0xff]  }
 0x444   : > { %6718 = vmatprep.mubr.bf16.mxu0 %v6543_v18  ;;  %8240 = vmatprep.subr.bf16.mxu0 %v9249_v27  ;;  %v6515_v62 = vld [vmem:[#allocation2 + $0x28] sm:$0xff]  ;;  %v6517_v53 = vld [vmem:[#allocation2 + $0x38] sm:$0xff]  ;;  %v9255_v0 = vld [vmem:[%s11875_s17 + $0x60] sm:$0xff]   ;;  %v9629_v27 = vmov 1  }
 0x445   : > { %8307 = vmatpush3.bf16.msra.mxu1 %v9236_v60  ;;  %v9254_v4 = vld [vmem:[%s11875_s17 + $0x18] sm:$0xff]   ;;  %v6545_v51 = vpack.c.bf16 %v6517_v53, %v6515_v62  ;;  %v6514_v15 = vld [vmem:[#allocation2 + $0x20] sm:$0xff]  ;;  %v6516_v30 = vld [vmem:[#allocation2 + $0x30] sm:$0xff]  ;;  %9212 = vset.pattern.permute.xlu1 %v9629_v27 }
 0x446   : > { %8308 = vmatprep.subr.bf16.mxu1 %v9237_v40  ;;  %v9256_v13 = vld [vmem:[%s11875_s17 + $0x20] sm:$0xff]   ;;  %v9257_v47 = vld [vmem:[%s11875_s17 + $0x68] sm:$0xff]   ;;  %v6521_v35 = vld [vmem:[#allocation2 + $0x58] sm:$0xff]  ;;  %v6544_v20 = vpack.c.bf16 %v6516_v30, %v6514_v15 }
 0x447   : > { %8241 = vmatpush3.bf16.msra.mxu0 %v9250_v9  ;;  %v6519_v39 = vld [vmem:[#allocation2 + $0x48] sm:$0xff]  ;;  %v9259_v56 = vld [vmem:[%s11875_s17 + $0x70] sm:$0xff]   ;;  %v9261_v48 = vld [vmem:[%s11875_s17 + $0x78] sm:$0xff]   ;;  %v9630_v9 = vmov 0   ;;  %s11878_s18 = smov %s11877_s12 }
 0x448   : > { %8242 = vmatprep.subr.bf16.mxu0 %v9251_v16  ;;  %v9258_v44 = vld [vmem:[%s11875_s17 + $0x28] sm:$0xff]   ;;  %v6547_v54 = vpack.c.bf16 %v6521_v35, %v6519_v39  ;;  %v9260_v34 = vld [vmem:[%s11875_s17 + $0x30] sm:$0xff]   ;;  %v6518_v57 = vld [vmem:[#allocation2 + $0x40] sm:$0xff]  ;;  %9211 = vset.pattern.permute.xlu0 %v9630_v9 }
 0x449   : > { %8309 = vmatpush3.bf16.msra.mxu1 %v9238_v32  ;;  %v6520_v11 = vld [vmem:[#allocation2 + $0x50] sm:$0xff]  ;;  %v6523_v29 = vld [vmem:[#allocation2 + $0x68] sm:$0xff]  ;;  %v6525_v63 = vld [vmem:[#allocation2 + $0x78] sm:$0xff] }
 0x44a   : > { %8310 = vmatprep.subr.bf16.mxu1 %v9239_v59  ;;  %v9262_v37 = vld [vmem:[%s11875_s17 + $0x38] sm:$0xff]   ;;  %v6546_v58 = vpack.c.bf16 %v6520_v11, %v6518_v57  ;;  %v6549_v45 = vpack.c.bf16 %v6525_v63, %v6523_v29  ;;  %v6522_v1 = vld [vmem:[#allocation2 + $0x60] sm:$0xff]  ;;  %v6524_v21 = vld [vmem:[#allocation2 + $0x70] sm:$0xff] }
 0x44b   : > { %8243 = vmatpush3.bf16.msra.mxu0 %v9252_v26  ;;  %v6527_v61 = vld [vmem:[#allocation2 + $0x88] sm:$0xff]  ;;  %v6529_v19 = vld [vmem:[#allocation2 + $0x98] sm:$0xff]  ;;  %v6548_v3 = vpack.c.bf16 %v6524_v21, %v6522_v1  ;;  %v6526_v55 = vld [vmem:[#allocation2 + $0x80] sm:$0xff] }
 0x44c   : > { %8244 = vmatprep.subr.bf16.mxu0 %v9253_v22  ;;  %v6551_v42 = vpack.c.bf16 %v6529_v19, %v6527_v61  ;;  %v6528_v46 = vld [vmem:[#allocation2 + $0x90] sm:$0xff]  ;;  %v6531_v25 = vld [vmem:[#allocation2 + $0xa8] sm:$0xff]  ;;  %v6533_v14 = vld [vmem:[#allocation2 + $0xb8] sm:$0xff] }
 0x44d   : > { %8311 = vmatpush3.bf16.msra.mxu1 %v9240_v17  ;;  %v6550_v6 = vpack.c.bf16 %v6528_v46, %v6526_v55  ;;  %v6553_v8 = vpack.c.bf16 %v6533_v14, %v6531_v25  ;;  %v6530_v7 = vld [vmem:[#allocation2 + $0xa0] sm:$0xff]  ;;  %v6532_v12 = vld [vmem:[#allocation2 + $0xb0] sm:$0xff]  ;;  %v6535_v60 = vld [vmem:[#allocation2 + $0xc8] sm:$0xff] }
 0x44e   : > { %8312 = vmatprep.subr.bf16.mxu1 %v9241_v38  ;;  %v6537_v40 = vld [vmem:[#allocation2 + $0xd8] sm:$0xff]  ;;  %v6552_v32 = vpack.c.bf16 %v6532_v12, %v6530_v7  ;;  %v6534_v17 = vld [vmem:[#allocation2 + $0xc0] sm:$0xff]  ;;  %v6536_v38 = vld [vmem:[#allocation2 + $0xd0] sm:$0xff] }
 0x44f   : > { %8245 = vmatpush3.bf16.msra.mxu0 %v9254_v4  ;;  %v6555_v59 = vpack.c.bf16 %v6537_v40, %v6535_v60  ;;  %v6539_v36 = vld [vmem:[#allocation2 + $0xe8] sm:$0xff]  ;;  %v6541_v10 = vld [vmem:[#allocation2 + $0xf8] sm:$0xff]  ;;  %v6540_v33 = vld [vmem:[#allocation2 + $0xf0] sm:$0xff] }
 0x450   : > { %8246 = vmatprep.subr.bf16.mxu0 %v9255_v0  ;;  %v6557_v18 = vpack.c.bf16 %v6541_v10, %v6539_v36  ;;  %v11349_v50 = vld [vmem:[#allocation19] ss:$0 sm:$0xff] }
 0x451   : > { %8313 = vmatpush3.bf16.msra.mxu1 %v9242_v2  ;;  %v6554_v2 = vpack.c.bf16 %v6536_v38, %v6534_v17 }
 0x452   : > { %8314 = vmatprep.subr.bf16.mxu1 %v9243_v5  ;;  %v6538_v5 = vld [vmem:[#allocation2 + $0xe0] sm:$0xff] }
 0x453   : > { %8247 = vmatpush3.bf16.msra.mxu0 %v9256_v13  ;;  %v6556_v41 = vpack.c.bf16 %v6540_v33, %v6538_v5 }
 0x454   : > { %8248 = vmatprep.subr.bf16.mxu0 %v9257_v47 }
 0x455   : > { %8315 = vmatpush3.bf16.msra.mxu1 %v9244_v24 }
 0x456   : > { %8316 = vmatprep.subr.bf16.mxu1 %v9245_v28  ;;  %v11347_v28 = vld [vmem:[#allocation18] ss:$0 sm:$0xff] }
 0x457   : > { %8249 = vmatpush3.bf16.msra.mxu0 %v9258_v44 }
 0x458   : > { %8250 = vmatprep.subr.bf16.mxu0 %v9259_v56 }
 0x459   : > { %8317 = vmatpush3.bf16.msra.mxu1 %v9246_v43 }
 0x45b   : > { %8251 = vmatpush3.bf16.msra.mxu0 %v9260_v34 }
 0x45c   : > { %7266 = vmatmul.mubr.bf16.vlgmr.msra.gmra.mrb[0].mxu1 %v6542_v23  ;;  %8252 = vmatprep.subr.bf16.mxu0 %v9261_v48 }
 0x45d   : > { %7273 = vmatprep.mubr.bf16.mxu1 %v6545_v51 }
 0x45f   : > { %8253 = vmatpush3.bf16.msra.mxu0 %v9262_v37 }
 0x462   : > { %6719 = vmatmul.mubr.bf16.vlgmr.msra.gmra.mrb[0].mxu0 %v6542_v23 }
 0x463   : > { %6726 = vmatprep.mubr.bf16.mxu0 %v6545_v51 }
 0x464   : > { %7274 = vmatmul.mubr.bf16.gmra.mrb[4].mxu1 %v6544_v20 }
 0x465   : > { %7281 = vmatprep.mubr.bf16.mxu1 %v6547_v54 }
 0x46a   : > { %6727 = vmatmul.mubr.bf16.gmra.mrb[4].mxu0 %v6544_v20 }
 0x46b   : > { %6734 = vmatprep.mubr.bf16.mxu0 %v6547_v54 }
 0x46c   : > { %7282 = vmatmul.mubr.bf16.gmra.mrb[8].mxu1 %v6546_v58 }
 0x46d   : > { %7289 = vmatprep.mubr.bf16.mxu1 %v6549_v45 }
 0x472   : > { %6735 = vmatmul.mubr.bf16.gmra.mrb[8].mxu0 %v6546_v58 }
 0x473   : > { %6742 = vmatprep.mubr.bf16.mxu0 %v6549_v45 }
 0x474   : > { %7290 = vmatmul.mubr.bf16.gmra.mrb[12].mxu1 %v6548_v3 }
 0x475   : > { %7297 = vmatprep.mubr.bf16.mxu1 %v6551_v42 }
 0x47a   : > { %6743 = vmatmul.mubr.bf16.gmra.mrb[12].mxu0 %v6548_v3 }
 0x47b   : > { %6750 = vmatprep.mubr.bf16.mxu0 %v6551_v42 }
 0x47c   : > { %7298 = vmatmul.mubr.bf16.gmra.mrb[16].mxu1 %v6550_v6 }
 0x47d   : > { %7305 = vmatprep.mubr.bf16.mxu1 %v6553_v8 }
 0x482   : > { %6751 = vmatmul.mubr.bf16.gmra.mrb[16].mxu0 %v6550_v6 }
 0x483   : > { %6758 = vmatprep.mubr.bf16.mxu0 %v6553_v8 }
 0x484   : > { %7306 = vmatmul.mubr.bf16.gmra.mrb[20].mxu1 %v6552_v32 }
 0x485   : > { %7313 = vmatprep.mubr.bf16.mxu1 %v6555_v59 }
 0x48a   : > { %6759 = vmatmul.mubr.bf16.gmra.mrb[20].mxu0 %v6552_v32 }
 0x48b   : > { %6766 = vmatprep.mubr.bf16.mxu0 %v6555_v59 }
 0x48c   : > { %7314 = vmatmul.mubr.bf16.gmra.mrb[24].mxu1 %v6554_v2 }
 0x48d   : > { %7321 = vmatprep.mubr.bf16.mxu1 %v6557_v18 }
 0x492   : > { %6767 = vmatmul.mubr.bf16.gmra.mrb[24].mxu0 %v6554_v2 }
 0x493   : > { %6774 = vmatprep.mubr.bf16.mxu0 %v6557_v18 }
 0x494   : > { %7322 = vmatmul.mubr.bf16.gmra.mrb[28].mxu1 %v6556_v41 }
 0x49a   : > { %6775 = vmatmul.mubr.bf16.gmra.mrb[28].mxu0 %v6556_v41 }
 0x52f   : > { %v8318_v24 = vpop.f32.mrb[0].mxu1 }
 0x530   : > { %v8319_v16 = vpop.f32.mrb[1].mxu1 }
 0x531   : > { %v8320_v26 = vadd.f32 %v8319_v16, %v8318_v24  ;;  %v8321_v43 = vpop.f32.mrb[2].mxu1 }
 0x532   : > { %v8322_v22 = vpop.f32.mrb[3].mxu1 }
 0x533   : > { %v7337_v31 = vmul.f32 %v8320_v26, %v11347_v28  ;;  %v8323_v62 = vadd.f32 %v8322_v22, %v8321_v43 }
 0x535   : > { %v7338_v53 = vmul.f32 %v8323_v62, %v11347_v28  ;;  %v7360_v4 = vadd.f32 %v11349_v50, %v7337_v31  ;;  %v8254_v37 = vpop.f32.mrb[0].mxu0 }
 0x536   : > { %v8255_v45 = vpop.f32.mrb[1].mxu0 }
 0x537   : > { %v8324_v23 = vpop.f32.mrb[4].mxu1  ;;  %v7376_v0 = vmax.f32 %v7360_v4, 0.0  ;;  %v7361_v15 = vadd.f32 %v11349_v50, %v7338_v53  ;;  %v11363_v61 = vadd.f32 %v8255_v45, %v8254_v37  ;;  %v8257_v19 = vpop.f32.mrb[2].mxu0 }
 0x538   : > { %v8325_v51 = vpop.f32.mrb[5].mxu1  ;;  %v8258_v3 = vpop.f32.mrb[3].mxu0 }
 0x539   : > { %v8326_v30 = vadd.f32 %v8325_v51, %v8324_v23  ;;  %v8327_v13 = vpop.f32.mrb[6].mxu1  ;;  %7521 = vperm.xlu1 %9212, %v7376_v0   ;;  %7410 = vperm.xlu0 %9211, %v7376_v0   ;;  %v7377_v44 = vmax.f32 %v7361_v15, 0.0  ;;  %v11367_v46 = vadd.f32 %v8258_v3, %v8257_v19 }
 0x53a   : > { %v8328_v47 = vpop.f32.mrb[7].mxu1 }
 0x53b   : > { %v7339_v39 = vmul.f32 %v8326_v30, %v11347_v28  ;;  %v8329_v35 = vadd.f32 %v8328_v47, %v8327_v13 }
 0x53d   : > { %v7340_v20 = vmul.f32 %v8329_v35, %v11347_v28  ;;  %9213 = vset.pattern.permute.xlu1 %v9630_v9  ;;  %9214 = vset.pattern.permute.xlu0 %v9629_v27  ;;  %v7362_v56 = vadd.f32 %v11349_v50, %v7339_v39  ;;  %v8260_v60 = vpop.f32.mrb[4].mxu0 }
 0x53e   : > { %7415 = vperm.xlu1 %9213, %v7377_v44   ;;  %7525 = vperm.xlu0 %9214, %v7377_v44   ;;  %v8261_v32 = vpop.f32.mrb[5].mxu0 }
 0x53f   : > { %v8330_v54 = vpop.f32.mrb[8].mxu1  ;;  %v7378_v34 = vmax.f32 %v7362_v56, 0.0  ;;  %v7363_v48 = vadd.f32 %v11349_v50, %v7340_v20  ;;  %v11376_v36 = vadd.f32 %v8261_v32, %v8260_v60  ;;  %v8263_v10 = vpop.f32.mrb[6].mxu0 }
 0x540   : > { %v8331_v57 = vpop.f32.mrb[9].mxu1  ;;  %v8264_v2 = vpop.f32.mrb[7].mxu0 }
 0x541   : > { %v8332_v11 = vadd.f32 %v8331_v57, %v8330_v54  ;;  %v8333_v29 = vpop.f32.mrb[10].mxu1  ;;  %v7379_v63 = vmax.f32 %v7363_v48, 0.0  ;;  %v11379_v18 = vadd.f32 %v8264_v2, %v8263_v10 }
 0x542   : > { %v8334_v58 = vpop.f32.mrb[11].mxu1  ;;  %7420 = vperm.xlu1 %9213, %v7378_v34   ;;  %9216 = vset.pattern.permute.xlu0 %v9630_v9 }
 0x543   : > { %v7341_v1 = vmul.f32 %v8332_v11, %v11347_v28  ;;  %v8335_v21 = vadd.f32 %v8334_v58, %v8333_v29  ;;  %7425 = vperm.xlu0 %9216, %v7379_v63  }
 0x545   : > { %v7342_v42 = vmul.f32 %v8335_v21, %v11347_v28  ;;  %v7364_v55 = vadd.f32 %v11349_v50, %v7341_v1  ;;  %v8266_v26 = vpop.f32.mrb[8].mxu0 }
 0x546   : > { %9215 = vset.pattern.permute.xlu1 %v9629_v27  ;;  %v8267_v31 = vpop.f32.mrb[9].mxu0 }
 0x547   : > { %7529 = vperm.xlu1 %9215, %v7378_v34   ;;  %9217 = vset.pattern.permute.xlu0 %v9629_v27  ;;  %v8336_v25 = vpop.f32.mrb[12].mxu1  ;;  %v7365_v14 = vadd.f32 %v11349_v50, %v7342_v42  ;;  %v7380_v8 = vmax.f32 %v7364_v55, 0.0  ;;  %v11385_v4 = vadd.f32 %v8267_v31, %v8266_v26  ;;  %v8269_v23 = vpop.f32.mrb[10].mxu0 }
 0x548   : > { %7533 = vperm.xlu0 %9217, %v7379_v63   ;;  %v8337_v6 = vpop.f32.mrb[13].mxu1  ;;  %v8270_v0 = vpop.f32.mrb[11].mxu0 }
 0x549   : > { %v8338_v7 = vadd.f32 %v8337_v6, %v8336_v25  ;;  %v8339_v12 = vpop.f32.mrb[14].mxu1  ;;  %v7381_v38 = vmax.f32 %v7365_v14, 0.0  ;;  %v11390_v30 = vadd.f32 %v8270_v0, %v8269_v23 }
 0x54a   : > { %v8340_v40 = vpop.f32.mrb[15].mxu1 }
 0x54b   : > { %v7343_v59 = vmul.f32 %v8338_v7, %v11347_v28  ;;  %9218 = vset.pattern.permute.xlu1 %v9630_v9  ;;  %v11374_v17 = vadd.f32 %v8340_v40, %v8339_v12 }
 0x54c   : > { %7430 = vperm.xlu1 %9218, %v7380_v8   ;;  %9220 = vset.pattern.permute.xlu0 %v9630_v9 }
 0x54d   : > { %7435 = vperm.xlu0 %9220, %v7381_v38   ;;  %v7366_v5 = vadd.f32 %v11349_v50, %v7343_v59  ;;  %v8272_v54 = vpop.f32.mrb[12].mxu0 }
 0x54e   : > { %v8273_v48 = vpop.f32.mrb[13].mxu0 }
 0x54f   : > { %v8342_v33 = vpop.f32.mrb[16].mxu1  ;;  %v7382_v22 = vmax.f32 %v7366_v5, 0.0  ;;  %v11396_v29 = vadd.f32 %v8273_v48, %v8272_v54  ;;  %v8275_v63 = vpop.f32.mrb[14].mxu0  ;;  %v11419_v54 = vld [vmem:[#allocation8] ss:$0 sm:$0xff] }
 0x550   : > { %9219 = vset.pattern.permute.xlu1 %v9629_v27  ;;  %v8343_v41 = vpop.f32.mrb[17].mxu1  ;;  %v8276_v37 = vpop.f32.mrb[15].mxu0 }
 0x551   : > { %v8344_v24 = vadd.f32 %v8343_v41, %v8342_v33  ;;  %7537 = vperm.xlu1 %9219, %v7380_v8   ;;  %9221 = vset.pattern.permute.xlu0 %v9629_v27  ;;  %v8345_v16 = vpop.f32.mrb[18].mxu1  ;;  %v11400_v1 = vadd.f32 %v8276_v37, %v8275_v63 }
 0x552   : > { %7541 = vperm.xlu0 %9221, %v7381_v38   ;;  %v8346_v43 = vpop.f32.mrb[19].mxu1 }
 0x553   : > { %v7345_v62 = vmul.f32 %v8344_v24, %v11347_v28  ;;  %v8347_v53 = vadd.f32 %v8346_v43, %v8345_v16 }
 0x555   : > { %v7346_v51 = vmul.f32 %v8347_v53, %v11347_v28  ;;  %9222 = vset.pattern.permute.xlu1 %v9630_v9  ;;  %v7368_v15 = vadd.f32 %v11349_v50, %v7345_v62  ;;  %v8278_v6 = vpop.f32.mrb[16].mxu0 }
 0x556   : > { %7440 = vperm.xlu1 %9222, %v7382_v22   ;;  %9224 = vset.pattern.permute.xlu0 %v9630_v9  ;;  %v8279_v7 = vpop.f32.mrb[17].mxu0 }
 0x557   : > { %v8348_v13 = vpop.f32.mrb[20].mxu1  ;;  %v7384_v47 = vmax.f32 %v7368_v15, 0.0  ;;  %v7369_v39 = vadd.f32 %v11349_v50, %v7346_v51  ;;  %v8280_v60 = vadd.f32 %v8279_v7, %v8278_v6  ;;  %v8281_v40 = vpop.f32.mrb[18].mxu0  ;;  %v11410_v51 = vld [vmem:[#allocation7] ss:$0 sm:$0xff] }
 0x558   : > { %v8349_v35 = vpop.f32.mrb[21].mxu1  ;;  %v8282_v59 = vpop.f32.mrb[19].mxu0 }
 0x559   : > { %v8350_v44 = vadd.f32 %v8349_v35, %v8348_v13  ;;  %7450 = vperm.xlu0 %9224, %v7384_v47   ;;  %v8351_v20 = vpop.f32.mrb[22].mxu1  ;;  %v7385_v56 = vmax.f32 %v7369_v39, 0.0  ;;  %v11405_v10 = vadd.f32 %v8282_v59, %v8281_v40 }
 0x55a   : > { %9223 = vset.pattern.permute.xlu1 %v9629_v27  ;;  %v8352_v34 = vpop.f32.mrb[23].mxu1 }
 0x55b   : > { %v7347_v57 = vmul.f32 %v8350_v44, %v11347_v28  ;;  %7545 = vperm.xlu1 %9223, %v7382_v22   ;;  %v8353_v11 = vadd.f32 %v8352_v34, %v8351_v20  ;;  %v6798_v20 = vmul.f32 %v8280_v60, %v11410_v51 }
 0x55d   : > { %v7348_v58 = vmul.f32 %v8353_v11, %v11347_v28  ;;  %7455 = vperm.xlu0 %9224, %v7385_v56   ;;  %v7370_v45 = vadd.f32 %v11349_v50, %v7347_v57  ;;  %v8284_v43 = vpop.f32.mrb[20].mxu0 }
 0x55e   : > { %v8285_v31 = vpop.f32.mrb[21].mxu0 }
 0x55f   : > { %7553 = vperm.xlu1 %9223, %v7384_v47   ;;  %v7386_v21 = vmax.f32 %v7370_v45, 0.0  ;;  %v8354_v19 = vpop.f32.mrb[24].mxu1  ;;  %v7371_v3 = vadd.f32 %v11349_v50, %v7348_v58  ;;  %v8286_v23 = vadd.f32 %v8285_v31, %v8284_v43  ;;  %v8287_v0 = vpop.f32.mrb[22].mxu0  ;;  %v7344_v47 = vmul.f32 %v11374_v17, %v11347_v28 }
 0x560   : > { %v8355_v42 = vpop.f32.mrb[25].mxu1  ;;  %v8288_v13 = vpop.f32.mrb[23].mxu0  ;;  %v6821_v17 = vadd.f32 %v11419_v54, %v6798_v20  ;;  %v6795_v43 = vmul.f32 %v11390_v30, %v11410_v51  ;;  %v6792_v31 = vmul.f32 %v11376_v36, %v11410_v51  ;;  %v6793_v30 = vmul.f32 %v11379_v18, %v11410_v51 }
 0x561   : > { %7460 = vperm.xlu0 %9224, %v7386_v21   ;;  %v8356_v55 = vadd.f32 %v8355_v42, %v8354_v19  ;;  %v8357_v25 = vpop.f32.mrb[26].mxu1  ;;  %v7387_v14 = vmax.f32 %v7371_v3, 0.0  ;;  %v8289_v44 = vadd.f32 %v8288_v13, %v8287_v0  ;;  %v7367_v48 = vadd.f32 %v11349_v50, %v7344_v47 }
 0x562   : > { %v8358_v8 = vpop.f32.mrb[27].mxu1  ;;  %v6800_v19 = vmul.f32 %v8286_v23, %v11410_v51  ;;  %v6818_v0 = vadd.f32 %v11419_v54, %v6795_v43  ;;  %v6815_v13 = vadd.f32 %v11419_v54, %v6792_v31  ;;  %v6796_v36 = vmul.f32 %v11396_v29, %v11410_v51  ;;  %v7512_v43 = vld [vmem:[%s11878_s18 + $0x40] sm:$0xff] }
 0x563   : > { %7557 = vperm.xlu1 %9223, %v7385_v56   ;;  %v8359_v12 = vadd.f32 %v8358_v8, %v8357_v25  ;;  %v7349_v32 = vmul.f32 %v8356_v55, %v11347_v28  ;;  %v7383_v45 = vmax.f32 %v7367_v48, 0.0  ;;  %v6801_v25 = vmul.f32 %v8289_v44, %v11410_v51 }
 0x564   : > { %v6823_v6 = vadd.f32 %v11419_v54, %v6800_v19  ;;  %v6834_v47 = vmax.f32 %v6818_v0, 0.0  ;;  %v6819_v18 = vadd.f32 %v11419_v54, %v6796_v36  ;;  %v7507_v36 = vld [vmem:[%s11878_s18 + $0x18] sm:$0xff] }
 0x565   : > { %v7350_v38 = vmul.f32 %v8359_v12, %v11347_v28  ;;  %7465 = vperm.xlu0 %9224, %v7387_v14   ;;  %v7372_v41 = vadd.f32 %v11349_v50, %v7349_v32  ;;  %v8290_v57 = vpop.f32.mrb[24].mxu0  ;;  %v6824_v59 = vadd.f32 %v11419_v54, %v6801_v25 }
 0x566   : > { %v8291_v11 = vpop.f32.mrb[25].mxu0  ;;  %v6839_v32 = vmax.f32 %v6823_v6, 0.0  ;;  %v6835_v29 = vmax.f32 %v6819_v18, 0.0  ;;  %v7403_v18 = vld [vmem:[%s11876_s24 + $0x58] sm:$0xff] }
 0x567   : > { %v8360_v2 = vpop.f32.mrb[28].mxu1  ;;  %7561 = vperm.xlu1 %9223, %v7386_v21   ;;  %v7373_v5 = vadd.f32 %v11349_v50, %v7350_v38  ;;  %v7388_v15 = vmax.f32 %v7372_v41, 0.0  ;;  %v8292_v63 = vadd.f32 %v8291_v11, %v8290_v57  ;;  %v8293_v37 = vpop.f32.mrb[26].mxu0  ;;  %v6794_v38 = vmul.f32 %v11385_v4, %v11410_v51 }
 0x568   : > { %v8361_v33 = vpop.f32.mrb[29].mxu1  ;;  %v8294_v58 = vpop.f32.mrb[27].mxu0 }
 0x569   : > { %v8362_v24 = vadd.f32 %v8361_v33, %v8360_v2  ;;  %v8363_v16 = vpop.f32.mrb[30].mxu1  ;;  %v7389_v26 = vmax.f32 %v7373_v5, 0.0  ;;  %v8295_v21 = vadd.f32 %v8294_v58, %v8293_v37  ;;  %v6802_v40 = vmul.f32 %v8292_v63, %v11410_v51 }
 0x56a   : > { %v8364_v22 = vpop.f32.mrb[31].mxu1  ;;  %v6840_v2 = vmax.f32 %v6824_v59, 0.0  ;;  %v6799_v33 = vmul.f32 %v11405_v10, %v11410_v51  ;;  %v7505_v59 = vld [vmem:[%s11877_s12 + $0x8] sm:$0xff] }
 0x56b   : > { %v7351_v62 = vmul.f32 %v8362_v24, %v11347_v28  ;;  %v8365_v53 = vadd.f32 %v8364_v22, %v8363_v16  ;;  %7565 = vperm.xlu1 %9223, %v7387_v14   ;;  %7475 = vperm.xlu0 %9224, %v7389_v26   ;;  %v6825_v5 = vadd.f32 %v11419_v54, %v6802_v40 }
 0x56c   : > { %v6803_v41 = vmul.f32 %v8295_v21, %v11410_v51  ;;  %v6817_v16 = vadd.f32 %v11419_v54, %v6794_v38  ;;  %v6822_v4 = vadd.f32 %v11419_v54, %v6799_v33  ;;  %v7504_v38 = vld [vmem:[%s11878_s18] sm:$0xff] }
 0x56d   : > { %v7352_v39 = vmul.f32 %v8365_v53, %v11347_v28  ;;  %v7374_v35 = vadd.f32 %v11349_v50, %v7351_v62  ;;  %v6790_v28 = vmul.f32 %v11363_v61, %v11410_v51  ;;  %v8296_v42 = vpop.f32.mrb[28].mxu0  ;;  %v6841_v24 = vmax.f32 %v6825_v5, 0.0  ;;  %v7513_v5 = vld [vmem:[%s11878_s18 + $0x48] sm:$0xff] }
 0x56e   : > { %v8297_v55 = vpop.f32.mrb[29].mxu0  ;;  %v6833_v22 = vmax.f32 %v6817_v16, 0.0  ;;  %v6826_v10 = vadd.f32 %v11419_v54, %v6803_v41  ;;  %v6838_v62 = vmax.f32 %v6822_v4, 0.0  ;;  %v7506_v41 = vld [vmem:[%s11878_s18 + $0x10] sm:$0xff]  ;;  %v7401_v16 = vld [vmem:[%s11876_s24 + $0x48] sm:$0xff] }
 0x56f   : > { %9225 = vset.pattern.permute.xlu1 %v9630_v9  ;;  %v7375_v56 = vadd.f32 %v11349_v50, %v7352_v39  ;;  %v6837_v50 = vmax.f32 %v6821_v17, 0.0  ;;  %v6813_v3 = vadd.f32 %v11419_v54, %v6790_v28  ;;  %v7390_v61 = vmax.f32 %v7374_v35, 0.0  ;;  %v8299_v7 = vpop.f32.mrb[30].mxu0 }
 0x570   : > { %7470 = vperm.xlu1 %9225, %v7388_v15   ;;  %v8298_v8 = vadd.f32 %v8297_v55, %v8296_v42  ;;  %v8300_v12 = vpop.f32.mrb[31].mxu0  ;;  %v6842_v23 = vmax.f32 %v6826_v10, 0.0  ;;  %v6831_v39 = vmax.f32 %v6815_v13, 0.0  ;;  %v6816_v35 = vadd.f32 %v11419_v54, %v6793_v30  ;;  %v7514_v10 = vld [vmem:[%s11878_s18 + $0x50] sm:$0xff] }
 0x571   : > { %v7391_v34 = vmax.f32 %v7375_v56, 0.0  ;;  %v6829_v14 = vmax.f32 %v6813_v3, 0.0  ;;  %v8301_v60 = vadd.f32 %v8300_v12, %v8299_v7 }
 0x572   : > { %v6832_v56 = vmax.f32 %v6816_v35, 0.0 }
 0x573   : > { %7485 = vperm.xlu0 %9224, %v7391_v34   ;;  %v6805_v44 = vmul.f32 %v8301_v60, %v11410_v51 }
 0x574   : > { %9226 = vset.pattern.permute.xlu1 %v9629_v27 }
 0x575   : > { %7569 = vperm.xlu1 %9226, %v7388_v15   ;;  %v6828_v48 = vadd.f32 %v11419_v54, %v6805_v44 }
 0x577   : > { %7445 = vperm.xlu0 %9224, %v7383_v45   ;;  %v6844_v57 = vmax.f32 %v6828_v48, 0.0  ;;  %v7508_v48 = vld [vmem:[%s11878_s18 + $0x20] sm:$0xff] }
 0x579   : > { %7573 = vperm.xlu1 %9226, %v7389_v26   ;;  %v6791_v26 = vmul.f32 %v11367_v46, %v11410_v51  ;;  %v6804_v46 = vmul.f32 %v8298_v8, %v11410_v51 }
 0x57b   : > { %6919 = vperm.xlu0 %9224, %v6837_v50   ;;  %v6814_v53 = vadd.f32 %v11419_v54, %v6791_v26 }
 0x57d   : > { %9227 = vset.pattern.permute.xlu1 %v9630_v9  ;;  %v6830_v15 = vmax.f32 %v6814_v53, 0.0 }
 0x57e   : > { %7480 = vperm.xlu1 %9227, %v7390_v61  }
 0x57f   : > { %6879 = vperm.xlu0 %9224, %v6829_v14  }
 0x582   : > { %9228 = vset.pattern.permute.xlu1 %v9629_v27 }
 0x583   : > { %7577 = vperm.xlu1 %9228, %v7390_v61   ;;  %6929 = vperm.xlu0 %9224, %v6839_v32   ;;  %v7393_v32 = vld [vmem:[%s11876_s24 + $0x8] sm:$0xff] }
 0x587   : > { %7581 = vperm.xlu1 %9228, %v7391_v34   ;;  %6934 = vperm.xlu0 %9224, %v6840_v2   ;;  %v6797_v34 = vmul.f32 %v11400_v1, %v11410_v51  ;;  %v7392_v2 = vld [vmem:[%s11876_s24] sm:$0xff] }
 0x589   : > { %v6820_v11 = vadd.f32 %v11419_v54, %v6797_v34 }
 0x58b   : > { %7549 = vperm.xlu1 %9228, %v7383_v45   ;;  %6939 = vperm.xlu0 %9224, %v6841_v24   ;;  %v6836_v28 = vmax.f32 %v6820_v11, 0.0  ;;  %v7400_v24 = vld [vmem:[%s11876_s24 + $0x40] sm:$0xff] }
 0x58f   : > { %9229 = vset.pattern.permute.xlu1 %v9630_v9  ;;  %6899 = vperm.xlu0 %9224, %v6833_v22   ;;  %v6827_v9 = vadd.f32 %v11419_v54, %v6804_v46  ;;  %v7402_v22 = vld [vmem:[%s11876_s24 + $0x50] sm:$0xff] }
 0x590   : > { %6924 = vperm.xlu1 %9229, %v6838_v62   ;;  %v7394_v62 = vld [vmem:[%s11876_s24 + $0x10] sm:$0xff] }
 0x591   : > { %v6843_v20 = vmax.f32 %v6827_v9, 0.0 }
 0x593   : > { %6944 = vperm.xlu0 %9224, %v6842_v23  }
 0x594   : > { %6884 = vperm.xlu1 %9229, %v6830_v15   ;;  %v7515_v15 = vld [vmem:[%s11878_s18 + $0x58] sm:$0xff] }
 0x597   : > { %6904 = vperm.xlu0 %9224, %v6834_v47  }
 0x598   : > { %6889 = vperm.xlu1 %9229, %v6831_v39  }
 0x59b   : > { %6949 = vperm.xlu0 %9224, %v6843_v20  }
 0x59c   : > { %6894 = vperm.xlu1 %9229, %v6832_v56   ;;  %v7516_v56 = vld [vmem:[%s11878_s18 + $0x60] sm:$0xff] }
 0x59f   : > { %6909 = vperm.xlu0 %9224, %v6835_v29   ;;  %v7395_v29 = vld [vmem:[%s11876_s24 + $0x18] sm:$0xff] }
 0x5a3   : > { %6954 = vperm.xlu0 %9224, %v6844_v57  }
 0x5a7   : > { %6914 = vperm.xlu0 %9224, %v6836_v28  }
 0x5ab   : > { %9230 = vset.pattern.permute.xlu0 %v9629_v27 }
 0x5b8   : > { %v7522_v17 = vpop.permute.xlu1 %7521  ;;  %v7411_v63 = vpop.permute.xlu0 %7410 }
 0x5b9   : > { %v7584_v46 = vmul.f32 %v7522_v17, %v7504_v38  ;;  %v7488_v23 = vmul.f32 %v7411_v63, %v7392_v2 }
 0x5bb   : > { %v7600_v28 = vadd.f32 %v7584_v46, %v7488_v23  ;;  %v7518_v46 = vld [vmem:[%s11878_s18 + $0x70] sm:$0xff] }
 0x5bd   : > { %v7416_v37 = vpop.permute.xlu1 %7415  ;;  %v7526_v58 = vpop.permute.xlu0 %7525 }
 0x5be   : > { %v7489_v26 = vmul.f32 %v7416_v37, %v7393_v32  ;;  %v7585_v4 = vmul.f32 %v7526_v58, %v7505_v59  ;;  %v7404_v37 = vld [vmem:[%s11876_s24 + $0x60] sm:$0xff]  ;;  %v7517_v58 = vld [vmem:[%s11878_s18 + $0x68] sm:$0xff] }
 0x5bf   : > { %v7509_v32 = vld [vmem:[%s11878_s18 + $0x28] sm:$0xff] }
 0x5c0   : > { %v7601_v44 = vadd.f32 %v7585_v4, %v7489_v26  ;;  %v7397_v26 = vld [vmem:[%s11876_s24 + $0x28] sm:$0xff] }
 0x5c1   : > { %v7421_v45 = vpop.permute.xlu1 %7420 }
 0x5c2   : > { %v11467_v1 = vpop.permute.xlu0 %7425  ;;  %v7490_v20 = vmul.f32 %v7421_v45, %v7394_v62 }
 0x5c6   : > { %v7530_v51 = vpop.permute.xlu1 %7529 }
 0x5c7   : > { %v7534_v21 = vpop.permute.xlu0 %7533  ;;  %v7586_v0 = vmul.f32 %v7530_v51, %v7506_v41  ;;  %v7396_v51 = vld [vmem:[%s11876_s24 + $0x20] sm:$0xff]  ;;  %v7617_v41 = vsel %vm7616_vm3, %v7600_v28, 0.0 }
 0x5c8   : > { %v7587_v63 = vmul.f32 %v7534_v21, %v7507_v36  ;;  %v7618_v21 = vsel %vm7616_vm3, %v7601_v44, 0.0  ;;  %v7398_v36 = vld [vmem:[%s11876_s24 + $0x30] sm:$0xff] }
 0x5c9   : > { %v7602_v17 = vadd.f32 %v7586_v0, %v7490_v20 }
 0x5cb   : > { %v11469_v19 = vpop.permute.xlu1 %7430 }
 0x5cc   : > { %v11471_v50 = vpop.permute.xlu0 %7435 }
 0x5d0   : > { %v11473_v3 = vpop.permute.xlu1 %7537 }
 0x5d1   : > { %v11475_v54 = vpop.permute.xlu0 %7541 }
 0x5d5   : > { %v11477_v42 = vpop.permute.xlu1 %7440 }
 0x5d8   : > { %v7451_v27 = vpop.permute.xlu0 %7450 }
 0x5d9   : > { %v7496_v30 = vmul.f32 %v7451_v27, %v7400_v24 }
 0x5da   : > { %v11479_v61 = vpop.permute.xlu1 %7545 }
 0x5dc   : > { %v7456_v55 = vpop.permute.xlu0 %7455 }
 0x5dd   : > { %v7497_v47 = vmul.f32 %v7456_v55, %v7401_v16 }
 0x5de   : > { %v7554_v25 = vpop.permute.xlu1 %7553 }
 0x5df   : > { %v7592_v9 = vmul.f32 %v7554_v25, %v7512_v43 }
 0x5e0   : > { %v7461_v14 = vpop.permute.xlu0 %7460 }
 0x5e1   : > { %v7498_v39 = vmul.f32 %v7461_v14, %v7402_v22  ;;  %v7608_v27 = vadd.f32 %v7592_v9, %v7496_v30 }
 0x5e2   : > { %v7558_v6 = vpop.permute.xlu1 %7557 }
 0x5e3   : > { %v7593_v53 = vmul.f32 %v7558_v6, %v7513_v5  ;;  %v7491_v6 = vmul.f32 %v11467_v1, %v7395_v29  ;;  %v7620_v1 = vsel %vm7616_vm3, %v7602_v17, 0.0  ;;  %v7638_v4 = vsel %vm7616_vm3, %v7608_v27, 0.0  ;;  %v7407_v29 = vld [vmem:[%s11876_s24 + $0x78] sm:$0xff] }
 0x5e4   : > { %v7466_v7 = vpop.permute.xlu0 %7465 }
 0x5e5   : > { %v7609_v57 = vadd.f32 %v7593_v53, %v7497_v47  ;;  %v7499_v55 = vmul.f32 %v7466_v7, %v7403_v18  ;;  %v7603_v24 = vadd.f32 %v7587_v63, %v7491_v6  ;;  %v7406_v53 = vld [vmem:[%s11876_s24 + $0x70] sm:$0xff] }
 0x5e6   : > { %v7562_v8 = vpop.permute.xlu1 %7561 }
 0x5e7   : > { %v7594_v35 = vmul.f32 %v7562_v8, %v7514_v10  ;;  %v7588_v8 = vmul.f32 %v11473_v3, %v7508_v48  ;;  %v7639_v59 = vsel %vm7616_vm3, %v7609_v57, 0.0  ;;  %v7492_v3 = vmul.f32 %v11469_v19, %v7396_v51  ;;  %v7510_v19 = vld [vmem:[%s11878_s18 + $0x30] sm:$0xff] }
 0x5e8   : > { %v7619_v10 = vadd.f32 %v7618_v21, %v7617_v41  ;;  %v7640_v62 = vadd.f32 %v7639_v59, %v7638_v4  ;;  %v7494_v57 = vmul.f32 %v11477_v42, %v7398_v36  ;;  %v7511_v42 = vld [vmem:[%s11878_s18 + $0x38] sm:$0xff]  ;;  %v6861_v41 = vld [vmem:[%s11879_s7 + $0x80] sm:$0xff]  ;;  %v6867_v36 = vld [vmem:[%s11879_s7 + $0xb0] sm:$0xff] }
 0x5e9   : > { %v7610_v25 = vadd.f32 %v7594_v35, %v7498_v39  ;;  %v7604_v23 = vadd.f32 %v7588_v8, %v7492_v3  ;;  %v7590_v35 = vmul.f32 %v11479_v61, %v7510_v19 }
 0x5ea   : > { %v7566_v12 = vpop.permute.xlu1 %7565  ;;  %v11481_v60 = vpop.permute.xlu0 %7475  ;;  %v7621_v30 = vadd.f32 %v7620_v1, %v7619_v10  ;;  %v6862_v1 = vld [vmem:[%s11879_s7 + $0x88] sm:$0xff] }
 0x5eb   : > { %v7595_v11 = vmul.f32 %v7566_v12, %v7515_v15  ;;  %v7405_v12 = vld [vmem:[%s11876_s24 + $0x68] sm:$0xff]  ;;  %v7641_v43 = vsel %vm7616_vm3, %v7610_v25, 0.0  ;;  %v7493_v15 = vmul.f32 %v11471_v50, %v7397_v26  ;;  %v7519_v50 = vld [vmem:[%s11878_s18 + $0x78] sm:$0xff]  ;;  %v7624_v48 = vsel %vm7616_vm3, %v7604_v23, 0.0  ;;  %v6863_v26 = vld [vmem:[%s11879_s7 + $0x90] sm:$0xff] }
 0x5ec   : > { %v7642_v47 = vadd.f32 %v7641_v43, %v7640_v62  ;;  %v6865_v43 = vld [vmem:[%s11879_s7 + $0xa0] sm:$0xff] }
 0x5ed   : > { %v7611_v38 = vadd.f32 %v7595_v11, %v7499_v55 }
 0x5ef   : > { %v7471_v40 = vpop.permute.xlu1 %7470 }
 0x5f0   : > { %v7500_v7 = vmul.f32 %v7471_v40, %v7404_v37  ;;  %v7501_v40 = vmul.f32 %v11481_v60, %v7405_v12  ;;  %v7643_v60 = vsel %vm7616_vm3, %v7611_v38, 0.0 }
 0x5f2   : > { %v11498_v33 = vpop.permute.xlu0 %7485 }
 0x5f3   : > { %v7503_v51 = vmul.f32 %v11498_v33, %v7407_v29 }
 0x5f4   : > { %v7570_v31 = vpop.permute.xlu1 %7569 }
 0x5f5   : > { %v7596_v14 = vmul.f32 %v7570_v31, %v7516_v56  ;;  %v7589_v31 = vmul.f32 %v11475_v54, %v7509_v32  ;;  %v7622_v54 = vsel %vm7616_vm3, %v7603_v24, 0.0 }
 0x5f6   : > { %v11524_v13 = vpop.permute.xlu0 %7445  ;;  %v7623_v28 = vadd.f32 %v7622_v54, %v7621_v30 }
 0x5f7   : > { %v7612_v22 = vadd.f32 %v7596_v14, %v7500_v7  ;;  %v7605_v56 = vadd.f32 %v7589_v31, %v7493_v15  ;;  %v7399_v14 = vld [vmem:[%s11876_s24 + $0x38] sm:$0xff] }
 0x5f8   : > { %v7574_v34 = vpop.permute.xlu1 %7573  ;;  %v7625_v25 = vadd.f32 %v7624_v48, %v7623_v28  ;;  %v7495_v38 = vmul.f32 %v11524_v13, %v7399_v14  ;;  %v6864_v13 = vld [vmem:[%s11879_s7 + $0x98] sm:$0xff]  ;;  %v6869_v28 = vld [vmem:[%s11879_s7 + $0xc0] sm:$0xff] }
 0x5f9   : > { %v7597_v2 = vmul.f32 %v7574_v34, %v7517_v58  ;;  %v7645_v44 = vsel %vm7616_vm3, %v7612_v22, 0.0  ;;  %v7644_v34 = vadd.f32 %v7643_v60, %v7642_v47  ;;  %v7606_v58 = vadd.f32 %v7590_v35, %v7494_v57  ;;  %v6868_v47 = vld [vmem:[%s11879_s7 + $0xb8] sm:$0xff]  ;;  %v6846_v57 = vld [vmem:[%s11879_s7 + $0x8] sm:$0xff] }
 0x5fa   : > { %v11547_v45 = vpop.permute.xlu0 %6919  ;;  %v7626_v6 = vsel %vm7616_vm3, %v7605_v56, 0.0  ;;  %v6845_v56 = vld [vmem:[%s11879_s7] sm:$0xff] }
 0x5fb   : > { %v7613_v0 = vadd.f32 %v7597_v2, %v7501_v40  ;;  %v7646_v17 = vadd.f32 %v7645_v44, %v7644_v34  ;;  %v7628_v33 = vsel %vm7616_vm3, %v7606_v58, 0.0  ;;  %v6866_v40 = vld [vmem:[%s11879_s7 + $0xa8] sm:$0xff]  ;;  %v6973_v31 = vmul.f32 %v11547_v45, %v6861_v41 }
 0x5fc   : > { %v6974_v19 = vmul.f32 %v11547_v45, %v6862_v1 }
 0x5fd   : > { %v7481_v5 = vpop.permute.xlu1 %7480  ;;  %v7647_v61 = vsel %vm7616_vm3, %v7613_v0, 0.0 }
 0x5fe   : > { %v11565_v16 = vpop.permute.xlu0 %6879  ;;  %v7502_v20 = vmul.f32 %v7481_v5, %v7406_v53  ;;  %v7648_v21 = vadd.f32 %v7647_v61, %v7646_v17  ;;  %v7627_v5 = vadd.f32 %v7626_v6, %v7625_v25 }
 0x5ff   : > { %v6957_v14 = vmul.f32 %v11565_v16, %v6845_v56 }
 0x600   : > { %v7629_v4 = vadd.f32 %v7628_v33, %v7627_v5  ;;  %v6854_v5 = vld [vmem:[%s11879_s7 + $0x48] sm:$0xff] }
 0x602   : > { %v7578_v9 = vpop.permute.xlu1 %7577  ;;  %v6930_v39 = vpop.permute.xlu0 %6929 }
 0x603   : > { %v7598_v18 = vmul.f32 %v7578_v9, %v7518_v46  ;;  %v6977_v30 = vmul.f32 %v6930_v39, %v6865_v43  ;;  %v6978_v54 = vmul.f32 %v6930_v39, %v6866_v40  ;;  %v6848_v39 = vld [vmem:[%s11879_s7 + $0x18] sm:$0xff]  ;;  %v6855_v43 = vld [vmem:[%s11879_s7 + $0x50] sm:$0xff] }
 0x605   : > { %v7614_v11 = vadd.f32 %v7598_v18, %v7502_v20  ;;  %v6847_v20 = vld [vmem:[%s11879_s7 + $0x10] sm:$0xff] }
 0x606   : > { %v7582_v63 = vpop.permute.xlu1 %7581  ;;  %v6935_v37 = vpop.permute.xlu0 %6934 }
 0x607   : > { %v7649_v27 = vsel %vm7616_vm3, %v7614_v11, 0.0  ;;  %v7599_v55 = vmul.f32 %v7582_v63, %v7519_v50  ;;  %v6979_v61 = vmul.f32 %v6935_v37, %v6867_v36  ;;  %v6980_v11 = vmul.f32 %v6935_v37, %v6868_v47  ;;  %v6849_v63 = vld [vmem:[%s11879_s7 + $0x20] sm:$0xff]  ;;  %v6850_v37 = vld [vmem:[%s11879_s7 + $0x28] sm:$0xff] }
 0x608   : > { %v7650_v12 = vadd.f32 %v7649_v27, %v7648_v21  ;;  %v6870_v27 = vld [vmem:[%s11879_s7 + $0xc8] sm:$0xff]  ;;  %v6853_v21 = vld [vmem:[%s11879_s7 + $0x40] sm:$0xff] }
 0x609   : > { %v7615_v8 = vadd.f32 %v7599_v55, %v7503_v51 }
 0x60a   : > { %v7550_v32 = vpop.permute.xlu1 %7549  ;;  %v11609_v59 = vpop.permute.xlu0 %6939 }
 0x60b   : > { %v7651_v7 = vsel %vm7616_vm3, %v7615_v8, 0.0  ;;  %v7591_v2 = vmul.f32 %v7550_v32, %v7511_v42  ;;  %v6981_v33 = vmul.f32 %v11609_v59, %v6869_v28  ;;  %v6875_v28 = vld [vmem:[%s11879_s7 + $0xf0] sm:$0xff] }
 0x60c   : > { %v7652_v24 = vadd.f32 %v7651_v7, %v7650_v12  ;;  %v6958_v12 = vmul.f32 %v11565_v16, %v6846_v57  ;;  %v8231_v7 = vld [vmem:[#allocation21] ss:$0 sm:$0xff]  ;;  %v6852_v16 = vld [vmem:[%s11879_s7 + $0x38] sm:$0xff] }
 0x60d   : > { %v7607_v3 = vadd.f32 %v7591_v2, %v7495_v38  ;;  %v6982_v2 = vmul.f32 %v11609_v59, %v6870_v27  ;;  %v6871_v59 = vld [vmem:[%s11879_s7 + $0xd0] sm:$0xff] }
 0x60e   : > { %v7653_v22 = vrot.slane %v7652_v24, 4  ;;  %v11632_v10 = vpop.permute.xlu0 %6899 }
 0x60f   : > { %v7630_v62 = vsel %vm7616_vm3, %v7607_v3, 0.0  ;;  %v6925_v53 = vpop.permute.xlu1 %6924  ;;  %v6966_v36 = vmul.f32 %v11632_v10, %v6854_v5 }
 0x610   : > { %v7654_v46 = vadd.f32 %v7653_v22, %v7652_v24  ;;  %v7631_v23 = vadd.f32 %v7630_v62, %v7629_v4  ;;  %v6975_v60 = vmul.f32 %v6925_v53, %v6863_v26  ;;  %v6976_v0 = vmul.f32 %v6925_v53, %v6864_v13  ;;  %v6851_v24 = vld [vmem:[%s11879_s7 + $0x30] sm:$0xff]  ;;  %v6872_v13 = vld [vmem:[%s11879_s7 + $0xd8] sm:$0xff] }
 0x611   : > { %v6965_v26 = vmul.f32 %v11632_v10, %v6853_v21 }
 0x612   : > { %v7655_v15 = vrot.slane %v7654_v46, 2  ;;  %v7632_v9 = vrot.slane %v7631_v23, 4  ;;  %v7015_v45 = vadd.f32 %v6975_v60, %v6973_v31  ;;  %v7028_v35 = vadd.f32 %v6976_v0, %v6974_v19  ;;  %v6945_v44 = vpop.permute.xlu0 %6944  ;;  %v6873_v60 = vld [vmem:[%s11879_s7 + $0xe0] sm:$0xff]  ;;  %v6874_v0 = vld [vmem:[%s11879_s7 + $0xe8] sm:$0xff] }
 0x613   : > { %v6885_v18 = vpop.permute.xlu1 %6884  ;;  %v6983_v47 = vmul.f32 %v6945_v44, %v6871_v59 }
 0x614   : > { %v7656_v34 = vadd.f32 %v7655_v15, %v7654_v46  ;;  %v7633_v29 = vadd.f32 %v7632_v9, %v7631_v23  ;;  %v7016_v50 = vadd.f32 %v7015_v45, %v6977_v30  ;;  %v7029_v48 = vadd.f32 %v7028_v35, %v6978_v54  ;;  %v6856_v45 = vld [vmem:[%s11879_s7 + $0x58] sm:$0xff] }
 0x615   : > { %v6959_v17 = vmul.f32 %v6885_v18, %v6847_v20  ;;  %v6960_v55 = vmul.f32 %v6885_v18, %v6848_v39  ;;  %v6984_v9 = vmul.f32 %v6945_v44, %v6872_v13 }
 0x616   : > { %v7657_v58 = vrot.slane %v7656_v34, 1  ;;  %v7634_v51 = vrot.slane %v7633_v29, 2  ;;  %v6905_v25 = vpop.permute.xlu0 %6904  ;;  %v7017_v42 = vadd.f32 %v7016_v50, %v6979_v61  ;;  %v7030_v6 = vadd.f32 %v7029_v48, %v6980_v11 }
 0x617   : > { %v6890_v8 = vpop.permute.xlu1 %6889  ;;  %v6989_v41 = vadd.f32 %v6959_v17, %v6957_v14  ;;  %v7002_v4 = vadd.f32 %v6960_v55, %v6958_v12  ;;  %v6967_v35 = vmul.f32 %v6905_v25, %v6855_v43  ;;  %v6968_v61 = vmul.f32 %v6905_v25, %v6856_v45  ;;  %v6876_v17 = vld [vmem:[%s11879_s7 + $0xf8] sm:$0xff]  ;;  %v6859_v12 = vld [vmem:[%s11879_s7 + $0x70] sm:$0xff] }
 0x618   : > { %v7635_v32 = vadd.f32 %v7634_v51, %v7633_v29  ;;  %v6961_v38 = vmul.f32 %v6890_v8, %v6849_v63  ;;  %v6962_v1 = vmul.f32 %v6890_v8, %v6850_v37  ;;  %v7658_v3 = vadd.f32 %v7657_v58, %v7656_v34  ;;  %v6857_v63 = vld [vmem:[%s11879_s7 + $0x60] sm:$0xff]  ;;  %v6858_v58 = vld [vmem:[%s11879_s7 + $0x68] sm:$0xff] }
 0x619   : > { %v7018_v31 = vadd.f32 %v7017_v42, %v6981_v33  ;;  %v7031_v19 = vadd.f32 %v7030_v6, %v6982_v2 }
 0x61a   : > { %v6950_v40 = vpop.permute.xlu0 %6949  ;;  %v7636_v22 = vrot.slane %v7635_v32, 1  ;;  %v6990_v62 = vadd.f32 %v6989_v41, %v6961_v38  ;;  %v11693_v46 = vadd.f32 %v8231_v7, %v7658_v3  ;;  %v7003_v23 = vadd.f32 %v7002_v4, %v6962_v1 }
 0x61b   : > { %v6895_v53 = vpop.permute.xlu1 %6894  ;;  %v7019_v29 = vadd.f32 %v7018_v31, %v6983_v47  ;;  %v7032_v50 = vadd.f32 %v7031_v19, %v6984_v9  ;;  %v6985_v48 = vmul.f32 %v6950_v40, %v6873_v60  ;;  %v6986_v57 = vmul.f32 %v6950_v40, %v6874_v0  ;;  %v7041_v31 = vld [vmem:[#allocation22] sm:$0x3]  ;;  %v7061_v47 = vld [vmem:[#allocation24] sm:$0x3] }
 0x61c   : > { %v6963_v30 = vmul.f32 %v6895_v53, %v6851_v24  ;;  %v6964_v54 = vmul.f32 %v6895_v53, %v6852_v16  ;;  %v7637_v15 = vadd.f32 %v7636_v22, %v7635_v32  ;;  %v7670_v34 = vrot.slane %v11693_v46, 7  ;;  %v6860_v32 = vld [vmem:[%s11879_s7 + $0x78] sm:$0xff] }
 0x61d   : > { %v7020_v37 = vadd.f32 %v7019_v29, %v6985_v48  ;;  %v7033_v14 = vadd.f32 %v7032_v50, %v6986_v57  ;;  %v7046_v60 = vrot.slane %v7041_v31, %v10966_v52  ;;  %v7050_v0 = vrot.slane %v7041_v31, %v10972_v49 }
 0x61e   : > { %v6991_v20 = vadd.f32 %v6990_v62, %v6963_v30  ;;  %v7004_v39 = vadd.f32 %v7003_v23, %v6964_v54  ;;  %v6910_v18 = vpop.permute.xlu0 %6909  ;;  %v11705_v56 = vadd.f32 %v8231_v7, %v7637_v15 }
 0x61f   : > { %v6969_v6 = vmul.f32 %v6910_v18, %v6857_v63  ;;  %v6970_v8 = vmul.f32 %v6910_v18, %v6858_v58  ;;  %v7070_v18 = vrot.slane %v7061_v47, %v10972_v49 }
 0x620   : > { %v6992_v10 = vadd.f32 %v6991_v20, %v6965_v26  ;;  %v7005_v11 = vadd.f32 %v7004_v39, %v6966_v36  ;;  %v7671_v44 = vsel %vm7082_vm4, %v7670_v34, %v11705_v56  ;;  %v7066_v39 = vrot.slane %v7061_v47, %v10966_v52 }
 0x621   : > { %v7674_v51 = vsel %vm7673_vm5, %v7671_v44, -inf }
 0x622   : > { %v6993_v27 = vadd.f32 %v6992_v10, %v6967_v35  ;;  %v7006_v55 = vadd.f32 %v7005_v11, %v6968_v61  ;;  %7675 = vmax.xlane.f32.xlu1 %v7674_v51  ;;  %v6955_v25 = vpop.permute.xlu0 %6954 }
 0x623   : > { %v6987_v21 = vmul.f32 %v6955_v25, %v6875_v28  ;;  %v6988_v42 = vmul.f32 %v6955_v25, %v6876_v17 }
 0x624   : > { %v6994_v7 = vadd.f32 %v6993_v27, %v6969_v6  ;;  %v7007_v2 = vadd.f32 %v7006_v55, %v6970_v8 }
 0x625   : > { %v7021_v33 = vadd.f32 %v7020_v37, %v6987_v21  ;;  %v7034_v38 = vadd.f32 %v7033_v14, %v6988_v42 }
 0x626   : > { %v6915_v5 = vpop.permute.xlu0 %6914 }
 0x627   : > { %v7022_v41 = vrot.slane %v7021_v33, 4  ;;  %v7035_v1 = vrot.slane %v7034_v38, 4  ;;  %v6971_v24 = vmul.f32 %v6915_v5, %v6859_v12  ;;  %v6972_v16 = vmul.f32 %v6915_v5, %v6860_v32 }
 0x629   : > { %v7023_v3 = vadd.f32 %v7022_v41, %v7021_v33  ;;  %v7036_v26 = vadd.f32 %v7035_v1, %v7034_v38  ;;  %v6995_v59 = vadd.f32 %v6994_v7, %v6971_v24  ;;  %v7008_v13 = vadd.f32 %v7007_v2, %v6972_v16  ;;  %v8212_v24 = vld [vmem:[#allocation9] ss:$0 sm:$0xff] }
 0x62b   : > { %v7024_v4 = vrot.slane %v7023_v3, 2  ;;  %v7037_v43 = vrot.slane %v7036_v26, 2  ;;  %v6996_v40 = vrot.slane %v6995_v59, 4  ;;  %v7009_v22 = vrot.slane %v7008_v13, 4 }
 0x62d   : > { %v7025_v19 = vadd.f32 %v7024_v4, %v7023_v3  ;;  %v7038_v62 = vadd.f32 %v7037_v43, %v7036_v26  ;;  %v6997_v53 = vadd.f32 %v6996_v40, %v6995_v59  ;;  %v7010_v23 = vadd.f32 %v7009_v22, %v7008_v13 }
 0x62f   : > { %v7026_v30 = vrot.slane %v7025_v19, 1  ;;  %v7039_v54 = vrot.slane %v7038_v62, 1  ;;  %v6998_v15 = vrot.slane %v6997_v53, 2  ;;  %v7011_v36 = vrot.slane %v7010_v23, 2 }
 0x631   : > { %v7027_v9 = vadd.f32 %v7026_v30, %v7025_v19  ;;  %v7040_v45 = vadd.f32 %v7039_v54, %v7038_v62  ;;  %v6999_v35 = vadd.f32 %v6998_v15, %v6997_v53  ;;  %v7012_v20 = vadd.f32 %v7011_v36, %v7010_v23 }
 0x633   : > { %v7000_v34 = vrot.slane %v6999_v35, 1  ;;  %v7013_v29 = vrot.slane %v7012_v20, 1  ;;  %v7055_v50 = vadd.f32 %v7046_v60, %v7027_v9  ;;  %v7056_v48 = vadd.f32 %v7050_v0, %v7040_v45 }
 0x635   : > { %v7001_v57 = vadd.f32 %v7000_v34, %v6999_v35  ;;  %v7014_v61 = vadd.f32 %v7013_v29, %v7012_v20  ;;  %v7059_v10 = vmax.f32 %v7055_v50, 0.0  ;;  %v7060_v11 = vmax.f32 %v7056_v48, 0.0 }
 0x637   : > { %v7053_v44 = vadd.f32 %v7046_v60, %v7001_v57  ;;  %v7054_v28 = vadd.f32 %v7050_v0, %v7014_v61  ;;  %v7075_v17 = vmul.f32 %v7066_v39, %v7059_v10  ;;  %v7076_v63 = vmul.f32 %v7070_v18, %v7060_v11 }
 0x639   : > { %v7057_v58 = vmax.f32 %v7053_v44, 0.0  ;;  %v7058_v51 = vmax.f32 %v7054_v28, 0.0  ;;  %v7081_v52 = vrot.slane %v7075_v17, 7  ;;  %v7084_v25 = vrot.slane %v7076_v63, 7 }
 0x63b   : > { %v7073_v27 = vmul.f32 %v7066_v39, %v7057_v58  ;;  %v7074_v55 = vmul.f32 %v7070_v18, %v7058_v51 }
 0x63d   : > { %v7083_v49 = vsel %vm7082_vm4, %v7081_v52, %v7073_v27  ;;  %v7085_v37 = vsel %vm7082_vm4, %v7084_v25, %v7074_v55 }
 0x63e   : > { %v7089_v14 = vsel %vm7088_vm6, %v7083_v49, 0.0  ;;  %v7090_v21 = vsel %vm7088_vm6, %v7085_v37, 0.0 }
 0x63f   : > { %v7091_v42 = vadd.f32 %v7090_v21, %v7089_v14 }
 0x641   : > { %7092 = vadd.xlane.f32.xlu1 %v7091_v42 }
 0x6af   : > { %v7676_v6 = vpop.xlane.xlu1 %7675 }
 0x6b0   : > { %v7678_v8 = vrot.slane %v7676_v6, 1  ;;  %v7681_v12 = vsub.f32 %v11705_v56, %v7676_v6 }
 0x6b2   : > { %v7682_v32 = vsub.f32 %v11693_v46, %v7678_v8  ;;  %v7683_v33 = vmul.f32 1.442695, %v7681_v12 }
 0x6b4   : > { %v7685_v38 = vmul.f32 1.442695, %v7682_v32 }
 0x6b6   : > { %9263 = vpow2.f32 %v7685_v38 }
 0x6b7   : > { %9265 = vpow2.f32 %v7683_v33 }
 0x6c0   : > { %v9264_v7 = vpop.eup %9263 }
 0x6c1   : > { %v7689_v2 = vrot.slane %v9264_v7, 7  ;;  %v9266_v5 = vpop.eup %9265 }
 0x6c3   : > { %v7690_v41 = vsel %vm7082_vm4, %v7689_v2, %v9266_v5 }
 0x6c4   : > { %v7692_v1 = vsel %vm7673_vm5, %v7690_v41, 0.0 }
 0x6c5   : > { %7693 = vadd.xlane.f32.xlu0 %v7692_v1 }
 0x6ce   : > { %v7093_v16 = vpop.xlane.xlu1 %7092 }
 0x6cf   : > { %v7101_v3 = vadd.f32 %v8212_v24, %v7093_v16 }
 0x6d1   : > { %9267 = vtanh.f32 %v7101_v3 }
 0x6db   : > { %v9268_v56 = vpop.eup %9267 }
 0x6dc   : > { %7104 = vst.msk [vmem:[%s11880_s6] sm:$0x3] %vm7103_vm7, %v9268_v56 }
 0x752   : > { %v7694_v46 = vpop.xlane.xlu0 %7693 }
 0x753   : > { %v7696_v26 = vrot.slane %v7694_v46, 1  ;;  %9269 = vrcp.f32 %v7694_v46 }
 0x755   : > { %9271 = vrcp.f32 %v7696_v26 }
 0x75d   : > { %v9270_v59 = vpop.eup %9269 }
 0x75e   : > { %v7700_v43 = vmul.f32 %v9270_v59, %v9266_v5 }
 0x75f   : > { %v9272_v13 = vpop.eup %9271 }
 0x760   : > { %v7702_v4 = vmul.f32 %v9272_v13, %v9264_v7 }
 0x762   : > { %v7705_v40 = vrot.slane %v7702_v4, 7 }
 0x764   : > { %v7706_v22 = vsel %vm7082_vm4, %v7705_v40, %v7700_v43 }
 0x765   : > { %7708 = vst.msk [vmem:[#allocation25] sm:$0x3] %vm7673_vm5, %v7706_v22 }
 0x766 PF: > { %p8733_p13 = scmp.eq.s32.totalorder %s9765_s27, 4  ;;  %s9631_s29 = smov [#allocation25]  }
 0x767   : > { %s7719_s12 = sshll.u32 %s9631_s29, 4  ;;  %s7720_s12 = int_to_ptr.vmem [resolvable:$true] %s7719_s12 }
 0x768   : > { %s9531_s21 = scalar_lea.vmem %s7720_s12, 32  ;;  %p9538_p10 = scmp.lt.s32.totalorder %s7720_s12, %s7720_s12 }
 0x769   : > { %p9532_p6 = scmp.ne.s32.totalorder %s7720_s12, %s9531_s21  ;;  %p9539_p12 = scmp.lt.s32.totalorder %s9531_s21, %s9531_s21 }
 0x76b   : > { %p9533_p11 = pnand %p9532_p6, %p8733_p13  ;;  %p9540_p4 = por %p9539_p12, %p9538_p10 }
 0x76d   : > { %p9534_p1 = pneg %p9533_p11 }
 0x76f   : > { %p9541_p0 = pnand %p9540_p4, %p9534_p1 }
 0x771   : > { %9544 = shalt.err (!%p9541_p0)
}
 0x772   : > { %s11881_s26 = sld [smem:[#allocation47_spill]] }
 0x778   : > { %s9545_s0 = scalar_lea.hbm %s11881_s26, 32 }
 0x779   : > { %p9546_p2 = scmp.ne.s32.totalorder %s11881_s26, %s9545_s0  ;;  %p9551_p9 = scmp.lt.u32.totalorder %s9545_s0, %s11881_s26 }
 0x77b   : > { %p9547_p7 = pnand %p9546_p2, %p8733_p13 }
 0x77d   : > { %p9548_p5 = pneg %p9547_p7 }
 0x77f   : > { %p9553_p3 = pnand %p9551_p9, %p9548_p5 }
 0x781   : > { %9556 = shalt.err (!%p9553_p3)
}
 0x782   : > { %8688 = dma.vmem_to_hbm [thread:$0]  (%p8733_p13), %s7720_s12, 32, %s11881_s26, [#allocation12]  }
 0x783   : > { %9598 = dma.done.wait (%p8733_p13), [#allocation12], 32  }
 0x784   : > { %9600 = vsyncadd (%p8733_p13), [#allocation12], 4294967264 }
 0x785 PF: > { %s11882_s3 = sld [smem:[#allocation33_spill]]  ;;  %s11883_s2 = sld [smem:[#allocation34_spill]] }
 0x786   : > { %s11884_s12 = smov %s9607_s25  ;;  %s11885_s25 = smov %s9611_s13 }
 0x78b   : > { %p44_p8 = scmp.ge.s32.totalorder %s11882_s3, 7   ;;  %s11886_s13 = smov %s11883_s2 }
 0x78d   :  { %46 = sbr.rel (!%p44_p8) target bundleno = 24 (0x18), region = 218 }
 0x794   :  { %7735 = vsyncpa [#allocation11], 1 }
 0x795   :  { %7737 = vsyncpa [#allocation11 + $0x1], 1 }
 0x796   :  { %7738 = vsyncpa [#allocation14], 1 }
 0x797   :  { %7740 = vsyncpa [#allocation14 + $0x1], 1 }
 0x798   :  { %7741 = vsyncpa [#allocation17], 1 }
 0x799   :  { %7743 = vsyncpa [#allocation17 + $0x1], 1 }
 0x79a   :  { %7744 = vsyncpa [#allocation20], 1 }
 0x79b   :  { %7745 = vsyncpa [#allocation23], 1 }
 0x79c   :  { %7746 = vsyncpa [#allocation12], 1 }
 0x79d   :  { %7748 = vsyncpa [#allocation12 + $0x1], 1 }

</bundles_post_ra>
